<compile_context>
chip_gen: v6e
topology: v6e:2x2x1
jax: 0.10.0
libtpu: 0.0.40
codegen_flags: <defaults>
</compile_context>

<pallas_src>
import functools

import jax
import jax.numpy as jnp
from jax import lax
from jax.experimental import pallas as pl
from jax.experimental.pallas import tpu as pltpu

GX = 8
GY = 6
HISTORY_LEN = 2

_LANES = 128
_VMEM_LIMIT_CONV = 16 * 1024 * 1024
_VMEM_LIMIT_HEAD = 16 * 1024 * 1024
_NEG = -1e9  # pad value for fc3 bias lanes (softmax-neutral)


def _round_up(x, m):
    return (x + m - 1) // m * m


# ---------------------------------------------------------------------------
# Pallas kernels
# ---------------------------------------------------------------------------
def _conv_pool_kernel(p_ref, w_ref, b_ref, o_ref, *, groups, slab):
    """matmul + bias + ReLU + maxpool over `groups` contiguous row-slabs."""
    y = jnp.dot(p_ref[...], w_ref[...], preferred_element_type=jnp.float32)
    y = jnp.maximum(y + b_ref[...], 0.0)
    pooled = y[0:slab]
    for g in range(1, groups):
        pooled = jnp.maximum(pooled, y[g * slab:(g + 1) * slab])
    o_ref[...] = pooled.astype(o_ref.dtype)


def conv_pool_call(patches, wmat, bvec, *, groups, slab):
    """Conv1 matmul with fused bias/ReLU/maxpool.

    patches: (n_img*groups*slab, K) bf16, rows ordered (img, window-offset,
    pooled-pos).  wmat: (K, 128) bf16 (OC zero-padded to 128 lanes).
    Returns (n_img*slab, 128) bf16 pooled conv output.
    """
    M, K = patches.shape
    rows_img = groups * slab
    assert M % rows_img == 0
    nimg = M // rows_img
    return pl.pallas_call(
        functools.partial(_conv_pool_kernel, groups=groups, slab=slab),
        out_shape=jax.ShapeDtypeStruct((nimg * slab, _LANES), jnp.bfloat16),
        grid=(nimg,),
        in_specs=[
            pl.BlockSpec((rows_img, K), lambda i: (i, 0)),
            pl.BlockSpec((K, _LANES), lambda i: (0, 0)),
            pl.BlockSpec((1, _LANES), lambda i: (0, 0)),
        ],
        out_specs=pl.BlockSpec((slab, _LANES), lambda i: (i, 0)),
        compiler_params=pltpu.CompilerParams(
            dimension_semantics=("parallel",),
            vmem_limit_bytes=_VMEM_LIMIT_CONV,
        ),
    )(patches, wmat, bvec)


def _conv_mm_kernel(p_ref, w_ref, b_ref, o_ref):
    y = jnp.dot(p_ref[0], w_ref[0], preferred_element_type=jnp.float32)
    y = jnp.maximum(y + b_ref[0], 0.0)
    o_ref[0] = y.astype(o_ref.dtype)


def conv2_merged_call(patches, wmats, bvecs):
    """Both second-layer convs in one pallas_call (grid step = branch)."""
    nb, M, K = patches.shape
    return pl.pallas_call(
        _conv_mm_kernel,
        out_shape=jax.ShapeDtypeStruct((nb, M, _LANES), jnp.bfloat16),
        grid=(nb,),
        in_specs=[
            pl.BlockSpec((1, M, K), lambda i: (i, 0, 0)),
            pl.BlockSpec((1, K, _LANES), lambda i: (i, 0, 0)),
            pl.BlockSpec((1, 1, _LANES), lambda i: (i, 0, 0)),
        ],
        out_specs=pl.BlockSpec((1, M, _LANES), lambda i: (i, 0, 0)),
        compiler_params=pltpu.CompilerParams(
            dimension_semantics=("parallel",),
            vmem_limit_bytes=_VMEM_LIMIT_CONV,
        ),
    )(patches, wmats, bvecs)


def _mlp_head_kernel(x_ref, w1_ref, b1_ref, w2_ref, b2_ref, w3_ref, b3_ref,
                     o_ref, acc_ref, *, softmax):
    t = pl.program_id(0)

    @pl.when(t == 0)
    def _():
        acc_ref[...] = jnp.zeros_like(acc_ref)

    h = jnp.dot(x_ref[...], w1_ref[...], preferred_element_type=jnp.float32)
    h = jnp.maximum(h + b1_ref[...], 0.0)
    acc_ref[...] += jnp.dot(h.astype(jnp.bfloat16), w2_ref[...],
                            preferred_element_type=jnp.float32)

    @pl.when(t == pl.num_programs(0) - 1)
    def _():
        h2 = jnp.maximum(acc_ref[...] + b2_ref[...], 0.0)
        y = jnp.dot(h2.astype(jnp.bfloat16), w3_ref[...],
                    preferred_element_type=jnp.float32) + b3_ref[...]
        if softmax:  # nn.Softmax(dim=1); padded lanes carry -1e9 bias -> exp=0
            m = jnp.max(y, axis=-1, keepdims=True)
            e = jnp.exp(y - m)
            y = e / jnp.sum(e, axis=-1, keepdims=True)
        o_ref[...] = y.astype(o_ref.dtype)


def mlp_head(x, w1, b1, w2, b2, w3, b3, *, softmax, tn=768):
    """Fused fc1(relu)->fc2(relu)->fc3(optional softmax).

    The grid tiles the fc1 output / fc2 contraction dim (1536) in two 768-wide
    steps so the bf16 weight streams pipeline; fc2 partials accumulate in an
    f32 VMEM scratch and fc3(+softmax) runs on the final step.  Biases are
    (1,H) blocks broadcast in-kernel; fc3 is padded to 128 lanes.
    """
    B, K = x.shape
    H1 = w1.shape[1]
    H2 = w2.shape[1]
    n_out = w3.shape[1]          # 128 (lane-padded)
    assert H1 % tn == 0
    n_t = H1 // tn
    b_pad = _round_up(max(B, 8), 8)
    xp = jnp.pad(x, ((0, b_pad - B), (0, 0)))
    out = pl.pallas_call(
        functools.partial(_mlp_head_kernel, softmax=softmax),
        out_shape=jax.ShapeDtypeStruct((b_pad, n_out), jnp.float32),
        grid=(n_t,),
        in_specs=[
            pl.BlockSpec((b_pad, K), lambda t: (0, 0)),
            pl.BlockSpec((K, tn), lambda t: (0, t)),
            pl.BlockSpec((1, tn), lambda t: (0, t)),
            pl.BlockSpec((tn, H2), lambda t: (t, 0)),
            pl.BlockSpec((1, H2), lambda t: (0, 0)),
            pl.BlockSpec((H2, n_out), lambda t: (0, 0)),
            pl.BlockSpec((1, n_out), lambda t: (0, 0)),
        ],
        out_specs=pl.BlockSpec((b_pad, n_out), lambda t: (0, 0)),
        scratch_shapes=[pltpu.VMEM((b_pad, H2), jnp.float32)],
        compiler_params=pltpu.CompilerParams(
            dimension_semantics=("arbitrary",),
            vmem_limit_bytes=_VMEM_LIMIT_HEAD,
        ),
    )(xp, w1, b1, w2, b2, w3, b3)
    return out[:B]


# ---------------------------------------------------------------------------
# Plain-JAX glue: NHWC im2col (single fused materialization), maxpool
# ---------------------------------------------------------------------------
def _im2col_nhwc(x, k, s):
    """x: (B,H,W,C) -> (B*OH*OW, k*k*C) with (kh,kw,C) feature order, true K."""
    B, H, W, C = x.shape
    oh = (H - k) // s + 1
    ow = (W - k) // s + 1
    cols = []
    for di in range(k):
        for dj in range(k):
            cols.append(x[:, di:di + s * (oh - 1) + 1:s,
                          dj:dj + s * (ow - 1) + 1:s, :])
    patches = jnp.concatenate(cols, axis=-1)
    return patches.reshape(B * oh * ow, k * k * C), oh, ow


def _im2col_pool_grouped(x, k, s, p):
    """im2col whose rows are ordered (b, pool-window-offset, pooled-pos).

    Lets the conv kernel maxpool by taking a max over p*p contiguous row
    slabs of size ph*pw.  Conv rows beyond the pooled region (MaxPool floor
    truncation) are never generated.
    """
    B, H, W, C = x.shape
    oh = (H - k) // s + 1
    ow = (W - k) // s + 1
    ph, pw = oh // p, ow // p
    step = p * s
    groups = []
    for wy in range(p):
        for wx in range(p):
            cols = []
            for dy in range(k):
                for dx in range(k):
                    r0 = wy * s + dy
                    c0 = wx * s + dx
                    cols.append(x[:, r0:r0 + step * (ph - 1) + 1:step,
                                  c0:c0 + step * (pw - 1) + 1:step, :])
            groups.append(jnp.concatenate(cols, axis=-1))    # (B, ph, pw, K)
    pat = jnp.stack(groups, axis=1)                          # (B, p*p, ph, pw, K)
    return pat.reshape(B * p * p * ph * pw, k * k * C), ph, pw


def conv1_pool(x_nhwc, wmat, bvec, oc, k, s, p):
    """Conv2d(VALID,stride)+ReLU+MaxPool on NHWC input, pooled in-kernel."""
    B = x_nhwc.shape[0]
    patches, ph, pw = _im2col_pool_grouped(x_nhwc, k, s, p)
    out = conv_pool_call(patches, wmat, bvec, groups=p * p, slab=ph * pw)
    return out[:, :oc].reshape(B, ph, pw, oc)                # NHWC pooled


def maxpool2d_nhwc(x, p):
    B, H, W, C = x.shape
    hc, wc = (H // p) * p, (W // p) * p
    x = x[:, :hc, :wc, :].reshape(B, hc // p, p, wc // p, p, C)
    return jnp.max(x, axis=(2, 4))


def conv2_stage(pp, x_obs_p, x_cue_p):
    """Both second-layer convs (one pallas_call) + pool/flatten/concat (XLA)."""
    B = x_obs_p.shape[0]
    pat_o, oh_o, ow_o = _im2col_nhwc(x_obs_p, 5, 2)          # (B*16, 400)
    pat_c, oh_c, ow_c = _im2col_nhwc(x_cue_p, 5, 2)          # (B*144, 400)
    m = pat_c.shape[0]
    pat_o = jnp.pad(pat_o, ((0, m - pat_o.shape[0]), (0, 0)))
    patches = jnp.stack([pat_o, pat_c], axis=0)              # (2, m, 400)
    out = conv2_merged_call(patches, pp["conv2_w"], pp["conv2_b"])
    y_o = out[0, :B * oh_o * ow_o, :48].reshape(B, oh_o, ow_o, 48)
    y_c = out[1, :B * oh_c * ow_c, :16].reshape(B, oh_c, ow_c, 16)
    y_o = maxpool2d_nhwc(y_o, 2).reshape(B, -1)              # (B, 192)
    y_c = maxpool2d_nhwc(y_c, 2).reshape(B, -1)              # (B, 576)
    return jnp.concatenate([y_o, y_c], axis=1)               # (B, 768)


# ---------------------------------------------------------------------------
# Parameter packing (host-side, once)
# ---------------------------------------------------------------------------
def _pack_conv(w, b):
    """Torch (OC,C,kh,kw) -> bf16 (K, 128) im2col matrix + f32 (1,128) bias."""
    oc, c, k, _ = w.shape
    kk = k * k * c
    wmat = jnp.transpose(w, (2, 3, 1, 0)).reshape(kk, oc)    # rows = (kh, kw, C)
    wmat = jnp.pad(wmat, ((0, 0), (0, _LANES - oc)))
    bvec = jnp.pad(b, (0, _LANES - oc)).reshape(1, _LANES)
    return wmat.astype(jnp.bfloat16), bvec.astype(jnp.float32)


def prepare_params(p):
    """One-time packing of torch-layout params into kernel-friendly layouts."""
    q = {}
    q["obs1_w"], q["obs1_b"] = _pack_conv(p["obs_w1"], p["obs_b1"])
    q["cue1_w"], q["cue1_b"] = _pack_conv(p["cue_w1"], p["cue_b1"])
    o2w, o2b = _pack_conv(p["obs_w2"], p["obs_b2"])
    c2w, c2b = _pack_conv(p["cue_w2"], p["cue_b2"])
    q["conv2_w"] = jnp.stack([o2w, c2w], axis=0)             # (2, 400, 128)
    q["conv2_b"] = jnp.stack([o2b, c2b], axis=0)             # (2, 1, 128)
    # fc1 rows permuted once: torch flattens conv features (C,H,W); the NHWC
    # pipeline flattens them (H,W,C).
    perm_obs = jnp.arange(48 * 2 * 2).reshape(48, 2, 2).transpose(1, 2, 0).reshape(-1)
    perm_cue = 192 + jnp.arange(16 * 6 * 6).reshape(16, 6, 6).transpose(1, 2, 0).reshape(-1)
    perm = jnp.concatenate([perm_obs, perm_cue])
    q["fc1_w"] = p["fc1_w"][perm].astype(jnp.bfloat16)
    q["fc1_b"] = p["fc1_b"].reshape(1, -1).astype(jnp.float32)
    q["fc2_w"] = p["fc2_w"].astype(jnp.bfloat16)
    q["fc2_b"] = p["fc2_b"].reshape(1, -1).astype(jnp.float32)
    n_act = p["fc3_w"].shape[1]
    q["fc3_w"] = jnp.pad(p["fc3_w"],
                         ((0, 0), (0, _LANES - n_act))).astype(jnp.bfloat16)
    q["fc3_b"] = jnp.concatenate(
        [p["fc3_b"].astype(jnp.float32),
         jnp.full((_LANES - n_act,), _NEG, jnp.float32)]).reshape(1, _LANES)
    return q


# ---------------------------------------------------------------------------
# AgentNet forward
# ---------------------------------------------------------------------------
def agent_net_forward(pp, i_obs, i_cue, i_pos, *, critic_flag=False):
    del i_pos  # the reference PyTorch forward never consumes the position input
    obs = (i_obs - 0.5).transpose(0, 2, 3, 1).astype(jnp.bfloat16)   # NHWC bf16
    cue = (i_cue - 0.5).transpose(0, 2, 3, 1).astype(jnp.bfloat16)   # NHWC bf16

    # obs: Conv(6->16,k5,s3)+ReLU+MaxPool4  |  cue: Conv(3->16,k5,s3)+ReLU+MaxPool2
    x_obs = conv1_pool(obs, pp["obs1_w"], pp["obs1_b"], 16, 5, 3, 4)  # (B,12,12,16)
    x_cue = conv1_pool(cue, pp["cue1_w"], pp["cue1_b"], 16, 5, 3, 2)  # (B,28,28,16)

    # second convs (merged call) + pool + flatten + concat -> (B, 768)
    feat = conv2_stage(pp, x_obs, x_cue)

    out = mlp_head(feat,
                   pp["fc1_w"], pp["fc1_b"],
                   pp["fc2_w"], pp["fc2_b"],
                   pp["fc3_w"], pp["fc3_b"],
                   softmax=not critic_flag)
    return out[:, :GX * GY]


def init_params(key):
    """Deterministic PyTorch-default-like uniform(-1/sqrt(fan_in), 1/sqrt(fan_in))."""
    def uni(k, shape, fan_in):
        bound = float(fan_in) ** -0.5
        return jax.random.uniform(k, shape, jnp.float32, -bound, bound)

    ks = jax.random.split(key, 14)
    p = {}
    p["obs_w1"] = uni(ks[0], (16, 3 * HISTORY_LEN, 5, 5), 3 * HISTORY_LEN * 25)
    p["obs_b1"] = uni(ks[1], (16,), 3 * HISTORY_LEN * 25)
    p["obs_w2"] = uni(ks[2], (48, 16, 5, 5), 16 * 25)
    p["obs_b2"] = uni(ks[3], (48,), 16 * 25)
    p["cue_w1"] = uni(ks[4], (16, 3, 5, 5), 3 * 25)
    p["cue_b1"] = uni(ks[5], (16,), 3 * 25)
    p["cue_w2"] = uni(ks[6], (16, 16, 5, 5), 16 * 25)
    p["cue_b2"] = uni(ks[7], (16,), 16 * 25)
    # Linear weights stored transposed as (in_features, out_features).
    p["fc1_w"] = uni(ks[8], (768, 1536), 768)
    p["fc1_b"] = uni(ks[9], (1536,), 768)
    p["fc2_w"] = uni(ks[10], (1536, 512), 1536)
    p["fc2_b"] = uni(ks[11], (512,), 1536)
    p["fc3_w"] = uni(ks[12], (512, GX * GY), 512)
    p["fc3_b"] = uni(ks[13], (GX * GY,), 512)
    return p


def reference_forward(p, i_obs, i_cue, *, critic_flag=False):
    """Plain-JAX f32 reference matching the PyTorch module semantics."""
    def conv(x, w, b, s):
        y = lax.conv_general_dilated(x, w, (s, s), "VALID",
                                     dimension_numbers=("NCHW", "OIHW", "NCHW"))
        return jnp.maximum(y + b[None, :, None, None], 0.0)

    def pool(x, k):
        B, C, H, W = x.shape
        x = x[:, :, :H // k * k, :W // k * k].reshape(B, C, H // k, k, W // k, k)
        return jnp.max(x, axis=(3, 5))

    x = pool(conv(i_obs - 0.5, p["obs_w1"], p["obs_b1"], 3), 4)
    x = pool(conv(x, p["obs_w2"], p["obs_b2"], 2), 2)
    x = x.reshape(x.shape[0], -1)
    y = pool(conv(i_cue - 0.5, p["cue_w1"], p["cue_b1"], 3), 2)
    y = pool(conv(y, p["cue_w2"], p["cue_b2"], 2), 2)
    y = y.reshape(y.shape[0], -1)
    f = jnp.concatenate([x, y], axis=1)
    h = jnp.maximum(f @ p["fc1_w"] + p["fc1_b"], 0.0)
    h = jnp.maximum(h @ p["fc2_w"] + p["fc2_b"], 0.0)
    o = h @ p["fc3_w"] + p["fc3_b"]
    return jax.nn.softmax(o, axis=1) if not critic_flag else o


if __name__ == "__main__":
    key = jax.random.PRNGKey(0)
    kp, ko, kc, kq = jax.random.split(key, 4)
    params = init_params(kp)
    packed = prepare_params(params)

    # Spatial sizes chosen so flattened features = 48*2*2 + 16*6*6 = 768
    # (matches nn.Linear(768, 1536)).
    B = 2
    i_obs = jax.random.uniform(ko, (B, 3 * HISTORY_LEN, 150, 150), jnp.float32)
    i_cue = jax.random.uniform(kc, (B, 3, 170, 170), jnp.float32)
    i_pos = jax.random.uniform(kq, (B, 2), jnp.float32)

    fwd = jax.jit(functools.partial(agent_net_forward, critic_flag=False))
    out = jax.block_until_ready(fwd(packed, i_obs, i_cue, i_pos))

    assert out.shape == (B, GX * GY), out.shape
    assert bool(jnp.all(jnp.isfinite(out)))
    # Actor head: rows are softmax distributions.
    assert bool(jnp.all(jnp.abs(jnp.sum(out, axis=1) - 1.0) < 1e-3))
    # Loose check vs the f32 plain-JAX reference (bf16 streaming in the Pallas
    # path introduces small, expected drift).
    ref = reference_forward(params, i_obs, i_cue, critic_flag=False)
    assert float(jnp.max(jnp.abs(out - ref))) < 2e-2
    print("KERNEL_OK")
</pallas_src>

<mosaic_0001>
module attributes {stable_mosaic.version = 11 : i64} {
  func.func @_conv_pool_kernel(%arg0: i32, %arg1: memref<3136x75xbf16, #tpu.memory_space<vmem>>, %arg2: memref<75x128xbf16, #tpu.memory_space<vmem>>, %arg3: memref<1x128xf32, #tpu.memory_space<vmem>>, %arg4: memref<784x128xbf16, #tpu.memory_space<vmem>>) attributes {dimension_semantics = [#tpu.dimension_semantics<parallel>], iteration_bounds = array<i64: 2>, scalar_prefetch = 0 : i64, scratch_operands = 0 : i64, tpu.core_type = #tpu.core_type<tc>, window_params = [{transform_indices = @transform_0, window_bounds = array<i64: 3136, 75>}, {pipeline_mode = #tpu.pipeline_mode<synchronous>, transform_indices = @transform_1, window_bounds = array<i64: 75, 128>}, {pipeline_mode = #tpu.pipeline_mode<synchronous>, transform_indices = @transform_2, window_bounds = array<i64: 1, 128>}, {transform_indices = @transform_3, window_bounds = array<i64: 784, 128>}]} {
    %c0 = arith.constant 0 : index
    %c0_0 = arith.constant 0 : index
    %0 = vector.load %arg1[%c0, %c0_0] : memref<3136x75xbf16, #tpu.memory_space<vmem>>, vector<3136x75xbf16>
    %c0_1 = arith.constant 0 : index
    %c0_2 = arith.constant 0 : index
    %1 = vector.load %arg2[%c0_1, %c0_2] : memref<75x128xbf16, #tpu.memory_space<vmem>>, vector<75x128xbf16>
    %cst = arith.constant dense<0.000000e+00> : vector<3136x128xf32>
    %2 = tpu.matmul %0, %1, %cst {dimension_numbers = #tpu.dot_dimension_numbers<[1], [0], [0], [1], [0, 0, 1, 1], [], []>} : vector<3136x75xbf16>, vector<75x128xbf16>, vector<3136x128xf32> -> vector<3136x128xf32>
    %c0_3 = arith.constant 0 : index
    %c0_4 = arith.constant 0 : index
    %3 = vector.load %arg3[%c0_3, %c0_4] : memref<1x128xf32, #tpu.memory_space<vmem>>, vector<1x128xf32>
    %4 = vector.broadcast %3 : vector<1x128xf32> to vector<3136x128xf32>
    %5 = arith.addf %2, %4 : vector<3136x128xf32>
    %cst_5 = arith.constant 0.000000e+00 : f32
    %6 = vector.broadcast %cst_5 : f32 to vector<3136x128xf32>
    %7 = arith.maximumf %5, %6 : vector<3136x128xf32>
    %8 = vector.extract_strided_slice %7 {offsets = [0, 0], sizes = [784, 128], strides = [1, 1]} : vector<3136x128xf32> to vector<784x128xf32>
    %9 = vector.extract_strided_slice %7 {offsets = [784, 0], sizes = [784, 128], strides = [1, 1]} : vector<3136x128xf32> to vector<784x128xf32>
    %10 = arith.maximumf %8, %9 : vector<784x128xf32>
    %11 = vector.extract_strided_slice %7 {offsets = [1568, 0], sizes = [784, 128], strides = [1, 1]} : vector<3136x128xf32> to vector<784x128xf32>
    %12 = arith.maximumf %10, %11 : vector<784x128xf32>
    %13 = vector.extract_strided_slice %7 {offsets = [2352, 0], sizes = [784, 128], strides = [1, 1]} : vector<3136x128xf32> to vector<784x128xf32>
    %14 = arith.maximumf %12, %13 : vector<784x128xf32>
    %15 = arith.truncf %14 : vector<784x128xf32> to vector<784x128xbf16>
    %c0_6 = arith.constant 0 : index
    %c0_7 = arith.constant 0 : index
    %16 = vector.load %arg4[%c0_6, %c0_7] : memref<784x128xbf16, #tpu.memory_space<vmem>>, vector<784x128xbf16>
    tpu.vector_store %arg4[%c0_6, %c0_7], %15 {strides = array<i32>} : memref<784x128xbf16, #tpu.memory_space<vmem>>, vector<784x128xbf16>,
    return
  }
  func.func @transform_0(%arg0: i32) -> (i32, i32) {
    %c0_i32 = arith.constant 0 : i32
    %c0_i32_0 = arith.constant 0 : i32
    return %arg0, %c0_i32 : i32, i32
  }
  func.func @transform_1(%arg0: i32) -> (i32, i32) {
    %c0_i32 = arith.constant 0 : i32
    %c0_i32_0 = arith.constant 0 : i32
    %c0_i32_1 = arith.constant 0 : i32
    return %c0_i32, %c0_i32_0 : i32, i32
  }
  func.func @transform_2(%arg0: i32) -> (i32, i32) {
    %c0_i32 = arith.constant 0 : i32
    %c0_i32_0 = arith.constant 0 : i32
    %c0_i32_1 = arith.constant 0 : i32
    return %c0_i32, %c0_i32_0 : i32, i32
  }
  func.func @transform_3(%arg0: i32) -> (i32, i32) {
    %c0_i32 = arith.constant 0 : i32
    %c0_i32_0 = arith.constant 0 : i32
    return %arg0, %c0_i32 : i32, i32
  }
}

module attributes {stable_mosaic.version = 11 : i64} {
  func.func @_conv_pool_kernel(%arg0: i32, %arg1: memref<2304x150xbf16, #tpu.memory_space<vmem>>, %arg2: memref<150x128xbf16, #tpu.memory_space<vmem>>, %arg3: memref<1x128xf32, #tpu.memory_space<vmem>>, %arg4: memref<144x128xbf16, #tpu.memory_space<vmem>>) attributes {dimension_semantics = [#tpu.dimension_semantics<parallel>], iteration_bounds = array<i64: 2>, scalar_prefetch = 0 : i64, scratch_operands = 0 : i64, tpu.core_type = #tpu.core_type<tc>, window_params = [{transform_indices = @transform_0, window_bounds = array<i64: 2304, 150>}, {pipeline_mode = #tpu.pipeline_mode<synchronous>, transform_indices = @transform_1, window_bounds = array<i64: 150, 128>}, {pipeline_mode = #tpu.pipeline_mode<synchronous>, transform_indices = @transform_2, window_bounds = array<i64: 1, 128>}, {transform_indices = @transform_3, window_bounds = array<i64: 144, 128>}]} {
    %c0 = arith.constant 0 : index
    %c0_0 = arith.constant 0 : index
    %0 = vector.load %arg1[%c0, %c0_0] : memref<2304x150xbf16, #tpu.memory_space<vmem>>, vector<2304x150xbf16>
    %c0_1 = arith.constant 0 : index
    %c0_2 = arith.constant 0 : index
    %1 = vector.load %arg2[%c0_1, %c0_2] : memref<150x128xbf16, #tpu.memory_space<vmem>>, vector<150x128xbf16>
    %cst = arith.constant dense<0.000000e+00> : vector<2304x128xf32>
    %2 = tpu.matmul %0, %1, %cst {dimension_numbers = #tpu.dot_dimension_numbers<[1], [0], [0], [1], [0, 0, 1, 1], [], []>} : vector<2304x150xbf16>, vector<150x128xbf16>, vector<2304x128xf32> -> vector<2304x128xf32>
    %c0_3 = arith.constant 0 : index
    %c0_4 = arith.constant 0 : index
    %3 = vector.load %arg3[%c0_3, %c0_4] : memref<1x128xf32, #tpu.memory_space<vmem>>, vector<1x128xf32>
    %4 = vector.broadcast %3 : vector<1x128xf32> to vector<2304x128xf32>
    %5 = arith.addf %2, %4 : vector<2304x128xf32>
    %cst_5 = arith.constant 0.000000e+00 : f32
    %6 = vector.broadcast %cst_5 : f32 to vector<2304x128xf32>
    %7 = arith.maximumf %5, %6 : vector<2304x128xf32>
    %8 = vector.extract_strided_slice %7 {offsets = [0, 0], sizes = [144, 128], strides = [1, 1]} : vector<2304x128xf32> to vector<144x128xf32>
    %9 = vector.extract_strided_slice %7 {offsets = [144, 0], sizes = [144, 128], strides = [1, 1]} : vector<2304x128xf32> to vector<144x128xf32>
    %10 = arith.maximumf %8, %9 : vector<144x128xf32>
    %11 = vector.extract_strided_slice %7 {offsets = [288, 0], sizes = [144, 128], strides = [1, 1]} : vector<2304x128xf32> to vector<144x128xf32>
    %12 = arith.maximumf %10, %11 : vector<144x128xf32>
    %13 = vector.extract_strided_slice %7 {offsets = [432, 0], sizes = [144, 128], strides = [1, 1]} : vector<2304x128xf32> to vector<144x128xf32>
    %14 = arith.maximumf %12, %13 : vector<144x128xf32>
    %15 = vector.extract_strided_slice %7 {offsets = [576, 0], sizes = [144, 128], strides = [1, 1]} : vector<2304x128xf32> to vector<144x128xf32>
    %16 = arith.maximumf %14, %15 : vector<144x128xf32>
    %17 = vector.extract_strided_slice %7 {offsets = [720, 0], sizes = [144, 128], strides = [1, 1]} : vector<2304x128xf32> to vector<144x128xf32>
    %18 = arith.maximumf %16, %17 : vector<144x128xf32>
    %19 = vector.extract_strided_slice %7 {offsets = [864, 0], sizes = [144, 128], strides = [1, 1]} : vector<2304x128xf32> to vector<144x128xf32>
    %20 = arith.maximumf %18, %19 : vector<144x128xf32>
    %21 = vector.extract_strided_slice %7 {offsets = [1008, 0], sizes = [144, 128], strides = [1, 1]} : vector<2304x128xf32> to vector<144x128xf32>
    %22 = arith.maximumf %20, %21 : vector<144x128xf32>
    %23 = vector.extract_strided_slice %7 {offsets = [1152, 0], sizes = [144, 128], strides = [1, 1]} : vector<2304x128xf32> to vector<144x128xf32>
    %24 = arith.maximumf %22, %23 : vector<144x128xf32>
    %25 = vector.extract_strided_slice %7 {offsets = [1296, 0], sizes = [144, 128], strides = [1, 1]} : vector<2304x128xf32> to vector<144x128xf32>
    %26 = arith.maximumf %24, %25 : vector<144x128xf32>
    %27 = vector.extract_strided_slice %7 {offsets = [1440, 0], sizes = [144, 128], strides = [1, 1]} : vector<2304x128xf32> to vector<144x128xf32>
    %28 = arith.maximumf %26, %27 : vector<144x128xf32>
    %29 = vector.extract_strided_slice %7 {offsets = [1584, 0], sizes = [144, 128], strides = [1, 1]} : vector<2304x128xf32> to vector<144x128xf32>
    %30 = arith.maximumf %28, %29 : vector<144x128xf32>
    %31 = vector.extract_strided_slice %7 {offsets = [1728, 0], sizes = [144, 128], strides = [1, 1]} : vector<2304x128xf32> to vector<144x128xf32>
    %32 = arith.maximumf %30, %31 : vector<144x128xf32>
    %33 = vector.extract_strided_slice %7 {offsets = [1872, 0], sizes = [144, 128], strides = [1, 1]} : vector<2304x128xf32> to vector<144x128xf32>
    %34 = arith.maximumf %32, %33 : vector<144x128xf32>
    %35 = vector.extract_strided_slice %7 {offsets = [2016, 0], sizes = [144, 128], strides = [1, 1]} : vector<2304x128xf32> to vector<144x128xf32>
    %36 = arith.maximumf %34, %35 : vector<144x128xf32>
    %37 = vector.extract_strided_slice %7 {offsets = [2160, 0], sizes = [144, 128], strides = [1, 1]} : vector<2304x128xf32> to vector<144x128xf32>
    %38 = arith.maximumf %36, %37 : vector<144x128xf32>
    %39 = arith.truncf %38 : vector<144x128xf32> to vector<144x128xbf16>
    %c0_6 = arith.constant 0 : index
    %c0_7 = arith.constant 0 : index
    %40 = vector.load %arg4[%c0_6, %c0_7] : memref<144x128xbf16, #tpu.memory_space<vmem>>, vector<144x128xbf16>
    tpu.vector_store %arg4[%c0_6, %c0_7], %39 {strides = array<i32>} : memref<144x128xbf16, #tpu.memory_space<vmem>>, vector<144x128xbf16>,
    return
  }
  func.func @transform_0(%arg0: i32) -> (i32, i32) {
    %c0_i32 = arith.constant 0 : i32
    %c0_i32_0 = arith.constant 0 : i32
    return %arg0, %c0_i32 : i32, i32
  }
  func.func @transform_1(%arg0: i32) -> (i32, i32) {
    %c0_i32 = arith.constant 0 : i32
    %c0_i32_0 = arith.constant 0 : i32
    %c0_i32_1 = arith.constant 0 : i32
    return %c0_i32, %c0_i32_0 : i32, i32
  }
  func.func @transform_2(%arg0: i32) -> (i32, i32) {
    %c0_i32 = arith.constant 0 : i32
    %c0_i32_0 = arith.constant 0 : i32
    %c0_i32_1 = arith.constant 0 : i32
    return %c0_i32, %c0_i32_0 : i32, i32
  }
  func.func @transform_3(%arg0: i32) -> (i32, i32) {
    %c0_i32 = arith.constant 0 : i32
    %c0_i32_0 = arith.constant 0 : i32
    return %arg0, %c0_i32 : i32, i32
  }
}

module attributes {stable_mosaic.version = 11 : i64} {
  func.func @_conv_mm_kernel(%arg0: i32, %arg1: memref<1x288x400xbf16, #tpu.memory_space<vmem>>, %arg2: memref<1x400x128xbf16, #tpu.memory_space<vmem>>, %arg3: memref<1x1x128xf32, #tpu.memory_space<vmem>>, %arg4: memref<1x288x128xbf16, #tpu.memory_space<vmem>>) attributes {dimension_semantics = [#tpu.dimension_semantics<parallel>], iteration_bounds = array<i64: 2>, scalar_prefetch = 0 : i64, scratch_operands = 0 : i64, tpu.core_type = #tpu.core_type<tc>, window_params = [{transform_indices = @transform_0, window_bounds = array<i64: 1, 288, 400>}, {transform_indices = @transform_1, window_bounds = array<i64: 1, 400, 128>}, {transform_indices = @transform_2, window_bounds = array<i64: 1, 1, 128>}, {transform_indices = @transform_3, window_bounds = array<i64: 1, 288, 128>}]} {
    %c0 = arith.constant 0 : index
    %c0_0 = arith.constant 0 : index
    %c0_1 = arith.constant 0 : index
    %0 = vector.load %arg1[%c0, %c0_0, %c0_1] : memref<1x288x400xbf16, #tpu.memory_space<vmem>>, vector<1x288x400xbf16>
    %1 = vector.shape_cast %0 : vector<1x288x400xbf16> to vector<288x400xbf16>
    %c0_2 = arith.constant 0 : index
    %c0_3 = arith.constant 0 : index
    %c0_4 = arith.constant 0 : index
    %2 = vector.load %arg2[%c0_2, %c0_3, %c0_4] : memref<1x400x128xbf16, #tpu.memory_space<vmem>>, vector<1x400x128xbf16>
    %3 = vector.shape_cast %2 : vector<1x400x128xbf16> to vector<400x128xbf16>
    %cst = arith.constant dense<0.000000e+00> : vector<288x128xf32>
    %4 = tpu.matmul %1, %3, %cst {dimension_numbers = #tpu.dot_dimension_numbers<[1], [0], [0], [1], [0, 0, 1, 1], [], []>} : vector<288x400xbf16>, vector<400x128xbf16>, vector<288x128xf32> -> vector<288x128xf32>
    %c0_5 = arith.constant 0 : index
    %c0_6 = arith.constant 0 : index
    %c0_7 = arith.constant 0 : index
    %5 = vector.load %arg3[%c0_5, %c0_6, %c0_7] : memref<1x1x128xf32, #tpu.memory_space<vmem>>, vector<1x1x128xf32>
    %6 = vector.shape_cast %5 : vector<1x1x128xf32> to vector<1x128xf32>
    %7 = vector.broadcast %6 : vector<1x128xf32> to vector<288x128xf32>
    %8 = arith.addf %4, %7 : vector<288x128xf32>
    %cst_8 = arith.constant 0.000000e+00 : f32
    %9 = vector.broadcast %cst_8 : f32 to vector<288x128xf32>
    %10 = arith.maximumf %8, %9 : vector<288x128xf32>
    %11 = arith.truncf %10 : vector<288x128xf32> to vector<288x128xbf16>
    %c0_9 = arith.constant 0 : index
    %c0_10 = arith.constant 0 : index
    %c0_11 = arith.constant 0 : index
    %12 = vector.load %arg4[%c0_9, %c0_10, %c0_11] : memref<1x288x128xbf16, #tpu.memory_space<vmem>>, vector<1x288x128xbf16>
    %13 = vector.shape_cast %12 : vector<1x288x128xbf16> to vector<288x128xbf16>
    %14 = vector.shape_cast %11 : vector<288x128xbf16> to vector<1x288x128xbf16>
    tpu.vector_store %arg4[%c0_9, %c0_10, %c0_11], %14 {strides = array<i32>} : memref<1x288x128xbf16, #tpu.memory_space<vmem>>, vector<1x288x128xbf16>,
    return
  }
  func.func @transform_0(%arg0: i32) -> (i32, i32, i32) {
    %c0_i32 = arith.constant 0 : i32
    %c0_i32_0 = arith.constant 0 : i32
    %c0_i32_1 = arith.constant 0 : i32
    return %arg0, %c0_i32, %c0_i32_0 : i32, i32, i32
  }
  func.func @transform_1(%arg0: i32) -> (i32, i32, i32) {
    %c0_i32 = arith.constant 0 : i32
    %c0_i32_0 = arith.constant 0 : i32
    %c0_i32_1 = arith.constant 0 : i32
    return %arg0, %c0_i32, %c0_i32_0 : i32, i32, i32
  }
  func.func @transform_2(%arg0: i32) -> (i32, i32, i32) {
    %c0_i32 = arith.constant 0 : i32
    %c0_i32_0 = arith.constant 0 : i32
    %c0_i32_1 = arith.constant 0 : i32
    return %arg0, %c0_i32, %c0_i32_0 : i32, i32, i32
  }
  func.func @transform_3(%arg0: i32) -> (i32, i32, i32) {
    %c0_i32 = arith.constant 0 : i32
    %c0_i32_0 = arith.constant 0 : i32
    %c0_i32_1 = arith.constant 0 : i32
    return %arg0, %c0_i32, %c0_i32_0 : i32, i32, i32
  }
}

module attributes {stable_mosaic.version = 11 : i64} {
  func.func @_mlp_head_kernel(%arg0: i32, %arg1: memref<8x768xbf16, #tpu.memory_space<vmem>>, %arg2: memref<768x768xbf16, #tpu.memory_space<vmem>>, %arg3: memref<1x768xf32, #tpu.memory_space<vmem>>, %arg4: memref<768x512xbf16, #tpu.memory_space<vmem>>, %arg5: memref<1x512xf32, #tpu.memory_space<vmem>>, %arg6: memref<512x128xbf16, #tpu.memory_space<vmem>>, %arg7: memref<1x128xf32, #tpu.memory_space<vmem>>, %arg8: memref<8x128xf32, #tpu.memory_space<vmem>>, %arg9: memref<8x512xf32, #tpu.memory_space<vmem>>) attributes {dimension_semantics = [#tpu.dimension_semantics<arbitrary>], iteration_bounds = array<i64: 2>, scalar_prefetch = 0 : i64, scratch_operands = 1 : i64, tpu.core_type = #tpu.core_type<tc>, window_params = [{pipeline_mode = #tpu.pipeline_mode<synchronous>, transform_indices = @transform_0, window_bounds = array<i64: 8, 768>}, {transform_indices = @transform_1, window_bounds = array<i64: 768, 768>}, {transform_indices = @transform_2, window_bounds = array<i64: 1, 768>}, {transform_indices = @transform_3, window_bounds = array<i64: 768, 512>}, {pipeline_mode = #tpu.pipeline_mode<synchronous>, transform_indices = @transform_4, window_bounds = array<i64: 1, 512>}, {pipeline_mode = #tpu.pipeline_mode<synchronous>, transform_indices = @transform_5, window_bounds = array<i64: 512, 128>}, {pipeline_mode = #tpu.pipeline_mode<synchronous>, transform_indices = @transform_6, window_bounds = array<i64: 1, 128>}, {pipeline_mode = #tpu.pipeline_mode<synchronous>, transform_indices = @transform_7, window_bounds = array<i64: 8, 128>}]} {
    %c0_i32 = arith.constant 0 : i32
    %0 = arith.cmpi eq, %arg0, %c0_i32 : i32
    %1 = arith.extui %0 : i1 to i32
    %c0_i32_0 = arith.constant 0 : i32
    %2 = arith.cmpi ne, %1, %c0_i32_0 : i32
    scf.if %2 {
      %cst_15 = arith.constant 0.000000e+00 : f32
      %20 = vector.broadcast %cst_15 : f32 to vector<8x512xf32>
      %c0_16 = arith.constant 0 : index
      %c0_17 = arith.constant 0 : index
      %21 = vector.load %arg9[%c0_16, %c0_17] : memref<8x512xf32, #tpu.memory_space<vmem>>, vector<8x512xf32>
      tpu.vector_store %arg9[%c0_16, %c0_17], %20 {strides = array<i32>} : memref<8x512xf32, #tpu.memory_space<vmem>>, vector<8x512xf32>,
    } else {
    }
    %c0 = arith.constant 0 : index
    %c0_1 = arith.constant 0 : index
    %3 = vector.load %arg1[%c0, %c0_1] : memref<8x768xbf16, #tpu.memory_space<vmem>>, vector<8x768xbf16>
    %c0_2 = arith.constant 0 : index
    %c0_3 = arith.constant 0 : index
    %4 = vector.load %arg2[%c0_2, %c0_3] : memref<768x768xbf16, #tpu.memory_space<vmem>>, vector<768x768xbf16>
    %cst = arith.constant dense<0.000000e+00> : vector<8x768xf32>
    %5 = tpu.matmul %3, %4, %cst {dimension_numbers = #tpu.dot_dimension_numbers<[1], [0], [0], [1], [0, 0, 1, 1], [], []>} : vector<8x768xbf16>, vector<768x768xbf16>, vector<8x768xf32> -> vector<8x768xf32>
    %c0_4 = arith.constant 0 : index
    %c0_5 = arith.constant 0 : index
    %6 = vector.load %arg3[%c0_4, %c0_5] : memref<1x768xf32, #tpu.memory_space<vmem>>, vector<1x768xf32>
    %7 = vector.broadcast %6 : vector<1x768xf32> to vector<8x768xf32>
    %8 = arith.addf %5, %7 : vector<8x768xf32>
    %cst_6 = arith.constant 0.000000e+00 : f32
    %9 = vector.broadcast %cst_6 : f32 to vector<8x768xf32>
    %10 = arith.maximumf %8, %9 : vector<8x768xf32>
    %c0_7 = arith.constant 0 : index
    %c0_8 = arith.constant 0 : index
    %11 = vector.load %arg9[%c0_7, %c0_8] : memref<8x512xf32, #tpu.memory_space<vmem>>, vector<8x512xf32>
    %12 = arith.truncf %10 : vector<8x768xf32> to vector<8x768xbf16>
    %c0_9 = arith.constant 0 : index
    %c0_10 = arith.constant 0 : index
    %13 = vector.load %arg4[%c0_9, %c0_10] : memref<768x512xbf16, #tpu.memory_space<vmem>>, vector<768x512xbf16>
    %cst_11 = arith.constant dense<0.000000e+00> : vector<8x512xf32>
    %14 = tpu.matmul %12, %13, %cst_11 {dimension_numbers = #tpu.dot_dimension_numbers<[1], [0], [0], [1], [0, 0, 1, 1], [], []>} : vector<8x768xbf16>, vector<768x512xbf16>, vector<8x512xf32> -> vector<8x512xf32>
    %15 = arith.addf %11, %14 : vector<8x512xf32>
    %c0_12 = arith.constant 0 : index
    %c0_13 = arith.constant 0 : index
    %16 = vector.load %arg9[%c0_12, %c0_13] : memref<8x512xf32, #tpu.memory_space<vmem>>, vector<8x512xf32>
    tpu.vector_store %arg9[%c0_12, %c0_13], %15 {strides = array<i32>} : memref<8x512xf32, #tpu.memory_space<vmem>>, vector<8x512xf32>,
    %c1_i32 = arith.constant 1 : i32
    %17 = arith.cmpi eq, %arg0, %c1_i32 : i32
    %18 = arith.extui %17 : i1 to i32
    %c0_i32_14 = arith.constant 0 : i32
    %19 = arith.cmpi ne, %18, %c0_i32_14 : i32
    scf.if %19 {
      %c0_15 = arith.constant 0 : index
      %c0_16 = arith.constant 0 : index
      %20 = vector.load %arg9[%c0_15, %c0_16] : memref<8x512xf32, #tpu.memory_space<vmem>>, vector<8x512xf32>
      %c0_17 = arith.constant 0 : index
      %c0_18 = arith.constant 0 : index
      %21 = vector.load %arg5[%c0_17, %c0_18] : memref<1x512xf32, #tpu.memory_space<vmem>>, vector<1x512xf32>
      %22 = vector.broadcast %21 : vector<1x512xf32> to vector<8x512xf32>
      %23 = arith.addf %20, %22 : vector<8x512xf32>
      %cst_19 = arith.constant 0.000000e+00 : f32
      %24 = vector.broadcast %cst_19 : f32 to vector<8x512xf32>
      %25 = arith.maximumf %23, %24 : vector<8x512xf32>
      %26 = arith.truncf %25 : vector<8x512xf32> to vector<8x512xbf16>
      %c0_20 = arith.constant 0 : index
      %c0_21 = arith.constant 0 : index
      %27 = vector.load %arg6[%c0_20, %c0_21] : memref<512x128xbf16, #tpu.memory_space<vmem>>, vector<512x128xbf16>
      %cst_22 = arith.constant dense<0.000000e+00> : vector<8x128xf32>
      %28 = tpu.matmul %26, %27, %cst_22 {dimension_numbers = #tpu.dot_dimension_numbers<[1], [0], [0], [1], [0, 0, 1, 1], [], []>} : vector<8x512xbf16>, vector<512x128xbf16>, vector<8x128xf32> -> vector<8x128xf32>
      %c0_23 = arith.constant 0 : index
      %c0_24 = arith.constant 0 : index
      %29 = vector.load %arg7[%c0_23, %c0_24] : memref<1x128xf32, #tpu.memory_space<vmem>>, vector<1x128xf32>
      %30 = vector.broadcast %29 : vector<1x128xf32> to vector<8x128xf32>
      %31 = arith.addf %28, %30 : vector<8x128xf32>
      %cst_25 = arith.constant dense<0xFF800000> : vector<8xf32>
      %32 = vector.multi_reduction <maximumf>, %31, %cst_25 [1] : vector<8x128xf32> to vector<8xf32>
      %33 = vector.shape_cast %32 : vector<8xf32> to vector<8x1xf32>
      %34 = vector.broadcast %33 : vector<8x1xf32> to vector<8x128xf32>
      %35 = arith.subf %31, %34 : vector<8x128xf32>
      %36 = math.exp %35 : vector<8x128xf32>
      %cst_26 = arith.constant dense<0.000000e+00> : vector<8xf32>
      %37 = vector.multi_reduction <add>, %36, %cst_26 [1] : vector<8x128xf32> to vector<8xf32>
      %38 = vector.shape_cast %37 : vector<8xf32> to vector<8x1xf32>
      %39 = vector.broadcast %38 : vector<8x1xf32> to vector<8x128xf32>
      %40 = arith.divf %36, %39 : vector<8x128xf32>
      %c0_27 = arith.constant 0 : index
      %c0_28 = arith.constant 0 : index
      %41 = vector.load %arg8[%c0_27, %c0_28] : memref<8x128xf32, #tpu.memory_space<vmem>>, vector<8x128xf32>
      tpu.vector_store %arg8[%c0_27, %c0_28], %40 {strides = array<i32>} : memref<8x128xf32, #tpu.memory_space<vmem>>, vector<8x128xf32>,
    } else {
    }
    return
  }
  func.func @transform_0(%arg0: i32) -> (i32, i32) {
    %c0_i32 = arith.constant 0 : i32
    %c0_i32_0 = arith.constant 0 : i32
    %c0_i32_1 = arith.constant 0 : i32
    return %c0_i32, %c0_i32_0 : i32, i32
  }
  func.func @transform_1(%arg0: i32) -> (i32, i32) {
    %c0_i32 = arith.constant 0 : i32
    %c0_i32_0 = arith.constant 0 : i32
    return %c0_i32, %arg0 : i32, i32
  }
  func.func @transform_2(%arg0: i32) -> (i32, i32) {
    %c0_i32 = arith.constant 0 : i32
    %c0_i32_0 = arith.constant 0 : i32
    return %c0_i32, %arg0 : i32, i32
  }
  func.func @transform_3(%arg0: i32) -> (i32, i32) {
    %c0_i32 = arith.constant 0 : i32
    %c0_i32_0 = arith.constant 0 : i32
    return %arg0, %c0_i32 : i32, i32
  }
  func.func @transform_4(%arg0: i32) -> (i32, i32) {
    %c0_i32 = arith.constant 0 : i32
    %c0_i32_0 = arith.constant 0 : i32
    %c0_i32_1 = arith.constant 0 : i32
    return %c0_i32, %c0_i32_0 : i32, i32
  }
  func.func @transform_5(%arg0: i32) -> (i32, i32) {
    %c0_i32 = arith.constant 0 : i32
    %c0_i32_0 = arith.constant 0 : i32
    %c0_i32_1 = arith.constant 0 : i32
    return %c0_i32, %c0_i32_0 : i32, i32
  }
  func.func @transform_6(%arg0: i32) -> (i32, i32) {
    %c0_i32 = arith.constant 0 : i32
    %c0_i32_0 = arith.constant 0 : i32
    %c0_i32_1 = arith.constant 0 : i32
    return %c0_i32, %c0_i32_0 : i32, i32
  }
  func.func @transform_7(%arg0: i32) -> (i32, i32) {
    %c0_i32 = arith.constant 0 : i32
    %c0_i32_0 = arith.constant 0 : i32
    %c0_i32_1 = arith.constant 0 : i32
    return %c0_i32, %c0_i32_0 : i32, i32
  }
}

</mosaic_0001>

<bundles_post_ra>
// kernel: agent_net_forward.5
= control target key start
LH: loop header
LB: loop body
LE: loop exit
PB: predicated region body
PF: predicated region fallthrough
CT: control target
= control target key end

     0   :  { %s6772_s12 = smov 0   ;;  %s9223_s0 = inlined_call_operand.vmem [shape: bf16[6272,75], index: 0, kind: input, shape index: {}]   ;;  %s9224_s1 = inlined_call_operand.vmem [shape: bf16[75,128], index: 1, kind: input, shape index: {}]   ;;  %s9225_s2 = inlined_call_operand.vmem [shape: f32[1,128], index: 2, kind: input, shape index: {}]   ;;  %s9226_s3 = inlined_call_operand.vmem [shape: bf16[1568,128], index: 3, kind: output, shape index: {}]  }
   0x1 LB: > { %s5022_s13 = sadd.s32 4294967295, %s6749_s12   ;;  %p5026_p0 = scmp.ge.s32.totalorder %s6749_s12, 1  ;;  %s6749_s12 = sphi %s6772_s12, %s13_s12  }
   0x2   : > { %p138_p1 = scmp.lt.s32.totalorder %s6749_s12, 3 }
   0x4   : > { %p139_p2 = pnand %p5026_p0, %p138_p1 }
   0x6   : > { %142 = sbr.rel (%p139_p2) target bundleno = 678 (0x2a6), region = 32 }
   0xb   : > { %v6540_v0 = vld [vmem:[%s9224_s1 + $0x20] sm:$0x3f]   ;;  %vm2182_vm0 = vcmask 1044480   ;;  %vm2183_vm1 = vcmask 1045504   ;;  %v6751_v1 = vmov 65535   ;;  %v6541_v4 = vld [vmem:[%s9224_s1 + $0x18] sm:$0xff]  }
   0xc   : > { %v2184_v2 = vsel %vm2182_vm0, 4294967295, %v6751_v1  ;;  %s162_s18 = smul.u32 392, %s5022_s13  ;;  %v6542_v6 = vld [vmem:[%s9224_s1 + $0x10] sm:$0xff]   ;;  %v6543_v7 = vld [vmem:[%s9224_s1 + $0x8] sm:$0xff]   ;;  %vm1593_vm2 = vcmask 613376   ;;  %v6544_v10 = vld [vmem:[%s9224_s1] sm:$0xff]  }
   0xd   : > { %v2185_v3 = vsel %vm2183_vm1, %v2184_v2, 0  ;;  %s8356_s4 = smul.u32 98, %s5022_s13 }
   0xe   : > { %v2187_v5 = vand.u32 %v6540_v0, %v2185_v3  ;;  %p163_p3 = scmp.lt.s32.totalorder %s162_s18, 783 }
   0xf   : > { %p169_p4 = scmp.lt.s32.totalorder %s8356_s4, 195 }
  0x10   : > { %6119 = vmatprep.subr.bf16.mxu0 %v2187_v5  ;;  %6521 = vmatprep.subr.bf16.mxu1 %v2187_v5  ;;  %s10062_s18 = smov (!%p163_p3, %s162_s18), 783 }
  0x11   : > { %6120 = vmatpush3.bf16.msra.mxu0 %v2187_v5  ;;  %6526 = vmatpush3.bf16.msra.mxu1 %v2187_v5  ;;  %s5027_s21 = sshll.u32 %s10062_s18, 2  ;;  %s10064_s4 = smov (!%p169_p4, %s8356_s4), 195 }
  0x12   : > { %6121 = vmatprep.subr.bf16.mxu0 %v6541_v4  ;;  %6522 = vmatprep.subr.bf16.mxu1 %v6541_v4  ;;  %s6797_s26 = scalar_lea.vmem %s9223_s0, %s5027_s21  ;;  %s5028_s7 = sshll.u32 %s10064_s4, 2 }
  0x13   : > { %v6545_v8 = vld [vmem:[%s6797_s26] sm:$0xff]   ;;  %v6546_v9 = vld [vmem:[%s6797_s26 + $0x310] sm:$0xff]   ;;  %v6547_v11 = vld [vmem:[%s6797_s26 + $0x8] sm:$0xff]   ;;  %s8478_s10 = scalar_lea.vmem %s9226_s3, %s5028_s7 }
  0x14   : > { %6129 = vmatprep.mubr.msk.bf16.mxu0 %vm1593_vm2, %v6545_v8  ;;  %6325 = vmatprep.mubr.msk.bf16.mxu1 %vm1593_vm2, %v6546_v9  ;;  %v6548_v12 = vld [vmem:[%s6797_s26 + $0x318] sm:$0xff]   ;;  %v6549_v13 = vld [vmem:[%s6797_s26 + $0x10] sm:$0xff]   ;;  %v6550_v14 = vld [vmem:[%s6797_s26 + $0x320] sm:$0xff]  }
  0x15   : > { %6122 = vmatpush3.bf16.msra.mxu0 %v6541_v4  ;;  %6527 = vmatpush3.bf16.msra.mxu1 %v6541_v4  ;;  %v6551_v15 = vld [vmem:[%s6797_s26 + $0x18] sm:$0xff]   ;;  %v6552_v16 = vld [vmem:[%s6797_s26 + $0x328] sm:$0xff]   ;;  %v6553_v17 = vld [vmem:[%s6797_s26 + $0x20] sm:$0xff]  }
  0x16   : > { %6123 = vmatprep.subr.bf16.mxu0 %v6542_v6  ;;  %6523 = vmatprep.subr.bf16.mxu1 %v6542_v6  ;;  %v6554_v18 = vld [vmem:[%s6797_s26 + $0x330] sm:$0xff]   ;;  %v6555_v19 = vld [vmem:[%s6797_s26 + $0x28] sm:$0xff]   ;;  %v6556_v20 = vld [vmem:[%s6797_s26 + $0x338] sm:$0xff]  }
  0x17   : > { %v6557_v21 = vld [vmem:[%s6797_s26 + $0x30] sm:$0xff]   ;;  %v6558_v22 = vld [vmem:[%s6797_s26 + $0x340] sm:$0xff]   ;;  %v6559_v23 = vld [vmem:[%s6797_s26 + $0x38] sm:$0xff]  }
  0x18   : > { %v6560_v24 = vld [vmem:[%s6797_s26 + $0x348] sm:$0xff]   ;;  %v6561_v25 = vld [vmem:[%s6797_s26 + $0x40] sm:$0xff]   ;;  %v6562_v26 = vld [vmem:[%s6797_s26 + $0x350] sm:$0xff]  }
  0x19   : > { %6124 = vmatpush3.bf16.msra.mxu0 %v6542_v6  ;;  %6528 = vmatpush3.bf16.msra.mxu1 %v6542_v6  ;;  %v6563_v27 = vld [vmem:[%s6797_s26 + $0x48] sm:$0xff]   ;;  %v6564_v28 = vld [vmem:[%s6797_s26 + $0x358] sm:$0xff]   ;;  %v6565_v29 = vld [vmem:[%s6797_s26 + $0x50] sm:$0xff]  }
  0x1a   : > { %6125 = vmatprep.subr.bf16.mxu0 %v6543_v7  ;;  %6524 = vmatprep.subr.bf16.mxu1 %v6543_v7  ;;  %v6566_v30 = vld [vmem:[%s6797_s26 + $0x360] sm:$0xff]   ;;  %v6567_v31 = vld [vmem:[%s6797_s26 + $0x58] sm:$0xff]   ;;  %v6568_v32 = vld [vmem:[%s6797_s26 + $0x368] sm:$0xff]  }
  0x1b   : > { %v6569_v33 = vld [vmem:[%s6797_s26 + $0x60] sm:$0xff]   ;;  %v6570_v34 = vld [vmem:[%s6797_s26 + $0x370] sm:$0xff]   ;;  %v6571_v35 = vld [vmem:[%s6797_s26 + $0x68] sm:$0xff]  }
  0x1c   : > { %v6572_v36 = vld [vmem:[%s6797_s26 + $0x378] sm:$0xff]   ;;  %v6573_v37 = vld [vmem:[%s6797_s26 + $0x70] sm:$0xff]   ;;  %v6574_v38 = vld [vmem:[%s6797_s26 + $0x380] sm:$0xff]  }
  0x1d   : > { %6126 = vmatpush3.bf16.msra.mxu0 %v6543_v7  ;;  %6529 = vmatpush3.bf16.msra.mxu1 %v6543_v7  ;;  %v6575_v39 = vld [vmem:[%s6797_s26 + $0x78] sm:$0xff]   ;;  %v6576_v40 = vld [vmem:[%s6797_s26 + $0x388] sm:$0xff]   ;;  %v6577_v41 = vld [vmem:[%s6797_s26 + $0x80] sm:$0xff]  }
  0x1e   : > { %6127 = vmatprep.subr.bf16.mxu0 %v6544_v10  ;;  %6525 = vmatprep.subr.bf16.mxu1 %v6544_v10  ;;  %v6578_v42 = vld [vmem:[%s6797_s26 + $0x390] sm:$0xff]   ;;  %v6579_v43 = vld [vmem:[%s6797_s26 + $0x88] sm:$0xff]   ;;  %v6580_v44 = vld [vmem:[%s6797_s26 + $0x398] sm:$0xff]  }
  0x1f   : > { %v6581_v45 = vld [vmem:[%s6797_s26 + $0x90] sm:$0xff]   ;;  %v6582_v46 = vld [vmem:[%s6797_s26 + $0x3a0] sm:$0xff]   ;;  %v6583_v47 = vld [vmem:[%s6797_s26 + $0x98] sm:$0xff]  }
  0x20   : > { %v6584_v48 = vld [vmem:[%s6797_s26 + $0x3a8] sm:$0xff]   ;;  %v6585_v49 = vld [vmem:[%s6797_s26 + $0xa0] sm:$0xff]   ;;  %v6586_v50 = vld [vmem:[%s6797_s26 + $0x3b0] sm:$0xff]  }
  0x21   : > { %6128 = vmatpush3.bf16.msra.mxu0 %v6544_v10  ;;  %6530 = vmatpush3.bf16.msra.mxu1 %v6544_v10  ;;  %v6587_v51 = vld [vmem:[%s6797_s26 + $0xa8] sm:$0xff]   ;;  %v6588_v52 = vld [vmem:[%s6797_s26 + $0x3b8] sm:$0xff]   ;;  %v6589_v53 = vld [vmem:[%s6797_s26 + $0xb0] sm:$0xff]  }
  0x22   : > { %v6590_v54 = vld [vmem:[%s6797_s26 + $0x3c0] sm:$0xff]   ;;  %v6591_v55 = vld [vmem:[%s6797_s26 + $0xb8] sm:$0xff]   ;;  %v6592_v56 = vld [vmem:[%s6797_s26 + $0x3c8] sm:$0xff]  }
  0x23   : > { %v6593_v57 = vld [vmem:[%s6797_s26 + $0xc0] sm:$0xff]   ;;  %v6594_v58 = vld [vmem:[%s6797_s26 + $0x3d0] sm:$0xff]   ;;  %v6595_v59 = vld [vmem:[%s6797_s26 + $0xc8] sm:$0xff]  }
  0x24   : > { %6130 = vmatmul.mubr.msk.bf16.vlgmr.msra.gmra.mxu0 %vm1593_vm2, %v6547_v11  ;;  %6326 = vmatmul.mubr.msk.bf16.vlgmr.msra.gmra.mxu1 %vm1593_vm2, %v6548_v12  ;;  %v6596_v60 = vld [vmem:[%s6797_s26 + $0x3d8] sm:$0xff]   ;;  %v6597_v61 = vld [vmem:[%s6797_s26 + $0xd0] sm:$0xff]   ;;  %v6598_v62 = vld [vmem:[%s6797_s26 + $0x3e0] sm:$0xff]  }
  0x25   : > { %6133 = vmatprep.mubr.msk.bf16.mxu0 %vm1593_vm2, %v6549_v13  ;;  %6329 = vmatprep.mubr.msk.bf16.mxu1 %vm1593_vm2, %v6550_v14  ;;  %v6599_v63 = vld [vmem:[%s6797_s26 + $0xd8] sm:$0xff]   ;;  %v6600_v0 = vld [vmem:[%s6797_s26 + $0x3e8] sm:$0xff]   ;;  %v6601_v1 = vld [vmem:[%s6797_s26 + $0xe0] sm:$0xff]  }
  0x26   : > { %v6602_v2 = vld [vmem:[%s6797_s26 + $0x3f0] sm:$0xff]   ;;  %v6603_v3 = vld [vmem:[%s6797_s26 + $0xe8] sm:$0xff]   ;;  %v6604_v4 = vld [vmem:[%s6797_s26 + $0x3f8] sm:$0xff]  }
  0x27   : > { %v6605_v5 = vld [vmem:[%s6797_s26 + $0xf0] sm:$0xff]   ;;  %v6606_v6 = vld [vmem:[%s6797_s26 + $0x400] sm:$0xff]   ;;  %v6607_v7 = vld [vmem:[%s6797_s26 + $0xf8] sm:$0xff]  }
  0x28   : > { %v6608_v8 = vld [vmem:[%s6797_s26 + $0x408] sm:$0xff]   ;;  %v6609_v9 = vld [vmem:[%s6797_s26 + $0x100] sm:$0xff]   ;;  %v6610_v10 = vld [vmem:[%s6797_s26 + $0x410] sm:$0xff]  }
  0x29   : > { %v6611_v11 = vld [vmem:[%s6797_s26 + $0x108] sm:$0xff]   ;;  %v6612_v12 = vld [vmem:[%s6797_s26 + $0x418] sm:$0xff]   ;;  %v6613_v13 = vld [vmem:[%s6797_s26 + $0x110] sm:$0xff]  }
  0x2a   : > { %v6614_v14 = vld [vmem:[%s6797_s26 + $0x420] sm:$0xff]  }
  0x2c   : > { %6134 = vmatmul.mubr.msk.bf16.gmra.mxu0 %vm1593_vm2, %v6551_v15  ;;  %6330 = vmatmul.mubr.msk.bf16.gmra.mxu1 %vm1593_vm2, %v6552_v16  ;;  %v6615_v15 = vld [vmem:[%s6797_s26 + $0x118] sm:$0xff]   ;;  %v6616_v16 = vld [vmem:[%s6797_s26 + $0x428] sm:$0xff]  }
  0x2d   : > { %6137 = vmatprep.mubr.msk.bf16.mxu0 %vm1593_vm2, %v6553_v17  ;;  %6333 = vmatprep.mubr.msk.bf16.mxu1 %vm1593_vm2, %v6554_v18  ;;  %v6617_v17 = vld [vmem:[%s6797_s26 + $0x120] sm:$0xff]   ;;  %v6618_v18 = vld [vmem:[%s6797_s26 + $0x430] sm:$0xff]  }
  0x34   : > { %6138 = vmatmul.mubr.msk.bf16.gmra.mxu0 %vm1593_vm2, %v6555_v19  ;;  %6334 = vmatmul.mubr.msk.bf16.gmra.mxu1 %vm1593_vm2, %v6556_v20  ;;  %v6619_v19 = vld [vmem:[%s6797_s26 + $0x128] sm:$0xff]   ;;  %v6620_v20 = vld [vmem:[%s6797_s26 + $0x438] sm:$0xff]  }
  0x35   : > { %6141 = vmatprep.mubr.msk.bf16.mxu0 %vm1593_vm2, %v6557_v21  ;;  %6337 = vmatprep.mubr.msk.bf16.mxu1 %vm1593_vm2, %v6558_v22  ;;  %v6621_v21 = vld [vmem:[%s6797_s26 + $0x130] sm:$0xff]   ;;  %v6622_v22 = vld [vmem:[%s6797_s26 + $0x440] sm:$0xff]  }
  0x3c   : > { %6142 = vmatmul.mubr.msk.bf16.gmra.mxu0 %vm1593_vm2, %v6559_v23  ;;  %6338 = vmatmul.mubr.msk.bf16.gmra.mxu1 %vm1593_vm2, %v6560_v24  ;;  %v6623_v23 = vld [vmem:[%s6797_s26 + $0x138] sm:$0xff]   ;;  %v6624_v24 = vld [vmem:[%s6797_s26 + $0x448] sm:$0xff]  }
  0x3d   : > { %6145 = vmatprep.mubr.msk.bf16.mxu0 %vm1593_vm2, %v6561_v25  ;;  %6341 = vmatprep.mubr.msk.bf16.mxu1 %vm1593_vm2, %v6562_v26  ;;  %v6625_v25 = vld [vmem:[%s6797_s26 + $0x140] sm:$0xff]   ;;  %v6626_v26 = vld [vmem:[%s6797_s26 + $0x450] sm:$0xff]  }
  0x44   : > { %6146 = vmatmul.mubr.msk.bf16.gmra.mxu0 %vm1593_vm2, %v6563_v27  ;;  %6342 = vmatmul.mubr.msk.bf16.gmra.mxu1 %vm1593_vm2, %v6564_v28  ;;  %v6627_v27 = vld [vmem:[%s6797_s26 + $0x148] sm:$0xff]   ;;  %v6628_v28 = vld [vmem:[%s6797_s26 + $0x458] sm:$0xff]  }
  0x45   : > { %6149 = vmatprep.mubr.msk.bf16.mxu0 %vm1593_vm2, %v6565_v29  ;;  %6345 = vmatprep.mubr.msk.bf16.mxu1 %vm1593_vm2, %v6566_v30  ;;  %v6629_v29 = vld [vmem:[%s6797_s26 + $0x150] sm:$0xff]   ;;  %v6630_v30 = vld [vmem:[%s6797_s26 + $0x460] sm:$0xff]  }
  0x4c   : > { %6150 = vmatmul.mubr.msk.bf16.gmra.mxu0 %vm1593_vm2, %v6567_v31  ;;  %6346 = vmatmul.mubr.msk.bf16.gmra.mxu1 %vm1593_vm2, %v6568_v32  ;;  %v6631_v31 = vld [vmem:[%s6797_s26 + $0x158] sm:$0xff]   ;;  %v6632_v32 = vld [vmem:[%s6797_s26 + $0x468] sm:$0xff]  }
  0x4d   : > { %6153 = vmatprep.mubr.msk.bf16.mxu0 %vm1593_vm2, %v6569_v33  ;;  %6349 = vmatprep.mubr.msk.bf16.mxu1 %vm1593_vm2, %v6570_v34  ;;  %v6633_v33 = vld [vmem:[%s6797_s26 + $0x160] sm:$0xff]   ;;  %v6634_v34 = vld [vmem:[%s6797_s26 + $0x470] sm:$0xff]  }
  0x54   : > { %6154 = vmatmul.mubr.msk.bf16.gmra.mxu0 %vm1593_vm2, %v6571_v35  ;;  %6350 = vmatmul.mubr.msk.bf16.gmra.mxu1 %vm1593_vm2, %v6572_v36  ;;  %v6635_v35 = vld [vmem:[%s6797_s26 + $0x168] sm:$0xff]   ;;  %v6636_v36 = vld [vmem:[%s6797_s26 + $0x478] sm:$0xff]  }
  0x55   : > { %6157 = vmatprep.mubr.msk.bf16.mxu0 %vm1593_vm2, %v6573_v37  ;;  %6353 = vmatprep.mubr.msk.bf16.mxu1 %vm1593_vm2, %v6574_v38  ;;  %v6637_v37 = vld [vmem:[%s6797_s26 + $0x170] sm:$0xff]   ;;  %v6638_v38 = vld [vmem:[%s6797_s26 + $0x480] sm:$0xff]  }
  0x5c   : > { %6158 = vmatmul.mubr.msk.bf16.gmra.mxu0 %vm1593_vm2, %v6575_v39  ;;  %6354 = vmatmul.mubr.msk.bf16.gmra.mxu1 %vm1593_vm2, %v6576_v40  ;;  %v6639_v39 = vld [vmem:[%s6797_s26 + $0x178] sm:$0xff]   ;;  %v6640_v40 = vld [vmem:[%s6797_s26 + $0x488] sm:$0xff]  }
  0x5d   : > { %6161 = vmatprep.mubr.msk.bf16.mxu0 %vm1593_vm2, %v6577_v41  ;;  %6357 = vmatprep.mubr.msk.bf16.mxu1 %vm1593_vm2, %v6578_v42  ;;  %v6641_v41 = vld [vmem:[%s6797_s26 + $0x180] sm:$0xff]   ;;  %v6642_v42 = vld [vmem:[%s6797_s26 + $0x490] sm:$0xff]  }
  0x64   : > { %6162 = vmatmul.mubr.msk.bf16.gmra.mxu0 %vm1593_vm2, %v6579_v43  ;;  %6358 = vmatmul.mubr.msk.bf16.gmra.mxu1 %vm1593_vm2, %v6580_v44  ;;  %v6643_v43 = vld [vmem:[%s6797_s26 + $0x188] sm:$0xff]   ;;  %v6644_v44 = vld [vmem:[%s6797_s26 + $0x498] sm:$0xff]  }
  0x65   : > { %6165 = vmatprep.mubr.msk.bf16.mxu0 %vm1593_vm2, %v6581_v45  ;;  %6361 = vmatprep.mubr.msk.bf16.mxu1 %vm1593_vm2, %v6582_v46  ;;  %v6645_v45 = vld [vmem:[%s6797_s26 + $0x190] sm:$0xff]   ;;  %v6646_v46 = vld [vmem:[%s6797_s26 + $0x4a0] sm:$0xff]  }
  0x6c   : > { %6166 = vmatmul.mubr.msk.bf16.gmra.mxu0 %vm1593_vm2, %v6583_v47  ;;  %6362 = vmatmul.mubr.msk.bf16.gmra.mxu1 %vm1593_vm2, %v6584_v48 }
  0x6d   : > { %6169 = vmatprep.mubr.msk.bf16.mxu0 %vm1593_vm2, %v6585_v49  ;;  %6365 = vmatprep.mubr.msk.bf16.mxu1 %vm1593_vm2, %v6586_v50 }
  0x74   : > { %6170 = vmatmul.mubr.msk.bf16.gmra.mxu0 %vm1593_vm2, %v6587_v51  ;;  %6366 = vmatmul.mubr.msk.bf16.gmra.mxu1 %vm1593_vm2, %v6588_v52 }
  0x75   : > { %6173 = vmatprep.mubr.msk.bf16.mxu0 %vm1593_vm2, %v6589_v53  ;;  %6369 = vmatprep.mubr.msk.bf16.mxu1 %vm1593_vm2, %v6590_v54  ;;  %v6647_v53 = vld [vmem:[%s6797_s26 + $0x198] sm:$0xff]   ;;  %v6648_v54 = vld [vmem:[%s6797_s26 + $0x4a8] sm:$0xff]  }
  0x7c   : > { %6174 = vmatmul.mubr.msk.bf16.gmra.mxu0 %vm1593_vm2, %v6591_v55  ;;  %6370 = vmatmul.mubr.msk.bf16.gmra.mxu1 %vm1593_vm2, %v6592_v56  ;;  %v6649_v55 = vld [vmem:[%s6797_s26 + $0x1a0] sm:$0xff]   ;;  %v6650_v56 = vld [vmem:[%s6797_s26 + $0x4b0] sm:$0xff]  }
  0x7d   : > { %6177 = vmatprep.mubr.msk.bf16.mxu0 %vm1593_vm2, %v6593_v57  ;;  %6373 = vmatprep.mubr.msk.bf16.mxu1 %vm1593_vm2, %v6594_v58 }
  0x84   : > { %6178 = vmatmul.mubr.msk.bf16.gmra.mxu0 %vm1593_vm2, %v6595_v59  ;;  %6374 = vmatmul.mubr.msk.bf16.gmra.mxu1 %vm1593_vm2, %v6596_v60 }
  0x85   : > { %6181 = vmatprep.mubr.msk.bf16.mxu0 %vm1593_vm2, %v6597_v61  ;;  %6377 = vmatprep.mubr.msk.bf16.mxu1 %vm1593_vm2, %v6598_v62 }
  0x8c   : > { %6182 = vmatmul.mubr.msk.bf16.gmra.mxu0 %vm1593_vm2, %v6599_v63  ;;  %6378 = vmatmul.mubr.msk.bf16.gmra.mxu1 %vm1593_vm2, %v6600_v0 }
  0x8d   : > { %6185 = vmatprep.mubr.msk.bf16.mxu0 %vm1593_vm2, %v6601_v1  ;;  %6381 = vmatprep.mubr.msk.bf16.mxu1 %vm1593_vm2, %v6602_v2  ;;  %v6651_v1 = vld [vmem:[%s6797_s26 + $0x1a8] sm:$0xff]   ;;  %v6652_v2 = vld [vmem:[%s6797_s26 + $0x4b8] sm:$0xff]  }
  0x94   : > { %6186 = vmatmul.mubr.msk.bf16.gmra.mxu0 %vm1593_vm2, %v6603_v3  ;;  %6382 = vmatmul.mubr.msk.bf16.gmra.mxu1 %vm1593_vm2, %v6604_v4  ;;  %v6653_v3 = vld [vmem:[%s6797_s26 + $0x1b0] sm:$0xff]   ;;  %v6654_v4 = vld [vmem:[%s6797_s26 + $0x4c0] sm:$0xff]  }
  0x95   : > { %6189 = vmatprep.mubr.msk.bf16.mxu0 %vm1593_vm2, %v6605_v5  ;;  %6385 = vmatprep.mubr.msk.bf16.mxu1 %vm1593_vm2, %v6606_v6 }
  0x9c   : > { %6190 = vmatmul.mubr.msk.bf16.gmra.mxu0 %vm1593_vm2, %v6607_v7  ;;  %6386 = vmatmul.mubr.msk.bf16.gmra.mxu1 %vm1593_vm2, %v6608_v8 }
  0x9d   : > { %6193 = vmatprep.mubr.msk.bf16.mxu0 %vm1593_vm2, %v6609_v9  ;;  %6389 = vmatprep.mubr.msk.bf16.mxu1 %vm1593_vm2, %v6610_v10 }
  0xa4   : > { %6194 = vmatmul.mubr.msk.bf16.gmra.mxu0 %vm1593_vm2, %v6611_v11  ;;  %6390 = vmatmul.mubr.msk.bf16.gmra.mxu1 %vm1593_vm2, %v6612_v12 }
  0xa5   : > { %6197 = vmatprep.mubr.msk.bf16.mxu0 %vm1593_vm2, %v6613_v13  ;;  %6393 = vmatprep.mubr.msk.bf16.mxu1 %vm1593_vm2, %v6614_v14  ;;  %v6655_v13 = vld [vmem:[%s6797_s26 + $0x1b8] sm:$0xff]   ;;  %v6656_v14 = vld [vmem:[%s6797_s26 + $0x4c8] sm:$0xff]  }
  0xac   : > { %6198 = vmatmul.mubr.msk.bf16.gmra.mxu0 %vm1593_vm2, %v6615_v15  ;;  %6394 = vmatmul.mubr.msk.bf16.gmra.mxu1 %vm1593_vm2, %v6616_v16  ;;  %v6657_v15 = vld [vmem:[%s6797_s26 + $0x1c0] sm:$0xff]   ;;  %v6658_v16 = vld [vmem:[%s6797_s26 + $0x4d0] sm:$0xff]  }
  0xad   : > { %6201 = vmatprep.mubr.msk.bf16.mxu0 %vm1593_vm2, %v6617_v17  ;;  %6397 = vmatprep.mubr.msk.bf16.mxu1 %vm1593_vm2, %v6618_v18 }
  0xb4   : > { %6202 = vmatmul.mubr.msk.bf16.gmra.mxu0 %vm1593_vm2, %v6619_v19  ;;  %6398 = vmatmul.mubr.msk.bf16.gmra.mxu1 %vm1593_vm2, %v6620_v20 }
  0xb5   : > { %6205 = vmatprep.mubr.msk.bf16.mxu0 %vm1593_vm2, %v6621_v21  ;;  %6401 = vmatprep.mubr.msk.bf16.mxu1 %vm1593_vm2, %v6622_v22 }
  0xbc   : > { %6206 = vmatmul.mubr.msk.bf16.gmra.mxu0 %vm1593_vm2, %v6623_v23  ;;  %6402 = vmatmul.mubr.msk.bf16.gmra.mxu1 %vm1593_vm2, %v6624_v24 }
  0xbd   : > { %6209 = vmatprep.mubr.msk.bf16.mxu0 %vm1593_vm2, %v6625_v25  ;;  %6405 = vmatprep.mubr.msk.bf16.mxu1 %vm1593_vm2, %v6626_v26  ;;  %v6659_v25 = vld [vmem:[%s6797_s26 + $0x1c8] sm:$0xff]   ;;  %v6660_v26 = vld [vmem:[%s6797_s26 + $0x4d8] sm:$0xff]  }
  0xc4   : > { %6210 = vmatmul.mubr.msk.bf16.gmra.mxu0 %vm1593_vm2, %v6627_v27  ;;  %6406 = vmatmul.mubr.msk.bf16.gmra.mxu1 %vm1593_vm2, %v6628_v28  ;;  %v6661_v27 = vld [vmem:[%s6797_s26 + $0x1d0] sm:$0xff]   ;;  %v6662_v28 = vld [vmem:[%s6797_s26 + $0x4e0] sm:$0xff]  }
  0xc5   : > { %6213 = vmatprep.mubr.msk.bf16.mxu0 %vm1593_vm2, %v6629_v29  ;;  %6409 = vmatprep.mubr.msk.bf16.mxu1 %vm1593_vm2, %v6630_v30 }
  0xcc   : > { %6214 = vmatmul.mubr.msk.bf16.gmra.mxu0 %vm1593_vm2, %v6631_v31  ;;  %6410 = vmatmul.mubr.msk.bf16.gmra.mxu1 %vm1593_vm2, %v6632_v32 }
  0xcd   : > { %6217 = vmatprep.mubr.msk.bf16.mxu0 %vm1593_vm2, %v6633_v33  ;;  %6413 = vmatprep.mubr.msk.bf16.mxu1 %vm1593_vm2, %v6634_v34 }
  0xd4   : > { %6218 = vmatmul.mubr.msk.bf16.gmra.mxu0 %vm1593_vm2, %v6635_v35  ;;  %6414 = vmatmul.mubr.msk.bf16.gmra.mxu1 %vm1593_vm2, %v6636_v36 }
  0xd5   : > { %6221 = vmatprep.mubr.msk.bf16.mxu0 %vm1593_vm2, %v6637_v37  ;;  %6417 = vmatprep.mubr.msk.bf16.mxu1 %vm1593_vm2, %v6638_v38  ;;  %v6663_v37 = vld [vmem:[%s6797_s26 + $0x1d8] sm:$0xff]   ;;  %v6664_v38 = vld [vmem:[%s6797_s26 + $0x4e8] sm:$0xff]  }
  0xdc   : > { %6222 = vmatmul.mubr.msk.bf16.gmra.mxu0 %vm1593_vm2, %v6639_v39  ;;  %6418 = vmatmul.mubr.msk.bf16.gmra.mxu1 %vm1593_vm2, %v6640_v40  ;;  %v6665_v39 = vld [vmem:[%s6797_s26 + $0x1e0] sm:$0xff]   ;;  %v6666_v40 = vld [vmem:[%s6797_s26 + $0x4f0] sm:$0xff]  }
  0xdd   : > { %6225 = vmatprep.mubr.msk.bf16.mxu0 %vm1593_vm2, %v6641_v41  ;;  %6421 = vmatprep.mubr.msk.bf16.mxu1 %vm1593_vm2, %v6642_v42 }
  0xe4   : > { %v7002_v47 = vpop.f32.mrf.mxu0  ;;  %6226 = vmatmul.mubr.msk.bf16.gmra.mxu0 %vm1593_vm2, %v6643_v43  ;;  %v7005_v48 = vpop.f32.mrf.mxu1  ;;  %6422 = vmatmul.mubr.msk.bf16.gmra.mxu1 %vm1593_vm2, %v6644_v44 }
  0xe5   : > { %6229 = vmatprep.mubr.msk.bf16.mxu0 %vm1593_vm2, %v6645_v45  ;;  %6425 = vmatprep.mubr.msk.bf16.mxu1 %vm1593_vm2, %v6646_v46 }
  0xe6   : > { %v7010_v49 = vpop.f32.mrf.mxu0  ;;  %v7012_v50 = vpop.f32.mrf.mxu1 }
  0xe8   : > { %v7014_v51 = vpop.f32.mrf.mxu0  ;;  %v7016_v52 = vpop.f32.mrf.mxu1 }
  0xea   : > { %v7022_v57 = vpop.f32.mrf.mxu0  ;;  %v7024_v58 = vpop.f32.mrf.mxu1 }
  0xec   : > { %v7026_v59 = vpop.f32.mrf.mxu0  ;;  %6230 = vmatmul.mubr.msk.bf16.gmra.mxu0 %vm1593_vm2, %v6647_v53  ;;  %v7029_v60 = vpop.f32.mrf.mxu1  ;;  %6426 = vmatmul.mubr.msk.bf16.gmra.mxu1 %vm1593_vm2, %v6648_v54 }
  0xed   : > { %6233 = vmatprep.mubr.msk.bf16.mxu0 %vm1593_vm2, %v6649_v55  ;;  %6429 = vmatprep.mubr.msk.bf16.mxu1 %vm1593_vm2, %v6650_v56  ;;  %v6667_v55 = vld [vmem:[%s6797_s26 + $0x1e8] sm:$0xff]   ;;  %v6668_v56 = vld [vmem:[%s6797_s26 + $0x4f8] sm:$0xff]  }
  0xee   : > { %v7034_v61 = vpop.f32.mrf.mxu0  ;;  %v7036_v62 = vpop.f32.mrf.mxu1 }
  0xf0   : > { %v7038_v63 = vpop.f32.mrf.mxu0  ;;  %v7040_v0 = vpop.f32.mrf.mxu1 }
  0xf2   : > { %v7046_v5 = vpop.f32.mrf.mxu0  ;;  %v7048_v6 = vpop.f32.mrf.mxu1 }
  0xf4   : > { %v7050_v7 = vpop.f32.mrf.mxu0  ;;  %6234 = vmatmul.mubr.msk.bf16.gmra.mxu0 %vm1593_vm2, %v6651_v1  ;;  %v7053_v8 = vpop.f32.mrf.mxu1  ;;  %6430 = vmatmul.mubr.msk.bf16.gmra.mxu1 %vm1593_vm2, %v6652_v2  ;;  %v6669_v1 = vld [vmem:[%s6797_s26 + $0x1f0] sm:$0xff]   ;;  %v6670_v2 = vld [vmem:[%s6797_s26 + $0x500] sm:$0xff]  }
  0xf5   : > { %6237 = vmatprep.mubr.msk.bf16.mxu0 %vm1593_vm2, %v6653_v3  ;;  %6433 = vmatprep.mubr.msk.bf16.mxu1 %vm1593_vm2, %v6654_v4 }
  0xf6   : > { %v7058_v9 = vpop.f32.mrf.mxu0  ;;  %v7060_v10 = vpop.f32.mrf.mxu1 }
  0xf8   : > { %v7062_v11 = vpop.f32.mrf.mxu0  ;;  %v7064_v12 = vpop.f32.mrf.mxu1 }
  0xfa   : > { %v7070_v17 = vpop.f32.mrf.mxu0  ;;  %v7072_v18 = vpop.f32.mrf.mxu1 }
  0xfc   : > { %v7074_v19 = vpop.f32.mrf.mxu0  ;;  %6238 = vmatmul.mubr.msk.bf16.gmra.mxu0 %vm1593_vm2, %v6655_v13  ;;  %v7077_v20 = vpop.f32.mrf.mxu1  ;;  %6434 = vmatmul.mubr.msk.bf16.gmra.mxu1 %vm1593_vm2, %v6656_v14 }
  0xfd   : > { %6241 = vmatprep.mubr.msk.bf16.mxu0 %vm1593_vm2, %v6657_v15  ;;  %6437 = vmatprep.mubr.msk.bf16.mxu1 %vm1593_vm2, %v6658_v16 }
  0xfe   : > { %v7082_v21 = vpop.f32.mrf.mxu0  ;;  %v7084_v22 = vpop.f32.mrf.mxu1 }
 0x100   : > { %v7086_v23 = vpop.f32.mrf.mxu0  ;;  %v7088_v24 = vpop.f32.mrf.mxu1 }
 0x102   : > { %v7094_v29 = vpop.f32.mrf.mxu0  ;;  %v7096_v30 = vpop.f32.mrf.mxu1 }
 0x104   : > { %v7098_v31 = vpop.f32.mrf.mxu0  ;;  %6242 = vmatmul.mubr.msk.bf16.gmra.mxu0 %vm1593_vm2, %v6659_v25  ;;  %v7101_v32 = vpop.f32.mrf.mxu1  ;;  %6438 = vmatmul.mubr.msk.bf16.gmra.mxu1 %vm1593_vm2, %v6660_v26 }
 0x105   : > { %6245 = vmatprep.mubr.msk.bf16.mxu0 %vm1593_vm2, %v6661_v27  ;;  %6441 = vmatprep.mubr.msk.bf16.mxu1 %vm1593_vm2, %v6662_v28  ;;  %v6671_v27 = vld [vmem:[%s6797_s26 + $0x1f8] sm:$0xff]   ;;  %v6672_v28 = vld [vmem:[%s6797_s26 + $0x508] sm:$0xff]  }
 0x106   : > { %v7106_v33 = vpop.f32.mrf.mxu0  ;;  %v7108_v34 = vpop.f32.mrf.mxu1 }
 0x108   : > { %v7110_v35 = vpop.f32.mrf.mxu0  ;;  %v7112_v36 = vpop.f32.mrf.mxu1 }
 0x10a   : > { %v7118_v41 = vpop.f32.mrf.mxu0  ;;  %v7120_v42 = vpop.f32.mrf.mxu1 }
 0x10c   : > { %v7122_v43 = vpop.f32.mrf.mxu0  ;;  %6246 = vmatmul.mubr.msk.bf16.gmra.mxu0 %vm1593_vm2, %v6663_v37  ;;  %v7125_v44 = vpop.f32.mrf.mxu1  ;;  %6442 = vmatmul.mubr.msk.bf16.gmra.mxu1 %vm1593_vm2, %v6664_v38  ;;  %v6673_v37 = vld [vmem:[%s6797_s26 + $0x200] sm:$0xff]   ;;  %v6674_v38 = vld [vmem:[%s6797_s26 + $0x510] sm:$0xff]  }
 0x10d   : > { %6249 = vmatprep.mubr.msk.bf16.mxu0 %vm1593_vm2, %v6665_v39  ;;  %6445 = vmatprep.mubr.msk.bf16.mxu1 %vm1593_vm2, %v6666_v40 }
 0x10e   : > { %v7130_v45 = vpop.f32.mrf.mxu0  ;;  %v7132_v46 = vpop.f32.mrf.mxu1 }
 0x110   : > { %v7134_v53 = vpop.f32.mrf.mxu0  ;;  %v7136_v54 = vpop.f32.mrf.mxu1 }
 0x112   : > { %v7142_v3 = vpop.f32.mrf.mxu0  ;;  %v7144_v4 = vpop.f32.mrf.mxu1 }
 0x114   : > { %v7146_v13 = vpop.f32.mrf.mxu0  ;;  %6250 = vmatmul.mubr.msk.bf16.gmra.mxu0 %vm1593_vm2, %v6667_v55  ;;  %v7149_v14 = vpop.f32.mrf.mxu1  ;;  %6446 = vmatmul.mubr.msk.bf16.gmra.mxu1 %vm1593_vm2, %v6668_v56 }
 0x115   : > { %6253 = vmatprep.mubr.msk.bf16.mxu0 %vm1593_vm2, %v6669_v1  ;;  %6449 = vmatprep.mubr.msk.bf16.mxu1 %vm1593_vm2, %v6670_v2 }
 0x116   : > { %v7154_v15 = vpop.f32.mrf.mxu0  ;;  %v7156_v16 = vpop.f32.mrf.mxu1 }
 0x117   : > { %9383 = vst [vmem:[#allocation2_spill] sm:$0xff] %v7154_v15  ;;  %9384 = vst [vmem:[#allocation3_spill] sm:$0xff] %v7156_v16 }
 0x118   : > { %v7158_v25 = vpop.f32.mrf.mxu0  ;;  %v7160_v26 = vpop.f32.mrf.mxu1 }
 0x119   : > { %9385 = vst [vmem:[#allocation4_spill] sm:$0xff] %v7158_v25  ;;  %9386 = vst [vmem:[#allocation5_spill] sm:$0xff] %v7160_v26  ;;  %v6701_v25 = vld [vmem:[%s6797_s26 + $0x270] sm:$0xff]  }
 0x11a   : > { %v7166_v39 = vpop.f32.mrf.mxu0  ;;  %v7168_v40 = vpop.f32.mrf.mxu1 }
 0x11b   : > { %9387 = vst [vmem:[#allocation6_spill] sm:$0xff] %v7166_v39  ;;  %9388 = vst [vmem:[#allocation7_spill] sm:$0xff] %v7168_v40  ;;  %v6675_v40 = vld [vmem:[%s6797_s26 + $0x208] sm:$0xff]  }
 0x11c   : > { %v7170_v55 = vpop.f32.mrf.mxu0  ;;  %6254 = vmatmul.mubr.msk.bf16.gmra.mxu0 %vm1593_vm2, %v6671_v27  ;;  %v7173_v56 = vpop.f32.mrf.mxu1  ;;  %6450 = vmatmul.mubr.msk.bf16.gmra.mxu1 %vm1593_vm2, %v6672_v28  ;;  %v6677_v27 = vld [vmem:[%s6797_s26 + $0x210] sm:$0xff]  }
 0x11d   : > { %9389 = vst [vmem:[#allocation8_spill] sm:$0xff] %v7170_v55  ;;  %9390 = vst [vmem:[#allocation9_spill] sm:$0xff] %v7173_v56  ;;  %6257 = vmatprep.mubr.msk.bf16.mxu0 %vm1593_vm2, %v6673_v37  ;;  %6453 = vmatprep.mubr.msk.bf16.mxu1 %vm1593_vm2, %v6674_v38  ;;  %v6676_v55 = vld [vmem:[%s6797_s26 + $0x518] sm:$0xff]   ;;  %v6678_v56 = vld [vmem:[%s6797_s26 + $0x520] sm:$0xff]  }
 0x11e   : > { %v7178_v1 = vpop.f32.mrf.mxu0  ;;  %v7180_v2 = vpop.f32.mrf.mxu1 }
 0x11f   : > { %9391 = vst [vmem:[#allocation10_spill] sm:$0xff] %v7178_v1  ;;  %9392 = vst [vmem:[#allocation11_spill] sm:$0xff] %v7180_v2 }
 0x120   : > { %v7182_v26 = vpop.f32.mrf.mxu0  ;;  %v7184_v39 = vpop.f32.mrf.mxu1 }
 0x121   : > { %9393 = vst [vmem:[#allocation12_spill] sm:$0xff] %v7182_v26  ;;  %9394 = vst [vmem:[#allocation13_spill] sm:$0xff] %v7184_v39 }
 0x122   : > { %v7190_v28 = vpop.f32.mrf.mxu0  ;;  %v7192_v37 = vpop.f32.mrf.mxu1 }
 0x123   : > { %9395 = vst [vmem:[#allocation14_spill] sm:$0xff] %v7190_v28  ;;  %9396 = vst [vmem:[#allocation15_spill] sm:$0xff] %v7192_v37  ;;  %v6679_v37 = vld [vmem:[%s6797_s26 + $0x218] sm:$0xff]  }
 0x124   : > { %v7194_v38 = vpop.f32.mrf.mxu0  ;;  %6258 = vmatmul.mubr.msk.bf16.gmra.mxu0 %vm1593_vm2, %v6675_v40  ;;  %v7197_v2 = vpop.f32.mrf.mxu1  ;;  %6454 = vmatmul.mubr.msk.bf16.gmra.mxu1 %vm1593_vm2, %v6676_v55  ;;  %v6681_v40 = vld [vmem:[%s6797_s26 + $0x220] sm:$0xff]  }
 0x125   : > { %9397 = vst [vmem:[#allocation16_spill] sm:$0xff] %v7194_v38  ;;  %9398 = vst [vmem:[#allocation17_spill] sm:$0xff] %v7197_v2  ;;  %6261 = vmatprep.mubr.msk.bf16.mxu0 %vm1593_vm2, %v6677_v27  ;;  %6457 = vmatprep.mubr.msk.bf16.mxu1 %vm1593_vm2, %v6678_v56  ;;  %v6680_v38 = vld [vmem:[%s6797_s26 + $0x528] sm:$0xff]   ;;  %v6682_v2 = vld [vmem:[%s6797_s26 + $0x530] sm:$0xff]  }
 0x126   : > { %v7202_v39 = vpop.f32.mrf.mxu0  ;;  %v7204_v26 = vpop.f32.mrf.mxu1 }
 0x127   : > { %9399 = vst [vmem:[#allocation18_spill] sm:$0xff] %v7202_v39  ;;  %9400 = vst [vmem:[#allocation19_spill] sm:$0xff] %v7204_v26 }
 0x128   : > { %v7206_v1 = vpop.f32.mrf.mxu0  ;;  %v7208_v28 = vpop.f32.mrf.mxu1 }
 0x129   : > { %9401 = vst [vmem:[#allocation20_spill] sm:$0xff] %v7206_v1  ;;  %9402 = vst [vmem:[#allocation21_spill] sm:$0xff] %v7208_v28 }
 0x12a   : > { %v7214_v55 = vpop.f32.mrf.mxu0  ;;  %v7216_v27 = vpop.f32.mrf.mxu1 }
 0x12b   : > { %9403 = vst [vmem:[#allocation22_spill] sm:$0xff] %v7214_v55  ;;  %9404 = vst [vmem:[#allocation23_spill] sm:$0xff] %v7216_v27  ;;  %v6683_v27 = vld [vmem:[%s6797_s26 + $0x228] sm:$0xff]  }
 0x12c   : > { %v7218_v56 = vpop.f32.mrf.mxu0  ;;  %6262 = vmatmul.mubr.msk.bf16.gmra.mxu0 %vm1593_vm2, %v6679_v37  ;;  %v7221_v26 = vpop.f32.mrf.mxu1  ;;  %6458 = vmatmul.mubr.msk.bf16.gmra.mxu1 %vm1593_vm2, %v6680_v38  ;;  %v6685_v37 = vld [vmem:[%s6797_s26 + $0x230] sm:$0xff]  }
 0x12d   : > { %9405 = vst [vmem:[#allocation24_spill] sm:$0xff] %v7218_v56  ;;  %9406 = vst [vmem:[#allocation25_spill] sm:$0xff] %v7221_v26  ;;  %6265 = vmatprep.mubr.msk.bf16.mxu0 %vm1593_vm2, %v6681_v40  ;;  %6461 = vmatprep.mubr.msk.bf16.mxu1 %vm1593_vm2, %v6682_v2  ;;  %v6684_v56 = vld [vmem:[%s6797_s26 + $0x538] sm:$0xff]   ;;  %v6686_v26 = vld [vmem:[%s6797_s26 + $0x540] sm:$0xff]  }
 0x12e   : > { %v7226_v28 = vpop.f32.mrf.mxu0  ;;  %v7228_v1 = vpop.f32.mrf.mxu1 }
 0x12f   : > { %9407 = vst [vmem:[#allocation26_spill] sm:$0xff] %v7226_v28  ;;  %9408 = vst [vmem:[#allocation27_spill] sm:$0xff] %v7228_v1 }
 0x130   : > { %v7230_v39 = vpop.f32.mrf.mxu0  ;;  %v7232_v55 = vpop.f32.mrf.mxu1 }
 0x131   : > { %9409 = vst [vmem:[#allocation28_spill] sm:$0xff] %v7230_v39  ;;  %9410 = vst [vmem:[#allocation29_spill] sm:$0xff] %v7232_v55 }
 0x132   : > { %v7238_v38 = vpop.f32.mrf.mxu0  ;;  %v7240_v40 = vpop.f32.mrf.mxu1 }
 0x133   : > { %9411 = vst [vmem:[#allocation30_spill] sm:$0xff] %v7238_v38  ;;  %9412 = vst [vmem:[#allocation31_spill] sm:$0xff] %v7240_v40  ;;  %v6687_v40 = vld [vmem:[%s6797_s26 + $0x238] sm:$0xff]  }
 0x134   : > { %v7242_v2 = vpop.f32.mrf.mxu0  ;;  %6266 = vmatmul.mubr.msk.bf16.gmra.mxu0 %vm1593_vm2, %v6683_v27  ;;  %v7245_v1 = vpop.f32.mrf.mxu1  ;;  %6462 = vmatmul.mubr.msk.bf16.gmra.mxu1 %vm1593_vm2, %v6684_v56  ;;  %v6689_v27 = vld [vmem:[%s6797_s26 + $0x240] sm:$0xff]  }
 0x135   : > { %9413 = vst [vmem:[#allocation32_spill] sm:$0xff] %v7242_v2  ;;  %9414 = vst [vmem:[#allocation33_spill] sm:$0xff] %v7245_v1  ;;  %6269 = vmatprep.mubr.msk.bf16.mxu0 %vm1593_vm2, %v6685_v37  ;;  %6465 = vmatprep.mubr.msk.bf16.mxu1 %vm1593_vm2, %v6686_v26  ;;  %v6688_v2 = vld [vmem:[%s6797_s26 + $0x548] sm:$0xff]   ;;  %v6690_v1 = vld [vmem:[%s6797_s26 + $0x550] sm:$0xff]  }
 0x136   : > { %v7250_v55 = vpop.f32.mrf.mxu0  ;;  %v7252_v39 = vpop.f32.mrf.mxu1 }
 0x137   : > { %9415 = vst [vmem:[#allocation34_spill] sm:$0xff] %v7250_v55  ;;  %9416 = vst [vmem:[#allocation35_spill] sm:$0xff] %v7252_v39 }
 0x138   : > { %v7254_v28 = vpop.f32.mrf.mxu0  ;;  %v7256_v38 = vpop.f32.mrf.mxu1 }
 0x139   : > { %9417 = vst [vmem:[#allocation36_spill] sm:$0xff] %v7254_v28  ;;  %9418 = vst [vmem:[#allocation37_spill] sm:$0xff] %v7256_v38 }
 0x13a   : > { %v7262_v56 = vpop.f32.mrf.mxu0  ;;  %v7264_v37 = vpop.f32.mrf.mxu1 }
 0x13b   : > { %9419 = vst [vmem:[#allocation38_spill] sm:$0xff] %v7262_v56  ;;  %9420 = vst [vmem:[#allocation39_spill] sm:$0xff] %v7264_v37  ;;  %v6691_v37 = vld [vmem:[%s6797_s26 + $0x248] sm:$0xff]  }
 0x13c   : > { %v7266_v26 = vpop.f32.mrf.mxu0  ;;  %6270 = vmatmul.mubr.msk.bf16.gmra.mxu0 %vm1593_vm2, %v6687_v40  ;;  %v7269_v39 = vpop.f32.mrf.mxu1  ;;  %6466 = vmatmul.mubr.msk.bf16.gmra.mxu1 %vm1593_vm2, %v6688_v2  ;;  %v6693_v40 = vld [vmem:[%s6797_s26 + $0x250] sm:$0xff]  }
 0x13d   : > { %9421 = vst [vmem:[#allocation40_spill] sm:$0xff] %v7266_v26  ;;  %9422 = vst [vmem:[#allocation41_spill] sm:$0xff] %v7269_v39  ;;  %6273 = vmatprep.mubr.msk.bf16.mxu0 %vm1593_vm2, %v6689_v27  ;;  %6469 = vmatprep.mubr.msk.bf16.mxu1 %vm1593_vm2, %v6690_v1  ;;  %v6692_v26 = vld [vmem:[%s6797_s26 + $0x558] sm:$0xff]   ;;  %v6694_v39 = vld [vmem:[%s6797_s26 + $0x560] sm:$0xff]  }
 0x13e   : > { %v7274_v38 = vpop.f32.mrf.mxu0  ;;  %v7276_v28 = vpop.f32.mrf.mxu1 }
 0x13f   : > { %9423 = vst [vmem:[#allocation42_spill] sm:$0xff] %v7274_v38  ;;  %9424 = vst [vmem:[#allocation43_spill] sm:$0xff] %v7276_v28 }
 0x140   : > { %v7278_v55 = vpop.f32.mrf.mxu0  ;;  %v7280_v56 = vpop.f32.mrf.mxu1 }
 0x141   : > { %9425 = vst [vmem:[#allocation44_spill] sm:$0xff] %v7278_v55  ;;  %9426 = vst [vmem:[#allocation45_spill] sm:$0xff] %v7280_v56 }
 0x142   : > { %v7286_v2 = vpop.f32.mrf.mxu0  ;;  %v7288_v27 = vpop.f32.mrf.mxu1 }
 0x143   : > { %9427 = vst [vmem:[#allocation46_spill] sm:$0xff] %v7286_v2  ;;  %9428 = vst [vmem:[#allocation47_spill] sm:$0xff] %v7288_v27  ;;  %v6695_v27 = vld [vmem:[%s6797_s26 + $0x258] sm:$0xff]  }
 0x144   : > { %v7290_v1 = vpop.f32.mrf.mxu0  ;;  %6274 = vmatmul.mubr.msk.bf16.gmra.mxu0 %vm1593_vm2, %v6691_v37  ;;  %v7293_v28 = vpop.f32.mrf.mxu1  ;;  %6470 = vmatmul.mubr.msk.bf16.gmra.mxu1 %vm1593_vm2, %v6692_v26  ;;  %v6697_v37 = vld [vmem:[%s6797_s26 + $0x260] sm:$0xff]  }
 0x145   : > { %9429 = vst [vmem:[#allocation48_spill] sm:$0xff] %v7290_v1  ;;  %9430 = vst [vmem:[#allocation49_spill] sm:$0xff] %v7293_v28  ;;  %6277 = vmatprep.mubr.msk.bf16.mxu0 %vm1593_vm2, %v6693_v40  ;;  %6473 = vmatprep.mubr.msk.bf16.mxu1 %vm1593_vm2, %v6694_v39  ;;  %v6696_v1 = vld [vmem:[%s6797_s26 + $0x568] sm:$0xff]   ;;  %v6698_v28 = vld [vmem:[%s6797_s26 + $0x570] sm:$0xff]  }
 0x146   : > { %v7298_v56 = vpop.f32.mrf.mxu0  ;;  %v7300_v55 = vpop.f32.mrf.mxu1 }
 0x147   : > { %9431 = vst [vmem:[#allocation50_spill] sm:$0xff] %v7298_v56  ;;  %9432 = vst [vmem:[#allocation51_spill] sm:$0xff] %v7300_v55 }
 0x148   : > { %v7302_v38 = vpop.f32.mrf.mxu0  ;;  %v7304_v2 = vpop.f32.mrf.mxu1 }
 0x149   : > { %9433 = vst [vmem:[#allocation52_spill] sm:$0xff] %v7302_v38  ;;  %9434 = vst [vmem:[#allocation53_spill] sm:$0xff] %v7304_v2 }
 0x14a   : > { %v7310_v26 = vpop.f32.mrf.mxu0  ;;  %v7312_v40 = vpop.f32.mrf.mxu1 }
 0x14b   : > { %9435 = vst [vmem:[#allocation54_spill] sm:$0xff] %v7310_v26  ;;  %9436 = vst [vmem:[#allocation55_spill] sm:$0xff] %v7312_v40  ;;  %v6699_v40 = vld [vmem:[%s6797_s26 + $0x268] sm:$0xff]  }
 0x14c   : > { %v7314_v39 = vpop.f32.mrf.mxu0  ;;  %6278 = vmatmul.mubr.msk.bf16.gmra.mxu0 %vm1593_vm2, %v6695_v27  ;;  %v7317_v55 = vpop.f32.mrf.mxu1  ;;  %6474 = vmatmul.mubr.msk.bf16.gmra.mxu1 %vm1593_vm2, %v6696_v1  ;;  %v6702_v27 = vld [vmem:[%s6797_s26 + $0x580] sm:$0xff]  }
 0x14d   : > { %9437 = vst [vmem:[#allocation56_spill] sm:$0xff] %v7314_v39  ;;  %9438 = vst [vmem:[#allocation57_spill] sm:$0xff] %v7317_v55  ;;  %6281 = vmatprep.mubr.msk.bf16.mxu0 %vm1593_vm2, %v6697_v37  ;;  %6477 = vmatprep.mubr.msk.bf16.mxu1 %vm1593_vm2, %v6698_v28  ;;  %v6700_v39 = vld [vmem:[%s6797_s26 + $0x578] sm:$0xff]   ;;  %v7341_v28 = vld [vmem:[%s9225_s2] ss:$0 sm:$0xff] }
 0x14e   : > { %v7322_v2 = vpop.f32.mrf.mxu0  ;;  %v7324_v38 = vpop.f32.mrf.mxu1 }
 0x14f   : > { %9439 = vst [vmem:[#allocation58_spill] sm:$0xff] %v7322_v2  ;;  %9440 = vst [vmem:[#allocation59_spill] sm:$0xff] %v7324_v38  ;;  %v7414_v38 = vadd.f32 %v7341_v28, %v7036_v62  ;;  %v7435_v2 = vadd.f32 %v7040_v0, %v7341_v28  ;;  %v7444_v62 = vadd.f32 %v7341_v28, %v7046_v5 }
 0x150   : > { %v7326_v56 = vpop.f32.mrf.mxu0  ;;  %v7328_v26 = vpop.f32.mrf.mxu1  ;;  %v7462_v5 = vadd.f32 %v7053_v8, %v7341_v28 }
 0x151   : > { %9441 = vst [vmem:[#allocation60_spill] sm:$0xff] %v7326_v56  ;;  %9442 = vst [vmem:[#allocation61_spill] sm:$0xff] %v7328_v26  ;;  %v6706_v26 = vld [vmem:[%s6797_s26 + $0x590] sm:$0xff]  }
 0x152   : > { %v7334_v16 = vpop.f32.mrf.mxu0  ;;  %v7336_v55 = vpop.f32.mrf.mxu1  ;;  %9463 = vst [vmem:[#allocation82_spill] sm:$0xff] %v7414_v38  ;;  %9465 = vst [vmem:[#allocation84_spill] sm:$0xff] %v7435_v2  ;;  %v6713_v2 = vld [vmem:[%s6797_s26 + $0x2a0] sm:$0xff]  }
 0x153   : > { %9443 = vst [vmem:[#allocation62_spill] sm:$0xff] %v7334_v16  ;;  %9444 = vst [vmem:[#allocation63_spill] sm:$0xff] %v7336_v55 }
 0x154   : > { %v7343_v1 = vpop.f32.mrf.mxu0  ;;  %6282 = vmatmul.mubr.msk.bf16.gmra.mxu0 %vm1593_vm2, %v6699_v40  ;;  %v7346_v37 = vpop.f32.mrf.mxu1  ;;  %6478 = vmatmul.mubr.msk.bf16.gmra.mxu1 %vm1593_vm2, %v6700_v39  ;;  %v7361_v40 = vadd.f32 %v7005_v48, %v7341_v28  ;;  %v7365_v39 = vadd.f32 %v7341_v28, %v7010_v49  ;;  %v7383_v48 = vadd.f32 %v7016_v52, %v7341_v28 }
 0x155   : > { %9445 = vst [vmem:[#allocation64_spill] sm:$0xff] %v7343_v1  ;;  %9446 = vst [vmem:[#allocation65_spill] sm:$0xff] %v7346_v37  ;;  %6285 = vmatprep.mubr.msk.bf16.mxu0 %vm1593_vm2, %v6701_v25  ;;  %6481 = vmatprep.mubr.msk.bf16.mxu1 %vm1593_vm2, %v6702_v27  ;;  %v7357_v1 = vadd.f32 %v7002_v47, %v7341_v28  ;;  %v7369_v25 = vadd.f32 %v7341_v28, %v7012_v50  ;;  %v6704_v37 = vld [vmem:[%s6797_s26 + $0x588] sm:$0xff]  }
 0x156   : > { %v7351_v55 = vpop.f32.mrf.mxu0  ;;  %v7353_v16 = vpop.f32.mrf.mxu1  ;;  %9450 = vst [vmem:[#allocation69_spill] sm:$0xff] %v7361_v40  ;;  %9451 = vst [vmem:[#allocation70_spill] sm:$0xff] %v7365_v39  ;;  %v7373_v27 = vadd.f32 %v7014_v51, %v7341_v28  ;;  %v7387_v49 = vadd.f32 %v7341_v28, %v7022_v57  ;;  %v7391_v50 = vadd.f32 %v7341_v28, %v7024_v58  ;;  %v6705_v51 = vld [vmem:[%s6797_s26 + $0x280] sm:$0xff]  }
 0x157   : > { %9447 = vst [vmem:[#allocation66_spill] sm:$0xff] %v7351_v55  ;;  %9448 = vst [vmem:[#allocation67_spill] sm:$0xff] %v7353_v16  ;;  %v6703_v55 = vld [vmem:[%s6797_s26 + $0x278] sm:$0xff]   ;;  %v7405_v52 = vadd.f32 %v7341_v28, %v7034_v61  ;;  %v7558_v40 = vadd.f32 %v7341_v28, %v7096_v30  ;;  %v7578_v30 = vadd.f32 %v7110_v35, %v7341_v28 }
 0x158   : > { %9449 = vst [vmem:[#allocation68_spill] sm:$0xff] %v7357_v1  ;;  %9452 = vst [vmem:[#allocation71_spill] sm:$0xff] %v7369_v25  ;;  %v7375_v16 = vpop.f32.mrf.mxu0  ;;  %v7377_v47 = vpop.f32.mrf.mxu1  ;;  %v6708_v61 = vld [vmem:[%s6797_s26 + $0x598] sm:$0xff]   ;;  %v7597_v35 = vadd.f32 %v7341_v28, %v7120_v42 }
 0x159   : > { %9453 = vst [vmem:[#allocation72_spill] sm:$0xff] %v7373_v27  ;;  %9454 = vst [vmem:[#allocation73_spill] sm:$0xff] %v7375_v16  ;;  %v7397_v16 = vadd.f32 %v7026_v59, %v7341_v28  ;;  %v7418_v59 = vadd.f32 %v7038_v63, %v7341_v28  ;;  %v6707_v63 = vld [vmem:[%s6797_s26 + $0x288] sm:$0xff]  }
 0x15a   : > { %9455 = vst [vmem:[#allocation74_spill] sm:$0xff] %v7377_v47  ;;  %9456 = vst [vmem:[#allocation75_spill] sm:$0xff] %v7383_v48  ;;  %v7401_v47 = vadd.f32 %v7029_v60, %v7341_v28  ;;  %v7407_v57 = vpop.f32.mrf.mxu0  ;;  %v7409_v56 = vpop.f32.mrf.mxu1  ;;  %v7500_v48 = vadd.f32 %v7074_v19, %v7341_v28  ;;  %v7518_v19 = vadd.f32 %v7341_v28, %v7084_v22 }
 0x15b   : > { %9457 = vst [vmem:[#allocation76_spill] sm:$0xff] %v7387_v49  ;;  %9458 = vst [vmem:[#allocation77_spill] sm:$0xff] %v7391_v50  ;;  %v7548_v22 = vadd.f32 %v7341_v28, %v7094_v29  ;;  %v7566_v29 = vadd.f32 %v7101_v32, %v7341_v28 }
 0x15c   : > { %9459 = vst [vmem:[#allocation78_spill] sm:$0xff] %v7397_v16  ;;  %9460 = vst [vmem:[#allocation79_spill] sm:$0xff] %v7401_v47  ;;  %v7424_v15 = vpop.f32.mrf.mxu0  ;;  %6286 = vmatmul.mubr.msk.bf16.gmra.mxu0 %vm1593_vm2, %v6703_v55  ;;  %v7427_v58 = vpop.f32.mrf.mxu1  ;;  %6482 = vmatmul.mubr.msk.bf16.gmra.mxu1 %vm1593_vm2, %v6704_v37  ;;  %v7458_v55 = vadd.f32 %v7050_v7, %v7341_v28  ;;  %v7466_v37 = vadd.f32 %v7341_v28, %v7058_v9  ;;  %v6710_v47 = vld [vmem:[%s6797_s26 + $0x5a0] sm:$0xff]  }
 0x15d   : > { %9461 = vst [vmem:[#allocation80_spill] sm:$0xff] %v7405_v52  ;;  %9462 = vst [vmem:[#allocation81_spill] sm:$0xff] %v7407_v57  ;;  %6289 = vmatprep.mubr.msk.bf16.mxu0 %vm1593_vm2, %v6705_v51  ;;  %6485 = vmatprep.mubr.msk.bf16.mxu1 %vm1593_vm2, %v6706_v26  ;;  %v7454_v57 = vadd.f32 %v7341_v28, %v7048_v6  ;;  %v7470_v26 = vadd.f32 %v7341_v28, %v7060_v10 }
 0x15e   : > { %9464 = vst [vmem:[#allocation83_spill] sm:$0xff] %v7418_v59  ;;  %9466 = vst [vmem:[#allocation85_spill] sm:$0xff] %v7444_v62  ;;  %v7446_v60 = vpop.f32.mrf.mxu0  ;;  %v7448_v0 = vpop.f32.mrf.mxu1  ;;  %v7474_v6 = vadd.f32 %v7062_v11, %v7341_v28  ;;  %v7485_v9 = vadd.f32 %v7064_v12, %v7341_v28  ;;  %v7489_v10 = vadd.f32 %v7341_v28, %v7070_v17  ;;  %v6709_v59 = vld [vmem:[%s6797_s26 + $0x290] sm:$0xff]   ;;  %v6712_v62 = vld [vmem:[%s6797_s26 + $0x5a8] sm:$0xff]  }
 0x15f   : > { %9467 = vst [vmem:[#allocation86_spill] sm:$0xff] %v7454_v57  ;;  %9468 = vst [vmem:[#allocation87_spill] sm:$0xff] %v7458_v55  ;;  %v7493_v11 = vadd.f32 %v7341_v28, %v7072_v18  ;;  %v7504_v12 = vadd.f32 %v7077_v20, %v7341_v28  ;;  %v7508_v17 = vadd.f32 %v7341_v28, %v7082_v21 }
 0x160   : > { %9469 = vst [vmem:[#allocation88_spill] sm:$0xff] %v7462_v5  ;;  %9470 = vst [vmem:[#allocation89_spill] sm:$0xff] %v7466_v37  ;;  %v7476_v51 = vpop.f32.mrf.mxu0  ;;  %v7478_v7 = vpop.f32.mrf.mxu1  ;;  %v7522_v20 = vadd.f32 %v7086_v23, %v7341_v28  ;;  %v7539_v21 = vadd.f32 %v7088_v24, %v7341_v28  ;;  %v6711_v23 = vld [vmem:[%s6797_s26 + $0x298] sm:$0xff]   ;;  %v9554_v37 = vld [vmem:[#allocation28_spill] sm:$0xff] }
 0x161   : > { %9471 = vst [vmem:[#allocation90_spill] sm:$0xff] %v7470_v26  ;;  %9472 = vst [vmem:[#allocation91_spill] sm:$0xff] %v7474_v6  ;;  %v9506_v6 = vld [vmem:[#allocation4_spill] sm:$0xff] }
 0x162   : > { %9473 = vst [vmem:[#allocation92_spill] sm:$0xff] %v7485_v9  ;;  %9474 = vst [vmem:[#allocation93_spill] sm:$0xff] %v7489_v10  ;;  %v7510_v8 = vpop.f32.mrf.mxu0  ;;  %v7512_v18 = vpop.f32.mrf.mxu1 }
 0x163   : > { %9475 = vst [vmem:[#allocation94_spill] sm:$0xff] %v7493_v11  ;;  %9476 = vst [vmem:[#allocation95_spill] sm:$0xff] %v7500_v48  ;;  %v7604_v48 = vadd.f32 %v7122_v43, %v7341_v28  ;;  %v7622_v43 = vadd.f32 %v7341_v28, %v7132_v46  ;;  %v7652_v46 = vadd.f32 %v7341_v28, %v7142_v3 }
 0x164   : > { %9477 = vst [vmem:[#allocation96_spill] sm:$0xff] %v7504_v12  ;;  %9478 = vst [vmem:[#allocation97_spill] sm:$0xff] %v7508_v17  ;;  %v7528_v38 = vpop.f32.mrf.mxu0  ;;  %6290 = vmatmul.mubr.msk.bf16.gmra.mxu0 %vm1593_vm2, %v6707_v63  ;;  %v7531_v16 = vpop.f32.mrf.mxu1  ;;  %6486 = vmatmul.mubr.msk.bf16.gmra.mxu1 %vm1593_vm2, %v6708_v61  ;;  %v7562_v63 = vadd.f32 %v7098_v31, %v7341_v28  ;;  %v7570_v61 = vadd.f32 %v7341_v28, %v7106_v33 }
 0x165   : > { %9479 = vst [vmem:[#allocation98_spill] sm:$0xff] %v7518_v19  ;;  %9480 = vst [vmem:[#allocation99_spill] sm:$0xff] %v7522_v20  ;;  %6293 = vmatprep.mubr.msk.bf16.mxu0 %vm1593_vm2, %v6709_v59  ;;  %6489 = vmatprep.mubr.msk.bf16.mxu1 %vm1593_vm2, %v6710_v47  ;;  %v7574_v47 = vadd.f32 %v7341_v28, %v7108_v34  ;;  %v7589_v33 = vadd.f32 %v7112_v36, %v7341_v28  ;;  %v6714_v20 = vld [vmem:[%s6797_s26 + $0x5b0] sm:$0xff]  }
 0x166   : > { %9481 = vst [vmem:[#allocation100_spill] sm:$0xff] %v7539_v21  ;;  %9482 = vst [vmem:[#allocation101_spill] sm:$0xff] %v7548_v22  ;;  %v7550_v27 = vpop.f32.mrf.mxu0  ;;  %v7552_v24 = vpop.f32.mrf.mxu1  ;;  %v7593_v34 = vadd.f32 %v7341_v28, %v7118_v41  ;;  %v7608_v36 = vadd.f32 %v7125_v44, %v7341_v28  ;;  %v7612_v41 = vadd.f32 %v7341_v28, %v7130_v45 }
 0x167   : > { %9483 = vst [vmem:[#allocation102_spill] sm:$0xff] %v7558_v40  ;;  %9484 = vst [vmem:[#allocation103_spill] sm:$0xff] %v7562_v63  ;;  %v7626_v44 = vadd.f32 %v7134_v53, %v7341_v28  ;;  %v7643_v45 = vadd.f32 %v7136_v54, %v7341_v28  ;;  %v7662_v22 = vadd.f32 %v7341_v28, %v7144_v4 }
 0x168   : > { %9485 = vst [vmem:[#allocation104_spill] sm:$0xff] %v7566_v29  ;;  %9486 = vst [vmem:[#allocation105_spill] sm:$0xff] %v7570_v61  ;;  %v7580_v59 = vpop.f32.mrf.mxu0  ;;  %v7582_v31 = vpop.f32.mrf.mxu1  ;;  %v7670_v3 = vadd.f32 %v7149_v14, %v7341_v28  ;;  %v7682_v4 = vadd.f32 %v9506_v6, %v7341_v28  ;;  %v6717_v29 = vld [vmem:[%s6797_s26 + $0x2b0] sm:$0xff]   ;;  %v9516_v14 = vld [vmem:[#allocation9_spill] sm:$0xff] }
 0x169   : > { %9487 = vst [vmem:[#allocation106_spill] sm:$0xff] %v7574_v47  ;;  %9488 = vst [vmem:[#allocation107_spill] sm:$0xff] %v7578_v30  ;;  %v9512_v30 = vld [vmem:[#allocation7_spill] sm:$0xff]  ;;  %v9522_v61 = vld [vmem:[#allocation12_spill] sm:$0xff] }
 0x16a   : > { %9489 = vst [vmem:[#allocation108_spill] sm:$0xff] %v7589_v33  ;;  %9490 = vst [vmem:[#allocation109_spill] sm:$0xff] %v7593_v34  ;;  %v7614_v32 = vpop.f32.mrf.mxu0  ;;  %v7616_v42 = vpop.f32.mrf.mxu1  ;;  %v9510_v33 = vld [vmem:[#allocation6_spill] sm:$0xff]  ;;  %v7701_v6 = vadd.f32 %v7341_v28, %v9512_v30 }
 0x16b   : > { %9491 = vst [vmem:[#allocation110_spill] sm:$0xff] %v7597_v35  ;;  %9492 = vst [vmem:[#allocation111_spill] sm:$0xff] %v7604_v48  ;;  %v9508_v48 = vld [vmem:[#allocation5_spill] sm:$0xff] }
 0x16c   : > { %9493 = vst [vmem:[#allocation112_spill] sm:$0xff] %v7608_v36  ;;  %9494 = vst [vmem:[#allocation113_spill] sm:$0xff] %v7612_v41  ;;  %v7632_v5 = vpop.f32.mrf.mxu0  ;;  %6294 = vmatmul.mubr.msk.bf16.gmra.mxu0 %vm1593_vm2, %v6711_v23  ;;  %v7635_v12 = vpop.f32.mrf.mxu1  ;;  %6490 = vmatmul.mubr.msk.bf16.gmra.mxu1 %vm1593_vm2, %v6712_v62  ;;  %v7666_v23 = vadd.f32 %v7146_v13, %v7341_v28  ;;  %v9502_v62 = vld [vmem:[#allocation2_spill] sm:$0xff]  ;;  %v6716_v36 = vld [vmem:[%s6797_s26 + $0x5b8] sm:$0xff]  }
 0x16d   : > { %9495 = vst [vmem:[#allocation114_spill] sm:$0xff] %v7622_v43  ;;  %9496 = vst [vmem:[#allocation115_spill] sm:$0xff] %v7626_v44  ;;  %6297 = vmatprep.mubr.msk.bf16.mxu0 %vm1593_vm2, %v6713_v2  ;;  %6493 = vmatprep.mubr.msk.bf16.mxu1 %vm1593_vm2, %v6714_v20  ;;  %v7674_v53 = vadd.f32 %v7341_v28, %v9502_v62  ;;  %v9504_v2 = vld [vmem:[#allocation3_spill] sm:$0xff]  ;;  %v7693_v62 = vadd.f32 %v9508_v48, %v7341_v28  ;;  %v6718_v43 = vld [vmem:[%s6797_s26 + $0x5c0] sm:$0xff]  }
 0x16e   : > { %9497 = vst [vmem:[#allocation116_spill] sm:$0xff] %v7643_v45  ;;  %9498 = vst [vmem:[#allocation117_spill] sm:$0xff] %v7652_v46  ;;  %v7654_v9 = vpop.f32.mrf.mxu0  ;;  %v7656_v54 = vpop.f32.mrf.mxu1  ;;  %v7678_v20 = vadd.f32 %v7341_v28, %v9504_v2  ;;  %v6715_v44 = vld [vmem:[%s6797_s26 + $0x2a8] sm:$0xff]   ;;  %v7697_v2 = vadd.f32 %v7341_v28, %v9510_v33  ;;  %v9514_v41 = vld [vmem:[#allocation8_spill] sm:$0xff]  ;;  %v7712_v48 = vadd.f32 %v9516_v14, %v7341_v28 }
 0x16f   : > { %9499 = vst [vmem:[#allocation118_spill] sm:$0xff] %v7662_v22  ;;  %9500 = vst [vmem:[#allocation119_spill] sm:$0xff] %v7666_v23  ;;  %v7708_v35 = vadd.f32 %v9514_v41, %v7341_v28  ;;  %v9518_v45 = vld [vmem:[#allocation10_spill] sm:$0xff]  ;;  %v9520_v46 = vld [vmem:[#allocation11_spill] sm:$0xff]  ;;  %v7730_v14 = vadd.f32 %v9522_v61, %v7341_v28 }
 0x170   : > { %9501 = vst [vmem:[#allocation120_spill] sm:$0xff] %v7670_v3  ;;  %9503 = vst [vmem:[#allocation2_spill] sm:$0xff] %v7674_v53  ;;  %v7684_v21 = vpop.f32.mrf.mxu0  ;;  %v7686_v13 = vpop.f32.mrf.mxu1  ;;  %v7716_v33 = vadd.f32 %v7341_v28, %v9518_v45  ;;  %v7726_v41 = vadd.f32 %v7341_v28, %v9520_v46  ;;  %v9524_v45 = vld [vmem:[#allocation13_spill] sm:$0xff]  ;;  %v9526_v46 = vld [vmem:[#allocation14_spill] sm:$0xff] }
 0x171   : > { %9505 = vst [vmem:[#allocation3_spill] sm:$0xff] %v7678_v20  ;;  %9507 = vst [vmem:[#allocation4_spill] sm:$0xff] %v7682_v4  ;;  %v7747_v47 = vadd.f32 %v9524_v45, %v7341_v28  ;;  %v7756_v61 = vadd.f32 %v7341_v28, %v9526_v46  ;;  %v9532_v46 = vld [vmem:[#allocation17_spill] sm:$0xff]  ;;  %v6720_v23 = vld [vmem:[%s6797_s26 + $0x5c8] sm:$0xff]  }
 0x172   : > { %9509 = vst [vmem:[#allocation5_spill] sm:$0xff] %v7693_v62  ;;  %9511 = vst [vmem:[#allocation6_spill] sm:$0xff] %v7697_v2  ;;  %v7718_v34 = vpop.f32.mrf.mxu0  ;;  %v7720_v30 = vpop.f32.mrf.mxu1  ;;  %v6719_v3 = vld [vmem:[%s6797_s26 + $0x2b8] sm:$0xff]   ;;  %v6721_v2 = vld [vmem:[%s6797_s26 + $0x2c0] sm:$0xff]  }
 0x173   : > { %9513 = vst [vmem:[#allocation7_spill] sm:$0xff] %v7701_v6  ;;  %9515 = vst [vmem:[#allocation8_spill] sm:$0xff] %v7708_v35  ;;  %v9534_v35 = vld [vmem:[#allocation18_spill] sm:$0xff]  ;;  %v9544_v6 = vld [vmem:[#allocation23_spill] sm:$0xff] }
 0x174   : > { %9517 = vst [vmem:[#allocation9_spill] sm:$0xff] %v7712_v48  ;;  %9519 = vst [vmem:[#allocation10_spill] sm:$0xff] %v7716_v33  ;;  %v7736_v17 = vpop.f32.mrf.mxu0  ;;  %6298 = vmatmul.mubr.msk.bf16.gmra.mxu0 %vm1593_vm2, %v6715_v44  ;;  %v7739_v63 = vpop.f32.mrf.mxu1  ;;  %6494 = vmatmul.mubr.msk.bf16.gmra.mxu1 %vm1593_vm2, %v6716_v36  ;;  %v9528_v44 = vld [vmem:[#allocation15_spill] sm:$0xff]  ;;  %v9530_v36 = vld [vmem:[#allocation16_spill] sm:$0xff]  ;;  %v7774_v48 = vadd.f32 %v9532_v46, %v7341_v28  ;;  %v7778_v62 = vadd.f32 %v7341_v28, %v9534_v35 }
 0x175   : > { %9521 = vst [vmem:[#allocation11_spill] sm:$0xff] %v7726_v41  ;;  %9523 = vst [vmem:[#allocation12_spill] sm:$0xff] %v7730_v14  ;;  %6301 = vmatprep.mubr.msk.bf16.mxu0 %vm1593_vm2, %v6717_v29  ;;  %6497 = vmatprep.mubr.msk.bf16.mxu1 %vm1593_vm2, %v6718_v43  ;;  %v7766_v19 = vadd.f32 %v7341_v28, %v9528_v44  ;;  %v7770_v55 = vadd.f32 %v9530_v36, %v7341_v28  ;;  %v9536_v29 = vld [vmem:[#allocation19_spill] sm:$0xff]  ;;  %v9538_v14 = vld [vmem:[#allocation20_spill] sm:$0xff] }
 0x176   : > { %9525 = vst [vmem:[#allocation13_spill] sm:$0xff] %v7747_v47  ;;  %9527 = vst [vmem:[#allocation14_spill] sm:$0xff] %v7756_v61  ;;  %v7758_v40 = vpop.f32.mrf.mxu0  ;;  %v7760_v45 = vpop.f32.mrf.mxu1  ;;  %v7782_v43 = vadd.f32 %v7341_v28, %v9536_v29  ;;  %v7786_v44 = vadd.f32 %v9538_v14, %v7341_v28  ;;  %v9540_v41 = vld [vmem:[#allocation21_spill] sm:$0xff]  ;;  %v9542_v33 = vld [vmem:[#allocation22_spill] sm:$0xff]  ;;  %v7805_v14 = vadd.f32 %v7341_v28, %v9544_v6 }
 0x177   : > { %9529 = vst [vmem:[#allocation15_spill] sm:$0xff] %v7766_v19  ;;  %9531 = vst [vmem:[#allocation16_spill] sm:$0xff] %v7770_v55  ;;  %v7797_v35 = vadd.f32 %v9540_v41, %v7341_v28  ;;  %v7801_v29 = vadd.f32 %v7341_v28, %v9542_v33  ;;  %v6722_v20 = vld [vmem:[%s6797_s26 + $0x5d0] sm:$0xff]   ;;  %v9548_v46 = vld [vmem:[#allocation25_spill] sm:$0xff] }
 0x178   : > { %9533 = vst [vmem:[#allocation17_spill] sm:$0xff] %v7774_v48  ;;  %9535 = vst [vmem:[#allocation18_spill] sm:$0xff] %v7778_v62  ;;  %v7788_v4 = vpop.f32.mrf.mxu0  ;;  %v7790_v36 = vpop.f32.mrf.mxu1  ;;  %v9546_v22 = vld [vmem:[#allocation24_spill] sm:$0xff]  ;;  %v7816_v41 = vadd.f32 %v9548_v46, %v7341_v28  ;;  %v9550_v47 = vld [vmem:[#allocation26_spill] sm:$0xff]  ;;  %v7834_v46 = vadd.f32 %v9554_v37, %v7341_v28 }
 0x179   : > { %9537 = vst [vmem:[#allocation19_spill] sm:$0xff] %v7782_v43  ;;  %9539 = vst [vmem:[#allocation20_spill] sm:$0xff] %v7786_v44  ;;  %v7812_v11 = vadd.f32 %v9546_v22, %v7341_v28  ;;  %v7820_v33 = vadd.f32 %v7341_v28, %v9550_v47  ;;  %v9552_v61 = vld [vmem:[#allocation27_spill] sm:$0xff]  ;;  %v9556_v47 = vld [vmem:[#allocation29_spill] sm:$0xff] }
 0x17a   : > { %9541 = vst [vmem:[#allocation21_spill] sm:$0xff] %v7797_v35  ;;  %9543 = vst [vmem:[#allocation22_spill] sm:$0xff] %v7801_v29  ;;  %v7822_v10 = vpop.f32.mrf.mxu0  ;;  %v7824_v6 = vpop.f32.mrf.mxu1  ;;  %v7830_v22 = vadd.f32 %v7341_v28, %v9552_v61  ;;  %v7851_v26 = vadd.f32 %v9556_v47, %v7341_v28  ;;  %v9558_v61 = vld [vmem:[#allocation30_spill] sm:$0xff]  ;;  %v6723_v48 = vld [vmem:[%s6797_s26 + $0x2c8] sm:$0xff]  }
 0x17b   : > { %9545 = vst [vmem:[#allocation23_spill] sm:$0xff] %v7805_v14  ;;  %9547 = vst [vmem:[#allocation24_spill] sm:$0xff] %v7812_v11  ;;  %v7860_v37 = vadd.f32 %v7341_v28, %v9558_v61  ;;  %v9565_v61 = vld [vmem:[#allocation33_spill] sm:$0xff]  ;;  %v9567_v11 = vld [vmem:[#allocation34_spill] sm:$0xff] }
 0x17c   : > { %9549 = vst [vmem:[#allocation25_spill] sm:$0xff] %v7816_v41  ;;  %9551 = vst [vmem:[#allocation26_spill] sm:$0xff] %v7820_v33  ;;  %v7840_v50 = vpop.f32.mrf.mxu0  ;;  %6302 = vmatmul.mubr.msk.bf16.gmra.mxu0 %vm1593_vm2, %v6719_v3  ;;  %v7843_v53 = vpop.f32.mrf.mxu1  ;;  %6498 = vmatmul.mubr.msk.bf16.gmra.mxu1 %vm1593_vm2, %v6720_v23  ;;  %v9561_v3 = vld [vmem:[#allocation31_spill] sm:$0xff]  ;;  %v9563_v23 = vld [vmem:[#allocation32_spill] sm:$0xff]  ;;  %v7878_v41 = vadd.f32 %v9565_v61, %v7341_v28  ;;  %v7882_v35 = vadd.f32 %v7341_v28, %v9567_v11 }
 0x17d   : > { %9553 = vst [vmem:[#allocation27_spill] sm:$0xff] %v7830_v22  ;;  %9555 = vst [vmem:[#allocation28_spill] sm:$0xff] %v7834_v46  ;;  %6305 = vmatprep.mubr.msk.bf16.mxu0 %vm1593_vm2, %v6721_v2  ;;  %6501 = vmatprep.mubr.msk.bf16.mxu1 %vm1593_vm2, %v6722_v20  ;;  %v7870_v52 = vadd.f32 %v7341_v28, %v9561_v3  ;;  %v7874_v1 = vadd.f32 %v9563_v23, %v7341_v28  ;;  %v9569_v2 = vld [vmem:[#allocation35_spill] sm:$0xff]  ;;  %v9571_v46 = vld [vmem:[#allocation36_spill] sm:$0xff] }
 0x17e   : > { %9557 = vst [vmem:[#allocation29_spill] sm:$0xff] %v7851_v26  ;;  %9559 = vst [vmem:[#allocation30_spill] sm:$0xff] %v7860_v37  ;;  %v7862_v57 = vpop.f32.mrf.mxu0  ;;  %v7864_v47 = vpop.f32.mrf.mxu1  ;;  %v7886_v20 = vadd.f32 %v7341_v28, %v9569_v2  ;;  %v7890_v3 = vadd.f32 %v9571_v46, %v7341_v28  ;;  %v6724_v22 = vld [vmem:[%s6797_s26 + $0x5d8] sm:$0xff]   ;;  %v9577_v33 = vld [vmem:[#allocation38_spill] sm:$0xff] }
 0x17f   : > { %9560 = vst [vmem:[#allocation121_spill] sm:$0xff] %v7864_v47  ;;  %9562 = vst [vmem:[#allocation31_spill] sm:$0xff] %v7870_v52  ;;  %v9575_v55 = vld [vmem:[#allocation37_spill] sm:$0xff]  ;;  %v7905_v2 = vadd.f32 %v7341_v28, %v9577_v33  ;;  %v9579_v14 = vld [vmem:[#allocation39_spill] sm:$0xff] }
 0x180   : > { %9564 = vst [vmem:[#allocation32_spill] sm:$0xff] %v7874_v1  ;;  %9566 = vst [vmem:[#allocation33_spill] sm:$0xff] %v7878_v41  ;;  %v7892_v44 = vpop.f32.mrf.mxu0  ;;  %v7894_v23 = vpop.f32.mrf.mxu1  ;;  %v7901_v11 = vadd.f32 %v9575_v55, %v7341_v28  ;;  %v7909_v46 = vadd.f32 %v7341_v28, %v9579_v14  ;;  %v6725_v29 = vld [vmem:[%s6797_s26 + $0x2d0] sm:$0xff]   ;;  %v6726_v43 = vld [vmem:[%s6797_s26 + $0x5e0] sm:$0xff]  }
 0x181   : > { %9568 = vst [vmem:[#allocation34_spill] sm:$0xff] %v7882_v35  ;;  %9570 = vst [vmem:[#allocation35_spill] sm:$0xff] %v7886_v20  ;;  %v9581_v19 = vld [vmem:[#allocation40_spill] sm:$0xff]  ;;  %v9583_v61 = vld [vmem:[#allocation41_spill] sm:$0xff] }
 0x182   : > { %9572 = vst [vmem:[#allocation36_spill] sm:$0xff] %v7890_v3  ;;  %9573 = vst [vmem:[#allocation122_spill] sm:$0xff] %v7892_v44  ;;  %v7916_v49 = vadd.f32 %v9581_v19, %v7341_v28  ;;  %v7920_v55 = vadd.f32 %v9583_v61, %v7341_v28  ;;  %v9585_v26 = vld [vmem:[#allocation42_spill] sm:$0xff]  ;;  %v7926_v25 = vpop.f32.mrf.mxu0  ;;  %v7928_v14 = vpop.f32.mrf.mxu1  ;;  %v9589_v37 = vld [vmem:[#allocation43_spill] sm:$0xff] }
 0x183   : > { %9574 = vst [vmem:[#allocation123_spill] sm:$0xff] %v7894_v23  ;;  %9576 = vst [vmem:[#allocation37_spill] sm:$0xff] %v7901_v11  ;;  %v7924_v33 = vadd.f32 %v7341_v28, %v9585_v26  ;;  %v7934_v19 = vadd.f32 %v7341_v28, %v9589_v37  ;;  %v9591_v23 = vld [vmem:[#allocation44_spill] sm:$0xff]  ;;  %v9595_v26 = vld [vmem:[#allocation45_spill] sm:$0xff] }
 0x184   : > { %9578 = vst [vmem:[#allocation38_spill] sm:$0xff] %v7905_v2  ;;  %9580 = vst [vmem:[#allocation39_spill] sm:$0xff] %v7909_v46  ;;  %v7938_v61 = vadd.f32 %v9591_v23, %v7341_v28  ;;  %v7944_v47 = vpop.f32.mrf.mxu0  ;;  %6306 = vmatmul.mubr.msk.bf16.gmra.mxu0 %vm1593_vm2, %v6723_v48  ;;  %v7947_v62 = vpop.f32.mrf.mxu1  ;;  %6502 = vmatmul.mubr.msk.bf16.gmra.mxu1 %vm1593_vm2, %v6724_v22  ;;  %v7955_v39 = vadd.f32 %v9595_v26, %v7341_v28  ;;  %v9597_v37 = vld [vmem:[#allocation46_spill] sm:$0xff]  ;;  %v9601_v48 = vld [vmem:[#allocation47_spill] sm:$0xff] }
 0x185   : > { %9582 = vst [vmem:[#allocation40_spill] sm:$0xff] %v7916_v49  ;;  %9584 = vst [vmem:[#allocation41_spill] sm:$0xff] %v7920_v55  ;;  %6309 = vmatprep.mubr.msk.bf16.mxu0 %vm1593_vm2, %v6725_v29  ;;  %6505 = vmatprep.mubr.msk.bf16.mxu1 %vm1593_vm2, %v6726_v43  ;;  %v7964_v23 = vadd.f32 %v7341_v28, %v9597_v37  ;;  %v9603_v22 = vld [vmem:[#allocation48_spill] sm:$0xff]  ;;  %v9605_v37 = vld [vmem:[#allocation49_spill] sm:$0xff] }
 0x186   : > { %9586 = vst [vmem:[#allocation42_spill] sm:$0xff] %v7924_v33  ;;  %9587 = vst [vmem:[#allocation124_spill] sm:$0xff] %v7926_v25  ;;  %v7966_v44 = vpop.f32.mrf.mxu0  ;;  %v7968_v26 = vpop.f32.mrf.mxu1  ;;  %v7978_v25 = vadd.f32 %v9603_v22, %v7341_v28  ;;  %v7982_v55 = vadd.f32 %v9605_v37, %v7341_v28  ;;  %v9607_v49 = vld [vmem:[#allocation50_spill] sm:$0xff]  ;;  %v9609_v29 = vld [vmem:[#allocation51_spill] sm:$0xff] }
 0x187   : > { %9588 = vst [vmem:[#allocation125_spill] sm:$0xff] %v7928_v14  ;;  %9590 = vst [vmem:[#allocation43_spill] sm:$0xff] %v7934_v19  ;;  %v7974_v14 = vadd.f32 %v7341_v28, %v9601_v48  ;;  %v7986_v11 = vadd.f32 %v7341_v28, %v9607_v49  ;;  %v7990_v43 = vadd.f32 %v7341_v28, %v9609_v29  ;;  %v6727_v41 = vld [vmem:[%s6797_s26 + $0x2d8] sm:$0xff]   ;;  %v6728_v1 = vld [vmem:[%s6797_s26 + $0x5e8] sm:$0xff]  }
 0x188   : > { %9592 = vst [vmem:[#allocation44_spill] sm:$0xff] %v7938_v61  ;;  %9593 = vst [vmem:[#allocation126_spill] sm:$0xff] %v7944_v47  ;;  %v9611_v61 = vld [vmem:[#allocation52_spill] sm:$0xff]  ;;  %v7996_v3 = vpop.f32.mrf.mxu0  ;;  %v7998_v22 = vpop.f32.mrf.mxu1  ;;  %v9615_v19 = vld [vmem:[#allocation53_spill] sm:$0xff] }
 0x189   : > { %9594 = vst [vmem:[#allocation127_spill] sm:$0xff] %v7947_v62  ;;  %9596 = vst [vmem:[#allocation45_spill] sm:$0xff] %v7955_v39  ;;  %v7994_v48 = vadd.f32 %v9611_v61, %v7341_v28  ;;  %v8005_v49 = vadd.f32 %v9615_v19, %v7341_v28  ;;  %v9617_v33 = vld [vmem:[#allocation54_spill] sm:$0xff]  ;;  %v9619_v46 = vld [vmem:[#allocation55_spill] sm:$0xff] }
 0x18a   : > { %9598 = vst [vmem:[#allocation46_spill] sm:$0xff] %v7964_v23  ;;  %9599 = vst [vmem:[#allocation128_spill] sm:$0xff] %v7966_v44  ;;  %v8009_v29 = vadd.f32 %v7341_v28, %v9617_v33  ;;  %v8013_v61 = vadd.f32 %v7341_v28, %v9619_v46  ;;  %v6729_v2 = vld [vmem:[%s6797_s26 + $0x2e0] sm:$0xff]   ;;  %v6730_v20 = vld [vmem:[%s6797_s26 + $0x5f0] sm:$0xff]   ;;  %v8032_v46 = vpop.f32.mrf.mxu1 }
 0x18b   : > { %9600 = vst [vmem:[#allocation129_spill] sm:$0xff] %v7968_v26  ;;  %9602 = vst [vmem:[#allocation47_spill] sm:$0xff] %v7974_v14  ;;  %v9621_v52 = vld [vmem:[#allocation56_spill] sm:$0xff]  ;;  %v9623_v37 = vld [vmem:[#allocation57_spill] sm:$0xff] }
 0x18c   : > { %9604 = vst [vmem:[#allocation48_spill] sm:$0xff] %v7978_v25  ;;  %9606 = vst [vmem:[#allocation49_spill] sm:$0xff] %v7982_v55  ;;  %v8024_v19 = vadd.f32 %v9623_v37, %v7341_v28  ;;  %v9625_v39 = vld [vmem:[#allocation58_spill] sm:$0xff]  ;;  %v9629_v23 = vld [vmem:[#allocation59_spill] sm:$0xff]  ;;  %6310 = vmatmul.mubr.msk.bf16.gmra.mxu0 %vm1593_vm2, %v6727_v41  ;;  %v8051_v35 = vpop.f32.mrf.mxu1  ;;  %6506 = vmatmul.mubr.msk.bf16.gmra.mxu1 %vm1593_vm2, %v6728_v1 }
 0x18d   : > { %9608 = vst [vmem:[#allocation50_spill] sm:$0xff] %v7986_v11  ;;  %9610 = vst [vmem:[#allocation51_spill] sm:$0xff] %v7990_v43  ;;  %v8028_v33 = vadd.f32 %v7341_v28, %v9625_v39  ;;  %v9631_v44 = vld [vmem:[#allocation60_spill] sm:$0xff]  ;;  %v9633_v39 = vld [vmem:[#allocation61_spill] sm:$0xff]  ;;  %6313 = vmatprep.mubr.msk.bf16.mxu0 %vm1593_vm2, %v6729_v2  ;;  %6509 = vmatprep.mubr.msk.bf16.mxu1 %vm1593_vm2, %v6730_v20  ;;  %v8124_v11 = vadd.f32 %v7424_v15, %v7341_v28 }
 0x18e   : > { %9612 = vst [vmem:[#allocation52_spill] sm:$0xff] %v7994_v48  ;;  %9613 = vst [vmem:[#allocation130_spill] sm:$0xff] %v7996_v3  ;;  %v8030_v3 = vpop.f32.mrf.mxu0  ;;  %v8042_v37 = vadd.f32 %v9631_v44, %v7341_v28  ;;  %v8059_v26 = vadd.f32 %v9633_v39, %v7341_v28  ;;  %v8072_v39 = vpop.f32.mrf.mxu1  ;;  %v9637_v41 = vld [vmem:[#allocation63_spill] sm:$0xff]  ;;  %v9638_v1 = vld [vmem:[#allocation64_spill] sm:$0xff]  ;;  %v8142_v15 = vadd.f32 %v7341_v28, %v7448_v0 }
 0x18f   : > { %9614 = vst [vmem:[#allocation131_spill] sm:$0xff] %v7998_v22  ;;  %9616 = vst [vmem:[#allocation53_spill] sm:$0xff] %v8005_v49  ;;  %v8020_v22 = vadd.f32 %v9621_v52, %v7341_v28  ;;  %v8038_v52 = vadd.f32 %v7341_v28, %v9629_v23  ;;  %v9635_v23 = vld [vmem:[#allocation62_spill] sm:$0xff]  ;;  %v9642_v2 = vld [vmem:[#allocation67_spill] sm:$0xff]  ;;  %v8172_v0 = vadd.f32 %v7341_v28, %v7510_v8 }
 0x190   : > { %9618 = vst [vmem:[#allocation54_spill] sm:$0xff] %v8009_v29  ;;  %9620 = vst [vmem:[#allocation55_spill] sm:$0xff] %v8013_v61  ;;  %v8048_v47 = vpop.f32.mrf.mxu0  ;;  %v8068_v44 = vadd.f32 %v7341_v28, %v9635_v23  ;;  %v9639_v23 = vld [vmem:[#allocation65_spill] sm:$0xff]  ;;  %v8094_v20 = vadd.f32 %v7341_v28, %v9642_v2  ;;  %v6731_v55 = vld [vmem:[%s6797_s26 + $0x2e8] sm:$0xff]   ;;  %v8190_v8 = vadd.f32 %v7531_v16, %v7341_v28 }
 0x191   : > { %9622 = vst [vmem:[#allocation56_spill] sm:$0xff] %v8020_v22  ;;  %9624 = vst [vmem:[#allocation57_spill] sm:$0xff] %v8024_v19  ;;  %v8086_v19 = vadd.f32 %v9639_v23, %v7341_v28  ;;  %v9641_v22 = vld [vmem:[#allocation66_spill] sm:$0xff]  ;;  %v6733_v61 = vld [vmem:[%s6797_s26 + $0x2f0] sm:$0xff]  }
 0x192   : > { %9626 = vst [vmem:[#allocation58_spill] sm:$0xff] %v8028_v33  ;;  %9627 = vst [vmem:[#allocation132_spill] sm:$0xff] %v8030_v3  ;;  %v8070_v62 = vpop.f32.mrf.mxu0  ;;  %v8082_v3 = vadd.f32 %v9638_v1, %v7341_v28  ;;  %v8090_v49 = vadd.f32 %v7341_v28, %v9641_v22  ;;  %v8102_v1 = vpop.f32.mrf.mxu1  ;;  %v9645_v25 = vld [vmem:[#allocation74_spill] sm:$0xff]  ;;  %v9647_v33 = vld [vmem:[#allocation81_spill] sm:$0xff] }
 0x193   : > { %9628 = vst [vmem:[#allocation133_spill] sm:$0xff] %v8032_v46  ;;  %9630 = vst [vmem:[#allocation59_spill] sm:$0xff] %v8038_v52  ;;  %v8078_v46 = vadd.f32 %v7341_v28, %v9637_v41  ;;  %v6732_v52 = vld [vmem:[%s6797_s26 + $0x5f8] sm:$0xff]   ;;  %v8109_v22 = vadd.f32 %v9645_v25, %v7341_v28  ;;  %v8113_v2 = vadd.f32 %v7341_v28, %v9647_v33  ;;  %v6734_v29 = vld [vmem:[%s6797_s26 + $0x600] sm:$0xff]  }
 0x194   : > { %9632 = vst [vmem:[#allocation60_spill] sm:$0xff] %v8042_v37  ;;  %9634 = vst [vmem:[#allocation61_spill] sm:$0xff] %v8059_v26  ;;  %v9643_v37 = vld [vmem:[#allocation73_spill] sm:$0xff]  ;;  %v8100_v48 = vpop.f32.mrf.mxu0  ;;  %v8128_v25 = vadd.f32 %v7427_v58, %v7341_v28  ;;  %v8132_v33 = vadd.f32 %v7341_v28, %v7446_v60  ;;  %v8146_v58 = vadd.f32 %v7476_v51, %v7341_v28  ;;  %6314 = vmatmul.mubr.msk.bf16.gmra.mxu0 %vm1593_vm2, %v6731_v55  ;;  %v6736_v14 = vld [vmem:[%s6797_s26 + $0x608] sm:$0xff]  }
 0x195   : > { %9636 = vst [vmem:[#allocation62_spill] sm:$0xff] %v8068_v44  ;;  %9640 = vst [vmem:[#allocation63_spill] sm:$0xff] %v8086_v19  ;;  %v8098_v41 = vadd.f32 %v9643_v37, %v7341_v28  ;;  %v8117_v37 = vadd.f32 %v7341_v28, %v7409_v56  ;;  %v8136_v56 = vpop.f32.mrf.mxu1  ;;  %6510 = vmatmul.mubr.msk.bf16.gmra.mxu1 %vm1593_vm2, %v6732_v52  ;;  %v8163_v60 = vadd.f32 %v7478_v7, %v7341_v28  ;;  %v6735_v51 = vld [vmem:[%s6797_s26 + $0x2f8] sm:$0xff]   ;;  %v6737_v26 = vld [vmem:[%s6797_s26 + $0x300] sm:$0xff]  }
 0x196   : > { %9646 = vst [vmem:[#allocation65_spill] sm:$0xff] %v8109_v22  ;;  %9648 = vst [vmem:[#allocation66_spill] sm:$0xff] %v8124_v11  ;;  %v8134_v23 = vpop.f32.mrf.mxu0  ;;  %6317 = vmatprep.mubr.msk.bf16.mxu0 %vm1593_vm2, %v6733_v61  ;;  %6513 = vmatprep.mubr.msk.bf16.mxu1 %vm1593_vm2, %v6734_v29  ;;  %v8186_v55 = vadd.f32 %v7528_v38, %v7341_v28  ;;  %v8194_v52 = vadd.f32 %v7341_v28, %v7550_v27 }
 0x197   : > { %9644 = vst [vmem:[#allocation64_spill] sm:$0xff] %v8098_v41  ;;  %9649 = vst [vmem:[#allocation67_spill] sm:$0xff] %v8128_v25  ;;  %v8155_v43 = vpop.f32.mrf.mxu1  ;;  %v8198_v29 = vadd.f32 %v7341_v28, %v7552_v24  ;;  %v8213_v27 = vadd.f32 %v7582_v31, %v7341_v28  ;;  %v8217_v24 = vadd.f32 %v7341_v28, %v7614_v32 }
 0x198   : > { %9650 = vst [vmem:[#allocation73_spill] sm:$0xff] %v8134_v23  ;;  %9651 = vst [vmem:[#allocation74_spill] sm:$0xff] %v8136_v56  ;;  %v8152_v23 = vpop.f32.mrf.mxu0  ;;  %v8182_v56 = vadd.f32 %v7341_v28, %v7512_v18  ;;  %v8202_v18 = vadd.f32 %v7580_v59, %v7341_v28  ;;  %v8221_v59 = vadd.f32 %v7341_v28, %v7616_v42 }
 0x199   : > { %9652 = vst [vmem:[#allocation81_spill] sm:$0xff] %v8146_v58  ;;  %9653 = vst [vmem:[#allocation134_spill] sm:$0xff] %v8163_v60  ;;  %v8176_v7 = vpop.f32.mrf.mxu1  ;;  %v6738_v58 = vld [vmem:[%s6797_s26 + $0x610] sm:$0xff]   ;;  %v8228_v11 = vadd.f32 %v7632_v5, %v7341_v28  ;;  %v8232_v31 = vadd.f32 %v7635_v12, %v7341_v28  ;;  %v8236_v32 = vadd.f32 %v7341_v28, %v7654_v9 }
 0x19a   : > { %9654 = vst [vmem:[#allocation135_spill] sm:$0xff] %v8172_v0  ;;  %v8174_v44 = vpop.f32.mrf.mxu0  ;;  %9655 = vst [vmem:[#allocation136_spill] sm:$0xff] %v8202_v18  ;;  %v8246_v5 = vadd.f32 %v7341_v28, %v7656_v54  ;;  %v8250_v12 = vadd.f32 %v7684_v21, %v7341_v28  ;;  %v8267_v9 = vadd.f32 %v7686_v13, %v7341_v28  ;;  %v6739_v21 = vld [vmem:[%s6797_s26 + $0x308] sm:$0xff]  }
 0x19b   : > { %v8206_v38 = vpop.f32.mrf.mxu1  ;;  %9656 = vst [vmem:[#allocation137_spill] sm:$0xff] %v8213_v27  ;;  %9657 = vst [vmem:[#allocation138_spill] sm:$0xff] %v8228_v11  ;;  %v8276_v54 = vadd.f32 %v7341_v28, %v7718_v34  ;;  %v8290_v0 = vadd.f32 %v7736_v17, %v7341_v28  ;;  %v8294_v34 = vadd.f32 %v7739_v63, %v7341_v28  ;;  %v6740_v63 = vld [vmem:[%s6797_s26 + $0x618] sm:$0xff]  }
 0x19c   : > { %v8204_v61 = vpop.f32.mrf.mxu0  ;;  %9658 = vst [vmem:[#allocation139_spill] sm:$0xff] %v8232_v31  ;;  %9659 = vst [vmem:[#allocation140_spill] sm:$0xff] %v8250_v12  ;;  %6318 = vmatmul.mubr.msk.bf16.gmra.mxu0 %vm1593_vm2, %v6735_v51  ;;  %v8286_v51 = vadd.f32 %v7341_v28, %v7720_v30  ;;  %v8306_v30 = vadd.f32 %v7788_v4, %v7341_v28  ;;  %v8325_v4 = vadd.f32 %v7341_v28, %v7824_v6  ;;  %v9680_v12 = vld [vmem:[#allocation122_spill] sm:$0xff] }
 0x19d   : > { %v8240_v42 = vpop.f32.mrf.mxu1  ;;  %6514 = vmatmul.mubr.msk.bf16.gmra.mxu1 %vm1593_vm2, %v6736_v14  ;;  %9660 = vst [vmem:[#allocation141_spill] sm:$0xff] %v8267_v9  ;;  %6321 = vmatprep.mubr.msk.bf16.mxu0 %vm1593_vm2, %v6737_v26  ;;  %9663 = vst [vmem:[#allocation144_spill] sm:$0xff] %v8290_v0  ;;  %v8298_v14 = vadd.f32 %v7341_v28, %v7758_v40  ;;  %v8302_v26 = vadd.f32 %v7341_v28, %v7760_v45  ;;  %v9678_v9 = vld [vmem:[#allocation121_spill] sm:$0xff]  ;;  %v9686_v0 = vld [vmem:[#allocation124_spill] sm:$0xff] }
 0x19e   : > { %v8238_v16 = vpop.f32.mrf.mxu0  ;;  %6517 = vmatprep.mubr.msk.bf16.mxu1 %vm1593_vm2, %v6738_v58  ;;  %9662 = vst [vmem:[#allocation143_spill] sm:$0xff] %v8286_v51  ;;  %9664 = vst [vmem:[#allocation145_spill] sm:$0xff] %v8294_v34  ;;  %v8317_v40 = vadd.f32 %v7790_v36, %v7341_v28  ;;  %v8321_v45 = vadd.f32 %v7341_v28, %v7822_v10  ;;  %v8334_v41 = vadd.f32 %v7843_v53, %v7341_v28 }
 0x19f   : > { %v8259_v25 = vpop.f32.mrf.mxu1  ;;  %9665 = vst [vmem:[#allocation146_spill] sm:$0xff] %v8298_v14  ;;  %9666 = vst [vmem:[#allocation147_spill] sm:$0xff] %v8302_v26  ;;  %v8338_v36 = vadd.f32 %v7341_v28, %v7862_v57  ;;  %v8352_v53 = vadd.f32 %v9680_v12, %v7341_v28  ;;  %v9694_v12 = vld [vmem:[#allocation128_spill] sm:$0xff] }
 0x1a0   : > { %v8256_v19 = vpop.f32.mrf.mxu0  ;;  %9667 = vst [vmem:[#allocation148_spill] sm:$0xff] %v8306_v30  ;;  %9670 = vst [vmem:[#allocation151_spill] sm:$0xff] %v8317_v40  ;;  %v9704_v26 = vld [vmem:[#allocation132_spill] sm:$0xff] }
 0x1a1   : > { %v8280_v13 = vpop.f32.mrf.mxu1  ;;  %9671 = vst [vmem:[#allocation152_spill] sm:$0xff] %v8321_v45  ;;  %9672 = vst [vmem:[#allocation153_spill] sm:$0xff] %v8325_v4  ;;  %v9702_v45 = vld [vmem:[#allocation131_spill] sm:$0xff] }
 0x1a2   : > { %v8278_v22 = vpop.f32.mrf.mxu0  ;;  %9661 = vst [vmem:[#allocation142_spill] sm:$0xff] %v8280_v13  ;;  %9674 = vst [vmem:[#allocation155_spill] sm:$0xff] %v8334_v41  ;;  %v8417_v11 = vadd.f32 %v9702_v45, %v7341_v28 }
 0x1a3   : > { %v8310_v17 = vpop.f32.mrf.mxu1  ;;  %9675 = vst [vmem:[#allocation156_spill] sm:$0xff] %v8338_v36  ;;  %9681 = vst [vmem:[#allocation122_spill] sm:$0xff] %v8352_v53  ;;  %v9696_v53 = vld [vmem:[#allocation129_spill] sm:$0xff] }
 0x1a4   : > { %v8308_v58 = vpop.f32.mrf.mxu0  ;;  %9669 = vst [vmem:[#allocation150_spill] sm:$0xff] %v8310_v17  ;;  %v8330_v17 = vadd.f32 %v7840_v50, %v7341_v28  ;;  %v8348_v50 = vadd.f32 %v7341_v28, %v9678_v9  ;;  %6322 = vmatmul.mubr.msk.bf16.gmra.mxu0 %vm1593_vm2, %v6739_v21  ;;  %v9682_v21 = vld [vmem:[#allocation123_spill] sm:$0xff] }
 0x1a5   : > { %9668 = vst [vmem:[#allocation149_spill] sm:$0xff] %v8308_v58  ;;  %v8342_v58 = vpop.f32.mrf.mxu1  ;;  %6518 = vmatmul.mubr.msk.bf16.gmra.mxu1 %vm1593_vm2, %v6740_v63  ;;  %v8373_v30 = vadd.f32 %v9682_v21, %v7341_v28  ;;  %v9690_v21 = vld [vmem:[#allocation126_spill] sm:$0xff] }
 0x1a6   : > { %9673 = vst [vmem:[#allocation154_spill] sm:$0xff] %v8330_v17  ;;  %v8340_v10 = vpop.f32.mrf.mxu0  ;;  %9677 = vst [vmem:[#allocation158_spill] sm:$0xff] %v8342_v58  ;;  %v9688_v58 = vld [vmem:[#allocation125_spill] sm:$0xff]  ;;  %v8392_v41 = vadd.f32 %v9690_v21, %v7341_v28  ;;  %v9698_v17 = vld [vmem:[#allocation70_spill] sm:$0xff] }
 0x1a7   : > { %9676 = vst [vmem:[#allocation157_spill] sm:$0xff] %v8340_v10  ;;  %9679 = vst [vmem:[#allocation121_spill] sm:$0xff] %v8348_v50  ;;  %v6423_v9 = vpop.f32.mrf.mxu1  ;;  %v8388_v6 = vadd.f32 %v7341_v28, %v9688_v58  ;;  %v8400_v10 = vadd.f32 %v7341_v28, %v9694_v12  ;;  %v8404_v58 = vadd.f32 %v7341_v28, %v9696_v53  ;;  %v9699_v40 = vmax.f32 %v9698_v17, 0.0  ;;  %v9700_v12 = vld [vmem:[#allocation130_spill] sm:$0xff] }
 0x1a8   : > { %v6227_v60 = vpop.f32.mrf.mxu0  ;;  %9683 = vst [vmem:[#allocation123_spill] sm:$0xff] %v8373_v30  ;;  %9691 = vst [vmem:[#allocation126_spill] sm:$0xff] %v8392_v41  ;;  %v3400_v50 = vadd.f32 %v6423_v9, %v7341_v28  ;;  %v8413_v4 = vadd.f32 %v9700_v12, %v7341_v28  ;;  %v8421_v53 = vadd.f32 %v7341_v28, %v9704_v26 }
 0x1a9   : > { %v2616_v57 = vadd.f32 %v6227_v60, %v7341_v28  ;;  %v8377_v63 = vpop.f32.mrf.mxu1  ;;  %v8383_v60 = vadd.f32 %v7341_v28, %v9686_v0  ;;  %9689 = vst [vmem:[#allocation125_spill] sm:$0xff] %v8388_v6  ;;  %9695 = vst [vmem:[#allocation128_spill] sm:$0xff] %v8400_v10 }
 0x1aa   : > { %v8375_v34 = vpop.f32.mrf.mxu0  ;;  %9685 = vst [vmem:[#allocation160_spill] sm:$0xff] %v8377_v63  ;;  %v9692_v63 = vld [vmem:[#allocation127_spill] sm:$0xff]  ;;  %9697 = vst [vmem:[#allocation129_spill] sm:$0xff] %v8404_v58  ;;  %v9723_v58 = vld [vmem:[#allocation82_spill] sm:$0xff] }
 0x1ab   : > { %9684 = vst [vmem:[#allocation159_spill] sm:$0xff] %v8375_v34  ;;  %9687 = vst [vmem:[#allocation124_spill] sm:$0xff] %v8383_v60  ;;  %v3888_v31 = vmax.f32 %v2616_v57, 0.0  ;;  %v8396_v34 = vadd.f32 %v9692_v63, %v7341_v28  ;;  %v6424_v57 = vpop.f32.mrf.mxu1 }
 0x1ac   : > { %v6228_v0 = vpop.f32.mrf.mxu0  ;;  %9701 = vst [vmem:[#allocation70_spill] sm:$0xff] %v8413_v4  ;;  %9703 = vst [vmem:[#allocation130_spill] sm:$0xff] %v8417_v11  ;;  %v3403_v45 = vadd.f32 %v6424_v57, %v7341_v28 }
 0x1ad   : > { %9693 = vst [vmem:[#allocation127_spill] sm:$0xff] %v8396_v34  ;;  %v4182_v21 = vmax.f32 %v9699_v40, %v3888_v31  ;;  %v2619_v63 = vadd.f32 %v6228_v0, %v7341_v28  ;;  %9705 = vst [vmem:[#allocation131_spill] sm:$0xff] %v8421_v53  ;;  %v8425_v31 = vpop.f32.mrf.mxu1  ;;  %v9708_v40 = vld [vmem:[#allocation133_spill] sm:$0xff]  ;;  %v9710_v0 = vld [vmem:[#allocation71_spill] sm:$0xff] }
 0x1ae   : > { %v8423_v17 = vpop.f32.mrf.mxu0  ;;  %9707 = vst [vmem:[#allocation161_spill] sm:$0xff] %v8425_v31  ;;  %v8429_v9 = vadd.f32 %v7341_v28, %v9708_v40  ;;  %v9711_v36 = vmax.f32 %v9710_v0, 0.0  ;;  %v8453_v31 = vld [vmem:[%s9225_s2] ss:$0 sm:$0xff] }
 0x1af   : > { %9706 = vst [vmem:[#allocation132_spill] sm:$0xff] %v8423_v17  ;;  %v3889_v30 = vmax.f32 %v2619_v63, 0.0  ;;  %v6427_v27 = vpop.f32.mrf.mxu1  ;;  %v9712_v63 = vld [vmem:[#allocation76_spill] sm:$0xff]  ;;  %v8463_v14 = vadd.f32 %v8453_v31, %v8048_v47 }
 0x1b0   : > { %9709 = vst [vmem:[#allocation133_spill] sm:$0xff] %v8429_v9  ;;  %v4280_v12 = vmax.f32 %v4182_v21, %v9711_v36  ;;  %v6231_v40 = vpop.f32.mrf.mxu0  ;;  %v4084_v21 = vmax.f32 %v3400_v50, 0.0  ;;  %v9713_v18 = vmax.f32 %v9712_v63, 0.0  ;;  %v4085_v63 = vmax.f32 %v3403_v45, 0.0 }
 0x1b1   : > { %v2632_v17 = vadd.f32 %v8453_v31, %v6231_v40  ;;  %v3407_v26 = vpop.f32.mrf.mxu1  ;;  %9716 = vst [vmem:[#allocation71_spill] sm:$0xff] %v8463_v14  ;;  %v8467_v36 = vadd.f32 %v8453_v31, %v8051_v35  ;;  %v3416_v11 = vadd.f32 %v8453_v31, %v6427_v27  ;;  %v9719_v35 = vld [vmem:[#allocation80_spill] sm:$0xff] }
 0x1b2   : > { %v4183_v51 = vmax.f32 %v9713_v18, %v3889_v30  ;;  %v2623_v0 = vpop.f32.mrf.mxu0  ;;  %v9714_v18 = vld [vmem:[#allocation77_spill] sm:$0xff]  ;;  %v4378_v34 = vmax.f32 %v4280_v12, %v4084_v21  ;;  %v9720_v47 = vmax.f32 %v9719_v35, 0.0  ;;  %v9724_v35 = vmax.f32 %v9723_v58, 0.0 }
 0x1b3   : > { %v9715_v30 = vmax.f32 %v9714_v18, 0.0  ;;  %v2624_v57 = vadd.f32 %v8453_v31, %v2623_v0  ;;  %9717 = vst [vmem:[#allocation76_spill] sm:$0xff] %v8467_v36  ;;  %v3892_v40 = vmax.f32 %v2632_v17, 0.0  ;;  %v6428_v50 = vpop.f32.mrf.mxu1  ;;  %v8473_v0 = vadd.f32 %v8453_v31, %v8070_v62 }
 0x1b4   : > { %v6232_v4 = vpop.f32.mrf.mxu0  ;;  %v3408_v17 = vadd.f32 %v8453_v31, %v3407_v26  ;;  %v3419_v12 = vadd.f32 %v8453_v31, %v6428_v50  ;;  %v4088_v53 = vmax.f32 %v3416_v11, 0.0  ;;  %v9725_v50 = vld [vmem:[#allocation69_spill] sm:$0xff]  ;;  %v8501_v58 = vadd.f32 %v8453_v31, %v8072_v39 }
 0x1b5   : > { %v4281_v28 = vmax.f32 %v4183_v51, %v9715_v30  ;;  %v3890_v41 = vmax.f32 %v2624_v57, 0.0  ;;  %v2635_v51 = vadd.f32 %v8453_v31, %v6232_v4  ;;  %9718 = vst [vmem:[#allocation77_spill] sm:$0xff] %v8473_v0  ;;  %v4186_v27 = vmax.f32 %v9720_v47, %v3892_v40  ;;  %v9721_v57 = vld [vmem:[#allocation68_spill] sm:$0xff] }
 0x1b6   : > { %v2626_v21 = vpop.f32.mrf.mxu0  ;;  %v9726_v6 = vmax.f32 %v9725_v50, 0.0  ;;  %9729 = vst [vmem:[#allocation80_spill] sm:$0xff] %v8501_v58  ;;  %v9730_v50 = vld [vmem:[#allocation86_spill] sm:$0xff] }
 0x1b7   : > { %v4379_v45 = vmax.f32 %v4281_v28, %v4085_v63  ;;  %v3410_v28 = vpop.f32.mrf.mxu1  ;;  %v9722_v63 = vmax.f32 %v9721_v57, 0.0  ;;  %v3893_v18 = vmax.f32 %v2635_v51, 0.0  ;;  %v2627_v30 = vadd.f32 %v8453_v31, %v2626_v21 }
 0x1b8   : > { %v4284_v10 = vmax.f32 %v4186_v27, %v9724_v35  ;;  %v3411_v40 = vadd.f32 %v8453_v31, %v3410_v28  ;;  %v6235_v26 = vpop.f32.mrf.mxu0  ;;  %v4086_v27 = vmax.f32 %v3408_v17, 0.0  ;;  %v4089_v35 = vmax.f32 %v3419_v12, 0.0  ;;  %v9734_v17 = vld [vmem:[#allocation75_spill] sm:$0xff]  ;;  %v9736_v12 = vld [vmem:[#allocation89_spill] sm:$0xff] }
 0x1b9   : > { %v5628_v4 = vpack.c.bf16 %v4379_v45, %v4378_v34  ;;  %v4184_v62 = vmax.f32 %v9722_v63, %v3890_v41  ;;  %v6431_v47 = vpop.f32.mrf.mxu1  ;;  %v9727_v45 = vld [vmem:[#allocation85_spill] sm:$0xff]  ;;  %v3891_v51 = vmax.f32 %v2627_v30, 0.0  ;;  %v2648_v21 = vadd.f32 %v8453_v31, %v6235_v26 }
 0x1ba   : > { %v9728_v57 = vmax.f32 %v9727_v45, 0.0  ;;  %v2639_v28 = vpop.f32.mrf.mxu0  ;;  %v9732_v45 = vld [vmem:[#allocation72_spill] sm:$0xff]  ;;  %v4382_v26 = vmax.f32 %v4284_v10, %v4088_v53  ;;  %v4087_v9 = vmax.f32 %v3411_v40, 0.0  ;;  %v3432_v63 = vadd.f32 %v8453_v31, %v6431_v47 }
 0x1bb   : > { %5629 = vst [vmem:[%s8478_s10] sm:$0xff] %v5628_v4   ;;  %v4282_v34 = vmax.f32 %v4184_v62, %v9726_v6  ;;  %v3423_v4 = vpop.f32.mrf.mxu1  ;;  %v9731_v6 = vmax.f32 %v9730_v50, 0.0  ;;  %v2640_v11 = vadd.f32 %v8453_v31, %v2639_v28  ;;  %v9735_v0 = vmax.f32 %v9734_v17, 0.0 }
 0x1bc   : > { %v4187_v41 = vmax.f32 %v9728_v57, %v3893_v18  ;;  %v9733_v18 = vmax.f32 %v9732_v45, 0.0  ;;  %v3896_v57 = vmax.f32 %v2648_v21, 0.0  ;;  %v6236_v36 = vpop.f32.mrf.mxu0  ;;  %v9737_v13 = vmax.f32 %v9736_v12, 0.0  ;;  %v9745_v12 = vld [vmem:[#allocation79_spill] sm:$0xff] }
 0x1bd   : > { %v6432_v39 = vpop.f32.mrf.mxu1  ;;  %v3424_v10 = vadd.f32 %v8453_v31, %v3423_v4  ;;  %v9770_v4 = vld [vmem:[#allocation105_spill] sm:$0xff] }
 0x1be   : > { %v4285_v62 = vmax.f32 %v4187_v41, %v9731_v6  ;;  %v4185_v30 = vmax.f32 %v9733_v18, %v3891_v51  ;;  %v4190_v50 = vmax.f32 %v9737_v13, %v3896_v57  ;;  %v2651_v41 = vadd.f32 %v8453_v31, %v6236_v36  ;;  %v2642_v40 = vpop.f32.mrf.mxu0 }
 0x1bf   : > { %v4380_v6 = vmax.f32 %v4282_v34, %v4086_v27  ;;  %v3894_v51 = vmax.f32 %v2640_v11, 0.0  ;;  %v3435_v53 = vadd.f32 %v8453_v31, %v6432_v39  ;;  %v3426_v47 = vpop.f32.mrf.mxu1  ;;  %v4092_v18 = vmax.f32 %v3432_v63, 0.0 }
 0x1c0   : > { %v4383_v14 = vmax.f32 %v4285_v62, %v4089_v35  ;;  %v4283_v60 = vmax.f32 %v4185_v30, %v9735_v0  ;;  %v9738_v35 = vld [vmem:[#allocation90_spill] sm:$0xff]  ;;  %v3897_v0 = vmax.f32 %v2651_v41, 0.0  ;;  %v2643_v36 = vadd.f32 %v8453_v31, %v2642_v40  ;;  %v6239_v11 = vpop.f32.mrf.mxu0 }
 0x1c1   : > { %v9739_v62 = vmax.f32 %v9738_v35, 0.0  ;;  %v9740_v30 = vld [vmem:[#allocation78_spill] sm:$0xff]  ;;  %v3427_v34 = vadd.f32 %v8453_v31, %v3426_v47  ;;  %v6435_v27 = vpop.f32.mrf.mxu1  ;;  %v2664_v39 = vadd.f32 %v8453_v31, %v6239_v11  ;;  %v8529_v63 = vadd.f32 %v8453_v31, %v8100_v48 }
 0x1c2   : > { %v5638_v21 = vpack.c.bf16 %v4383_v14, %v4382_v26  ;;  %v4381_v28 = vmax.f32 %v4283_v60, %v4087_v9  ;;  %v9741_v13 = vmax.f32 %v9740_v30, 0.0  ;;  %v9742_v60 = vld [vmem:[#allocation93_spill] sm:$0xff]  ;;  %v4090_v17 = vmax.f32 %v3424_v10, 0.0  ;;  %v2655_v40 = vpop.f32.mrf.mxu0 }
 0x1c3   : > { %v4288_v45 = vmax.f32 %v4190_v50, %v9739_v62  ;;  %v9743_v9 = vmax.f32 %v9742_v60, 0.0  ;;  %9744 = vst [vmem:[#allocation68_spill] sm:$0xff] %v8529_v63  ;;  %v9746_v50 = vmax.f32 %v9745_v12, 0.0  ;;  %v3439_v47 = vpop.f32.mrf.mxu1  ;;  %v4093_v35 = vmax.f32 %v3435_v53, 0.0  ;;  %v9751_v12 = vld [vmem:[#allocation97_spill] sm:$0xff] }
 0x1c4   : > { %v4188_v57 = vmax.f32 %v9741_v13, %v3894_v51  ;;  %5871 = vst [vmem:[%s8478_s10 + $0x10] sm:$0xff] %v5638_v21   ;;  %v5633_v14 = vpack.c.bf16 %v4381_v28, %v4380_v6  ;;  %v3895_v51 = vmax.f32 %v2643_v36, 0.0  ;;  %v9747_v21 = vld [vmem:[#allocation94_spill] sm:$0xff]  ;;  %v3900_v62 = vmax.f32 %v2664_v39, 0.0  ;;  %v9749_v13 = vld [vmem:[#allocation83_spill] sm:$0xff]  ;;  %v9753_v39 = vld [vmem:[#allocation84_spill] sm:$0xff] }
 0x1c5   : > { %v4191_v26 = vmax.f32 %v9743_v9, %v3897_v0  ;;  %v9748_v6 = vmax.f32 %v9747_v21, 0.0  ;;  %v2656_v0 = vadd.f32 %v8453_v31, %v2655_v40  ;;  %v4386_v30 = vmax.f32 %v4288_v45, %v4092_v18  ;;  %v6240_v9 = vpop.f32.mrf.mxu0 }
 0x1c6   : > { %v4286_v41 = vmax.f32 %v4188_v57, %v9746_v50  ;;  %5870 = vst [vmem:[%s8478_s10 + $0x8] sm:$0xff] %v5633_v14   ;;  %v9750_v11 = vmax.f32 %v9749_v13, 0.0  ;;  %v4091_v60 = vmax.f32 %v3427_v34, 0.0  ;;  %v3448_v10 = vadd.f32 %v8453_v31, %v6435_v27  ;;  %v6436_v57 = vpop.f32.mrf.mxu1  ;;  %v9755_v13 = vld [vmem:[#allocation98_spill] sm:$0xff] }
 0x1c7   : > { %v4289_v28 = vmax.f32 %v4191_v26, %v9748_v6  ;;  %v9752_v50 = vmax.f32 %v9751_v12, 0.0  ;;  %v3898_v53 = vmax.f32 %v2656_v0, 0.0  ;;  %v3440_v21 = vadd.f32 %v8453_v31, %v3439_v47  ;;  %v2658_v34 = vpop.f32.mrf.mxu0 }
 0x1c8   : > { %v4189_v48 = vmax.f32 %v9750_v11, %v3895_v51  ;;  %v4384_v26 = vmax.f32 %v4286_v41, %v4090_v17  ;;  %v9754_v6 = vmax.f32 %v9753_v39, 0.0  ;;  %v2667_v45 = vadd.f32 %v8453_v31, %v6240_v9  ;;  %v3442_v27 = vpop.f32.mrf.mxu1  ;;  %v9757_v11 = vld [vmem:[#allocation87_spill] sm:$0xff] }
 0x1c9   : > { %v4387_v36 = vmax.f32 %v4289_v28, %v4093_v35  ;;  %v4194_v14 = vmax.f32 %v9752_v50, %v3900_v62  ;;  %v3451_v18 = vadd.f32 %v8453_v31, %v6436_v57  ;;  %v9756_v35 = vmax.f32 %v9755_v13, 0.0  ;;  %v6243_v50 = vpop.f32.mrf.mxu0 }
 0x1ca   : > { %v4287_v40 = vmax.f32 %v4189_v48, %v9754_v6  ;;  %v9758_v62 = vmax.f32 %v9757_v11, 0.0  ;;  %v2659_v47 = vadd.f32 %v8453_v31, %v2658_v34  ;;  %v4096_v41 = vmax.f32 %v3448_v10, 0.0  ;;  %v6439_v9 = vpop.f32.mrf.mxu1  ;;  %v9762_v10 = vld [vmem:[#allocation101_spill] sm:$0xff]  ;;  %v9764_v11 = vld [vmem:[#allocation91_spill] sm:$0xff] }
 0x1cb   : > { %v5648_v51 = vpack.c.bf16 %v4387_v36, %v4386_v30  ;;  %v4292_v28 = vmax.f32 %v4194_v14, %v9756_v35  ;;  %v3901_v12 = vmax.f32 %v2667_v45, 0.0  ;;  %v3443_v48 = vadd.f32 %v8453_v31, %v3442_v27  ;;  %v9760_v30 = vld [vmem:[#allocation88_spill] sm:$0xff]  ;;  %v2671_v27 = vpop.f32.mrf.mxu0 }
 0x1cc   : > { %v4192_v0 = vmax.f32 %v9758_v62, %v3898_v53  ;;  %v4385_v17 = vmax.f32 %v4287_v40, %v4091_v60  ;;  %v8555_v57 = vadd.f32 %v8453_v31, %v8102_v1  ;;  %v9761_v36 = vmax.f32 %v9760_v30, 0.0  ;;  %v3455_v13 = vpop.f32.mrf.mxu1 }
 0x1cd   : > { %5873 = vst [vmem:[%s8478_s10 + $0x20] sm:$0xff] %v5648_v51   ;;  %v3899_v39 = vmax.f32 %v2659_v47, 0.0  ;;  %v2680_v53 = vadd.f32 %v8453_v31, %v6243_v50  ;;  %v4094_v60 = vmax.f32 %v3440_v21, 0.0  ;;  %v9763_v40 = vmax.f32 %v9762_v10, 0.0  ;;  %v9766_v50 = vld [vmem:[#allocation102_spill] sm:$0xff]  ;;  %v9768_v10 = vld [vmem:[#allocation92_spill] sm:$0xff] }
 0x1ce   : > { %9759 = vst [vmem:[#allocation82_spill] sm:$0xff] %v8555_v57  ;;  %v4290_v14 = vmax.f32 %v4192_v0, %v9761_v36  ;;  %v5643_v6 = vpack.c.bf16 %v4385_v17, %v4384_v26  ;;  %v3464_v34 = vadd.f32 %v8453_v31, %v6439_v9  ;;  %v4097_v35 = vmax.f32 %v3451_v18, 0.0  ;;  %v6244_v36 = vpop.f32.mrf.mxu0  ;;  %v9804_v57 = vld [vmem:[#allocation2_spill] sm:$0xff] }
 0x1cf   : > { %v4195_v45 = vmax.f32 %v9763_v40, %v3901_v12  ;;  %v9765_v1 = vmax.f32 %v9764_v11, 0.0  ;;  %v3904_v51 = vmax.f32 %v2680_v53, 0.0  ;;  %v2672_v30 = vadd.f32 %v8453_v31, %v2671_v27  ;;  %v6440_v12 = vpop.f32.mrf.mxu1 }
 0x1d0   : > { %5872 = vst [vmem:[%s8478_s10 + $0x18] sm:$0xff] %v5643_v6   ;;  %v4390_v0 = vmax.f32 %v4292_v28, %v4096_v41  ;;  %v4388_v47 = vmax.f32 %v4290_v14, %v4094_v60  ;;  %v9767_v26 = vmax.f32 %v9766_v50, 0.0  ;;  %v4095_v17 = vmax.f32 %v3443_v48, 0.0  ;;  %v2674_v14 = vpop.f32.mrf.mxu0  ;;  %v9772_v60 = vld [vmem:[#allocation106_spill] sm:$0xff] }
 0x1d1   : > { %v4193_v62 = vmax.f32 %v9765_v1, %v3899_v39  ;;  %v9769_v9 = vmax.f32 %v9768_v10, 0.0  ;;  %v9771_v18 = vmax.f32 %v9770_v4, 0.0  ;;  %v3902_v11 = vmax.f32 %v2672_v30, 0.0  ;;  %v3458_v6 = vpop.f32.mrf.mxu1 }
 0x1d2   : > { %v4293_v21 = vmax.f32 %v4195_v45, %v9767_v26  ;;  %v2683_v39 = vadd.f32 %v8453_v31, %v6244_v36  ;;  %v4100_v27 = vmax.f32 %v3464_v34, 0.0  ;;  %v3456_v28 = vadd.f32 %v8453_v31, %v3455_v13 }
 0x1d3   : > { %v4291_v40 = vmax.f32 %v4193_v62, %v9769_v9  ;;  %v4198_v58 = vmax.f32 %v9771_v18, %v3904_v51  ;;  %v3467_v41 = vadd.f32 %v8453_v31, %v6440_v12  ;;  %v9773_v45 = vmax.f32 %v9772_v60, 0.0  ;;  %v9774_v62 = vld [vmem:[#allocation95_spill] sm:$0xff]  ;;  %v9776_v12 = vld [vmem:[#allocation96_spill] sm:$0xff]  ;;  %v9778_v9 = vld [vmem:[#allocation109_spill] sm:$0xff] }
 0x1d4   : > { %v4391_v53 = vmax.f32 %v4293_v21, %v4097_v35  ;;  %v9775_v50 = vmax.f32 %v9774_v62, 0.0  ;;  %v3905_v51 = vmax.f32 %v2683_v39, 0.0  ;;  %v2675_v34 = vadd.f32 %v8453_v31, %v2674_v14  ;;  %v6247_v35 = vpop.f32.mrf.mxu0  ;;  %v6443_v21 = vpop.f32.mrf.mxu1 }
 0x1d5   : > { %v4389_v48 = vmax.f32 %v4291_v40, %v4095_v17  ;;  %v4296_v1 = vmax.f32 %v4198_v58, %v9773_v45  ;;  %v3459_v13 = vadd.f32 %v8453_v31, %v3458_v6  ;;  %v9777_v10 = vmax.f32 %v9776_v12, 0.0 }
 0x1d6   : > { %v4196_v4 = vmax.f32 %v9775_v50, %v3902_v11  ;;  %v5658_v26 = vpack.c.bf16 %v4391_v53, %v4390_v0  ;;  %v9779_v40 = vmax.f32 %v9778_v9, 0.0  ;;  %v9780_v11 = vld [vmem:[#allocation73_spill] sm:$0xff]  ;;  %v4098_v0 = vmax.f32 %v3456_v28, 0.0  ;;  %v2687_v6 = vpop.f32.mrf.mxu0  ;;  %v3471_v60 = vpop.f32.mrf.mxu1 }
 0x1d7   : > { %v5653_v17 = vpack.c.bf16 %v4389_v48, %v4388_v47  ;;  %v8591_v39 = vadd.f32 %v8453_v31, %v9780_v11  ;;  %v3903_v53 = vmax.f32 %v2675_v34, 0.0  ;;  %v2696_v14 = vadd.f32 %v8453_v31, %v6247_v35  ;;  %v9781_v48 = vld [vmem:[#allocation110_spill] sm:$0xff] }
 0x1d8   : > { %v4294_v58 = vmax.f32 %v4196_v4, %v9777_v10  ;;  %v4199_v18 = vmax.f32 %v9779_v40, %v3905_v51  ;;  %5875 = vst [vmem:[%s8478_s10 + $0x30] sm:$0xff] %v5658_v26   ;;  %v4394_v45 = vmax.f32 %v4296_v1, %v4100_v27  ;;  %v4101_v47 = vmax.f32 %v3467_v41, 0.0  ;;  %v9783_v51 = vld [vmem:[#allocation99_spill] sm:$0xff]  ;;  %v6248_v26 = vpop.f32.mrf.mxu0  ;;  %v6444_v34 = vpop.f32.mrf.mxu1  ;;  %v9785_v41 = vld [vmem:[#allocation100_spill] sm:$0xff] }
 0x1d9   : > { %5874 = vst [vmem:[%s8478_s10 + $0x28] sm:$0xff] %v5653_v17   ;;  %v9782_v62 = vmax.f32 %v9781_v48, 0.0  ;;  %v2688_v4 = vadd.f32 %v8453_v31, %v2687_v6  ;;  %v9784_v12 = vmax.f32 %v9783_v51, 0.0  ;;  %v4099_v9 = vmax.f32 %v3459_v13, 0.0  ;;  %v9789_v51 = vld [vmem:[#allocation103_spill] sm:$0xff] }
 0x1da   : > { %v3908_v40 = vmax.f32 %v2696_v14, 0.0  ;;  %v3480_v28 = vadd.f32 %v8453_v31, %v6443_v21  ;;  %v4392_v35 = vmax.f32 %v4294_v58, %v4098_v0  ;;  %v2699_v27 = vadd.f32 %v8453_v31, %v6248_v26  ;;  %v2690_v14 = vpop.f32.mrf.mxu0  ;;  %v3474_v21 = vpop.f32.mrf.mxu1 }
 0x1db   : > { %v4297_v50 = vmax.f32 %v4199_v18, %v9782_v62  ;;  %v4197_v10 = vmax.f32 %v9784_v12, %v3903_v53  ;;  %v3906_v36 = vmax.f32 %v2688_v4, 0.0  ;;  %v9786_v1 = vmax.f32 %v9785_v41, 0.0  ;;  %v9787_v18 = vld [vmem:[#allocation113_spill] sm:$0xff] }
 0x1dc   : > { %v9788_v48 = vmax.f32 %v9787_v18, 0.0  ;;  %v3472_v53 = vadd.f32 %v8453_v31, %v3471_v60  ;;  %v3483_v13 = vadd.f32 %v8453_v31, %v6444_v34  ;;  %v9790_v58 = vmax.f32 %v9789_v51, 0.0  ;;  %v6447_v60 = vpop.f32.mrf.mxu1  ;;  %v9793_v34 = vld [vmem:[#allocation104_spill] sm:$0xff] }
 0x1dd   : > { %v4395_v11 = vmax.f32 %v4297_v50, %v4101_v47  ;;  %v4295_v17 = vmax.f32 %v4197_v10, %v9786_v1  ;;  %v3909_v47 = vmax.f32 %v2699_v27, 0.0  ;;  %v2691_v50 = vadd.f32 %v8453_v31, %v2690_v14  ;;  %v9791_v10 = vld [vmem:[#allocation114_spill] sm:$0xff]  ;;  %v6251_v1 = vpop.f32.mrf.mxu0 }
 0x1de   : > { %v4202_v6 = vmax.f32 %v9788_v48, %v3908_v40  ;;  %v4200_v0 = vmax.f32 %v9790_v58, %v3906_v36  ;;  %v4104_v12 = vmax.f32 %v3480_v28, 0.0  ;;  %v9792_v26 = vmax.f32 %v9791_v10, 0.0  ;;  %v9797_v28 = vld [vmem:[#allocation74_spill] sm:$0xff]  ;;  %v3487_v58 = vpop.f32.mrf.mxu1 }
 0x1df   : > { %v5668_v62 = vpack.c.bf16 %v4395_v11, %v4394_v45  ;;  %v4393_v4 = vmax.f32 %v4295_v17, %v4099_v9  ;;  %v3475_v40 = vadd.f32 %v8453_v31, %v3474_v21  ;;  %v9794_v18 = vmax.f32 %v9793_v34, 0.0  ;;  %v9795_v11 = vld [vmem:[#allocation117_spill] sm:$0xff]  ;;  %v2703_v51 = vpop.f32.mrf.mxu0  ;;  %v9798_v10 = vld [vmem:[#allocation118_spill] sm:$0xff]  ;;  %v9800_v34 = vld [vmem:[#allocation107_spill] sm:$0xff] }
 0x1e0   : > { %v4300_v41 = vmax.f32 %v4202_v6, %v9792_v26  ;;  %v9796_v48 = vmax.f32 %v9795_v11, 0.0  ;;  %v3907_v27 = vmax.f32 %v2691_v50, 0.0  ;;  %v2712_v14 = vadd.f32 %v8453_v31, %v6251_v1 }
 0x1e1   : > { %5877 = vst [vmem:[%s8478_s10 + $0x40] sm:$0xff] %v5668_v62   ;;  %v4298_v45 = vmax.f32 %v4200_v0, %v9794_v18  ;;  %v8624_v17 = vadd.f32 %v8453_v31, %v9797_v28  ;;  %v5663_v6 = vpack.c.bf16 %v4393_v4, %v4392_v35  ;;  %v4102_v21 = vmax.f32 %v3472_v53, 0.0  ;;  %v6252_v30 = vpop.f32.mrf.mxu0  ;;  %v6448_v35 = vpop.f32.mrf.mxu1  ;;  %v9802_v4 = vld [vmem:[#allocation108_spill] sm:$0xff] }
 0x1e2   : > { %v4203_v36 = vmax.f32 %v9796_v48, %v3909_v47  ;;  %v4105_v62 = vmax.f32 %v3483_v13, 0.0  ;;  %v9799_v26 = vmax.f32 %v9798_v10, 0.0  ;;  %v9801_v18 = vmax.f32 %v9800_v34, 0.0 }
 0x1e3   : > { %v3912_v50 = vmax.f32 %v2712_v14, 0.0  ;;  %5876 = vst [vmem:[%s8478_s10 + $0x38] sm:$0xff] %v5663_v6   ;;  %v4398_v1 = vmax.f32 %v4300_v41, %v4104_v12  ;;  %v4103_v11 = vmax.f32 %v3475_v40, 0.0  ;;  %v3496_v48 = vadd.f32 %v8453_v31, %v6447_v60  ;;  %v2706_v40 = vpop.f32.mrf.mxu0  ;;  %v3490_v60 = vpop.f32.mrf.mxu1 }
 0x1e4   : > { %v4301_v0 = vmax.f32 %v4203_v36, %v9799_v26  ;;  %v4201_v47 = vmax.f32 %v9801_v18, %v3907_v27  ;;  %v2704_v28 = vadd.f32 %v8453_v31, %v2703_v51  ;;  %v9803_v9 = vmax.f32 %v9802_v4, 0.0 }
 0x1e5   : > { %v9805_v10 = vmax.f32 %v9804_v57, 0.0  ;;  %v2715_v26 = vadd.f32 %v8453_v31, %v6252_v30  ;;  %v4396_v27 = vmax.f32 %v4298_v45, %v4102_v21  ;;  %v3488_v12 = vadd.f32 %v8453_v31, %v3487_v58  ;;  %v9808_v57 = vld [vmem:[#allocation111_spill] sm:$0xff]  ;;  %v6255_v21 = vpop.f32.mrf.mxu0  ;;  %v6451_v58 = vpop.f32.mrf.mxu1 }
 0x1e6   : > { %v4399_v53 = vmax.f32 %v4301_v0, %v4105_v62  ;;  %v4299_v13 = vmax.f32 %v4201_v47, %v9803_v9  ;;  %v3910_v14 = vmax.f32 %v2704_v28, 0.0  ;;  %v3499_v41 = vadd.f32 %v8453_v31, %v6448_v35  ;;  %v9806_v62 = vld [vmem:[#allocation3_spill] sm:$0xff]  ;;  %v9836_v28 = vld [vmem:[#allocation18_spill] sm:$0xff] }
 0x1e7   : > { %v4206_v36 = vmax.f32 %v9805_v10, %v3912_v50  ;;  %v9807_v0 = vmax.f32 %v9806_v62, 0.0  ;;  %v3913_v9 = vmax.f32 %v2715_v26, 0.0  ;;  %v4108_v18 = vmax.f32 %v3496_v48, 0.0  ;;  %v9812_v10 = vld [vmem:[#allocation112_spill] sm:$0xff] }
 0x1e8   : > { %v5678_v6 = vpack.c.bf16 %v4399_v53, %v4398_v1  ;;  %v4397_v51 = vmax.f32 %v4299_v13, %v4103_v11  ;;  %v9809_v47 = vmax.f32 %v9808_v57, 0.0  ;;  %v2707_v30 = vadd.f32 %v8453_v31, %v2706_v40  ;;  %v9810_v11 = vld [vmem:[#allocation6_spill] sm:$0xff]  ;;  %v2719_v40 = vpop.f32.mrf.mxu0 }
 0x1e9   : > { %v4304_v34 = vmax.f32 %v4206_v36, %v9807_v0  ;;  %v3491_v45 = vadd.f32 %v8453_v31, %v3490_v60  ;;  %v9811_v35 = vmax.f32 %v9810_v11, 0.0  ;;  %v2728_v4 = vadd.f32 %v8453_v31, %v6255_v21  ;;  %v3503_v60 = vpop.f32.mrf.mxu1 }
 0x1ea   : > { %v4204_v50 = vmax.f32 %v9809_v47, %v3910_v14  ;;  %5879 = vst [vmem:[%s8478_s10 + $0x50] sm:$0xff] %v5678_v6   ;;  %v5673_v1 = vpack.c.bf16 %v4397_v51, %v4396_v27  ;;  %v8653_v48 = vadd.f32 %v8453_v31, %v8152_v23  ;;  %v4106_v13 = vmax.f32 %v3488_v12, 0.0  ;;  %v9814_v6 = vld [vmem:[#allocation7_spill] sm:$0xff] }
 0x1eb   : > { %v4207_v53 = vmax.f32 %v9811_v35, %v3913_v9  ;;  %v9813_v36 = vmax.f32 %v9812_v10, 0.0  ;;  %v3911_v14 = vmax.f32 %v2707_v30, 0.0  ;;  %v4109_v62 = vmax.f32 %v3499_v41, 0.0  ;;  %v9816_v47 = vld [vmem:[#allocation115_spill] sm:$0xff]  ;;  %v6256_v35 = vpop.f32.mrf.mxu0  ;;  %v9818_v10 = vld [vmem:[#allocation10_spill] sm:$0xff] }
 0x1ec   : > { %5878 = vst [vmem:[%s8478_s10 + $0x48] sm:$0xff] %v5673_v1   ;;  %v9815_v27 = vmax.f32 %v9814_v6, 0.0  ;;  %v3916_v0 = vmax.f32 %v2728_v4, 0.0  ;;  %v2720_v9 = vadd.f32 %v8453_v31, %v2719_v40  ;;  %v4402_v57 = vmax.f32 %v4304_v34, %v4108_v18  ;;  %v9820_v4 = vld [vmem:[#allocation116_spill] sm:$0xff] }
 0x1ed   : > { %v4302_v26 = vmax.f32 %v4204_v50, %v9813_v36  ;;  %v9817_v21 = vmax.f32 %v9816_v47, 0.0  ;;  %v4107_v11 = vmax.f32 %v3491_v45, 0.0  ;;  %v3512_v12 = vadd.f32 %v8453_v31, %v6451_v58  ;;  %v6452_v50 = vpop.f32.mrf.mxu1  ;;  %v2722_v45 = vpop.f32.mrf.mxu0  ;;  %v9822_v47 = vld [vmem:[#allocation11_spill] sm:$0xff] }
 0x1ee   : > { %v4305_v51 = vmax.f32 %v4207_v53, %v9815_v27  ;;  %v9819_v36 = vmax.f32 %v9818_v10, 0.0  ;;  %v3914_v41 = vmax.f32 %v2720_v9, 0.0  ;;  %v3504_v6 = vadd.f32 %v8453_v31, %v3503_v60 }
 0x1ef   : > { %v4205_v23 = vmax.f32 %v9817_v21, %v3911_v14  ;;  %v4400_v53 = vmax.f32 %v4302_v26, %v4106_v13  ;;  %v9821_v27 = vmax.f32 %v9820_v4, 0.0  ;;  %v2731_v34 = vadd.f32 %v8453_v31, %v6256_v35  ;;  %v3506_v58 = vpop.f32.mrf.mxu1  ;;  %v9824_v21 = vld [vmem:[#allocation119_spill] sm:$0xff] }
 0x1f0   : > { %v4403_v30 = vmax.f32 %v4305_v51, %v4109_v62  ;;  %v4210_v1 = vmax.f32 %v9819_v36, %v3916_v0  ;;  %v3515_v18 = vadd.f32 %v8453_v31, %v6452_v50  ;;  %v9823_v62 = vmax.f32 %v9822_v47, 0.0  ;;  %v6259_v36 = vpop.f32.mrf.mxu0 }
 0x1f1   : > { %v4303_v40 = vmax.f32 %v4205_v23, %v9821_v27  ;;  %v9825_v0 = vmax.f32 %v9824_v21, 0.0  ;;  %v2723_v60 = vadd.f32 %v8453_v31, %v2722_v45  ;;  %v4112_v26 = vmax.f32 %v3512_v12, 0.0  ;;  %v6455_v35 = vpop.f32.mrf.mxu1  ;;  %v9828_v12 = vld [vmem:[#allocation14_spill] sm:$0xff]  ;;  %v9830_v21 = vld [vmem:[#allocation4_spill] sm:$0xff] }
 0x1f2   : > { %v5688_v14 = vpack.c.bf16 %v4403_v30, %v4402_v57  ;;  %v4308_v51 = vmax.f32 %v4210_v1, %v9823_v62  ;;  %v3917_v10 = vmax.f32 %v2731_v34, 0.0  ;;  %v3507_v23 = vadd.f32 %v8453_v31, %v3506_v58  ;;  %v9826_v57 = vld [vmem:[#allocation120_spill] sm:$0xff]  ;;  %v2735_v58 = vpop.f32.mrf.mxu0 }
 0x1f3   : > { %v4208_v9 = vmax.f32 %v9825_v0, %v3914_v41  ;;  %v4401_v13 = vmax.f32 %v4303_v40, %v4107_v11  ;;  %v8679_v50 = vadd.f32 %v8453_v31, %v8155_v43  ;;  %v9827_v30 = vmax.f32 %v9826_v57, 0.0  ;;  %v3519_v47 = vpop.f32.mrf.mxu1 }
 0x1f4   : > { %5881 = vst [vmem:[%s8478_s10 + $0x60] sm:$0xff] %v5688_v14   ;;  %v3915_v4 = vmax.f32 %v2723_v60, 0.0  ;;  %v2744_v41 = vadd.f32 %v8453_v31, %v6259_v36  ;;  %v4110_v11 = vmax.f32 %v3504_v6, 0.0  ;;  %v9829_v40 = vmax.f32 %v9828_v12, 0.0  ;;  %v9832_v36 = vld [vmem:[#allocation15_spill] sm:$0xff]  ;;  %v9834_v12 = vld [vmem:[#allocation5_spill] sm:$0xff] }
 0x1f5   : > { %v4306_v1 = vmax.f32 %v4208_v9, %v9827_v30  ;;  %v5683_v27 = vpack.c.bf16 %v4401_v13, %v4400_v53  ;;  %v3528_v45 = vadd.f32 %v8453_v31, %v6455_v35  ;;  %v4113_v62 = vmax.f32 %v3515_v18, 0.0  ;;  %v6260_v30 = vpop.f32.mrf.mxu0 }
 0x1f6   : > { %v4211_v34 = vmax.f32 %v9829_v40, %v3917_v10  ;;  %v9831_v43 = vmax.f32 %v9830_v21, 0.0  ;;  %v3920_v14 = vmax.f32 %v2744_v41, 0.0  ;;  %v2736_v57 = vadd.f32 %v8453_v31, %v2735_v58  ;;  %v6456_v10 = vpop.f32.mrf.mxu1 }
 0x1f7   : > { %5880 = vst [vmem:[%s8478_s10 + $0x58] sm:$0xff] %v5683_v27   ;;  %v4406_v9 = vmax.f32 %v4308_v51, %v4112_v26  ;;  %v4404_v60 = vmax.f32 %v4306_v1, %v4110_v11  ;;  %v9833_v53 = vmax.f32 %v9832_v36, 0.0  ;;  %v4111_v13 = vmax.f32 %v3507_v23, 0.0  ;;  %v2738_v1 = vpop.f32.mrf.mxu0  ;;  %v9838_v11 = vld [vmem:[#allocation19_spill] sm:$0xff] }
 0x1f8   : > { %v4209_v0 = vmax.f32 %v9831_v43, %v3915_v4  ;;  %v9835_v35 = vmax.f32 %v9834_v12, 0.0  ;;  %v9837_v18 = vmax.f32 %v9836_v28, 0.0  ;;  %v3918_v21 = vmax.f32 %v2736_v57, 0.0  ;;  %v3522_v27 = vpop.f32.mrf.mxu1  ;;  %v9868_v57 = vld [vmem:[#allocation34_spill] sm:$0xff] }
 0x1f9   : > { %v4309_v6 = vmax.f32 %v4211_v34, %v9833_v53  ;;  %v2747_v4 = vadd.f32 %v8453_v31, %v6260_v30  ;;  %v4116_v58 = vmax.f32 %v3528_v45, 0.0  ;;  %v3520_v51 = vadd.f32 %v8453_v31, %v3519_v47 }
 0x1fa   : > { %v4307_v40 = vmax.f32 %v4209_v0, %v9835_v35  ;;  %v4214_v63 = vmax.f32 %v9837_v18, %v3920_v14  ;;  %v3531_v26 = vadd.f32 %v8453_v31, %v6456_v10  ;;  %v9839_v34 = vmax.f32 %v9838_v11, 0.0  ;;  %v9840_v0 = vld [vmem:[#allocation8_spill] sm:$0xff]  ;;  %v9842_v10 = vld [vmem:[#allocation9_spill] sm:$0xff]  ;;  %v9844_v35 = vld [vmem:[#allocation22_spill] sm:$0xff] }
 0x1fb   : > { %v4407_v41 = vmax.f32 %v4309_v6, %v4113_v62  ;;  %v9841_v36 = vmax.f32 %v9840_v0, 0.0  ;;  %v3921_v14 = vmax.f32 %v2747_v4, 0.0  ;;  %v2739_v45 = vadd.f32 %v8453_v31, %v2738_v1  ;;  %v6263_v62 = vpop.f32.mrf.mxu0  ;;  %v6459_v6 = vpop.f32.mrf.mxu1 }
 0x1fc   : > { %v4405_v23 = vmax.f32 %v4307_v40, %v4111_v13  ;;  %v4312_v43 = vmax.f32 %v4214_v63, %v9839_v34  ;;  %v3523_v47 = vadd.f32 %v8453_v31, %v3522_v27  ;;  %v9843_v12 = vmax.f32 %v9842_v10, 0.0 }
 0x1fd   : > { %v4212_v28 = vmax.f32 %v9841_v36, %v3918_v21  ;;  %v5698_v53 = vpack.c.bf16 %v4407_v41, %v4406_v9  ;;  %v9845_v40 = vmax.f32 %v9844_v35, 0.0  ;;  %v8715_v21 = vadd.f32 %v8453_v31, %v8174_v44  ;;  %v2751_v1 = vpop.f32.mrf.mxu0  ;;  %v3535_v27 = vpop.f32.mrf.mxu1 }
 0x1fe   : > { %v5693_v13 = vpack.c.bf16 %v4405_v23, %v4404_v60  ;;  %v4114_v9 = vmax.f32 %v3520_v51, 0.0  ;;  %v3919_v4 = vmax.f32 %v2739_v45, 0.0  ;;  %v2760_v41 = vadd.f32 %v8453_v31, %v6263_v62  ;;  %v9846_v23 = vld [vmem:[#allocation23_spill] sm:$0xff] }
 0x1ff   : > { %v4310_v63 = vmax.f32 %v4212_v28, %v9843_v12  ;;  %v4215_v18 = vmax.f32 %v9845_v40, %v3921_v14  ;;  %5883 = vst [vmem:[%s8478_s10 + $0x70] sm:$0xff] %v5698_v53   ;;  %v4410_v11 = vmax.f32 %v4312_v43, %v4116_v58  ;;  %v4117_v60 = vmax.f32 %v3531_v26, 0.0  ;;  %v9848_v28 = vld [vmem:[#allocation12_spill] sm:$0xff]  ;;  %v6264_v53 = vpop.f32.mrf.mxu0  ;;  %v6460_v45 = vpop.f32.mrf.mxu1  ;;  %v9850_v26 = vld [vmem:[#allocation13_spill] sm:$0xff] }
 0x200   : > { %5882 = vst [vmem:[%s8478_s10 + $0x68] sm:$0xff] %v5693_v13   ;;  %v9847_v34 = vmax.f32 %v9846_v23, 0.0  ;;  %v2752_v36 = vadd.f32 %v8453_v31, %v2751_v1  ;;  %v9849_v14 = vmax.f32 %v9848_v28, 0.0  ;;  %v4115_v44 = vmax.f32 %v3523_v47, 0.0  ;;  %v9854_v28 = vld [vmem:[#allocation16_spill] sm:$0xff] }
 0x201   : > { %v3924_v12 = vmax.f32 %v2760_v41, 0.0  ;;  %v3544_v51 = vadd.f32 %v8453_v31, %v6459_v6  ;;  %v4408_v62 = vmax.f32 %v4310_v63, %v4114_v9  ;;  %v2763_v58 = vadd.f32 %v8453_v31, %v6264_v53  ;;  %v2754_v41 = vpop.f32.mrf.mxu0  ;;  %v3538_v6 = vpop.f32.mrf.mxu1 }
 0x202   : > { %v4313_v0 = vmax.f32 %v4215_v18, %v9847_v34  ;;  %v4213_v10 = vmax.f32 %v9849_v14, %v3919_v4  ;;  %v3922_v40 = vmax.f32 %v2752_v36, 0.0  ;;  %v9851_v43 = vmax.f32 %v9850_v26, 0.0  ;;  %v9852_v18 = vld [vmem:[#allocation26_spill] sm:$0xff] }
 0x203   : > { %v9853_v23 = vmax.f32 %v9852_v18, 0.0  ;;  %v3536_v4 = vadd.f32 %v8453_v31, %v3535_v27  ;;  %v3547_v47 = vadd.f32 %v8453_v31, %v6460_v45  ;;  %v9855_v63 = vmax.f32 %v9854_v28, 0.0  ;;  %v6463_v27 = vpop.f32.mrf.mxu1  ;;  %v9858_v45 = vld [vmem:[#allocation17_spill] sm:$0xff] }
 0x204   : > { %v4411_v35 = vmax.f32 %v4313_v0, %v4117_v60  ;;  %v4311_v13 = vmax.f32 %v4213_v10, %v9851_v43  ;;  %v3925_v60 = vmax.f32 %v2763_v58, 0.0  ;;  %v2755_v0 = vadd.f32 %v8453_v31, %v2754_v41  ;;  %v9856_v10 = vld [vmem:[#allocation27_spill] sm:$0xff]  ;;  %v6267_v43 = vpop.f32.mrf.mxu0 }
 0x205   : > { %v4218_v1 = vmax.f32 %v9853_v23, %v3924_v12  ;;  %v4216_v9 = vmax.f32 %v9855_v63, %v3922_v40  ;;  %v4120_v14 = vmax.f32 %v3544_v51, 0.0  ;;  %v9857_v53 = vmax.f32 %v9856_v10, 0.0  ;;  %v3551_v28 = vpop.f32.mrf.mxu1  ;;  %v9862_v63 = vld [vmem:[#allocation31_spill] sm:$0xff] }
 0x206   : > { %v5708_v34 = vpack.c.bf16 %v4411_v35, %v4410_v11  ;;  %v4409_v36 = vmax.f32 %v4311_v13, %v4115_v44  ;;  %v3539_v12 = vadd.f32 %v8453_v31, %v3538_v6  ;;  %v9859_v18 = vmax.f32 %v9858_v45, 0.0  ;;  %v9860_v35 = vld [vmem:[#allocation30_spill] sm:$0xff]  ;;  %v2767_v6 = vpop.f32.mrf.mxu0 }
 0x207   : > { %v4316_v26 = vmax.f32 %v4218_v1, %v9857_v53  ;;  %v9861_v23 = vmax.f32 %v9860_v35, 0.0  ;;  %v3923_v58 = vmax.f32 %v2755_v0, 0.0  ;;  %v2776_v41 = vadd.f32 %v8453_v31, %v6267_v43  ;;  %v9864_v53 = vld [vmem:[#allocation20_spill] sm:$0xff] }
 0x208   : > { %5885 = vst [vmem:[%s8478_s10 + $0x80] sm:$0xff] %v5708_v34   ;;  %v4314_v11 = vmax.f32 %v4216_v9, %v9859_v18  ;;  %v8748_v51 = vadd.f32 %v8453_v31, %v8176_v7  ;;  %v5703_v13 = vpack.c.bf16 %v4409_v36, %v4408_v62  ;;  %v4118_v1 = vmax.f32 %v3536_v4, 0.0  ;;  %v6464_v62 = vpop.f32.mrf.mxu1  ;;  %v9866_v36 = vld [vmem:[#allocation21_spill] sm:$0xff] }
 0x209   : > { %v4219_v40 = vmax.f32 %v9861_v23, %v3925_v60  ;;  %v4121_v34 = vmax.f32 %v3547_v47, 0.0  ;;  %v9863_v10 = vmax.f32 %v9862_v63, 0.0  ;;  %v9865_v45 = vmax.f32 %v9864_v53, 0.0  ;;  %v6268_v23 = vpop.f32.mrf.mxu0 }
 0x20a   : > { %v3928_v0 = vmax.f32 %v2776_v41, 0.0  ;;  %5884 = vst [vmem:[%s8478_s10 + $0x78] sm:$0xff] %v5703_v13   ;;  %v4414_v43 = vmax.f32 %v4316_v26, %v4120_v14  ;;  %v4119_v18 = vmax.f32 %v3539_v12, 0.0  ;;  %v3560_v35 = vadd.f32 %v8453_v31, %v6463_v27  ;;  %v3554_v27 = vpop.f32.mrf.mxu1 }
 0x20b   : > { %v4317_v9 = vmax.f32 %v4219_v40, %v9863_v10  ;;  %v4217_v60 = vmax.f32 %v9865_v45, %v3923_v58  ;;  %v2768_v7 = vadd.f32 %v8453_v31, %v2767_v6  ;;  %v9867_v30 = vmax.f32 %v9866_v36, 0.0  ;;  %v2770_v12 = vpop.f32.mrf.mxu0 }
 0x20c   : > { %v9869_v63 = vmax.f32 %v9868_v57, 0.0  ;;  %v2779_v10 = vadd.f32 %v8453_v31, %v6268_v23  ;;  %v4412_v58 = vmax.f32 %v4314_v11, %v4118_v1  ;;  %v3552_v14 = vadd.f32 %v8453_v31, %v3551_v28  ;;  %v9872_v57 = vld [vmem:[#allocation24_spill] sm:$0xff]  ;;  %v9900_v23 = vld [vmem:[#allocation50_spill] sm:$0xff] }
 0x20d   : > { %v4415_v4 = vmax.f32 %v4317_v9, %v4121_v34  ;;  %v4315_v47 = vmax.f32 %v4217_v60, %v9867_v30  ;;  %v3926_v41 = vmax.f32 %v2768_v7, 0.0  ;;  %v3563_v26 = vadd.f32 %v8453_v31, %v6464_v62  ;;  %v9870_v34 = vld [vmem:[#allocation35_spill] sm:$0xff]  ;;  %v6271_v28 = vpop.f32.mrf.mxu0  ;;  %v6467_v7 = vpop.f32.mrf.mxu1 }
 0x20e   : > { %v4222_v40 = vmax.f32 %v9869_v63, %v3928_v0  ;;  %v9871_v9 = vmax.f32 %v9870_v34, 0.0  ;;  %v3929_v30 = vmax.f32 %v2779_v10, 0.0  ;;  %v4124_v45 = vmax.f32 %v3560_v35, 0.0  ;;  %v9876_v63 = vld [vmem:[#allocation25_spill] sm:$0xff] }
 0x20f   : > { %v5718_v13 = vpack.c.bf16 %v4415_v4, %v4414_v43  ;;  %v4413_v6 = vmax.f32 %v4315_v47, %v4119_v18  ;;  %v9873_v60 = vmax.f32 %v9872_v57, 0.0  ;;  %v2771_v11 = vadd.f32 %v8453_v31, %v2770_v12  ;;  %v9874_v18 = vld [vmem:[#allocation38_spill] sm:$0xff]  ;;  %v2783_v12 = vpop.f32.mrf.mxu0 }
 0x210   : > { %v4320_v53 = vmax.f32 %v4222_v40, %v9871_v9  ;;  %v3555_v1 = vadd.f32 %v8453_v31, %v3554_v27  ;;  %v9875_v62 = vmax.f32 %v9874_v18, 0.0  ;;  %v2792_v36 = vadd.f32 %v8453_v31, %v6271_v28  ;;  %v3567_v27 = vpop.f32.mrf.mxu1 }
 0x211   : > { %v4220_v0 = vmax.f32 %v9873_v60, %v3926_v41  ;;  %5887 = vst [vmem:[%s8478_s10 + $0x90] sm:$0xff] %v5718_v13   ;;  %v5713_v43 = vpack.c.bf16 %v4413_v6, %v4412_v58  ;;  %v8777_v35 = vadd.f32 %v8453_v31, %v8204_v61  ;;  %v4122_v47 = vmax.f32 %v3552_v14, 0.0  ;;  %v9878_v13 = vld [vmem:[#allocation39_spill] sm:$0xff]  ;;  %v9880_v60 = vld [vmem:[#allocation28_spill] sm:$0xff] }
 0x212   : > { %v4223_v4 = vmax.f32 %v9875_v62, %v3929_v30  ;;  %v9877_v40 = vmax.f32 %v9876_v63, 0.0  ;;  %v3927_v41 = vmax.f32 %v2771_v11, 0.0  ;;  %v4125_v34 = vmax.f32 %v3563_v26, 0.0  ;;  %v6272_v62 = vpop.f32.mrf.mxu0  ;;  %v9882_v63 = vld [vmem:[#allocation42_spill] sm:$0xff] }
 0x213   : > { %5886 = vst [vmem:[%s8478_s10 + $0x88] sm:$0xff] %v5713_v43   ;;  %v9879_v58 = vmax.f32 %v9878_v13, 0.0  ;;  %v3932_v9 = vmax.f32 %v2792_v36, 0.0  ;;  %v2784_v30 = vadd.f32 %v8453_v31, %v2783_v12  ;;  %v4418_v57 = vmax.f32 %v4320_v53, %v4124_v45  ;;  %v9884_v36 = vld [vmem:[#allocation29_spill] sm:$0xff] }
 0x214   : > { %v4318_v10 = vmax.f32 %v4220_v0, %v9877_v40  ;;  %v9881_v28 = vmax.f32 %v9880_v60, 0.0  ;;  %v4123_v18 = vmax.f32 %v3555_v1, 0.0  ;;  %v3576_v14 = vadd.f32 %v8453_v31, %v6467_v7  ;;  %v6468_v0 = vpop.f32.mrf.mxu1  ;;  %v2786_v1 = vpop.f32.mrf.mxu0  ;;  %v9886_v60 = vld [vmem:[#allocation43_spill] sm:$0xff] }
 0x215   : > { %v4321_v6 = vmax.f32 %v4223_v4, %v9879_v58  ;;  %v9883_v40 = vmax.f32 %v9882_v63, 0.0  ;;  %v3930_v26 = vmax.f32 %v2784_v30, 0.0  ;;  %v3568_v13 = vadd.f32 %v8453_v31, %v3567_v27 }
 0x216   : > { %v4221_v61 = vmax.f32 %v9881_v28, %v3927_v41  ;;  %v4416_v4 = vmax.f32 %v4318_v10, %v4122_v47  ;;  %v9885_v58 = vmax.f32 %v9884_v36, 0.0  ;;  %v2795_v53 = vadd.f32 %v8453_v31, %v6272_v62  ;;  %v3570_v7 = vpop.f32.mrf.mxu1  ;;  %v9888_v28 = vld [vmem:[#allocation32_spill] sm:$0xff] }
 0x217   : > { %v4419_v11 = vmax.f32 %v4321_v6, %v4125_v34  ;;  %v4226_v43 = vmax.f32 %v9883_v40, %v3932_v9  ;;  %v3579_v45 = vadd.f32 %v8453_v31, %v6468_v0  ;;  %v9887_v34 = vmax.f32 %v9886_v60, 0.0  ;;  %v6275_v40 = vpop.f32.mrf.mxu0 }
 0x218   : > { %v4319_v12 = vmax.f32 %v4221_v61, %v9885_v58  ;;  %v9889_v9 = vmax.f32 %v9888_v28, 0.0  ;;  %v2787_v27 = vadd.f32 %v8453_v31, %v2786_v1  ;;  %v4128_v10 = vmax.f32 %v3576_v14, 0.0  ;;  %v6471_v62 = vpop.f32.mrf.mxu1  ;;  %v9892_v14 = vld [vmem:[#allocation46_spill] sm:$0xff]  ;;  %v9894_v28 = vld [vmem:[#allocation36_spill] sm:$0xff] }
 0x219   : > { %v5728_v41 = vpack.c.bf16 %v4419_v11, %v4418_v57  ;;  %v4324_v6 = vmax.f32 %v4226_v43, %v9887_v34  ;;  %v3933_v63 = vmax.f32 %v2795_v53, 0.0  ;;  %v3571_v61 = vadd.f32 %v8453_v31, %v3570_v7  ;;  %v9890_v57 = vld [vmem:[#allocation33_spill] sm:$0xff]  ;;  %v2799_v7 = vpop.f32.mrf.mxu0 }
 0x21a   : > { %v4224_v30 = vmax.f32 %v9889_v9, %v3930_v26  ;;  %v4417_v47 = vmax.f32 %v4319_v12, %v4123_v18  ;;  %v8803_v0 = vadd.f32 %v8453_v31, %v8206_v38  ;;  %v9891_v11 = vmax.f32 %v9890_v57, 0.0  ;;  %v3583_v60 = vpop.f32.mrf.mxu1 }
 0x21b   : > { %5889 = vst [vmem:[%s8478_s10 + $0xa0] sm:$0xff] %v5728_v41   ;;  %v3931_v36 = vmax.f32 %v2787_v27, 0.0  ;;  %v2808_v26 = vadd.f32 %v8453_v31, %v6275_v40  ;;  %v4126_v18 = vmax.f32 %v3568_v13, 0.0  ;;  %v9893_v12 = vmax.f32 %v9892_v14, 0.0  ;;  %v9896_v40 = vld [vmem:[#allocation47_spill] sm:$0xff]  ;;  %v9898_v14 = vld [vmem:[#allocation37_spill] sm:$0xff] }
 0x21c   : > { %v4322_v43 = vmax.f32 %v4224_v30, %v9891_v11  ;;  %v5723_v58 = vpack.c.bf16 %v4417_v47, %v4416_v4  ;;  %v3592_v1 = vadd.f32 %v8453_v31, %v6471_v62  ;;  %v4129_v34 = vmax.f32 %v3579_v45, 0.0  ;;  %v6276_v11 = vpop.f32.mrf.mxu0 }
 0x21d   : > { %v4227_v53 = vmax.f32 %v9893_v12, %v3933_v63  ;;  %v9895_v38 = vmax.f32 %v9894_v28, 0.0  ;;  %v3936_v41 = vmax.f32 %v2808_v26, 0.0  ;;  %v2800_v57 = vadd.f32 %v8453_v31, %v2799_v7  ;;  %v6472_v63 = vpop.f32.mrf.mxu1 }
 0x21e   : > { %5888 = vst [vmem:[%s8478_s10 + $0x98] sm:$0xff] %v5723_v58   ;;  %v4422_v30 = vmax.f32 %v4324_v6, %v4128_v10  ;;  %v4420_v27 = vmax.f32 %v4322_v43, %v4126_v18  ;;  %v9897_v4 = vmax.f32 %v9896_v40, 0.0  ;;  %v4127_v47 = vmax.f32 %v3571_v61, 0.0  ;;  %v2802_v43 = vpop.f32.mrf.mxu0  ;;  %v9902_v18 = vld [vmem:[#allocation51_spill] sm:$0xff] }
 0x21f   : > { %v4225_v9 = vmax.f32 %v9895_v38, %v3931_v36  ;;  %v9899_v62 = vmax.f32 %v9898_v14, 0.0  ;;  %v9901_v45 = vmax.f32 %v9900_v23, 0.0  ;;  %v3934_v28 = vmax.f32 %v2800_v57, 0.0  ;;  %v3586_v58 = vpop.f32.mrf.mxu1 }
 0x220   : > { %v4325_v13 = vmax.f32 %v4227_v53, %v9897_v4  ;;  %v2811_v36 = vadd.f32 %v8453_v31, %v6276_v11  ;;  %v4132_v7 = vmax.f32 %v3592_v1, 0.0  ;;  %v3584_v6 = vadd.f32 %v8453_v31, %v3583_v60 }
 0x221   : > { %v4323_v12 = vmax.f32 %v4225_v9, %v9899_v62  ;;  %v4230_v44 = vmax.f32 %v9901_v45, %v3936_v41  ;;  %v3595_v10 = vadd.f32 %v8453_v31, %v6472_v63  ;;  %v9903_v53 = vmax.f32 %v9902_v18, 0.0  ;;  %v9904_v9 = vld [vmem:[#allocation40_spill] sm:$0xff]  ;;  %v9906_v63 = vld [vmem:[#allocation41_spill] sm:$0xff]  ;;  %v9908_v62 = vld [vmem:[#allocation54_spill] sm:$0xff] }
 0x222   : > { %v4423_v26 = vmax.f32 %v4325_v13, %v4129_v34  ;;  %v9905_v40 = vmax.f32 %v9904_v9, 0.0  ;;  %v3937_v41 = vmax.f32 %v2811_v36, 0.0  ;;  %v3881_v57 = vmax.f32 %v8777_v35, 0.0  ;;  %v6279_v34 = vpop.f32.mrf.mxu0  ;;  %v6475_v13 = vpop.f32.mrf.mxu1 }
 0x223   : > { %v4421_v61 = vmax.f32 %v4323_v12, %v4127_v47  ;;  %v4328_v38 = vmax.f32 %v4230_v44, %v9903_v53  ;;  %v2803_v1 = vadd.f32 %v8453_v31, %v2802_v43  ;;  %v3587_v60 = vadd.f32 %v8453_v31, %v3586_v58 }
 0x224   : > { %v4228_v23 = vmax.f32 %v9905_v40, %v3934_v28  ;;  %v5738_v4 = vpack.c.bf16 %v4423_v26, %v4422_v30  ;;  %v4077_v11 = vmax.f32 %v8803_v0, 0.0  ;;  %v9907_v14 = vmax.f32 %v9906_v63, 0.0  ;;  %v2815_v43 = vpop.f32.mrf.mxu0  ;;  %v3599_v58 = vpop.f32.mrf.mxu1 }
 0x225   : > { %v5733_v47 = vpack.c.bf16 %v4421_v61, %v4420_v27  ;;  %v9909_v12 = vmax.f32 %v9908_v62, 0.0  ;;  %v8839_v28 = vadd.f32 %v8453_v31, %v8238_v16  ;;  %v4130_v30 = vmax.f32 %v3584_v6, 0.0  ;;  %v9910_v61 = vld [vmem:[#allocation55_spill] sm:$0xff]  ;;  %v8852_v6 = vld [vmem:[%s9225_s2] ss:$0 sm:$0xff] }
 0x226   : > { %v4326_v44 = vmax.f32 %v4228_v23, %v9907_v14  ;;  %5891 = vst [vmem:[%s8478_s10 + $0xb0] sm:$0xff] %v5738_v4   ;;  %v3935_v36 = vmax.f32 %v2803_v1, 0.0  ;;  %v2824_v26 = vadd.f32 %v8453_v31, %v6279_v34  ;;  %v4426_v18 = vmax.f32 %v4328_v38, %v4132_v7  ;;  %v9912_v23 = vld [vmem:[#allocation44_spill] sm:$0xff]  ;;  %v6280_v1 = vpop.f32.mrf.mxu0  ;;  %v6476_v7 = vpop.f32.mrf.mxu1 }
 0x227   : > { %v4231_v45 = vmax.f32 %v9909_v12, %v3937_v41  ;;  %5890 = vst [vmem:[%s8478_s10 + $0xa8] sm:$0xff] %v5733_v47   ;;  %v4133_v27 = vmax.f32 %v3595_v10, 0.0  ;;  %v9911_v53 = vmax.f32 %v9910_v61, 0.0  ;;  %v2816_v40 = vadd.f32 %v8453_v31, %v2815_v43  ;;  %v9914_v31 = vld [vmem:[#allocation45_spill] sm:$0xff] }
 0x228   : > { %v9913_v41 = vmax.f32 %v9912_v23, 0.0  ;;  %v4131_v16 = vmax.f32 %v3587_v60, 0.0  ;;  %v3940_v14 = vmax.f32 %v2824_v26, 0.0  ;;  %v3608_v4 = vadd.f32 %v8852_v6, %v6475_v13  ;;  %v2818_v61 = vpop.f32.mrf.mxu0  ;;  %v3602_v13 = vpop.f32.mrf.mxu1  ;;  %v9918_v23 = vld [vmem:[#allocation48_spill] sm:$0xff] }
 0x229   : > { %v4329_v9 = vmax.f32 %v4231_v45, %v9911_v53  ;;  %v4424_v10 = vmax.f32 %v4326_v44, %v4130_v30  ;;  %v3938_v34 = vmax.f32 %v2816_v40, 0.0  ;;  %v2827_v47 = vadd.f32 %v8852_v6, %v6280_v1  ;;  %v9916_v45 = vld [vmem:[#allocation58_spill] sm:$0xff] }
 0x22a   : > { %v4229_v63 = vmax.f32 %v9913_v41, %v3935_v36  ;;  %v9915_v62 = vmax.f32 %v9914_v31, 0.0  ;;  %v9917_v60 = vmax.f32 %v9916_v45, 0.0  ;;  %v3600_v26 = vadd.f32 %v8852_v6, %v3599_v58  ;;  %v6479_v58 = vpop.f32.mrf.mxu1 }
 0x22b   : > { %v4427_v38 = vmax.f32 %v4329_v9, %v4133_v27  ;;  %v3611_v43 = vadd.f32 %v8852_v6, %v6476_v7  ;;  %v9919_v44 = vmax.f32 %v9918_v23, 0.0  ;;  %v3941_v27 = vmax.f32 %v2827_v47, 0.0  ;;  %v9922_v7 = vld [vmem:[#allocation49_spill] sm:$0xff] }
 0x22c   : > { %v4327_v12 = vmax.f32 %v4229_v63, %v9915_v62  ;;  %v4234_v36 = vmax.f32 %v9917_v60, %v3940_v14  ;;  %v2819_v9 = vadd.f32 %v8852_v6, %v2818_v61  ;;  %v4136_v41 = vmax.f32 %v3608_v4, 0.0  ;;  %v9920_v63 = vld [vmem:[#allocation59_spill] sm:$0xff]  ;;  %v6283_v62 = vpop.f32.mrf.mxu0  ;;  %v3615_v23 = vpop.f32.mrf.mxu1 }
 0x22d   : > { %v5748_v53 = vpack.c.bf16 %v4427_v38, %v4426_v18  ;;  %v4232_v30 = vmax.f32 %v9919_v44, %v3938_v34  ;;  %v9921_v1 = vmax.f32 %v9920_v63, 0.0  ;;  %v3603_v14 = vadd.f32 %v8852_v6, %v3602_v13  ;;  %v9924_v38 = vld [vmem:[#allocation62_spill] sm:$0xff]  ;;  %v9927_v63 = vld [vmem:[#allocation52_spill] sm:$0xff] }
 0x22e   : > { %v4425_v40 = vmax.f32 %v4327_v12, %v4131_v16  ;;  %v9923_v45 = vmax.f32 %v9922_v7, 0.0  ;;  %v9925_v60 = vmax.f32 %v9924_v38, 0.0  ;;  %v3939_v47 = vmax.f32 %v2819_v9, 0.0  ;;  %v2831_v13 = vpop.f32.mrf.mxu0 }
 0x22f   : > { %v4332_v31 = vmax.f32 %v4234_v36, %v9921_v1  ;;  %5893 = vst [vmem:[%s8478_s10 + $0xc0] sm:$0xff] %v5748_v53   ;;  %v2840_v61 = vadd.f32 %v8852_v6, %v6283_v62  ;;  %v3879_v16 = vmax.f32 %v8839_v28, 0.0  ;;  %v8877_v4 = vadd.f32 %v8852_v6, %v8240_v42 }
 0x230   : > { %v4330_v18 = vmax.f32 %v4232_v30, %v9923_v45  ;;  %v4235_v34 = vmax.f32 %v9925_v60, %v3941_v27  ;;  %v5743_v12 = vpack.c.bf16 %v4425_v40, %v4424_v10  ;;  %v4134_v36 = vmax.f32 %v3600_v26, 0.0  ;;  %v6284_v38 = vpop.f32.mrf.mxu0  ;;  %v6480_v10 = vpop.f32.mrf.mxu1  ;;  %v9929_v40 = vld [vmem:[#allocation53_spill] sm:$0xff] }
 0x231   : > { %v4137_v53 = vmax.f32 %v3611_v43, 0.0  ;;  %v9926_v44 = vmax.f32 %v8078_v46, 0.0  ;;  %v9928_v1 = vmax.f32 %v9927_v63, 0.0  ;;  %v3944_v9 = vmax.f32 %v2840_v61, 0.0 }
 0x232   : > { %5892 = vst [vmem:[%s8478_s10 + $0xb8] sm:$0xff] %v5743_v12   ;;  %v4430_v62 = vmax.f32 %v4332_v31, %v4136_v41  ;;  %v4135_v7 = vmax.f32 %v3603_v14, 0.0  ;;  %v3624_v45 = vadd.f32 %v8852_v6, %v6479_v58  ;;  %v2832_v42 = vadd.f32 %v8852_v6, %v2831_v13  ;;  %v2834_v14 = vpop.f32.mrf.mxu0  ;;  %v3618_v58 = vpop.f32.mrf.mxu1 }
 0x233   : > { %v4333_v30 = vmax.f32 %v4235_v34, %v9926_v44  ;;  %v4233_v27 = vmax.f32 %v9928_v1, %v3939_v47  ;;  %v9930_v60 = vmax.f32 %v9929_v40, 0.0  ;;  %v9931_v46 = vmax.f32 %v8090_v49, 0.0  ;;  %v9933_v49 = vld [vmem:[#allocation56_spill] sm:$0xff]  ;;  %v9936_v40 = vld [vmem:[#allocation57_spill] sm:$0xff] }
 0x234   : > { %v2843_v44 = vadd.f32 %v8852_v6, %v6284_v38  ;;  %v4428_v47 = vmax.f32 %v4330_v18, %v4134_v36  ;;  %v3942_v61 = vmax.f32 %v2832_v42, 0.0  ;;  %v3616_v41 = vadd.f32 %v8852_v6, %v3615_v23  ;;  %v6287_v23 = vpop.f32.mrf.mxu0  ;;  %v6483_v42 = vpop.f32.mrf.mxu1 }
 0x235   : > { %v4431_v26 = vmax.f32 %v4333_v30, %v4137_v53  ;;  %v4331_v43 = vmax.f32 %v4233_v27, %v9930_v60  ;;  %v4238_v34 = vmax.f32 %v9931_v46, %v3944_v9  ;;  %v3627_v31 = vadd.f32 %v8852_v6, %v6480_v10 }
 0x236   : > { %v9932_v53 = vmax.f32 %v8094_v20, 0.0  ;;  %v3945_v63 = vmax.f32 %v2843_v44, 0.0  ;;  %v4140_v1 = vmax.f32 %v3624_v45, 0.0  ;;  %v9934_v27 = vmax.f32 %v9933_v49, 0.0  ;;  %v3631_v44 = vpop.f32.mrf.mxu1 }
 0x237   : > { %v5758_v12 = vpack.c.bf16 %v4431_v26, %v4430_v62  ;;  %v4429_v13 = vmax.f32 %v4331_v43, %v4135_v7  ;;  %v2835_v18 = vadd.f32 %v8852_v6, %v2834_v14  ;;  %v3619_v36 = vadd.f32 %v8852_v6, %v3618_v58 }
 0x238   : > { %v4336_v30 = vmax.f32 %v4238_v34, %v9932_v53  ;;  %v4236_v9 = vmax.f32 %v9934_v27, %v3942_v61  ;;  %v4075_v38 = vmax.f32 %v8877_v4, 0.0  ;;  %v9935_v7 = vmax.f32 %v8113_v2, 0.0  ;;  %v2847_v34 = vpop.f32.mrf.mxu0  ;;  %v6484_v27 = vpop.f32.mrf.mxu1 }
 0x239   : > { %5895 = vst [vmem:[%s8478_s10 + $0xd0] sm:$0xff] %v5758_v12   ;;  %v5753_v62 = vpack.c.bf16 %v4429_v13, %v4428_v47  ;;  %v2856_v10 = vadd.f32 %v8852_v6, %v6287_v23  ;;  %v8906_v45 = vadd.f32 %v8852_v6, %v8256_v19  ;;  %v4138_v26 = vmax.f32 %v3616_v41, 0.0  ;;  %v9939_v13 = vld [vmem:[#allocation60_spill] sm:$0xff] }
 0x23a   : > { %v4239_v20 = vmax.f32 %v9935_v7, %v3945_v63  ;;  %v9937_v60 = vmax.f32 %v9936_v40, 0.0  ;;  %v3943_v46 = vmax.f32 %v2835_v18, 0.0  ;;  %v4141_v61 = vmax.f32 %v3627_v31, 0.0  ;;  %v6288_v49 = vpop.f32.mrf.mxu0  ;;  %v9942_v7 = vld [vmem:[#allocation61_spill] sm:$0xff] }
 0x23b   : > { %5894 = vst [vmem:[%s8478_s10 + $0xc8] sm:$0xff] %v5753_v62   ;;  %v9938_v47 = vmax.f32 %v8117_v37, 0.0  ;;  %v3948_v2 = vmax.f32 %v2856_v10, 0.0  ;;  %v2848_v58 = vadd.f32 %v8852_v6, %v2847_v34  ;;  %v4434_v12 = vmax.f32 %v4336_v30, %v4140_v1 }
 0x23c   : > { %v4334_v43 = vmax.f32 %v4236_v9, %v9937_v60  ;;  %v9940_v53 = vmax.f32 %v9939_v13, 0.0  ;;  %v4139_v63 = vmax.f32 %v3619_v36, 0.0  ;;  %v3640_v41 = vadd.f32 %v8852_v6, %v6483_v42  ;;  %v2850_v36 = vpop.f32.mrf.mxu0  ;;  %v3634_v42 = vpop.f32.mrf.mxu1 }
 0x23d   : > { %v4337_v14 = vmax.f32 %v4239_v20, %v9938_v47  ;;  %v9941_v18 = vmax.f32 %v8132_v33, 0.0  ;;  %v3946_v31 = vmax.f32 %v2848_v58, 0.0  ;;  %v3632_v37 = vadd.f32 %v8852_v6, %v3631_v44 }
 0x23e   : > { %v4237_v19 = vmax.f32 %v9940_v53, %v3943_v46  ;;  %v4432_v62 = vmax.f32 %v4334_v43, %v4138_v26  ;;  %v9943_v20 = vmax.f32 %v9942_v7, 0.0  ;;  %v2859_v30 = vadd.f32 %v8852_v6, %v6288_v49  ;;  %v9950_v7 = vld [vmem:[#allocation64_spill] sm:$0xff] }
 0x23f   : > { %v4435_v9 = vmax.f32 %v4337_v14, %v4141_v61  ;;  %v4242_v23 = vmax.f32 %v9941_v18, %v3948_v2  ;;  %v3643_v1 = vadd.f32 %v8852_v6, %v6484_v27  ;;  %v9944_v60 = vmax.f32 %v8142_v15, 0.0  ;;  %v6291_v14 = vpop.f32.mrf.mxu0  ;;  %v6487_v2 = vpop.f32.mrf.mxu1  ;;  %v9946_v15 = vld [vmem:[#allocation63_spill] sm:$0xff] }
 0x240   : > { %v4335_v10 = vmax.f32 %v4237_v19, %v9943_v20  ;;  %v9945_v33 = vmax.f32 %v8082_v3, 0.0  ;;  %v2851_v44 = vadd.f32 %v8852_v6, %v2850_v36  ;;  %v4144_v43 = vmax.f32 %v3640_v41, 0.0  ;;  %v9948_v41 = vld [vmem:[#allocation135_spill] sm:$0xff] }
 0x241   : > { %v5768_v40 = vpack.c.bf16 %v4435_v9, %v4434_v12  ;;  %v4340_v46 = vmax.f32 %v4242_v23, %v9944_v60  ;;  %v3949_v61 = vmax.f32 %v2859_v30, 0.0  ;;  %v3635_v47 = vadd.f32 %v8852_v6, %v3634_v42  ;;  %v2863_v18 = vpop.f32.mrf.mxu0  ;;  %v3647_v23 = vpop.f32.mrf.mxu1 }
 0x242   : > { %v4240_v34 = vmax.f32 %v9945_v33, %v3946_v31  ;;  %v4433_v26 = vmax.f32 %v4335_v10, %v4139_v63  ;;  %v8932_v58 = vadd.f32 %v8852_v6, %v8259_v25  ;;  %v9947_v12 = vmax.f32 %v9946_v15, 0.0 }
 0x243   : > { %5897 = vst [vmem:[%s8478_s10 + $0xe0] sm:$0xff] %v5768_v40   ;;  %v3947_v3 = vmax.f32 %v2851_v44, 0.0  ;;  %v2872_v53 = vadd.f32 %v8852_v6, %v6291_v14  ;;  %v4142_v63 = vmax.f32 %v3632_v37, 0.0  ;;  %v9949_v49 = vmax.f32 %v9948_v41, 0.0  ;;  %v6292_v60 = vpop.f32.mrf.mxu0  ;;  %v6488_v33 = vpop.f32.mrf.mxu1 }
 0x244   : > { %v4338_v13 = vmax.f32 %v4240_v34, %v9947_v12  ;;  %v5763_v19 = vpack.c.bf16 %v4433_v26, %v4432_v62  ;;  %v3656_v9 = vadd.f32 %v8852_v6, %v6487_v2  ;;  %v4145_v31 = vmax.f32 %v3643_v1, 0.0  ;;  %v9953_v34 = vld [vmem:[#allocation65_spill] sm:$0xff] }
 0x245   : > { %v4243_v27 = vmax.f32 %v9949_v49, %v3949_v61  ;;  %v9951_v25 = vmax.f32 %v9950_v7, 0.0  ;;  %v3952_v10 = vmax.f32 %v2872_v53, 0.0  ;;  %v2864_v30 = vadd.f32 %v8852_v6, %v2863_v18 }
 0x246   : > { %5896 = vst [vmem:[%s8478_s10 + $0xd8] sm:$0xff] %v5763_v19   ;;  %v4438_v36 = vmax.f32 %v4340_v46, %v4144_v43  ;;  %v4436_v42 = vmax.f32 %v4338_v13, %v4142_v63  ;;  %v9952_v62 = vmax.f32 %v8182_v56, 0.0  ;;  %v4143_v40 = vmax.f32 %v3635_v47, 0.0  ;;  %v2866_v56 = vpop.f32.mrf.mxu0  ;;  %v3650_v13 = vpop.f32.mrf.mxu1  ;;  %v9957_v19 = vld [vmem:[#allocation66_spill] sm:$0xff] }
 0x247   : > { %v4241_v20 = vmax.f32 %v9951_v25, %v3947_v3  ;;  %v9954_v44 = vmax.f32 %v9953_v34, 0.0  ;;  %v9955_v1 = vmax.f32 %v8194_v52, 0.0  ;;  %v3950_v14 = vmax.f32 %v2864_v30, 0.0 }
 0x248   : > { %v4341_v37 = vmax.f32 %v4243_v27, %v9952_v62  ;;  %v2875_v2 = vadd.f32 %v8852_v6, %v6292_v60  ;;  %v4148_v12 = vmax.f32 %v3656_v9, 0.0  ;;  %v3648_v46 = vadd.f32 %v8852_v6, %v3647_v23  ;;  %v6295_v23 = vpop.f32.mrf.mxu0 }
 0x249   : > { %v4339_v26 = vmax.f32 %v4241_v20, %v9954_v44  ;;  %v4246_v61 = vmax.f32 %v9955_v1, %v3952_v10  ;;  %v3659_v43 = vadd.f32 %v8852_v6, %v6488_v33  ;;  %v9956_v3 = vmax.f32 %v8198_v29, 0.0  ;;  %v9959_v20 = vld [vmem:[#allocation67_spill] sm:$0xff] }
 0x24a   : > { %v4439_v15 = vmax.f32 %v4341_v37, %v4145_v31  ;;  %v9958_v63 = vmax.f32 %v9957_v19, 0.0  ;;  %v3953_v41 = vmax.f32 %v2875_v2, 0.0  ;;  %v3884_v49 = vmax.f32 %v8906_v45, 0.0  ;;  %v6491_v31 = vpop.f32.mrf.mxu1  ;;  %v2879_v33 = vpop.f32.mrf.mxu0 }
 0x24b   : > { %v4437_v47 = vmax.f32 %v4339_v26, %v4143_v40  ;;  %v4344_v53 = vmax.f32 %v4246_v61, %v9956_v3  ;;  %v2867_v9 = vadd.f32 %v8852_v6, %v2866_v56  ;;  %v3651_v18 = vadd.f32 %v8852_v6, %v3650_v13  ;;  %v9963_v61 = vld [vmem:[#allocation81_spill] sm:$0xff] }
 0x24c   : > { %v4244_v52 = vmax.f32 %v9958_v63, %v3950_v14  ;;  %v5778_v27 = vpack.c.bf16 %v4439_v15, %v4438_v36  ;;  %v4080_v7 = vmax.f32 %v8932_v58, 0.0  ;;  %v9960_v29 = vmax.f32 %v9959_v20, 0.0  ;;  %v3663_v34 = vpop.f32.mrf.mxu1  ;;  %v6296_v56 = vpop.f32.mrf.mxu0 }
 0x24d   : > { %v5773_v25 = vpack.c.bf16 %v4437_v47, %v4436_v42  ;;  %v9961_v30 = vmax.f32 %v8217_v24, 0.0  ;;  %v8968_v37 = vadd.f32 %v8852_v6, %v8278_v22  ;;  %v4146_v36 = vmax.f32 %v3648_v46, 0.0 }
 0x24e   : > { %v4342_v10 = vmax.f32 %v4244_v52, %v9960_v29  ;;  %5899 = vst [vmem:[%s8478_s10 + $0xf0] sm:$0xff] %v5778_v27   ;;  %v3951_v40 = vmax.f32 %v2867_v9, 0.0  ;;  %v2888_v60 = vadd.f32 %v8852_v6, %v6295_v23  ;;  %v4442_v44 = vmax.f32 %v4344_v53, %v4148_v12  ;;  %v6492_v13 = vpop.f32.mrf.mxu1  ;;  %v2882_v9 = vpop.f32.mrf.mxu0 }
 0x24f   : > { %v4247_v62 = vmax.f32 %v9961_v30, %v3953_v41  ;;  %5898 = vst [vmem:[%s8478_s10 + $0xe8] sm:$0xff] %v5773_v25   ;;  %v4149_v42 = vmax.f32 %v3659_v43, 0.0  ;;  %v9962_v26 = vmax.f32 %v8221_v59, 0.0  ;;  %v2880_v24 = vadd.f32 %v8852_v6, %v2879_v33  ;;  %v9965_v43 = vld [vmem:[#allocation134_spill] sm:$0xff] }
 0x250   : > { %v9964_v14 = vmax.f32 %v9963_v61, 0.0  ;;  %v4147_v22 = vmax.f32 %v3651_v18, 0.0  ;;  %v3956_v15 = vmax.f32 %v2888_v60, 0.0  ;;  %v3672_v46 = vadd.f32 %v8852_v6, %v6491_v31  ;;  %v3666_v18 = vpop.f32.mrf.mxu1 }
 0x251   : > { %v4345_v1 = vmax.f32 %v4247_v62, %v9962_v26  ;;  %v4440_v47 = vmax.f32 %v4342_v10, %v4146_v36  ;;  %v3954_v19 = vmax.f32 %v2880_v24, 0.0  ;;  %v2891_v12 = vadd.f32 %v8852_v6, %v6296_v56  ;;  %v9972_v24 = vld [vmem:[#allocation142_spill] sm:$0xff] }
 0x252   : > { %v4245_v2 = vmax.f32 %v9964_v14, %v3951_v40  ;;  %v9966_v53 = vmax.f32 %v9965_v43, 0.0  ;;  %v9967_v63 = vmax.f32 %v8236_v32, 0.0  ;;  %v3664_v41 = vadd.f32 %v8852_v6, %v3663_v34  ;;  %v6299_v40 = vpop.f32.mrf.mxu0  ;;  %v6495_v60 = vpop.f32.mrf.mxu1 }
 0x253   : > { %v4443_v3 = vmax.f32 %v4345_v1, %v4149_v42  ;;  %v3675_v27 = vadd.f32 %v8852_v6, %v6492_v13  ;;  %v9968_v31 = vmax.f32 %v8186_v55, 0.0  ;;  %v3957_v20 = vmax.f32 %v2891_v12, 0.0  ;;  %v9975_v13 = vld [vmem:[#allocation136_spill] sm:$0xff] }
 0x254   : > { %v4343_v59 = vmax.f32 %v4245_v2, %v9966_v53  ;;  %v4250_v52 = vmax.f32 %v9967_v63, %v3956_v15  ;;  %v2883_v29 = vadd.f32 %v8852_v6, %v2882_v9  ;;  %v4152_v30 = vmax.f32 %v3672_v46, 0.0  ;;  %v2895_v2 = vpop.f32.mrf.mxu0  ;;  %v9973_v46 = vld [vmem:[#allocation143_spill] sm:$0xff] }
 0x255   : > { %v5788_v23 = vpack.c.bf16 %v4443_v3, %v4442_v44  ;;  %v4248_v25 = vmax.f32 %v9968_v31, %v3954_v19  ;;  %v9969_v62 = vmax.f32 %v8246_v5, 0.0  ;;  %v3667_v36 = vadd.f32 %v8852_v6, %v3666_v18  ;;  %v9979_v18 = vld [vmem:[#allocation146_spill] sm:$0xff] }
 0x256   : > { %v4441_v10 = vmax.f32 %v4343_v59, %v4147_v22  ;;  %v9970_v33 = vmax.f32 %v8190_v8, 0.0  ;;  %v9971_v55 = vmax.f32 %v8276_v54, 0.0  ;;  %v3955_v42 = vmax.f32 %v2883_v29, 0.0  ;;  %v3679_v22 = vpop.f32.mrf.mxu1  ;;  %v6300_v63 = vpop.f32.mrf.mxu0 }
 0x257   : > { %v4348_v32 = vmax.f32 %v4250_v52, %v9969_v62  ;;  %5901 = vst [vmem:[%s8478_s10 + $0x100] sm:$0xff] %v5788_v23   ;;  %v2904_v26 = vadd.f32 %v8852_v6, %v6299_v40  ;;  %v3882_v1 = vmax.f32 %v8968_v37, 0.0  ;;  %v9001_v5 = vadd.f32 %v8852_v6, %v9972_v24 }
 0x258   : > { %v4346_v34 = vmax.f32 %v4248_v25, %v9970_v33  ;;  %v4251_v44 = vmax.f32 %v9971_v55, %v3957_v20  ;;  %v5783_v61 = vpack.c.bf16 %v4441_v10, %v4440_v47  ;;  %v4150_v14 = vmax.f32 %v3664_v41, 0.0  ;;  %v6496_v47 = vpop.f32.mrf.mxu1  ;;  %v9977_v41 = vld [vmem:[#allocation137_spill] sm:$0xff]  ;;  %v2898_v62 = vpop.f32.mrf.mxu0 }
 0x259   : > { %v4153_v15 = vmax.f32 %v3675_v27, 0.0  ;;  %v9974_v8 = vmax.f32 %v9973_v46, 0.0  ;;  %v9976_v54 = vmax.f32 %v9975_v13, 0.0  ;;  %v3960_v19 = vmax.f32 %v2904_v26, 0.0  ;;  %v9983_v26 = vld [vmem:[#allocation138_spill] sm:$0xff] }
 0x25a   : > { %5900 = vst [vmem:[%s8478_s10 + $0xf8] sm:$0xff] %v5783_v61   ;;  %v4446_v12 = vmax.f32 %v4348_v32, %v4152_v30  ;;  %v4151_v43 = vmax.f32 %v3667_v36, 0.0  ;;  %v3688_v53 = vadd.f32 %v8852_v6, %v6495_v60  ;;  %v2896_v59 = vadd.f32 %v8852_v6, %v2895_v2  ;;  %v3682_v32 = vpop.f32.mrf.mxu1  ;;  %v9981_v60 = vld [vmem:[#allocation147_spill] sm:$0xff]  ;;  %v6303_v2 = vpop.f32.mrf.mxu0 }
 0x25b   : > { %v4349_v56 = vmax.f32 %v4251_v44, %v9974_v8  ;;  %v4249_v3 = vmax.f32 %v9976_v54, %v3955_v42  ;;  %v9978_v9 = vmax.f32 %v9977_v41, 0.0  ;;  %v9980_v23 = vmax.f32 %v9979_v18, 0.0  ;;  %v9985_v8 = vld [vmem:[#allocation152_spill] sm:$0xff] }
 0x25c   : > { %v2907_v25 = vadd.f32 %v8852_v6, %v6300_v63  ;;  %v4444_v20 = vmax.f32 %v4346_v34, %v4150_v14  ;;  %v3958_v29 = vmax.f32 %v2896_v59, 0.0  ;;  %v3680_v10 = vadd.f32 %v8852_v6, %v3679_v22  ;;  %v6499_v22 = vpop.f32.mrf.mxu1 }
 0x25d   : > { %v4447_v52 = vmax.f32 %v4349_v56, %v4153_v15  ;;  %v4347_v27 = vmax.f32 %v4249_v3, %v9978_v9  ;;  %v4254_v31 = vmax.f32 %v9980_v23, %v3960_v19  ;;  %v3691_v30 = vadd.f32 %v8852_v6, %v6496_v47  ;;  %v9987_v3 = vld [vmem:[#allocation157_spill] sm:$0xff]  ;;  %v2911_v47 = vpop.f32.mrf.mxu0 }
 0x25e   : > { %v9982_v33 = vmax.f32 %v9981_v60, 0.0  ;;  %v3961_v44 = vmax.f32 %v2907_v25, 0.0  ;;  %v4156_v42 = vmax.f32 %v3688_v53, 0.0  ;;  %v9984_v24 = vmax.f32 %v9983_v26, 0.0  ;;  %v9990_v9 = vld [vmem:[#allocation153_spill] sm:$0xff] }
 0x25f   : > { %v5798_v36 = vpack.c.bf16 %v4447_v52, %v4446_v12  ;;  %v4445_v40 = vmax.f32 %v4347_v27, %v4151_v43  ;;  %v2899_v34 = vadd.f32 %v8852_v6, %v2898_v62  ;;  %v3683_v14 = vadd.f32 %v8852_v6, %v3682_v32  ;;  %v9988_v43 = vld [vmem:[#allocation139_spill] sm:$0xff]  ;;  %v3695_v52 = vpop.f32.mrf.mxu1 }
 0x260   : > { %v4352_v55 = vmax.f32 %v4254_v31, %v9982_v33  ;;  %v4252_v61 = vmax.f32 %v9984_v24, %v3958_v29  ;;  %v4078_v15 = vmax.f32 %v9001_v5, 0.0  ;;  %v9986_v56 = vmax.f32 %v9985_v8, 0.0  ;;  %v9994_v33 = vld [vmem:[#allocation156_spill] sm:$0xff] }
 0x261   : > { %5903 = vst [vmem:[%s8478_s10 + $0x110] sm:$0xff] %v5798_v36   ;;  %v5793_v46 = vpack.c.bf16 %v4445_v40, %v4444_v20  ;;  %v2920_v54 = vadd.f32 %v8852_v6, %v6303_v2  ;;  %v9030_v19 = vadd.f32 %v8852_v6, %v9987_v3  ;;  %v4154_v12 = vmax.f32 %v3680_v10, 0.0  ;;  %v9992_v20 = vld [vmem:[#allocation140_spill] sm:$0xff]  ;;  %v6304_v36 = vpop.f32.mrf.mxu0  ;;  %v6500_v40 = vpop.f32.mrf.mxu1 }
 0x262   : > { %v4255_v13 = vmax.f32 %v9986_v56, %v3961_v44  ;;  %v9989_v53 = vmax.f32 %v9988_v43, 0.0  ;;  %v3959_v63 = vmax.f32 %v2899_v34, 0.0  ;;  %v4157_v41 = vmax.f32 %v3691_v30, 0.0  ;;  %v9996_v34 = vld [vmem:[#allocation141_spill] sm:$0xff]  ;;  %v10000_v3 = vld [vmem:[#allocation144_spill] sm:$0xff] }
 0x263   : > { %5902 = vst [vmem:[%s8478_s10 + $0x108] sm:$0xff] %v5793_v46   ;;  %v9991_v27 = vmax.f32 %v9990_v9, 0.0  ;;  %v3964_v23 = vmax.f32 %v2920_v54, 0.0  ;;  %v2912_v31 = vadd.f32 %v8852_v6, %v2911_v47  ;;  %v4450_v25 = vmax.f32 %v4352_v55, %v4156_v42  ;;  %v9998_v56 = vld [vmem:[#allocation121_spill] sm:$0xff] }
 0x264   : > { %v4350_v59 = vmax.f32 %v4252_v61, %v9989_v53  ;;  %v9993_v29 = vmax.f32 %v9992_v20, 0.0  ;;  %v4155_v32 = vmax.f32 %v3683_v14, 0.0  ;;  %v3704_v10 = vadd.f32 %v8852_v6, %v6499_v22  ;;  %v2914_v14 = vpop.f32.mrf.mxu0  ;;  %v3698_v22 = vpop.f32.mrf.mxu1 }
 0x265   : > { %v4353_v18 = vmax.f32 %v4255_v13, %v9991_v27  ;;  %v9995_v44 = vmax.f32 %v9994_v33, 0.0  ;;  %v3962_v30 = vmax.f32 %v2912_v31, 0.0  ;;  %v3696_v24 = vadd.f32 %v8852_v6, %v3695_v52  ;;  %v10002_v27 = vld [vmem:[#allocation158_spill] sm:$0xff] }
 0x266   : > { %v4253_v62 = vmax.f32 %v9993_v29, %v3959_v63  ;;  %v4448_v61 = vmax.f32 %v4350_v59, %v4154_v12  ;;  %v9997_v2 = vmax.f32 %v9996_v34, 0.0  ;;  %v2923_v55 = vadd.f32 %v8852_v6, %v6304_v36  ;;  %v6503_v9 = vpop.f32.mrf.mxu1 }
 0x267   : > { %v4451_v60 = vmax.f32 %v4353_v18, %v4157_v41  ;;  %v4258_v26 = vmax.f32 %v9995_v44, %v3964_v23  ;;  %v3707_v42 = vadd.f32 %v8852_v6, %v6500_v40  ;;  %v9999_v13 = vmax.f32 %v9998_v56, 0.0  ;;  %v6307_v41 = vpop.f32.mrf.mxu0  ;;  %v10003_v23 = vld [vmem:[#allocation145_spill] sm:$0xff] }
 0x268   : > { %v4351_v46 = vmax.f32 %v4253_v62, %v9997_v2  ;;  %v10001_v43 = vmax.f32 %v10000_v3, 0.0  ;;  %v2915_v63 = vadd.f32 %v8852_v6, %v2914_v14  ;;  %v4160_v59 = vmax.f32 %v3704_v10, 0.0  ;;  %v10005_v10 = vld [vmem:[#allocation124_spill] sm:$0xff]  ;;  %v3711_v44 = vpop.f32.mrf.mxu1 }
 0x269   : > { %v5808_v8 = vpack.c.bf16 %v4451_v60, %v4450_v25  ;;  %v4356_v54 = vmax.f32 %v4258_v26, %v9999_v13  ;;  %v3965_v47 = vmax.f32 %v2923_v55, 0.0  ;;  %v3699_v52 = vadd.f32 %v8852_v6, %v3698_v22  ;;  %v2927_v33 = vpop.f32.mrf.mxu0 }
 0x26a   : > { %v4256_v53 = vmax.f32 %v10001_v43, %v3962_v30  ;;  %v4449_v12 = vmax.f32 %v4351_v46, %v4155_v32  ;;  %v9056_v18 = vadd.f32 %v8852_v6, %v10002_v27  ;;  %v10004_v31 = vmax.f32 %v10003_v23, 0.0  ;;  %v10007_v30 = vld [vmem:[#allocation148_spill] sm:$0xff]  ;;  %v6504_v3 = vpop.f32.mrf.mxu1  ;;  %v10011_v43 = vld [vmem:[#allocation151_spill] sm:$0xff] }
 0x26b   : > { %5905 = vst [vmem:[%s8478_s10 + $0x120] sm:$0xff] %v5808_v8   ;;  %v3963_v20 = vmax.f32 %v2915_v63, 0.0  ;;  %v2936_v29 = vadd.f32 %v8852_v6, %v6307_v41  ;;  %v4158_v32 = vmax.f32 %v3696_v24, 0.0  ;;  %v10006_v36 = vmax.f32 %v10005_v10, 0.0  ;;  %v10009_v8 = vld [vmem:[#allocation125_spill] sm:$0xff]  ;;  %v6308_v13 = vpop.f32.mrf.mxu0 }
 0x26c   : > { %v4354_v25 = vmax.f32 %v4256_v53, %v10004_v31  ;;  %v5803_v62 = vpack.c.bf16 %v4449_v12, %v4448_v61  ;;  %v3720_v60 = vadd.f32 %v8852_v6, %v6503_v9  ;;  %v4161_v26 = vmax.f32 %v3707_v42, 0.0  ;;  %v10013_v12 = vld [vmem:[#allocation128_spill] sm:$0xff] }
 0x26d   : > { %v4259_v40 = vmax.f32 %v10006_v36, %v3965_v47  ;;  %v10008_v34 = vmax.f32 %v10007_v30, 0.0  ;;  %v3968_v46 = vmax.f32 %v2936_v29, 0.0  ;;  %v2928_v55 = vadd.f32 %v8852_v6, %v2927_v33  ;;  %v2930_v31 = vpop.f32.mrf.mxu0  ;;  %v10019_v33 = vld [vmem:[#allocation149_spill] sm:$0xff] }
 0x26e   : > { %5904 = vst [vmem:[%s8478_s10 + $0x118] sm:$0xff] %v5803_v62   ;;  %v4454_v14 = vmax.f32 %v4356_v54, %v4160_v59  ;;  %v4452_v22 = vmax.f32 %v4354_v25, %v4158_v32  ;;  %v10010_v61 = vmax.f32 %v10009_v8, 0.0  ;;  %v4159_v56 = vmax.f32 %v3699_v52, 0.0  ;;  %v3714_v25 = vpop.f32.mrf.mxu1  ;;  %v10017_v32 = vld [vmem:[#allocation154_spill] sm:$0xff]  ;;  %v10020_v8 = vld [vmem:[#allocation155_spill] sm:$0xff] }
 0x26f   : > { %v4257_v2 = vmax.f32 %v10008_v34, %v3963_v20  ;;  %v10012_v53 = vmax.f32 %v10011_v43, 0.0  ;;  %v10014_v42 = vmax.f32 %v10013_v12, 0.0  ;;  %v3966_v41 = vmax.f32 %v2928_v55, 0.0  ;;  %v10015_v20 = vld [vmem:[#allocation129_spill] sm:$0xff]  ;;  %v6311_v34 = vpop.f32.mrf.mxu0 }
 0x270   : > { %v4357_v24 = vmax.f32 %v4259_v40, %v10010_v61  ;;  %v2939_v9 = vadd.f32 %v8852_v6, %v6308_v13  ;;  %v4164_v23 = vmax.f32 %v3720_v60, 0.0  ;;  %v3712_v54 = vadd.f32 %v8852_v6, %v3711_v44 }
 0x271   : > { %v4355_v63 = vmax.f32 %v4257_v2, %v10012_v53  ;;  %v4262_v47 = vmax.f32 %v10014_v42, %v3968_v46  ;;  %v3723_v59 = vadd.f32 %v8852_v6, %v6504_v3  ;;  %v10016_v29 = vmax.f32 %v10015_v20, 0.0  ;;  %v6507_v2 = vpop.f32.mrf.mxu1  ;;  %v2943_v12 = vpop.f32.mrf.mxu0 }
 0x272   : > { %v4455_v27 = vmax.f32 %v4357_v24, %v4161_v26  ;;  %v10018_v10 = vmax.f32 %v10017_v32, 0.0  ;;  %v3969_v40 = vmax.f32 %v2939_v9, 0.0  ;;  %v9084_v30 = vadd.f32 %v8852_v6, %v10019_v33  ;;  %v10024_v9 = vld [vmem:[#allocation133_spill] sm:$0xff] }
 0x273   : > { %v4453_v52 = vmax.f32 %v4355_v63, %v4159_v56  ;;  %v4360_v62 = vmax.f32 %v4262_v47, %v10016_v29  ;;  %v2931_v44 = vadd.f32 %v8852_v6, %v2930_v31  ;;  %v3715_v26 = vadd.f32 %v8852_v6, %v3714_v25  ;;  %v10022_v56 = vld [vmem:[#allocation131_spill] sm:$0xff]  ;;  %v3727_v42 = vpop.f32.mrf.mxu1  ;;  %v10026_v25 = vld [vmem:[#allocation122_spill] sm:$0xff] }
 0x274   : > { %v4260_v36 = vmax.f32 %v10018_v10, %v3966_v41  ;;  %v5818_v60 = vpack.c.bf16 %v4455_v27, %v4454_v14  ;;  %v3883_v46 = vmax.f32 %v9030_v19, 0.0  ;;  %v10021_v61 = vmax.f32 %v10020_v8, 0.0  ;;  %v6312_v10 = vpop.f32.mrf.mxu0 }
 0x275   : > { %v5813_v55 = vpack.c.bf16 %v4453_v52, %v4452_v22  ;;  %v10023_v13 = vmax.f32 %v10022_v56, 0.0  ;;  %v4079_v43 = vmax.f32 %v9056_v18, 0.0  ;;  %v4162_v14 = vmax.f32 %v3712_v54, 0.0 }
 0x276   : > { %v4358_v24 = vmax.f32 %v4260_v36, %v10021_v61  ;;  %5907 = vst [vmem:[%s8478_s10 + $0x130] sm:$0xff] %v5818_v60   ;;  %v3967_v53 = vmax.f32 %v2931_v44, 0.0  ;;  %v2952_v63 = vadd.f32 %v8852_v6, %v6311_v34  ;;  %v4458_v47 = vmax.f32 %v4360_v62, %v4164_v23  ;;  %v6508_v36 = vpop.f32.mrf.mxu1  ;;  %v10030_v34 = vld [vmem:[#allocation77_spill] sm:$0xff]  ;;  %v2946_v56 = vpop.f32.mrf.mxu0 }
 0x277   : > { %v4263_v3 = vmax.f32 %v10023_v13, %v3969_v40  ;;  %5906 = vst [vmem:[%s8478_s10 + $0x128] sm:$0xff] %v5813_v55   ;;  %v4165_v41 = vmax.f32 %v3723_v59, 0.0  ;;  %v10025_v22 = vmax.f32 %v10024_v9, 0.0  ;;  %v2944_v31 = vadd.f32 %v8852_v6, %v2943_v12  ;;  %v10028_v59 = vld [vmem:[#allocation123_spill] sm:$0xff]  ;;  %v10034_v9 = vld [vmem:[#allocation80_spill] sm:$0xff] }
 0x278   : > { %v10027_v52 = vmax.f32 %v10026_v25, 0.0  ;;  %v4163_v29 = vmax.f32 %v3715_v26, 0.0  ;;  %v3972_v32 = vmax.f32 %v2952_v63, 0.0  ;;  %v3736_v54 = vadd.f32 %v8852_v6, %v6507_v2  ;;  %v3730_v2 = vpop.f32.mrf.mxu1  ;;  %v6315_v25 = vpop.f32.mrf.mxu0 }
 0x279   : > { %v4361_v27 = vmax.f32 %v4263_v3, %v10025_v22  ;;  %v4456_v40 = vmax.f32 %v4358_v24, %v4162_v14  ;;  %v3970_v60 = vmax.f32 %v2944_v31, 0.0  ;;  %v2955_v23 = vadd.f32 %v8852_v6, %v6312_v10  ;;  %v10032_v3 = vld [vmem:[#allocation126_spill] sm:$0xff] }
 0x27a   : > { %v4261_v20 = vmax.f32 %v10027_v52, %v3967_v53  ;;  %v10029_v62 = vmax.f32 %v10028_v59, 0.0  ;;  %v10031_v55 = vmax.f32 %v10030_v34, 0.0  ;;  %v3728_v61 = vadd.f32 %v8852_v6, %v3727_v42  ;;  %v6511_v42 = vpop.f32.mrf.mxu1  ;;  %v10036_v52 = vld [vmem:[#allocation127_spill] sm:$0xff] }
 0x27b   : > { %v4459_v33 = vmax.f32 %v4361_v27, %v4165_v41  ;;  %v3739_v26 = vadd.f32 %v8852_v6, %v6508_v36  ;;  %v10033_v24 = vmax.f32 %v10032_v3, 0.0  ;;  %v3973_v53 = vmax.f32 %v2955_v23, 0.0 }
 0x27c   : > { %v4359_v44 = vmax.f32 %v4261_v20, %v10029_v62  ;;  %v4266_v8 = vmax.f32 %v10031_v55, %v3972_v32  ;;  %v2947_v63 = vadd.f32 %v8852_v6, %v2946_v56  ;;  %v4168_v41 = vmax.f32 %v3736_v54, 0.0  ;;  %v3743_v34 = vpop.f32.mrf.mxu1  ;;  %v10042_v56 = vld [vmem:[#allocation70_spill] sm:$0xff] }
 0x27d   : > { %v5828_v13 = vpack.c.bf16 %v4459_v33, %v4458_v47  ;;  %v4264_v14 = vmax.f32 %v10033_v24, %v3970_v60  ;;  %v10035_v22 = vmax.f32 %v10034_v9, 0.0  ;;  %v3731_v31 = vadd.f32 %v8852_v6, %v3730_v2  ;;  %v10040_v60 = vld [vmem:[#allocation160_spill] sm:$0xff] }
 0x27e   : > { %v4457_v12 = vmax.f32 %v4359_v44, %v4163_v29  ;;  %v10037_v20 = vmax.f32 %v10036_v52, 0.0  ;;  %v10038_v32 = vmax.f32 %v8591_v39, 0.0  ;;  %v3971_v36 = vmax.f32 %v2947_v63, 0.0  ;;  %v10039_v29 = vld [vmem:[#allocation159_spill] sm:$0xff]  ;;  %v2959_v44 = vpop.f32.mrf.mxu0 }
 0x27f   : > { %v4364_v27 = vmax.f32 %v4266_v8, %v10035_v22  ;;  %5909 = vst [vmem:[%s8478_s10 + $0x140] sm:$0xff] %v5828_v13   ;;  %v2968_v33 = vadd.f32 %v8852_v6, %v6315_v25  ;;  %v9124_v54 = vadd.f32 %v8852_v6, %v10039_v29  ;;  %v9128_v23 = vadd.f32 %v8852_v6, %v10040_v60  ;;  %v10044_v22 = vld [vmem:[#allocation130_spill] sm:$0xff] }
 0x280   : > { %v4362_v47 = vmax.f32 %v4264_v14, %v10037_v20  ;;  %v4267_v10 = vmax.f32 %v10038_v32, %v3973_v53  ;;  %v5823_v59 = vpack.c.bf16 %v4457_v12, %v4456_v40  ;;  %v3752_v62 = vadd.f32 %v8852_v6, %v6511_v42  ;;  %v6316_v9 = vpop.f32.mrf.mxu0  ;;  %v6512_v40 = vpop.f32.mrf.mxu1 }
 0x281   : > { %v4169_v55 = vmax.f32 %v3739_v26, 0.0  ;;  %v10041_v39 = vmax.f32 %v8624_v17, 0.0  ;;  %v10043_v2 = vmax.f32 %v10042_v56, 0.0  ;;  %v3976_v3 = vmax.f32 %v2968_v33, 0.0 }
 0x282   : > { %5908 = vst [vmem:[%s8478_s10 + $0x138] sm:$0xff] %v5823_v59   ;;  %v4462_v24 = vmax.f32 %v4364_v27, %v4168_v41  ;;  %v4166_v14 = vmax.f32 %v3728_v61, 0.0  ;;  %v4167_v53 = vmax.f32 %v3731_v31, 0.0  ;;  %v2960_v63 = vadd.f32 %v8852_v6, %v2959_v44  ;;  %v2962_v41 = vpop.f32.mrf.mxu0  ;;  %v3746_v27 = vpop.f32.mrf.mxu1  ;;  %v10048_v59 = vld [vmem:[#allocation71_spill] sm:$0xff] }
 0x283   : > { %v4365_v8 = vmax.f32 %v4267_v10, %v10041_v39  ;;  %v4265_v13 = vmax.f32 %v10043_v2, %v3971_v36  ;;  %v10045_v25 = vmax.f32 %v10044_v22, 0.0  ;;  %v10046_v26 = vmax.f32 %v8715_v21, 0.0 }
 0x284   : > { %v2971_v52 = vadd.f32 %v8852_v6, %v6316_v9  ;;  %v4460_v20 = vmax.f32 %v4362_v47, %v4166_v14  ;;  %v4172_v32 = vmax.f32 %v3752_v62, 0.0  ;;  %v3974_v10 = vmax.f32 %v2960_v63, 0.0  ;;  %v6319_v39 = vpop.f32.mrf.mxu0  ;;  %v10051_v14 = vld [vmem:[#allocation76_spill] sm:$0xff] }
 0x285   : > { %v4463_v12 = vmax.f32 %v4365_v8, %v4169_v55  ;;  %v4363_v42 = vmax.f32 %v4265_v13, %v10045_v25  ;;  %v4270_v17 = vmax.f32 %v10046_v26, %v3976_v3  ;;  %v3755_v61 = vadd.f32 %v8852_v6, %v6512_v40  ;;  %v6515_v8 = vpop.f32.mrf.mxu1 }
 0x286   : > { %v10047_v33 = vmax.f32 %v8748_v51, 0.0  ;;  %v3977_v60 = vmax.f32 %v2971_v52, 0.0  ;;  %v10049_v44 = vmax.f32 %v10048_v59, 0.0  ;;  %v3744_v55 = vadd.f32 %v8852_v6, %v3743_v34  ;;  %v2975_v40 = vpop.f32.mrf.mxu0 }
 0x287   : > { %v5838_v31 = vpack.c.bf16 %v4463_v12, %v4462_v24  ;;  %v4461_v36 = vmax.f32 %v4363_v42, %v4167_v53  ;;  %v2963_v47 = vadd.f32 %v8852_v6, %v2962_v41  ;;  %v3747_v62 = vadd.f32 %v8852_v6, %v3746_v27  ;;  %v10050_v24 = vld [vmem:[#allocation132_spill] sm:$0xff]  ;;  %v3759_v12 = vpop.f32.mrf.mxu1 }
 0x288   : > { %v4368_v29 = vmax.f32 %v4270_v17, %v10047_v33  ;;  %v4268_v21 = vmax.f32 %v10049_v44, %v3974_v10  ;;  %v3886_v56 = vmax.f32 %v9124_v54, 0.0  ;;  %v4271_v51 = vmax.f32 %v3879_v16, %v3977_v60  ;;  %v10053_v17 = vld [vmem:[#allocation68_spill] sm:$0xff]  ;;  %v6320_v41 = vpop.f32.mrf.mxu0 }
 0x289   : > { %5911 = vst [vmem:[%s8478_s10 + $0x150] sm:$0xff] %v5838_v31   ;;  %v5833_v2 = vpack.c.bf16 %v4461_v36, %v4460_v20  ;;  %v2984_v13 = vadd.f32 %v8852_v6, %v6319_v39  ;;  %v4082_v3 = vmax.f32 %v9128_v23, 0.0  ;;  %v9158_v34 = vadd.f32 %v8852_v6, %v10050_v24  ;;  %v6516_v27 = vpop.f32.mrf.mxu1 }
 0x28a   : > { %v10052_v53 = vmax.f32 %v10051_v14, 0.0  ;;  %v3975_v9 = vmax.f32 %v2963_v47, 0.0  ;;  %v4173_v22 = vmax.f32 %v3755_v61, 0.0  ;;  %v4369_v28 = vmax.f32 %v4271_v51, %v4075_v38  ;;  %v10055_v38 = vld [vmem:[#allocation82_spill] sm:$0xff]  ;;  %v2978_v44 = vpop.f32.mrf.mxu0  ;;  %v10058_v14 = vld [vmem:[#allocation161_spill] sm:$0xff] }
 0x28b   : > { %5910 = vst [vmem:[%s8478_s10 + $0x148] sm:$0xff] %v5833_v2   ;;  %v3980_v16 = vmax.f32 %v2984_v13, 0.0  ;;  %v2976_v25 = vadd.f32 %v8852_v6, %v2975_v40  ;;  %v4466_v42 = vmax.f32 %v4368_v29, %v4172_v32  ;;  %v4170_v26 = vmax.f32 %v3744_v55, 0.0 }
 0x28c   : > { %v4366_v63 = vmax.f32 %v4268_v21, %v10052_v53  ;;  %v10054_v52 = vmax.f32 %v10053_v17, 0.0  ;;  %v4171_v10 = vmax.f32 %v3747_v62, 0.0  ;;  %v4467_v31 = vmax.f32 %v4369_v28, %v4173_v22  ;;  %v3762_v21 = vpop.f32.mrf.mxu1  ;;  %v6323_v13 = vpop.f32.mrf.mxu0 }
 0x28d   : > { %v4274_v36 = vmax.f32 %v3882_v1, %v3980_v16  ;;  %v3768_v61 = vadd.f32 %v8852_v6, %v6515_v8  ;;  %v3978_v33 = vmax.f32 %v2976_v25, 0.0  ;;  %v10056_v60 = vmax.f32 %v10055_v38, 0.0 }
 0x28e   : > { %v4269_v20 = vmax.f32 %v10054_v52, %v3975_v9  ;;  %v4464_v4 = vmax.f32 %v4366_v63, %v4170_v26  ;;  %v3760_v32 = vadd.f32 %v8852_v6, %v3759_v12  ;;  %v2987_v29 = vadd.f32 %v8852_v6, %v6320_v41  ;;  %v6519_v24 = vpop.f32.mrf.mxu1  ;;  %v2991_v28 = vpop.f32.mrf.mxu0 }
 0x28f   : > { %v5848_v55 = vpack.c.bf16 %v4467_v31, %v4466_v42  ;;  %v4372_v47 = vmax.f32 %v4274_v36, %v4078_v15  ;;  %v10057_v37 = vmax.f32 %v8653_v48, 0.0  ;;  %v2979_v62 = vadd.f32 %v8852_v6, %v2978_v44 }
 0x290   : > { %v4367_v59 = vmax.f32 %v4269_v20, %v10056_v60  ;;  %v3981_v8 = vmax.f32 %v2987_v29, 0.0  ;;  %v3771_v2 = vadd.f32 %v8852_v6, %v6516_v27  ;;  %v3763_v51 = vadd.f32 %v8852_v6, %v3762_v21  ;;  %v3775_v16 = vpop.f32.mrf.mxu1 }
 0x291   : > { %v4272_v1 = vmax.f32 %v10057_v37, %v3978_v33  ;;  %v3395_v53 = vadd.f32 %v8852_v6, %v10058_v14  ;;  %5913 = vst [vmem:[%s8478_s10 + $0x160] sm:$0xff] %v5848_v55   ;;  %v10059_v5 = vmax.f32 %v8679_v50, 0.0  ;;  %v3979_v48 = vmax.f32 %v2979_v62, 0.0 }
 0x292   : > { %v4465_v39 = vmax.f32 %v4367_v59, %v4171_v10  ;;  %v3000_v63 = vadd.f32 %v8852_v6, %v6323_v13  ;;  %v3887_v9 = vmax.f32 %v9158_v34, 0.0  ;;  %v4176_v12 = vmax.f32 %v3768_v61, 0.0  ;;  %v6324_v10 = vpop.f32.mrf.mxu0  ;;  %v6520_v19 = vpop.f32.mrf.mxu1 }
 0x293   : > { %v4370_v15 = vmax.f32 %v4272_v1, %v10059_v5  ;;  %v4275_v22 = vmax.f32 %v3883_v46, %v3981_v8  ;;  %v4174_v25 = vmax.f32 %v3760_v32, 0.0  ;;  %v4273_v42 = vmax.f32 %v3881_v57, %v3979_v48 }
 0x294   : > { %v5843_v40 = vpack.c.bf16 %v4465_v39, %v4464_v4  ;;  %v3984_v26 = vmax.f32 %v3000_v63, 0.0  ;;  %v2992_v50 = vadd.f32 %v8852_v6, %v2991_v28  ;;  %v4177_v17 = vmax.f32 %v3771_v2, 0.0  ;;  %v3778_v54 = vpop.f32.mrf.mxu1 }
 0x295   : > { %v4373_v52 = vmax.f32 %v4275_v22, %v4079_v43  ;;  %v4175_v34 = vmax.f32 %v3763_v51, 0.0  ;;  %v3784_v20 = vadd.f32 %v8852_v6, %v6519_v24  ;;  %v4371_v46 = vmax.f32 %v4273_v42, %v4077_v11  ;;  %v2994_v43 = vpop.f32.mrf.mxu0 }
 0x296   : > { %5912 = vst [vmem:[%s8478_s10 + $0x158] sm:$0xff] %v5843_v40   ;;  %v4278_v35 = vmax.f32 %v3886_v56, %v3984_v26  ;;  %v3982_v57 = vmax.f32 %v2992_v50, 0.0  ;;  %v3003_v41 = vadd.f32 %v8852_v6, %v6324_v10  ;;  %v4470_v27 = vmax.f32 %v4372_v47, %v4176_v12  ;;  %v10060_v56 = vld [vmem:[#allocation150_spill] sm:$0xff] }
 0x297   : > { %v4468_v31 = vmax.f32 %v4370_v15, %v4174_v25  ;;  %v4471_v36 = vmax.f32 %v4373_v52, %v4177_v17  ;;  %v3787_v18 = vadd.f32 %v8852_v6, %v6520_v19  ;;  %v4469_v61 = vmax.f32 %v4371_v46, %v4175_v34 }
 0x298   : > { %v4376_v33 = vmax.f32 %v4278_v35, %v4082_v3  ;;  %v4276_v0 = vmax.f32 %v3884_v49, %v3982_v57  ;;  %v3985_v11 = vmax.f32 %v3003_v41, 0.0  ;;  %v3387_v4 = vadd.f32 %v8852_v6, %v10060_v56 }
 0x299   : > { %v4083_v38 = vmax.f32 %v3395_v53, 0.0  ;;  %v5858_v60 = vpack.c.bf16 %v4471_v36, %v4470_v27  ;;  %v2995_v59 = vadd.f32 %v8852_v6, %v2994_v43  ;;  %v5853_v32 = vpack.c.bf16 %v4469_v61, %v4468_v31 }
 0x29a   : > { %v4180_v29 = vmax.f32 %v3784_v20, 0.0  ;;  %v4374_v44 = vmax.f32 %v4276_v0, %v4080_v7  ;;  %v4279_v23 = vmax.f32 %v3887_v9, %v3985_v11  ;;  %v3885_v3 = vmax.f32 %v9084_v30, 0.0 }
 0x29b   : > { %5915 = vst [vmem:[%s8478_s10 + $0x170] sm:$0xff] %v5858_v60   ;;  %v3776_v45 = vadd.f32 %v8852_v6, %v3775_v16  ;;  %v3983_v49 = vmax.f32 %v2995_v59, 0.0  ;;  %v3779_v21 = vadd.f32 %v8852_v6, %v3778_v54  ;;  %5914 = vst [vmem:[%s8478_s10 + $0x168] sm:$0xff] %v5853_v32   ;;  %v4181_v55 = vmax.f32 %v3787_v18, 0.0 }
 0x29c   : > { %v4377_v47 = vmax.f32 %v4279_v23, %v4083_v38  ;;  %v4081_v37 = vmax.f32 %v3387_v4, 0.0  ;;  %v4474_v62 = vmax.f32 %v4376_v33, %v4180_v29 }
 0x29d   : > { %v4277_v1 = vmax.f32 %v3885_v3, %v3983_v49  ;;  %v4178_v58 = vmax.f32 %v3776_v45, 0.0  ;;  %v4179_v7 = vmax.f32 %v3779_v21, 0.0 }
 0x29e   : > { %v4475_v39 = vmax.f32 %v4377_v47, %v4181_v55 }
 0x29f   : > { %v4375_v8 = vmax.f32 %v4277_v1, %v4081_v37  ;;  %v4472_v30 = vmax.f32 %v4374_v44, %v4178_v58 }
 0x2a0   : > { %v5868_v2 = vpack.c.bf16 %v4475_v39, %v4474_v62 }
 0x2a1   : > { %v4473_v51 = vmax.f32 %v4375_v8, %v4179_v7 }
 0x2a2   : > { %5917 = vst [vmem:[%s8478_s10 + $0x180] sm:$0xff] %v5868_v2  }
 0x2a3   : > { %v5863_v13 = vpack.c.bf16 %v4473_v51, %v4472_v30 }
 0x2a5   : > { %5916 = vst [vmem:[%s8478_s10 + $0x178] sm:$0xff] %v5863_v13  }
 0x2a6 PF: > { %s13_s12 = sadd.s32 1, %s6749_s12  }
 0x2a7   : > { %p10_p5 = scmp.ge.s32.totalorder %s13_s12, 4  }
 0x2a9   :  { %12 = sbr.rel (!%p10_p5) target bundleno = 1 (0x1), region = 62 }

// kernel: agent_net_forward.4
= control target key start
LH: loop header
LB: loop body
LE: loop exit
PB: predicated region body
PF: predicated region fallthrough
CT: control target
= control target key end

     0   :  { %s5217_s12 = smov 0   ;;  %s6399_s0 = inlined_call_operand.vmem [shape: bf16[4608,150], index: 0, kind: input, shape index: {}]   ;;  %s6400_s1 = inlined_call_operand.vmem [shape: bf16[150,128], index: 1, kind: input, shape index: {}]   ;;  %s6401_s2 = inlined_call_operand.vmem [shape: f32[1,128], index: 2, kind: input, shape index: {}]   ;;  %s6402_s3 = inlined_call_operand.vmem [shape: bf16[288,128], index: 3, kind: output, shape index: {}]  }
   0x1 LB: > { %s4171_s13 = sadd.s32 4294967295, %s5194_s12   ;;  %p4175_p0 = scmp.ge.s32.totalorder %s5194_s12, 1  ;;  %s5194_s12 = sphi %s5217_s12, %s13_s12  }
   0x2   : > { %p139_p1 = scmp.lt.s32.totalorder %s5194_s12, 3 }
   0x4   : > { %p140_p2 = pnand %p4175_p0, %p139_p1 }
   0x5   : > { %s164_s18 = smul.u32 (!%p140_p2), 288, %s4171_s13 }
   0x6   : > { %143 = sbr.rel (%p140_p2) target bundleno = 828 (0x33c), region = 32 }
   0x7   : > { %p165_p3 = scmp.lt.s32.totalorder (!%p140_p2), %s164_s18, 575  ;;  %s171_s22 = smul.u32 (!%p140_p2), 18, %s4171_s13 }
   0x9   : > { %p172_p4 = scmp.lt.s32.totalorder (!%p140_p2), %s171_s22, 35 }
   0xb   : > { %v4743_v0 = vld [vmem:[%s6400_s1 + $0x38] sm:$0xff]   ;;  %v5196_v1 = vmov 0   ;;  %v4744_v2 = vld [vmem:[%s6400_s1 + $0x30] sm:$0xff]   ;;  %v4745_v3 = vld [vmem:[%s6400_s1 + $0x28] sm:$0xff]   ;;  %s6404_s18 = smov (!%p165_p3, %s164_s18), 575  ;;  %vm1845_vm0 = vcmask 179200  }
   0xc   : > { %2282 = vmatprep.subr.bf16.mxu0 %v5196_v1  ;;  %4714 = vmatprep.subr.bf16.mxu1 %v5196_v1  ;;  %s4642_s21 = sshll.u32 %s6404_s18, 3  ;;  %v4746_v4 = vld [vmem:[%s6400_s1 + $0x20] sm:$0xff]   ;;  %v4747_v6 = vld [vmem:[%s6400_s1 + $0x18] sm:$0xff]   ;;  %v4748_v8 = vld [vmem:[%s6400_s1 + $0x10] sm:$0xff]   ;;  %vm2278_vm1 = vcmask 1042432   ;;  %s6406_s22 = smov (!%p172_p4, %s171_s22), 35 }
   0xd   : > { %2283 = vmatpush1.bf16.msra.mxu0 %v4743_v0  ;;  %4724 = vmatpush1.bf16.msra.mxu1 %v4743_v0  ;;  %s5242_s26 = scalar_lea.vmem %s6399_s0, %s4642_s21  ;;  %v4749_v9 = vld [vmem:[%s6400_s1 + $0x8] sm:$0xff]   ;;  %v4750_v10 = vld [vmem:[%s6400_s1] sm:$0xff]   ;;  %s4178_s13 = sshll.u32 %s6406_s22, 2 }
   0xe   : > { %2284 = vmatprep.subr.bf16.mxu0 %v5196_v1  ;;  %4715 = vmatprep.subr.bf16.mxu1 %v5196_v1  ;;  %v4755_v5 = vld [vmem:[%s5242_s26 + $0x4] ss:$8 sps:$4 sm:$0xff]   ;;  %v4751_v11 = vld [vmem:[%s6400_s1 + $0x48] ss:$0 sps:$4 sm:$0x77]   ;;  %s6339_s25 = scalar_lea.vmem %s6402_s3, %s4178_s13 }
   0xf   : > { %v4761_v7 = vld [vmem:[%s5242_s26 + $0x484] ss:$8 sps:$4 sm:$0xff]   ;;  %4478 = vmatprep.mubr.msk.bf16.mxu0 %vm1845_vm0, %v4755_v5  ;;  %v2280_v12 = vsel %vm2278_vm1, %v4751_v11, 0  ;;  %v4753_v14 = vld [vmem:[%s5242_s26] ss:$8 sps:$4 sm:$0xff]  }
  0x10   : > { %4550 = vmatprep.mubr.msk.bf16.mxu1 %vm1845_vm0, %v4761_v7  ;;  %v4752_v13 = vld [vmem:[%s6400_s1 + $0x40] sm:$0xff]   ;;  %v4756_v16 = vld [vmem:[%s5242_s26 + $0x14] ss:$8 sps:$4 sm:$0xff]   ;;  %v4758_v18 = vld [vmem:[%s5242_s26 + $0x10] ss:$8 sps:$4 sm:$0xff]  }
  0x11   : > { %2285 = vmatpush1.bf16.msra.mxu0 %v4744_v2  ;;  %4725 = vmatpush1.bf16.msra.mxu1 %v4744_v2  ;;  %v4759_v15 = vld [vmem:[%s5242_s26 + $0x480] ss:$8 sps:$4 sm:$0xff]   ;;  %v4765_v17 = vld [vmem:[%s5242_s26 + $0x494] ss:$8 sps:$4 sm:$0xff]   ;;  %v4767_v19 = vld [vmem:[%s5242_s26 + $0x490] ss:$8 sps:$4 sm:$0xff]  }
  0x12   : > { %2286 = vmatprep.subr.bf16.mxu0 %v5196_v1  ;;  %4716 = vmatprep.subr.bf16.mxu1 %v5196_v1  ;;  %v4762_v20 = vld [vmem:[%s5242_s26 + $0x24] ss:$8 sps:$4 sm:$0xff]   ;;  %v4764_v22 = vld [vmem:[%s5242_s26 + $0x20] ss:$8 sps:$4 sm:$0xff]   ;;  %v4768_v24 = vld [vmem:[%s5242_s26 + $0x34] ss:$8 sps:$4 sm:$0xff]  }
  0x13   : > { %v4771_v21 = vld [vmem:[%s5242_s26 + $0x4a4] ss:$8 sps:$4 sm:$0xff]   ;;  %v4773_v23 = vld [vmem:[%s5242_s26 + $0x4a0] ss:$8 sps:$4 sm:$0xff]   ;;  %v4777_v25 = vld [vmem:[%s5242_s26 + $0x4b4] ss:$8 sps:$4 sm:$0xff]  }
  0x14   : > { %v4770_v26 = vld [vmem:[%s5242_s26 + $0x30] ss:$8 sps:$4 sm:$0xff]   ;;  %v4774_v28 = vld [vmem:[%s5242_s26 + $0x44] ss:$8 sps:$4 sm:$0xff]   ;;  %v4776_v30 = vld [vmem:[%s5242_s26 + $0x40] ss:$8 sps:$4 sm:$0xff]  }
  0x15   : > { %2287 = vmatpush1.bf16.msra.mxu0 %v4745_v3  ;;  %4726 = vmatpush1.bf16.msra.mxu1 %v4745_v3  ;;  %v4779_v27 = vld [vmem:[%s5242_s26 + $0x4b0] ss:$8 sps:$4 sm:$0xff]   ;;  %v4783_v29 = vld [vmem:[%s5242_s26 + $0x4c4] ss:$8 sps:$4 sm:$0xff]   ;;  %v4785_v31 = vld [vmem:[%s5242_s26 + $0x4c0] ss:$8 sps:$4 sm:$0xff]  }
  0x16   : > { %2288 = vmatprep.subr.bf16.mxu0 %v5196_v1  ;;  %4717 = vmatprep.subr.bf16.mxu1 %v5196_v1  ;;  %v4780_v32 = vld [vmem:[%s5242_s26 + $0x54] ss:$8 sps:$4 sm:$0xff]   ;;  %v4782_v34 = vld [vmem:[%s5242_s26 + $0x50] ss:$8 sps:$4 sm:$0xff]   ;;  %v4786_v36 = vld [vmem:[%s5242_s26 + $0x64] ss:$8 sps:$4 sm:$0xff]  }
  0x17   : > { %v4789_v33 = vld [vmem:[%s5242_s26 + $0x4d4] ss:$8 sps:$4 sm:$0xff]   ;;  %v4791_v35 = vld [vmem:[%s5242_s26 + $0x4d0] ss:$8 sps:$4 sm:$0xff]   ;;  %v4795_v37 = vld [vmem:[%s5242_s26 + $0x4e4] ss:$8 sps:$4 sm:$0xff]  }
  0x18   : > { %v4788_v38 = vld [vmem:[%s5242_s26 + $0x60] ss:$8 sps:$4 sm:$0xff]   ;;  %v4792_v40 = vld [vmem:[%s5242_s26 + $0x74] ss:$8 sps:$4 sm:$0xff]   ;;  %v4794_v42 = vld [vmem:[%s5242_s26 + $0x70] ss:$8 sps:$4 sm:$0xff]  }
  0x19   : > { %2289 = vmatpush1.bf16.msra.mxu0 %v4746_v4  ;;  %4727 = vmatpush1.bf16.msra.mxu1 %v4746_v4  ;;  %v4797_v39 = vld [vmem:[%s5242_s26 + $0x4e0] ss:$8 sps:$4 sm:$0xff]   ;;  %v4801_v41 = vld [vmem:[%s5242_s26 + $0x4f4] ss:$8 sps:$4 sm:$0xff]   ;;  %v4803_v43 = vld [vmem:[%s5242_s26 + $0x4f0] ss:$8 sps:$4 sm:$0xff]  }
  0x1a   : > { %2290 = vmatprep.subr.bf16.mxu0 %v5196_v1  ;;  %4718 = vmatprep.subr.bf16.mxu1 %v5196_v1  ;;  %v4798_v44 = vld [vmem:[%s5242_s26 + $0x84] ss:$8 sps:$4 sm:$0xff]   ;;  %v4800_v46 = vld [vmem:[%s5242_s26 + $0x80] ss:$8 sps:$4 sm:$0xff]   ;;  %v4804_v48 = vld [vmem:[%s5242_s26 + $0x94] ss:$8 sps:$4 sm:$0xff]  }
  0x1b   : > { %v4807_v45 = vld [vmem:[%s5242_s26 + $0x504] ss:$8 sps:$4 sm:$0xff]   ;;  %v4809_v47 = vld [vmem:[%s5242_s26 + $0x500] ss:$8 sps:$4 sm:$0xff]   ;;  %v4813_v49 = vld [vmem:[%s5242_s26 + $0x514] ss:$8 sps:$4 sm:$0xff]  }
  0x1c   : > { %v4806_v50 = vld [vmem:[%s5242_s26 + $0x90] ss:$8 sps:$4 sm:$0xff]   ;;  %v4810_v52 = vld [vmem:[%s5242_s26 + $0xa4] ss:$8 sps:$4 sm:$0xff]   ;;  %v4812_v54 = vld [vmem:[%s5242_s26 + $0xa0] ss:$8 sps:$4 sm:$0xff]  }
  0x1d   : > { %2291 = vmatpush1.bf16.msra.mxu0 %v4747_v6  ;;  %4728 = vmatpush1.bf16.msra.mxu1 %v4747_v6  ;;  %v4815_v51 = vld [vmem:[%s5242_s26 + $0x510] ss:$8 sps:$4 sm:$0xff]   ;;  %v4819_v53 = vld [vmem:[%s5242_s26 + $0x524] ss:$8 sps:$4 sm:$0xff]   ;;  %v4821_v55 = vld [vmem:[%s5242_s26 + $0x520] ss:$8 sps:$4 sm:$0xff]  }
  0x1e   : > { %2292 = vmatprep.subr.bf16.mxu0 %v5196_v1  ;;  %4719 = vmatprep.subr.bf16.mxu1 %v5196_v1  ;;  %v4816_v56 = vld [vmem:[%s5242_s26 + $0xb4] ss:$8 sps:$4 sm:$0xff]   ;;  %v4818_v58 = vld [vmem:[%s5242_s26 + $0xb0] ss:$8 sps:$4 sm:$0xff]   ;;  %v4822_v60 = vld [vmem:[%s5242_s26 + $0xc4] ss:$8 sps:$4 sm:$0xff]  }
  0x1f   : > { %v4825_v57 = vld [vmem:[%s5242_s26 + $0x534] ss:$8 sps:$4 sm:$0xff]   ;;  %v4827_v59 = vld [vmem:[%s5242_s26 + $0x530] ss:$8 sps:$4 sm:$0xff]   ;;  %v4831_v61 = vld [vmem:[%s5242_s26 + $0x544] ss:$8 sps:$4 sm:$0xff]  }
  0x20   : > { %v4824_v62 = vld [vmem:[%s5242_s26 + $0xc0] ss:$8 sps:$4 sm:$0xff]   ;;  %v4828_v0 = vld [vmem:[%s5242_s26 + $0xd4] ss:$8 sps:$4 sm:$0xff]   ;;  %v4830_v2 = vld [vmem:[%s5242_s26 + $0xd0] ss:$8 sps:$4 sm:$0xff]  }
  0x21   : > { %2293 = vmatpush1.bf16.msra.mxu0 %v4748_v8  ;;  %4729 = vmatpush1.bf16.msra.mxu1 %v4748_v8  ;;  %v4833_v63 = vld [vmem:[%s5242_s26 + $0x540] ss:$8 sps:$4 sm:$0xff]   ;;  %v4839_v3 = vld [vmem:[%s5242_s26 + $0x550] ss:$8 sps:$4 sm:$0xff]   ;;  %v4834_v4 = vld [vmem:[%s5242_s26 + $0xe4] ss:$8 sps:$4 sm:$0xff]  }
  0x22   : > { %2294 = vmatprep.subr.bf16.mxu0 %v5196_v1  ;;  %4720 = vmatprep.subr.bf16.mxu1 %v5196_v1  ;;  %v4843_v5 = vld [vmem:[%s5242_s26 + $0x564] ss:$8 sps:$4 sm:$0xff]   ;;  %v4836_v6 = vld [vmem:[%s5242_s26 + $0xe0] ss:$8 sps:$4 sm:$0xff]   ;;  %v4840_v8 = vld [vmem:[%s5242_s26 + $0xf4] ss:$8 sps:$4 sm:$0xff]  }
  0x23   : > { %v4845_v7 = vld [vmem:[%s5242_s26 + $0x560] ss:$8 sps:$4 sm:$0xff]   ;;  %v4851_v11 = vld [vmem:[%s5242_s26 + $0x570] ss:$8 sps:$4 sm:$0xff]  }
  0x25   : > { %2295 = vmatpush1.bf16.msra.mxu0 %v4749_v9  ;;  %4730 = vmatpush1.bf16.msra.mxu1 %v4749_v9  ;;  %v4849_v9 = vld [vmem:[%s5242_s26 + $0x574] ss:$8 sps:$4 sm:$0xff]  }
  0x26   : > { %2296 = vmatprep.subr.bf16.mxu0 %v5196_v1  ;;  %4721 = vmatprep.subr.bf16.mxu1 %v5196_v1 }
  0x29   : > { %2297 = vmatpush1.bf16.msra.mxu0 %v4750_v10  ;;  %4731 = vmatpush1.bf16.msra.mxu1 %v4750_v10  ;;  %v4842_v10 = vld [vmem:[%s5242_s26 + $0xf0] ss:$8 sps:$4 sm:$0xff]  }
  0x2a   : > { %2310 = vmatprep.subr.bf16.mxu0 %v5196_v1  ;;  %4722 = vmatprep.subr.bf16.mxu1 %v5196_v1 }
  0x2d   : > { %2311 = vmatpush2.bf16.msra.mxu0 %v2280_v12  ;;  %4732 = vmatpush2.bf16.msra.mxu1 %v2280_v12  ;;  %v4846_v12 = vld [vmem:[%s5242_s26 + $0x104] ss:$8 sps:$4 sm:$0xff]  }
  0x2e   : > { %2312 = vmatprep.subr.bf16.mxu0 %v5196_v1  ;;  %4723 = vmatprep.subr.bf16.mxu1 %v5196_v1  ;;  %v4837_v1 = vld [vmem:[%s5242_s26 + $0x554] ss:$8 sps:$4 sm:$0xff]  }
  0x31   : > { %2313 = vmatpush2.bf16.msra.mxu0 %v4752_v13  ;;  %4733 = vmatpush2.bf16.msra.mxu1 %v4752_v13  ;;  %v4855_v13 = vld [vmem:[%s5242_s26 + $0x584] ss:$8 sps:$4 sm:$0xff]  }
  0x34   : > { %2315 = vmatmul.mubr.bf16.vlgmr.msra.gmra.mxu0 %v4753_v14  ;;  %2891 = vmatmul.mubr.bf16.vlgmr.msra.gmra.mxu1 %v4759_v15  ;;  %v4848_v14 = vld [vmem:[%s5242_s26 + $0x100] ss:$8 sps:$4 sm:$0xff]  }
  0x35   : > { %4479 = vmatprep.mubr.msk.bf16.mxu0 %vm1845_vm0, %v4756_v16  ;;  %4551 = vmatprep.mubr.msk.bf16.mxu1 %vm1845_vm0, %v4765_v17  ;;  %v4857_v15 = vld [vmem:[%s5242_s26 + $0x580] ss:$8 sps:$4 sm:$0xff]   ;;  %v4852_v16 = vld [vmem:[%s5242_s26 + $0x114] ss:$8 sps:$4 sm:$0xff]  }
  0x36   : > { %v4861_v17 = vld [vmem:[%s5242_s26 + $0x594] ss:$8 sps:$4 sm:$0xff]  }
  0x3c   : > { %2323 = vmatmul.mubr.bf16.gmra.mxu0 %v4758_v18  ;;  %2899 = vmatmul.mubr.bf16.gmra.mxu1 %v4767_v19  ;;  %v4854_v18 = vld [vmem:[%s5242_s26 + $0x110] ss:$8 sps:$4 sm:$0xff]  }
  0x3d   : > { %4480 = vmatprep.mubr.msk.bf16.mxu0 %vm1845_vm0, %v4762_v20  ;;  %4552 = vmatprep.mubr.msk.bf16.mxu1 %vm1845_vm0, %v4771_v21  ;;  %v4863_v19 = vld [vmem:[%s5242_s26 + $0x590] ss:$8 sps:$4 sm:$0xff]   ;;  %v4858_v20 = vld [vmem:[%s5242_s26 + $0x124] ss:$8 sps:$4 sm:$0xff]  }
  0x3e   : > { %v4867_v21 = vld [vmem:[%s5242_s26 + $0x5a4] ss:$8 sps:$4 sm:$0xff]  }
  0x44   : > { %2331 = vmatmul.mubr.bf16.gmra.mxu0 %v4764_v22  ;;  %2907 = vmatmul.mubr.bf16.gmra.mxu1 %v4773_v23  ;;  %v4860_v22 = vld [vmem:[%s5242_s26 + $0x120] ss:$8 sps:$4 sm:$0xff]  }
  0x45   : > { %4481 = vmatprep.mubr.msk.bf16.mxu0 %vm1845_vm0, %v4768_v24  ;;  %4553 = vmatprep.mubr.msk.bf16.mxu1 %vm1845_vm0, %v4777_v25  ;;  %v4869_v23 = vld [vmem:[%s5242_s26 + $0x5a0] ss:$8 sps:$4 sm:$0xff]   ;;  %v4864_v24 = vld [vmem:[%s5242_s26 + $0x134] ss:$8 sps:$4 sm:$0xff]  }
  0x46   : > { %v4873_v25 = vld [vmem:[%s5242_s26 + $0x5b4] ss:$8 sps:$4 sm:$0xff]  }
  0x4c   : > { %2339 = vmatmul.mubr.bf16.gmra.mxu0 %v4770_v26  ;;  %2915 = vmatmul.mubr.bf16.gmra.mxu1 %v4779_v27  ;;  %v4866_v26 = vld [vmem:[%s5242_s26 + $0x130] ss:$8 sps:$4 sm:$0xff]  }
  0x4d   : > { %4482 = vmatprep.mubr.msk.bf16.mxu0 %vm1845_vm0, %v4774_v28  ;;  %4554 = vmatprep.mubr.msk.bf16.mxu1 %vm1845_vm0, %v4783_v29  ;;  %v4875_v27 = vld [vmem:[%s5242_s26 + $0x5b0] ss:$8 sps:$4 sm:$0xff]   ;;  %v4870_v28 = vld [vmem:[%s5242_s26 + $0x144] ss:$8 sps:$4 sm:$0xff]  }
  0x4e   : > { %v4879_v29 = vld [vmem:[%s5242_s26 + $0x5c4] ss:$8 sps:$4 sm:$0xff]  }
  0x54   : > { %2347 = vmatmul.mubr.bf16.gmra.mxu0 %v4776_v30  ;;  %2923 = vmatmul.mubr.bf16.gmra.mxu1 %v4785_v31  ;;  %v4872_v30 = vld [vmem:[%s5242_s26 + $0x140] ss:$8 sps:$4 sm:$0xff]  }
  0x55   : > { %4483 = vmatprep.mubr.msk.bf16.mxu0 %vm1845_vm0, %v4780_v32  ;;  %4555 = vmatprep.mubr.msk.bf16.mxu1 %vm1845_vm0, %v4789_v33  ;;  %v4881_v31 = vld [vmem:[%s5242_s26 + $0x5c0] ss:$8 sps:$4 sm:$0xff]   ;;  %v4876_v32 = vld [vmem:[%s5242_s26 + $0x154] ss:$8 sps:$4 sm:$0xff]  }
  0x56   : > { %v4885_v33 = vld [vmem:[%s5242_s26 + $0x5d4] ss:$8 sps:$4 sm:$0xff]  }
  0x5c   : > { %2355 = vmatmul.mubr.bf16.gmra.mxu0 %v4782_v34  ;;  %2931 = vmatmul.mubr.bf16.gmra.mxu1 %v4791_v35  ;;  %v4878_v34 = vld [vmem:[%s5242_s26 + $0x150] ss:$8 sps:$4 sm:$0xff]  }
  0x5d   : > { %4484 = vmatprep.mubr.msk.bf16.mxu0 %vm1845_vm0, %v4786_v36  ;;  %4556 = vmatprep.mubr.msk.bf16.mxu1 %vm1845_vm0, %v4795_v37  ;;  %v4887_v35 = vld [vmem:[%s5242_s26 + $0x5d0] ss:$8 sps:$4 sm:$0xff]   ;;  %v4882_v36 = vld [vmem:[%s5242_s26 + $0x164] ss:$8 sps:$4 sm:$0xff]  }
  0x5e   : > { %v4891_v37 = vld [vmem:[%s5242_s26 + $0x5e4] ss:$8 sps:$4 sm:$0xff]  }
  0x64   : > { %2363 = vmatmul.mubr.bf16.gmra.mxu0 %v4788_v38  ;;  %2939 = vmatmul.mubr.bf16.gmra.mxu1 %v4797_v39  ;;  %v4884_v38 = vld [vmem:[%s5242_s26 + $0x160] ss:$8 sps:$4 sm:$0xff]  }
  0x65   : > { %4485 = vmatprep.mubr.msk.bf16.mxu0 %vm1845_vm0, %v4792_v40  ;;  %4557 = vmatprep.mubr.msk.bf16.mxu1 %vm1845_vm0, %v4801_v41  ;;  %v4893_v39 = vld [vmem:[%s5242_s26 + $0x5e0] ss:$8 sps:$4 sm:$0xff]   ;;  %v4888_v40 = vld [vmem:[%s5242_s26 + $0x174] ss:$8 sps:$4 sm:$0xff]  }
  0x66   : > { %v4897_v41 = vld [vmem:[%s5242_s26 + $0x5f4] ss:$8 sps:$4 sm:$0xff]  }
  0x6c   : > { %2371 = vmatmul.mubr.bf16.gmra.mxu0 %v4794_v42  ;;  %2947 = vmatmul.mubr.bf16.gmra.mxu1 %v4803_v43  ;;  %v4890_v42 = vld [vmem:[%s5242_s26 + $0x170] ss:$8 sps:$4 sm:$0xff]  }
  0x6d   : > { %4486 = vmatprep.mubr.msk.bf16.mxu0 %vm1845_vm0, %v4798_v44  ;;  %4558 = vmatprep.mubr.msk.bf16.mxu1 %vm1845_vm0, %v4807_v45  ;;  %v4899_v43 = vld [vmem:[%s5242_s26 + $0x5f0] ss:$8 sps:$4 sm:$0xff]   ;;  %v4894_v44 = vld [vmem:[%s5242_s26 + $0x184] ss:$8 sps:$4 sm:$0xff]  }
  0x6e   : > { %v4903_v45 = vld [vmem:[%s5242_s26 + $0x604] ss:$8 sps:$4 sm:$0xff]  }
  0x74   : > { %2379 = vmatmul.mubr.bf16.gmra.mxu0 %v4800_v46  ;;  %2955 = vmatmul.mubr.bf16.gmra.mxu1 %v4809_v47  ;;  %v4896_v46 = vld [vmem:[%s5242_s26 + $0x180] ss:$8 sps:$4 sm:$0xff]  }
  0x75   : > { %4487 = vmatprep.mubr.msk.bf16.mxu0 %vm1845_vm0, %v4804_v48  ;;  %4559 = vmatprep.mubr.msk.bf16.mxu1 %vm1845_vm0, %v4813_v49  ;;  %v4905_v47 = vld [vmem:[%s5242_s26 + $0x600] ss:$8 sps:$4 sm:$0xff]   ;;  %v4900_v48 = vld [vmem:[%s5242_s26 + $0x194] ss:$8 sps:$4 sm:$0xff]  }
  0x76   : > { %v4909_v49 = vld [vmem:[%s5242_s26 + $0x614] ss:$8 sps:$4 sm:$0xff]  }
  0x7c   : > { %2387 = vmatmul.mubr.bf16.gmra.mxu0 %v4806_v50  ;;  %2963 = vmatmul.mubr.bf16.gmra.mxu1 %v4815_v51  ;;  %v5417_v50 = vld [vmem:[%s6401_s2] ss:$0 sm:$0xff] }
  0x7d   : > { %4488 = vmatprep.mubr.msk.bf16.mxu0 %vm1845_vm0, %v4810_v52  ;;  %4560 = vmatprep.mubr.msk.bf16.mxu1 %vm1845_vm0, %v4819_v53 }
  0x84   : > { %2395 = vmatmul.mubr.bf16.gmra.mxu0 %v4812_v54  ;;  %2971 = vmatmul.mubr.bf16.gmra.mxu1 %v4821_v55 }
  0x85   : > { %4489 = vmatprep.mubr.msk.bf16.mxu0 %vm1845_vm0, %v4816_v56  ;;  %4561 = vmatprep.mubr.msk.bf16.mxu1 %vm1845_vm0, %v4825_v57 }
  0x8c   : > { %2403 = vmatmul.mubr.bf16.gmra.mxu0 %v4818_v58  ;;  %2979 = vmatmul.mubr.bf16.gmra.mxu1 %v4827_v59 }
  0x8d   : > { %4490 = vmatprep.mubr.msk.bf16.mxu0 %vm1845_vm0, %v4822_v60  ;;  %4562 = vmatprep.mubr.msk.bf16.mxu1 %vm1845_vm0, %v4831_v61  ;;  %v4902_v60 = vld [vmem:[%s5242_s26 + $0x190] ss:$8 sps:$4 sm:$0xff]  }
  0x94   : > { %2411 = vmatmul.mubr.bf16.gmra.mxu0 %v4824_v62  ;;  %2987 = vmatmul.mubr.bf16.gmra.mxu1 %v4833_v63  ;;  %v4911_v62 = vld [vmem:[%s5242_s26 + $0x610] ss:$8 sps:$4 sm:$0xff]  }
  0x95   : > { %4491 = vmatprep.mubr.msk.bf16.mxu0 %vm1845_vm0, %v4828_v0  ;;  %4563 = vmatprep.mubr.msk.bf16.mxu1 %vm1845_vm0, %v4837_v1 }
  0x9c   : > { %2419 = vmatmul.mubr.bf16.gmra.mxu0 %v4830_v2  ;;  %2995 = vmatmul.mubr.bf16.gmra.mxu1 %v4839_v3  ;;  %v4906_v2 = vld [vmem:[%s5242_s26 + $0x1a4] ss:$8 sps:$4 sm:$0xff]  }
  0x9d   : > { %4492 = vmatprep.mubr.msk.bf16.mxu0 %vm1845_vm0, %v4834_v4  ;;  %4564 = vmatprep.mubr.msk.bf16.mxu1 %vm1845_vm0, %v4843_v5  ;;  %v4915_v3 = vld [vmem:[%s5242_s26 + $0x624] ss:$8 sps:$4 sm:$0xff]  }
  0xa4   : > { %2427 = vmatmul.mubr.bf16.gmra.mxu0 %v4836_v6  ;;  %3003 = vmatmul.mubr.bf16.gmra.mxu1 %v4845_v7 }
  0xa5   : > { %4493 = vmatprep.mubr.msk.bf16.mxu0 %vm1845_vm0, %v4840_v8  ;;  %4565 = vmatprep.mubr.msk.bf16.mxu1 %vm1845_vm0, %v4849_v9 }
  0xac   : > { %2435 = vmatmul.mubr.bf16.gmra.mxu0 %v4842_v10  ;;  %3011 = vmatmul.mubr.bf16.gmra.mxu1 %v4851_v11 }
  0xad   : > { %4494 = vmatprep.mubr.msk.bf16.mxu0 %vm1845_vm0, %v4846_v12  ;;  %4566 = vmatprep.mubr.msk.bf16.mxu1 %vm1845_vm0, %v4855_v13 }
  0xb4   : > { %2443 = vmatmul.mubr.bf16.gmra.mxu0 %v4848_v14  ;;  %3019 = vmatmul.mubr.bf16.gmra.mxu1 %v4857_v15 }
  0xb5   : > { %4495 = vmatprep.mubr.msk.bf16.mxu0 %vm1845_vm0, %v4852_v16  ;;  %4567 = vmatprep.mubr.msk.bf16.mxu1 %vm1845_vm0, %v4861_v17 }
  0xbc   : > { %2451 = vmatmul.mubr.bf16.gmra.mxu0 %v4854_v18  ;;  %3027 = vmatmul.mubr.bf16.gmra.mxu1 %v4863_v19  ;;  %v4908_v18 = vld [vmem:[%s5242_s26 + $0x1a0] ss:$8 sps:$4 sm:$0xff]  }
  0xbd   : > { %4496 = vmatprep.mubr.msk.bf16.mxu0 %vm1845_vm0, %v4858_v20  ;;  %4568 = vmatprep.mubr.msk.bf16.mxu1 %vm1845_vm0, %v4867_v21  ;;  %v4917_v20 = vld [vmem:[%s5242_s26 + $0x620] ss:$8 sps:$4 sm:$0xff]  }
  0xc4   : > { %2459 = vmatmul.mubr.bf16.gmra.mxu0 %v4860_v22  ;;  %3035 = vmatmul.mubr.bf16.gmra.mxu1 %v4869_v23 }
  0xc5   : > { %4497 = vmatprep.mubr.msk.bf16.mxu0 %vm1845_vm0, %v4864_v24  ;;  %4569 = vmatprep.mubr.msk.bf16.mxu1 %vm1845_vm0, %v4873_v25  ;;  %v4912_v24 = vld [vmem:[%s5242_s26 + $0x1b4] ss:$8 sps:$4 sm:$0xff]  }
  0xc6   : > { %v4921_v25 = vld [vmem:[%s5242_s26 + $0x634] ss:$8 sps:$4 sm:$0xff]  }
  0xcc   : > { %2467 = vmatmul.mubr.bf16.gmra.mxu0 %v4866_v26  ;;  %3043 = vmatmul.mubr.bf16.gmra.mxu1 %v4875_v27 }
  0xcd   : > { %4498 = vmatprep.mubr.msk.bf16.mxu0 %vm1845_vm0, %v4870_v28  ;;  %4570 = vmatprep.mubr.msk.bf16.mxu1 %vm1845_vm0, %v4879_v29 }
  0xd4   : > { %2475 = vmatmul.mubr.bf16.gmra.mxu0 %v4872_v30  ;;  %3051 = vmatmul.mubr.bf16.gmra.mxu1 %v4881_v31 }
  0xd5   : > { %4499 = vmatprep.mubr.msk.bf16.mxu0 %vm1845_vm0, %v4876_v32  ;;  %4571 = vmatprep.mubr.msk.bf16.mxu1 %vm1845_vm0, %v4885_v33 }
  0xdc   : > { %2483 = vmatmul.mubr.bf16.gmra.mxu0 %v4878_v34  ;;  %3059 = vmatmul.mubr.bf16.gmra.mxu1 %v4887_v35 }
  0xdd   : > { %4500 = vmatprep.mubr.msk.bf16.mxu0 %vm1845_vm0, %v4882_v36  ;;  %4572 = vmatprep.mubr.msk.bf16.mxu1 %vm1845_vm0, %v4891_v37 }
  0xe4   : > { %2491 = vmatmul.mubr.bf16.gmra.mxu0 %v4884_v38  ;;  %3067 = vmatmul.mubr.bf16.gmra.mxu1 %v4893_v39 }
  0xe5   : > { %4501 = vmatprep.mubr.msk.bf16.mxu0 %vm1845_vm0, %v4888_v40  ;;  %4573 = vmatprep.mubr.msk.bf16.mxu1 %vm1845_vm0, %v4897_v41  ;;  %v4914_v40 = vld [vmem:[%s5242_s26 + $0x1b0] ss:$8 sps:$4 sm:$0xff]  }
  0xec   : > { %2499 = vmatmul.mubr.bf16.gmra.mxu0 %v4890_v42  ;;  %3075 = vmatmul.mubr.bf16.gmra.mxu1 %v4899_v43  ;;  %v4923_v42 = vld [vmem:[%s5242_s26 + $0x630] ss:$8 sps:$4 sm:$0xff]  }
  0xed   : > { %4502 = vmatprep.mubr.msk.bf16.mxu0 %vm1845_vm0, %v4894_v44  ;;  %4574 = vmatprep.mubr.msk.bf16.mxu1 %vm1845_vm0, %v4903_v45 }
  0xf4   : > { %v2316_v51 = vpop.f32.mrf.mxu0  ;;  %2507 = vmatmul.mubr.bf16.gmra.mxu0 %v4896_v46  ;;  %v2892_v52 = vpop.f32.mrf.mxu1  ;;  %3083 = vmatmul.mubr.bf16.gmra.mxu1 %v4905_v47  ;;  %v4918_v46 = vld [vmem:[%s5242_s26 + $0x1c4] ss:$8 sps:$4 sm:$0xff]  }
  0xf5   : > { %v2317_v53 = vadd.f32 %v5417_v50, %v2316_v51  ;;  %4503 = vmatprep.mubr.msk.bf16.mxu0 %vm1845_vm0, %v4900_v48  ;;  %v2893_v54 = vadd.f32 %v5417_v50, %v2892_v52  ;;  %4575 = vmatprep.mubr.msk.bf16.mxu1 %vm1845_vm0, %v4909_v49  ;;  %v4927_v47 = vld [vmem:[%s5242_s26 + $0x644] ss:$8 sps:$4 sm:$0xff]  }
  0xf6   : > { %v2318_v55 = vpop.f32.mrf.mxu0  ;;  %v2894_v56 = vpop.f32.mrf.mxu1 }
  0xf7   : > { %v3467_v57 = vmax.f32 %v2317_v53, 0.0  ;;  %v3611_v58 = vmax.f32 %v2893_v54, 0.0 }
  0xf8   : > { %v2319_v59 = vpop.f32.mrf.mxu0  ;;  %v2895_v61 = vpop.f32.mrf.mxu1 }
  0xf9   : > { %v2320_v63 = vadd.f32 %v5417_v50, %v2319_v59  ;;  %v5426_v0 = vmax.f32 %v3467_v57, %v3611_v58  ;;  %v2896_v1 = vadd.f32 %v5417_v50, %v2895_v61 }
  0xfa   : > { %v2321_v4 = vpop.f32.mrf.mxu0  ;;  %v2897_v5 = vpop.f32.mrf.mxu1 }
  0xfb   : > { %v3468_v6 = vmax.f32 %v2320_v63, 0.0  ;;  %v3612_v7 = vmax.f32 %v2896_v1, 0.0  ;;  %v4920_v63 = vld [vmem:[%s5242_s26 + $0x1c0] ss:$8 sps:$4 sm:$0xff]  }
  0xfc   : > { %v2324_v8 = vpop.f32.mrf.mxu0  ;;  %2515 = vmatmul.mubr.bf16.gmra.mxu0 %v4902_v60  ;;  %v2900_v9 = vpop.f32.mrf.mxu1  ;;  %3091 = vmatmul.mubr.bf16.gmra.mxu1 %v4911_v62 }
  0xfd   : > { %v2325_v10 = vadd.f32 %v5417_v50, %v2324_v8  ;;  %v5432_v11 = vmax.f32 %v3468_v6, %v3612_v7  ;;  %4504 = vmatprep.mubr.msk.bf16.mxu0 %vm1845_vm0, %v4906_v2  ;;  %v2901_v12 = vadd.f32 %v5417_v50, %v2900_v9  ;;  %4576 = vmatprep.mubr.msk.bf16.mxu1 %vm1845_vm0, %v4915_v3  ;;  %v4929_v2 = vld [vmem:[%s5242_s26 + $0x640] ss:$8 sps:$4 sm:$0xff]   ;;  %v4924_v6 = vld [vmem:[%s5242_s26 + $0x1d4] ss:$8 sps:$4 sm:$0xff]  }
  0xfe   : > { %v2326_v13 = vpop.f32.mrf.mxu0  ;;  %v2902_v14 = vpop.f32.mrf.mxu1  ;;  %v4933_v7 = vld [vmem:[%s5242_s26 + $0x654] ss:$8 sps:$4 sm:$0xff]  }
  0xff   : > { %v3469_v15 = vmax.f32 %v2325_v10, 0.0  ;;  %v3613_v16 = vmax.f32 %v2901_v12, 0.0 }
 0x100   : > { %v2327_v17 = vpop.f32.mrf.mxu0  ;;  %v2903_v19 = vpop.f32.mrf.mxu1 }
 0x101   : > { %v2328_v21 = vadd.f32 %v5417_v50, %v2327_v17  ;;  %v5440_v22 = vmax.f32 %v3469_v15, %v3613_v16  ;;  %v2904_v23 = vadd.f32 %v5417_v50, %v2903_v19 }
 0x102   : > { %v2329_v26 = vpop.f32.mrf.mxu0  ;;  %v2905_v27 = vpop.f32.mrf.mxu1 }
 0x103   : > { %v3470_v28 = vmax.f32 %v2328_v21, 0.0  ;;  %v3614_v29 = vmax.f32 %v2904_v23, 0.0  ;;  %v4935_v26 = vld [vmem:[%s5242_s26 + $0x650] ss:$8 sps:$4 sm:$0xff]  }
 0x104   : > { %v2332_v30 = vpop.f32.mrf.mxu0  ;;  %2523 = vmatmul.mubr.bf16.gmra.mxu0 %v4908_v18  ;;  %v2908_v31 = vpop.f32.mrf.mxu1  ;;  %3099 = vmatmul.mubr.bf16.gmra.mxu1 %v4917_v20 }
 0x105   : > { %v2333_v32 = vadd.f32 %v5417_v50, %v2332_v30  ;;  %v5446_v33 = vmax.f32 %v3470_v28, %v3614_v29  ;;  %4505 = vmatprep.mubr.msk.bf16.mxu0 %vm1845_vm0, %v4912_v24  ;;  %v2909_v34 = vadd.f32 %v5417_v50, %v2908_v31  ;;  %4577 = vmatprep.mubr.msk.bf16.mxu1 %vm1845_vm0, %v4921_v25  ;;  %v4926_v24 = vld [vmem:[%s5242_s26 + $0x1d0] ss:$8 sps:$4 sm:$0xff]   ;;  %v4930_v30 = vld [vmem:[%s5242_s26 + $0x1e4] ss:$8 sps:$4 sm:$0xff]  }
 0x106   : > { %v2334_v35 = vpop.f32.mrf.mxu0  ;;  %v2910_v36 = vpop.f32.mrf.mxu1  ;;  %v4939_v31 = vld [vmem:[%s5242_s26 + $0x664] ss:$8 sps:$4 sm:$0xff]  }
 0x107   : > { %v3471_v37 = vmax.f32 %v2333_v32, 0.0  ;;  %v3615_v38 = vmax.f32 %v2909_v34, 0.0 }
 0x108   : > { %v2335_v39 = vpop.f32.mrf.mxu0  ;;  %v2911_v41 = vpop.f32.mrf.mxu1 }
 0x109   : > { %v2336_v43 = vadd.f32 %v5417_v50, %v2335_v39  ;;  %v5454_v44 = vmax.f32 %v3471_v37, %v3615_v38  ;;  %v2912_v45 = vadd.f32 %v5417_v50, %v2911_v41 }
 0x10a   : > { %v2337_v48 = vpop.f32.mrf.mxu0  ;;  %v2913_v49 = vpop.f32.mrf.mxu1 }
 0x10b   : > { %v3472_v51 = vmax.f32 %v2336_v43, 0.0  ;;  %v3616_v52 = vmax.f32 %v2912_v45, 0.0  ;;  %v4932_v48 = vld [vmem:[%s5242_s26 + $0x1e0] ss:$8 sps:$4 sm:$0xff]  }
 0x10c   : > { %v2340_v53 = vpop.f32.mrf.mxu0  ;;  %2531 = vmatmul.mubr.bf16.gmra.mxu0 %v4914_v40  ;;  %v2916_v54 = vpop.f32.mrf.mxu1  ;;  %3107 = vmatmul.mubr.bf16.gmra.mxu1 %v4923_v42 }
 0x10d   : > { %v2341_v55 = vadd.f32 %v5417_v50, %v2340_v53  ;;  %v5460_v56 = vmax.f32 %v3472_v51, %v3616_v52  ;;  %4506 = vmatprep.mubr.msk.bf16.mxu0 %vm1845_vm0, %v4918_v46  ;;  %v2917_v57 = vadd.f32 %v5417_v50, %v2916_v54  ;;  %4578 = vmatprep.mubr.msk.bf16.mxu1 %vm1845_vm0, %v4927_v47  ;;  %v4941_v51 = vld [vmem:[%s5242_s26 + $0x660] ss:$8 sps:$4 sm:$0xff]  }
 0x10e   : > { %v2342_v58 = vpop.f32.mrf.mxu0  ;;  %v2918_v59 = vpop.f32.mrf.mxu1 }
 0x10f   : > { %v3473_v60 = vmax.f32 %v2341_v55, 0.0  ;;  %v3617_v61 = vmax.f32 %v2917_v57, 0.0  ;;  %v4936_v55 = vld [vmem:[%s5242_s26 + $0x1f4] ss:$8 sps:$4 sm:$0xff]  }
 0x110   : > { %v2343_v62 = vpop.f32.mrf.mxu0  ;;  %v2919_v1 = vpop.f32.mrf.mxu1  ;;  %v4945_v57 = vld [vmem:[%s5242_s26 + $0x674] ss:$8 sps:$4 sm:$0xff]  }
 0x111   : > { %v2344_v3 = vadd.f32 %v5417_v50, %v2343_v62  ;;  %v5468_v4 = vmax.f32 %v3473_v60, %v3617_v61  ;;  %v2920_v5 = vadd.f32 %v5417_v50, %v2919_v1 }
 0x112   : > { %v2345_v8 = vpop.f32.mrf.mxu0  ;;  %v2921_v9 = vpop.f32.mrf.mxu1 }
 0x113   : > { %v3474_v10 = vmax.f32 %v2344_v3, 0.0  ;;  %v3618_v12 = vmax.f32 %v2920_v5, 0.0 }
 0x114   : > { %v2348_v13 = vpop.f32.mrf.mxu0  ;;  %2539 = vmatmul.mubr.bf16.gmra.mxu0 %v4920_v63  ;;  %v2924_v14 = vpop.f32.mrf.mxu1  ;;  %3115 = vmatmul.mubr.bf16.gmra.mxu1 %v4929_v2 }
 0x115   : > { %v2349_v15 = vadd.f32 %v5417_v50, %v2348_v13  ;;  %v5474_v16 = vmax.f32 %v3474_v10, %v3618_v12  ;;  %4507 = vmatprep.mubr.msk.bf16.mxu0 %vm1845_vm0, %v4924_v6  ;;  %v2925_v17 = vadd.f32 %v5417_v50, %v2924_v14  ;;  %4579 = vmatprep.mubr.msk.bf16.mxu1 %vm1845_vm0, %v4933_v7  ;;  %v4938_v10 = vld [vmem:[%s5242_s26 + $0x1f0] ss:$8 sps:$4 sm:$0xff]  }
 0x116   : > { %v2350_v18 = vpop.f32.mrf.mxu0  ;;  %v2926_v19 = vpop.f32.mrf.mxu1  ;;  %v4947_v13 = vld [vmem:[%s5242_s26 + $0x670] ss:$8 sps:$4 sm:$0xff]  }
 0x117   : > { %v3475_v20 = vmax.f32 %v2349_v15, 0.0  ;;  %v3619_v21 = vmax.f32 %v2925_v17, 0.0  ;;  %v4942_v18 = vld [vmem:[%s5242_s26 + $0x204] ss:$8 sps:$4 sm:$0xff]  }
 0x118   : > { %v2351_v23 = vpop.f32.mrf.mxu0  ;;  %v2927_v25 = vpop.f32.mrf.mxu1  ;;  %v4951_v19 = vld [vmem:[%s5242_s26 + $0x684] ss:$8 sps:$4 sm:$0xff]  }
 0x119   : > { %v2352_v27 = vadd.f32 %v5417_v50, %v2351_v23  ;;  %v5482_v28 = vmax.f32 %v3475_v20, %v3619_v21  ;;  %v2928_v29 = vadd.f32 %v5417_v50, %v2927_v25 }
 0x11a   : > { %v2353_v32 = vpop.f32.mrf.mxu0  ;;  %v2929_v34 = vpop.f32.mrf.mxu1 }
 0x11b   : > { %v3476_v35 = vmax.f32 %v2352_v27, 0.0  ;;  %v3620_v36 = vmax.f32 %v2928_v29, 0.0 }
 0x11c   : > { %v2356_v37 = vpop.f32.mrf.mxu0  ;;  %2547 = vmatmul.mubr.bf16.gmra.mxu0 %v4926_v24  ;;  %v2932_v38 = vpop.f32.mrf.mxu1  ;;  %3123 = vmatmul.mubr.bf16.gmra.mxu1 %v4935_v26 }
 0x11d   : > { %v2357_v39 = vadd.f32 %v5417_v50, %v2356_v37  ;;  %v5488_v40 = vmax.f32 %v3476_v35, %v3620_v36  ;;  %4508 = vmatprep.mubr.msk.bf16.mxu0 %vm1845_vm0, %v4930_v30  ;;  %v2933_v41 = vadd.f32 %v5417_v50, %v2932_v38  ;;  %4580 = vmatprep.mubr.msk.bf16.mxu1 %vm1845_vm0, %v4939_v31  ;;  %v4944_v37 = vld [vmem:[%s5242_s26 + $0x200] ss:$8 sps:$4 sm:$0xff]  }
 0x11e   : > { %v2358_v42 = vpop.f32.mrf.mxu0  ;;  %v2934_v43 = vpop.f32.mrf.mxu1 }
 0x11f   : > { %v3477_v45 = vmax.f32 %v2357_v39, 0.0  ;;  %v3621_v46 = vmax.f32 %v2933_v41, 0.0  ;;  %v4953_v39 = vld [vmem:[%s5242_s26 + $0x680] ss:$8 sps:$4 sm:$0xff]  }
 0x120   : > { %v2359_v47 = vpop.f32.mrf.mxu0  ;;  %v2935_v49 = vpop.f32.mrf.mxu1 }
 0x121   : > { %v2360_v52 = vadd.f32 %v5417_v50, %v2359_v47  ;;  %v5496_v53 = vmax.f32 %v3477_v45, %v3621_v46  ;;  %v2936_v54 = vadd.f32 %v5417_v50, %v2935_v49  ;;  %v4948_v45 = vld [vmem:[%s5242_s26 + $0x214] ss:$8 sps:$4 sm:$0xff]  }
 0x122   : > { %v2361_v58 = vpop.f32.mrf.mxu0  ;;  %v2937_v59 = vpop.f32.mrf.mxu1  ;;  %v4957_v46 = vld [vmem:[%s5242_s26 + $0x694] ss:$8 sps:$4 sm:$0xff]  }
 0x123   : > { %v3478_v60 = vmax.f32 %v2360_v52, 0.0  ;;  %v3622_v61 = vmax.f32 %v2936_v54, 0.0 }
 0x124   : > { %v2364_v62 = vpop.f32.mrf.mxu0  ;;  %2555 = vmatmul.mubr.bf16.gmra.mxu0 %v4932_v48  ;;  %v2940_v63 = vpop.f32.mrf.mxu1  ;;  %3131 = vmatmul.mubr.bf16.gmra.mxu1 %v4941_v51 }
 0x125   : > { %v2365_v1 = vadd.f32 %v5417_v50, %v2364_v62  ;;  %v5502_v2 = vmax.f32 %v3478_v60, %v3622_v61  ;;  %4509 = vmatprep.mubr.msk.bf16.mxu0 %vm1845_vm0, %v4936_v55  ;;  %v2941_v3 = vadd.f32 %v5417_v50, %v2940_v63  ;;  %4581 = vmatprep.mubr.msk.bf16.mxu1 %vm1845_vm0, %v4945_v57 }
 0x126   : > { %v2366_v5 = vpop.f32.mrf.mxu0  ;;  %v2942_v6 = vpop.f32.mrf.mxu1 }
 0x127   : > { %v3479_v7 = vmax.f32 %v2365_v1, 0.0  ;;  %v3623_v8 = vmax.f32 %v2941_v3, 0.0  ;;  %v4950_v1 = vld [vmem:[%s5242_s26 + $0x210] ss:$8 sps:$4 sm:$0xff]  }
 0x128   : > { %v2367_v9 = vpop.f32.mrf.mxu0  ;;  %v2943_v12 = vpop.f32.mrf.mxu1  ;;  %v4959_v5 = vld [vmem:[%s5242_s26 + $0x690] ss:$8 sps:$4 sm:$0xff]  }
 0x129   : > { %v2368_v14 = vadd.f32 %v5417_v50, %v2367_v9  ;;  %v5510_v15 = vmax.f32 %v3479_v7, %v3623_v8  ;;  %v2944_v17 = vadd.f32 %v5417_v50, %v2943_v12  ;;  %v4954_v9 = vld [vmem:[%s5242_s26 + $0x224] ss:$8 sps:$4 sm:$0xff]  }
 0x12a   : > { %v2369_v20 = vpop.f32.mrf.mxu0  ;;  %v2945_v21 = vpop.f32.mrf.mxu1 }
 0x12b   : > { %v3480_v23 = vmax.f32 %v2368_v14, 0.0  ;;  %v3624_v24 = vmax.f32 %v2944_v17, 0.0 }
 0x12c   : > { %v2372_v25 = vpop.f32.mrf.mxu0  ;;  %2563 = vmatmul.mubr.bf16.gmra.mxu0 %v4938_v10  ;;  %v2948_v26 = vpop.f32.mrf.mxu1  ;;  %3139 = vmatmul.mubr.bf16.gmra.mxu1 %v4947_v13  ;;  %v4963_v10 = vld [vmem:[%s5242_s26 + $0x6a4] ss:$8 sps:$4 sm:$0xff]  }
 0x12d   : > { %v2373_v27 = vadd.f32 %v5417_v50, %v2372_v25  ;;  %v5516_v29 = vmax.f32 %v3480_v23, %v3624_v24  ;;  %4510 = vmatprep.mubr.msk.bf16.mxu0 %vm1845_vm0, %v4942_v18  ;;  %v2949_v30 = vadd.f32 %v5417_v50, %v2948_v26  ;;  %4582 = vmatprep.mubr.msk.bf16.mxu1 %vm1845_vm0, %v4951_v19 }
 0x12e   : > { %v2374_v31 = vpop.f32.mrf.mxu0  ;;  %v2950_v32 = vpop.f32.mrf.mxu1 }
 0x12f   : > { %v3481_v34 = vmax.f32 %v2373_v27, 0.0  ;;  %v3625_v35 = vmax.f32 %v2949_v30, 0.0  ;;  %v4956_v31 = vld [vmem:[%s5242_s26 + $0x220] ss:$8 sps:$4 sm:$0xff]  }
 0x130   : > { %v2375_v36 = vpop.f32.mrf.mxu0  ;;  %v2951_v38 = vpop.f32.mrf.mxu1 }
 0x131   : > { %v2376_v41 = vadd.f32 %v5417_v50, %v2375_v36  ;;  %v5524_v42 = vmax.f32 %v3481_v34, %v3625_v35  ;;  %v2952_v43 = vadd.f32 %v5417_v50, %v2951_v38  ;;  %v4965_v34 = vld [vmem:[%s5242_s26 + $0x6a0] ss:$8 sps:$4 sm:$0xff]   ;;  %v4960_v38 = vld [vmem:[%s5242_s26 + $0x234] ss:$8 sps:$4 sm:$0xff]  }
 0x132   : > { %v2377_v47 = vpop.f32.mrf.mxu0  ;;  %v2953_v48 = vpop.f32.mrf.mxu1 }
 0x133   : > { %v3482_v49 = vmax.f32 %v2376_v41, 0.0  ;;  %v3626_v51 = vmax.f32 %v2952_v43, 0.0 }
 0x134   : > { %v2380_v52 = vpop.f32.mrf.mxu0  ;;  %2571 = vmatmul.mubr.bf16.gmra.mxu0 %v4944_v37  ;;  %v2956_v54 = vpop.f32.mrf.mxu1  ;;  %3147 = vmatmul.mubr.bf16.gmra.mxu1 %v4953_v39  ;;  %v4969_v39 = vld [vmem:[%s5242_s26 + $0x6b4] ss:$8 sps:$4 sm:$0xff]  }
 0x135   : > { %v2381_v55 = vadd.f32 %v5417_v50, %v2380_v52  ;;  %v5530_v57 = vmax.f32 %v3482_v49, %v3626_v51  ;;  %4511 = vmatprep.mubr.msk.bf16.mxu0 %vm1845_vm0, %v4948_v45  ;;  %v2957_v58 = vadd.f32 %v5417_v50, %v2956_v54  ;;  %4583 = vmatprep.mubr.msk.bf16.mxu1 %vm1845_vm0, %v4957_v46 }
 0x136   : > { %v2382_v59 = vpop.f32.mrf.mxu0  ;;  %v2958_v60 = vpop.f32.mrf.mxu1 }
 0x137   : > { %v3483_v61 = vmax.f32 %v2381_v55, 0.0  ;;  %v3627_v62 = vmax.f32 %v2957_v58, 0.0 }
 0x138   : > { %v2383_v63 = vpop.f32.mrf.mxu0  ;;  %v2959_v3 = vpop.f32.mrf.mxu1 }
 0x139   : > { %v2384_v6 = vadd.f32 %v5417_v50, %v2383_v63  ;;  %v5538_v7 = vmax.f32 %v3483_v61, %v3627_v62  ;;  %v2960_v8 = vadd.f32 %v5417_v50, %v2959_v3  ;;  %v4962_v62 = vld [vmem:[%s5242_s26 + $0x230] ss:$8 sps:$4 sm:$0xff]  }
 0x13a   : > { %v2385_v12 = vpop.f32.mrf.mxu0  ;;  %v2961_v13 = vpop.f32.mrf.mxu1  ;;  %v4971_v63 = vld [vmem:[%s5242_s26 + $0x6b0] ss:$8 sps:$4 sm:$0xff]  }
 0x13b   : > { %v3484_v14 = vmax.f32 %v2384_v6, 0.0  ;;  %v3628_v17 = vmax.f32 %v2960_v8, 0.0  ;;  %v4966_v6 = vld [vmem:[%s5242_s26 + $0x244] ss:$8 sps:$4 sm:$0xff]  }
 0x13c   : > { %v2388_v18 = vpop.f32.mrf.mxu0  ;;  %2579 = vmatmul.mubr.bf16.gmra.mxu0 %v4950_v1  ;;  %v2964_v19 = vpop.f32.mrf.mxu1  ;;  %3155 = vmatmul.mubr.bf16.gmra.mxu1 %v4959_v5  ;;  %v4975_v8 = vld [vmem:[%s5242_s26 + $0x6c4] ss:$8 sps:$4 sm:$0xff]  }
 0x13d   : > { %v2389_v20 = vadd.f32 %v5417_v50, %v2388_v18  ;;  %v5544_v21 = vmax.f32 %v3484_v14, %v3628_v17  ;;  %4512 = vmatprep.mubr.msk.bf16.mxu0 %vm1845_vm0, %v4954_v9  ;;  %v2965_v23 = vadd.f32 %v5417_v50, %v2964_v19  ;;  %4584 = vmatprep.mubr.msk.bf16.mxu1 %vm1845_vm0, %v4963_v10 }
 0x13e   : > { %v2390_v24 = vpop.f32.mrf.mxu0  ;;  %v2966_v25 = vpop.f32.mrf.mxu1 }
 0x13f   : > { %v3485_v26 = vmax.f32 %v2389_v20, 0.0  ;;  %v3629_v27 = vmax.f32 %v2965_v23, 0.0 }
 0x140   : > { %v2391_v30 = vpop.f32.mrf.mxu0  ;;  %v2967_v32 = vpop.f32.mrf.mxu1 }
 0x141   : > { %v3773_v35 = vmax.f32 %v5426_v0, %v3485_v26  ;;  %v2392_v36 = vadd.f32 %v5417_v50, %v2391_v30  ;;  %v2968_v37 = vadd.f32 %v5417_v50, %v2967_v32  ;;  %v4977_v32 = vld [vmem:[%s5242_s26 + $0x6c0] ss:$8 sps:$4 sm:$0xff]  }
 0x142   : > { %v2393_v41 = vpop.f32.mrf.mxu0  ;;  %v2969_v43 = vpop.f32.mrf.mxu1 }
 0x143   : > { %v3486_v45 = vmax.f32 %v2392_v36, 0.0  ;;  %v5556_v46 = vmax.f32 %v3773_v35, %v3629_v27  ;;  %v3630_v51 = vmax.f32 %v2968_v37, 0.0  ;;  %v4972_v37 = vld [vmem:[%s5242_s26 + $0x254] ss:$8 sps:$4 sm:$0xff]  }
 0x144   : > { %v2396_v47 = vpop.f32.mrf.mxu0  ;;  %2587 = vmatmul.mubr.bf16.gmra.mxu0 %v4956_v31  ;;  %v2972_v48 = vpop.f32.mrf.mxu1  ;;  %3163 = vmatmul.mubr.bf16.gmra.mxu1 %v4965_v34  ;;  %v4968_v31 = vld [vmem:[%s5242_s26 + $0x240] ss:$8 sps:$4 sm:$0xff]  }
 0x145   : > { %v3774_v49 = vmax.f32 %v5432_v11, %v3486_v45  ;;  %v2397_v0 = vadd.f32 %v5417_v50, %v2396_v47  ;;  %4513 = vmatprep.mubr.msk.bf16.mxu0 %vm1845_vm0, %v4960_v38  ;;  %v2973_v52 = vadd.f32 %v5417_v50, %v2972_v48  ;;  %4585 = vmatprep.mubr.msk.bf16.mxu1 %vm1845_vm0, %v4969_v39  ;;  %v4981_v38 = vld [vmem:[%s5242_s26 + $0x6d4] ss:$8 sps:$4 sm:$0xff]  }
 0x146   : > { %v2398_v54 = vpop.f32.mrf.mxu0  ;;  %v2974_v55 = vpop.f32.mrf.mxu1 }
 0x147   : > { %v3487_v58 = vmax.f32 %v2397_v0, 0.0  ;;  %v5563_v59 = vmax.f32 %v3774_v49, %v3630_v51  ;;  %v3631_v60 = vmax.f32 %v2973_v52, 0.0 }
 0x148   : > { %v2399_v61 = vpop.f32.mrf.mxu0  ;;  %v2975_v11 = vpop.f32.mrf.mxu1 }
 0x149   : > { %v3775_v1 = vmax.f32 %v5440_v22, %v3487_v58  ;;  %v2400_v3 = vadd.f32 %v5417_v50, %v2399_v61  ;;  %v2976_v5 = vadd.f32 %v5417_v50, %v2975_v11  ;;  %v4983_v11 = vld [vmem:[%s5242_s26 + $0x6d0] ss:$8 sps:$4 sm:$0xff]  }
 0x14a   : > { %v2401_v9 = vpop.f32.mrf.mxu0  ;;  %v2977_v10 = vpop.f32.mrf.mxu1 }
 0x14b   : > { %v3488_v12 = vmax.f32 %v2400_v3, 0.0  ;;  %v5572_v13 = vmax.f32 %v3775_v1, %v3631_v60  ;;  %v3632_v19 = vmax.f32 %v2976_v5, 0.0  ;;  %v4978_v5 = vld [vmem:[%s5242_s26 + $0x264] ss:$8 sps:$4 sm:$0xff]  }
 0x14c   : > { %v2404_v14 = vpop.f32.mrf.mxu0  ;;  %2595 = vmatmul.mubr.bf16.gmra.mxu0 %v4962_v62  ;;  %v2980_v17 = vpop.f32.mrf.mxu1  ;;  %3171 = vmatmul.mubr.bf16.gmra.mxu1 %v4971_v63  ;;  %v4974_v62 = vld [vmem:[%s5242_s26 + $0x250] ss:$8 sps:$4 sm:$0xff]  }
 0x14d   : > { %v3776_v18 = vmax.f32 %v5446_v33, %v3488_v12  ;;  %v2405_v22 = vadd.f32 %v5417_v50, %v2404_v14  ;;  %4514 = vmatprep.mubr.msk.bf16.mxu0 %vm1845_vm0, %v4966_v6  ;;  %v2981_v20 = vadd.f32 %v5417_v50, %v2980_v17  ;;  %4586 = vmatprep.mubr.msk.bf16.mxu1 %vm1845_vm0, %v4975_v8  ;;  %v4987_v6 = vld [vmem:[%s5242_s26 + $0x6e4] ss:$8 sps:$4 sm:$0xff]  }
 0x14e   : > { %v2406_v23 = vpop.f32.mrf.mxu0  ;;  %v2982_v24 = vpop.f32.mrf.mxu1 }
 0x14f   : > { %v3489_v25 = vmax.f32 %v2405_v22, 0.0  ;;  %v5579_v26 = vmax.f32 %v3776_v18, %v3632_v19  ;;  %v3633_v27 = vmax.f32 %v2981_v20, 0.0 }
 0x150   : > { %v2407_v30 = vpop.f32.mrf.mxu0  ;;  %v2983_v33 = vpop.f32.mrf.mxu1 }
 0x151   : > { %v3777_v34 = vmax.f32 %v5454_v44, %v3489_v25  ;;  %v2408_v35 = vadd.f32 %v5417_v50, %v2407_v30  ;;  %v2984_v36 = vadd.f32 %v5417_v50, %v2983_v33  ;;  %v4989_v33 = vld [vmem:[%s5242_s26 + $0x6e0] ss:$8 sps:$4 sm:$0xff]  }
 0x152   : > { %v2409_v39 = vpop.f32.mrf.mxu0  ;;  %v2985_v41 = vpop.f32.mrf.mxu1 }
 0x153   : > { %v3490_v43 = vmax.f32 %v2408_v35, 0.0  ;;  %v5588_v45 = vmax.f32 %v3777_v34, %v3633_v27  ;;  %v3634_v0 = vmax.f32 %v2984_v36, 0.0  ;;  %v4984_v36 = vld [vmem:[%s5242_s26 + $0x274] ss:$8 sps:$4 sm:$0xff]  }
 0x154   : > { %v2412_v47 = vpop.f32.mrf.mxu0  ;;  %2603 = vmatmul.mubr.bf16.gmra.mxu0 %v4968_v31  ;;  %v2988_v48 = vpop.f32.mrf.mxu1  ;;  %3179 = vmatmul.mubr.bf16.gmra.mxu1 %v4977_v32  ;;  %v4980_v31 = vld [vmem:[%s5242_s26 + $0x260] ss:$8 sps:$4 sm:$0xff]  }
 0x155   : > { %v3778_v49 = vmax.f32 %v5460_v56, %v3490_v43  ;;  %v2413_v44 = vadd.f32 %v5417_v50, %v2412_v47  ;;  %4515 = vmatprep.mubr.msk.bf16.mxu0 %vm1845_vm0, %v4972_v37  ;;  %v2989_v51 = vadd.f32 %v5417_v50, %v2988_v48  ;;  %4587 = vmatprep.mubr.msk.bf16.mxu1 %vm1845_vm0, %v4981_v38  ;;  %v4993_v37 = vld [vmem:[%s5242_s26 + $0x6f4] ss:$8 sps:$4 sm:$0xff]  }
 0x156   : > { %v2414_v52 = vpop.f32.mrf.mxu0  ;;  %v2990_v54 = vpop.f32.mrf.mxu1 }
 0x157   : > { %v3491_v55 = vmax.f32 %v2413_v44, 0.0  ;;  %v5595_v58 = vmax.f32 %v3778_v49, %v3634_v0  ;;  %v3635_v60 = vmax.f32 %v2989_v51, 0.0 }
 0x158   : > { %v2415_v61 = vpop.f32.mrf.mxu0  ;;  %v2991_v56 = vpop.f32.mrf.mxu1 }
 0x159   : > { %v3779_v63 = vmax.f32 %v5468_v4, %v3491_v55  ;;  %v2416_v1 = vadd.f32 %v5417_v50, %v2415_v61  ;;  %v2992_v3 = vadd.f32 %v5417_v50, %v2991_v56  ;;  %v4995_v56 = vld [vmem:[%s5242_s26 + $0x6f0] ss:$8 sps:$4 sm:$0xff]  }
 0x15a   : > { %v2417_v8 = vpop.f32.mrf.mxu0  ;;  %v2993_v9 = vpop.f32.mrf.mxu1 }
 0x15b   : > { %v3492_v10 = vmax.f32 %v2416_v1, 0.0  ;;  %v5604_v12 = vmax.f32 %v3779_v63, %v3635_v60  ;;  %v3636_v22 = vmax.f32 %v2992_v3, 0.0  ;;  %v4990_v3 = vld [vmem:[%s5242_s26 + $0x284] ss:$8 sps:$4 sm:$0xff]  }
 0x15c   : > { %v2420_v14 = vpop.f32.mrf.mxu0  ;;  %2611 = vmatmul.mubr.bf16.gmra.mxu0 %v4974_v62  ;;  %v2996_v17 = vpop.f32.mrf.mxu1  ;;  %3187 = vmatmul.mubr.bf16.gmra.mxu1 %v4983_v11  ;;  %v4986_v62 = vld [vmem:[%s5242_s26 + $0x270] ss:$8 sps:$4 sm:$0xff]  }
 0x15d   : > { %v3780_v18 = vmax.f32 %v5474_v16, %v3492_v10  ;;  %v2421_v4 = vadd.f32 %v5417_v50, %v2420_v14  ;;  %4516 = vmatprep.mubr.msk.bf16.mxu0 %vm1845_vm0, %v4978_v5  ;;  %v2997_v19 = vadd.f32 %v5417_v50, %v2996_v17  ;;  %4588 = vmatprep.mubr.msk.bf16.mxu1 %vm1845_vm0, %v4987_v6  ;;  %v4999_v5 = vld [vmem:[%s5242_s26 + $0x704] ss:$8 sps:$4 sm:$0xff]  }
 0x15e   : > { %v2422_v20 = vpop.f32.mrf.mxu0  ;;  %v2998_v23 = vpop.f32.mrf.mxu1 }
 0x15f   : > { %v3493_v24 = vmax.f32 %v2421_v4, 0.0  ;;  %v5611_v25 = vmax.f32 %v3780_v18, %v3636_v22  ;;  %v3637_v27 = vmax.f32 %v2997_v19, 0.0 }
 0x160   : > { %v2423_v30 = vpop.f32.mrf.mxu0  ;;  %v2999_v16 = vpop.f32.mrf.mxu1 }
 0x161   : > { %v3781_v32 = vmax.f32 %v5482_v28, %v3493_v24  ;;  %v2424_v34 = vadd.f32 %v5417_v50, %v2423_v30  ;;  %v3000_v35 = vadd.f32 %v5417_v50, %v2999_v16  ;;  %v5001_v16 = vld [vmem:[%s5242_s26 + $0x700] ss:$8 sps:$4 sm:$0xff]  }
 0x162   : > { %v2425_v38 = vpop.f32.mrf.mxu0  ;;  %v3001_v39 = vpop.f32.mrf.mxu1 }
 0x163   : > { %v3494_v41 = vmax.f32 %v2424_v34, 0.0  ;;  %v5620_v43 = vmax.f32 %v3781_v32, %v3637_v27  ;;  %v3638_v44 = vmax.f32 %v3000_v35, 0.0  ;;  %v4996_v35 = vld [vmem:[%s5242_s26 + $0x294] ss:$8 sps:$4 sm:$0xff]  }
 0x164   : > { %v2428_v47 = vpop.f32.mrf.mxu0  ;;  %2619 = vmatmul.mubr.bf16.gmra.mxu0 %v4980_v31  ;;  %v3004_v48 = vpop.f32.mrf.mxu1  ;;  %3195 = vmatmul.mubr.bf16.gmra.mxu1 %v4989_v33  ;;  %v4992_v31 = vld [vmem:[%s5242_s26 + $0x280] ss:$8 sps:$4 sm:$0xff]  }
 0x165   : > { %v3782_v49 = vmax.f32 %v5488_v40, %v3494_v41  ;;  %v2429_v28 = vadd.f32 %v5417_v50, %v2428_v47  ;;  %4517 = vmatprep.mubr.msk.bf16.mxu0 %vm1845_vm0, %v4984_v36  ;;  %v3005_v0 = vadd.f32 %v5417_v50, %v3004_v48  ;;  %4589 = vmatprep.mubr.msk.bf16.mxu1 %vm1845_vm0, %v4993_v37  ;;  %v5005_v36 = vld [vmem:[%s5242_s26 + $0x714] ss:$8 sps:$4 sm:$0xff]  }
 0x166   : > { %v2430_v51 = vpop.f32.mrf.mxu0  ;;  %v3006_v52 = vpop.f32.mrf.mxu1 }
 0x167   : > { %v3495_v54 = vmax.f32 %v2429_v28, 0.0  ;;  %v5627_v55 = vmax.f32 %v3782_v49, %v3638_v44  ;;  %v3639_v60 = vmax.f32 %v3005_v0, 0.0 }
 0x168   : > { %v2431_v61 = vpop.f32.mrf.mxu0  ;;  %v3007_v40 = vpop.f32.mrf.mxu1 }
 0x169   : > { %v3783_v11 = vmax.f32 %v5496_v53, %v3495_v54  ;;  %v2432_v63 = vadd.f32 %v5417_v50, %v2431_v61  ;;  %v3008_v1 = vadd.f32 %v5417_v50, %v3007_v40  ;;  %v5007_v40 = vld [vmem:[%s5242_s26 + $0x710] ss:$8 sps:$4 sm:$0xff]  }
 0x16a   : > { %v2433_v6 = vpop.f32.mrf.mxu0  ;;  %v3009_v8 = vpop.f32.mrf.mxu1 }
 0x16b   : > { %v3496_v9 = vmax.f32 %v2432_v63, 0.0  ;;  %v5636_v10 = vmax.f32 %v3783_v11, %v3639_v60  ;;  %v3640_v4 = vmax.f32 %v3008_v1, 0.0  ;;  %v5002_v1 = vld [vmem:[%s5242_s26 + $0x2a4] ss:$8 sps:$4 sm:$0xff]  }
 0x16c   : > { %v2436_v14 = vpop.f32.mrf.mxu0  ;;  %2627 = vmatmul.mubr.bf16.gmra.mxu0 %v4986_v62  ;;  %v3012_v17 = vpop.f32.mrf.mxu1  ;;  %3203 = vmatmul.mubr.bf16.gmra.mxu1 %v4995_v56  ;;  %v4998_v62 = vld [vmem:[%s5242_s26 + $0x290] ss:$8 sps:$4 sm:$0xff]  }
 0x16d   : > { %v3784_v18 = vmax.f32 %v5502_v2, %v3496_v9  ;;  %v2437_v53 = vadd.f32 %v5417_v50, %v2436_v14  ;;  %4518 = vmatprep.mubr.msk.bf16.mxu0 %vm1845_vm0, %v4990_v3  ;;  %v3013_v22 = vadd.f32 %v5417_v50, %v3012_v17  ;;  %4590 = vmatprep.mubr.msk.bf16.mxu1 %vm1845_vm0, %v4999_v5  ;;  %v5011_v3 = vld [vmem:[%s5242_s26 + $0x724] ss:$8 sps:$4 sm:$0xff]  }
 0x16e   : > { %v2438_v19 = vpop.f32.mrf.mxu0  ;;  %v3014_v20 = vpop.f32.mrf.mxu1 }
 0x16f   : > { %v3497_v23 = vmax.f32 %v2437_v53, 0.0  ;;  %v5643_v24 = vmax.f32 %v3784_v18, %v3640_v4  ;;  %v3641_v27 = vmax.f32 %v3013_v22, 0.0 }
 0x170   : > { %v2439_v30 = vpop.f32.mrf.mxu0  ;;  %v3015_v2 = vpop.f32.mrf.mxu1 }
 0x171   : > { %v3785_v33 = vmax.f32 %v5510_v15, %v3497_v23  ;;  %v2440_v32 = vadd.f32 %v5417_v50, %v2439_v30  ;;  %v3016_v34 = vadd.f32 %v5417_v50, %v3015_v2  ;;  %v5013_v2 = vld [vmem:[%s5242_s26 + $0x720] ss:$8 sps:$4 sm:$0xff]  }
 0x172   : > { %v2441_v37 = vpop.f32.mrf.mxu0  ;;  %v3017_v38 = vpop.f32.mrf.mxu1 }
 0x173   : > { %v3498_v39 = vmax.f32 %v2440_v32, 0.0  ;;  %v5652_v41 = vmax.f32 %v3785_v33, %v3641_v27  ;;  %v3642_v28 = vmax.f32 %v3016_v34, 0.0  ;;  %v5008_v34 = vld [vmem:[%s5242_s26 + $0x2b4] ss:$8 sps:$4 sm:$0xff]  }
 0x174   : > { %v2444_v47 = vpop.f32.mrf.mxu0  ;;  %2635 = vmatmul.mubr.bf16.gmra.mxu0 %v4992_v31  ;;  %v3020_v48 = vpop.f32.mrf.mxu1  ;;  %3211 = vmatmul.mubr.bf16.gmra.mxu1 %v5001_v16  ;;  %v5004_v31 = vld [vmem:[%s5242_s26 + $0x2a0] ss:$8 sps:$4 sm:$0xff]  }
 0x175   : > { %v3786_v49 = vmax.f32 %v5516_v29, %v3498_v39  ;;  %v2445_v15 = vadd.f32 %v5417_v50, %v2444_v47  ;;  %4519 = vmatprep.mubr.msk.bf16.mxu0 %vm1845_vm0, %v4996_v35  ;;  %v3021_v44 = vadd.f32 %v5417_v50, %v3020_v48  ;;  %4591 = vmatprep.mubr.msk.bf16.mxu1 %vm1845_vm0, %v5005_v36  ;;  %v5017_v35 = vld [vmem:[%s5242_s26 + $0x734] ss:$8 sps:$4 sm:$0xff]  }
 0x176   : > { %v2446_v0 = vpop.f32.mrf.mxu0  ;;  %v3022_v51 = vpop.f32.mrf.mxu1 }
 0x177   : > { %v3499_v52 = vmax.f32 %v2445_v15, 0.0  ;;  %v5659_v54 = vmax.f32 %v3786_v49, %v3642_v28  ;;  %v3643_v60 = vmax.f32 %v3021_v44, 0.0 }
 0x178   : > { %v2447_v61 = vpop.f32.mrf.mxu0  ;;  %v3023_v29 = vpop.f32.mrf.mxu1 }
 0x179   : > { %v3787_v56 = vmax.f32 %v5524_v42, %v3499_v52  ;;  %v2448_v11 = vadd.f32 %v5417_v50, %v2447_v61  ;;  %v3024_v63 = vadd.f32 %v5417_v50, %v3023_v29  ;;  %v5019_v29 = vld [vmem:[%s5242_s26 + $0x730] ss:$8 sps:$4 sm:$0xff]  }
 0x17a   : > { %v2449_v5 = vpop.f32.mrf.mxu0  ;;  %v3025_v6 = vpop.f32.mrf.mxu1 }
 0x17b   : > { %v3500_v8 = vmax.f32 %v2448_v11, 0.0  ;;  %v5668_v9 = vmax.f32 %v3787_v56, %v3643_v60  ;;  %v3644_v53 = vmax.f32 %v3024_v63, 0.0  ;;  %v5014_v63 = vld [vmem:[%s5242_s26 + $0x2c4] ss:$8 sps:$4 sm:$0xff]  }
 0x17c   : > { %v2452_v14 = vpop.f32.mrf.mxu0  ;;  %2643 = vmatmul.mubr.bf16.gmra.mxu0 %v4998_v62  ;;  %v3028_v17 = vpop.f32.mrf.mxu1  ;;  %3219 = vmatmul.mubr.bf16.gmra.mxu1 %v5007_v40  ;;  %v5010_v62 = vld [vmem:[%s5242_s26 + $0x2b0] ss:$8 sps:$4 sm:$0xff]  }
 0x17d   : > { %v3788_v18 = vmax.f32 %v5530_v57, %v3500_v8  ;;  %v2453_v42 = vadd.f32 %v5417_v50, %v2452_v14  ;;  %4520 = vmatprep.mubr.msk.bf16.mxu0 %vm1845_vm0, %v5002_v1  ;;  %v3029_v4 = vadd.f32 %v5417_v50, %v3028_v17  ;;  %4592 = vmatprep.mubr.msk.bf16.mxu1 %vm1845_vm0, %v5011_v3  ;;  %v5023_v1 = vld [vmem:[%s5242_s26 + $0x744] ss:$8 sps:$4 sm:$0xff]  }
 0x17e   : > { %v2454_v22 = vpop.f32.mrf.mxu0  ;;  %v3030_v19 = vpop.f32.mrf.mxu1 }
 0x17f   : > { %v3501_v20 = vmax.f32 %v2453_v42, 0.0  ;;  %v5675_v23 = vmax.f32 %v3788_v18, %v3644_v53  ;;  %v3645_v27 = vmax.f32 %v3029_v4, 0.0 }
 0x180   : > { %v2455_v30 = vpop.f32.mrf.mxu0  ;;  %v3031_v57 = vpop.f32.mrf.mxu1 }
 0x181   : > { %v3789_v16 = vmax.f32 %v5538_v7, %v3501_v20  ;;  %v2456_v33 = vadd.f32 %v5417_v50, %v2455_v30  ;;  %v3032_v32 = vadd.f32 %v5417_v50, %v3031_v57  ;;  %v5016_v30 = vld [vmem:[%s5242_s26 + $0x2c0] ss:$8 sps:$4 sm:$0xff]  }
 0x182   : > { %v2457_v36 = vpop.f32.mrf.mxu0  ;;  %v3033_v37 = vpop.f32.mrf.mxu1  ;;  %v5025_v57 = vld [vmem:[%s5242_s26 + $0x740] ss:$8 sps:$4 sm:$0xff]  }
 0x183   : > { %v3502_v38 = vmax.f32 %v2456_v33, 0.0  ;;  %v5684_v39 = vmax.f32 %v3789_v16, %v3645_v27  ;;  %v3646_v15 = vmax.f32 %v3032_v32, 0.0  ;;  %v5020_v32 = vld [vmem:[%s5242_s26 + $0x2d4] ss:$8 sps:$4 sm:$0xff]  }
 0x184   : > { %v2460_v47 = vpop.f32.mrf.mxu0  ;;  %2651 = vmatmul.mubr.bf16.gmra.mxu0 %v5004_v31  ;;  %v3036_v48 = vpop.f32.mrf.mxu1  ;;  %3227 = vmatmul.mubr.bf16.gmra.mxu1 %v5013_v2 }
 0x185   : > { %v3790_v49 = vmax.f32 %v5544_v21, %v3502_v38  ;;  %v2461_v7 = vadd.f32 %v5417_v50, %v2460_v47  ;;  %4521 = vmatprep.mubr.msk.bf16.mxu0 %vm1845_vm0, %v5008_v34  ;;  %v3037_v28 = vadd.f32 %v5417_v50, %v3036_v48  ;;  %4593 = vmatprep.mubr.msk.bf16.mxu1 %vm1845_vm0, %v5017_v35  ;;  %v5029_v34 = vld [vmem:[%s5242_s26 + $0x754] ss:$8 sps:$4 sm:$0xff]  }
 0x186   : > { %v2462_v44 = vpop.f32.mrf.mxu0  ;;  %v3038_v0 = vpop.f32.mrf.mxu1 }
 0x187   : > { %v3503_v51 = vmax.f32 %v2461_v7, 0.0  ;;  %v5691_v52 = vmax.f32 %v3790_v49, %v3646_v15  ;;  %v3647_v60 = vmax.f32 %v3037_v28, 0.0 }
 0x188   : > { %v2463_v61 = vpop.f32.mrf.mxu0  ;;  %v3039_v21 = vpop.f32.mrf.mxu1 }
 0x189   : > { %v3809_v40 = vmax.f32 %v5556_v46, %v3503_v51  ;;  %v2464_v56 = vadd.f32 %v5417_v50, %v2463_v61  ;;  %v3040_v11 = vadd.f32 %v5417_v50, %v3039_v21  ;;  %v5706_v46 = vld [vmem:[%s6401_s2] ss:$0 sm:$0xff]  ;;  %v5031_v21 = vld [vmem:[%s5242_s26 + $0x750] ss:$8 sps:$4 sm:$0xff]  }
 0x18a   : > { %v2465_v3 = vpop.f32.mrf.mxu0  ;;  %v3041_v5 = vpop.f32.mrf.mxu1 }
 0x18b   : > { %v3504_v6 = vmax.f32 %v2464_v56, 0.0  ;;  %v5700_v8 = vmax.f32 %v3809_v40, %v3647_v60  ;;  %v3648_v42 = vmax.f32 %v3040_v11, 0.0  ;;  %v5026_v11 = vld [vmem:[%s5242_s26 + $0x2e4] ss:$8 sps:$4 sm:$0xff]  }
 0x18c   : > { %v2468_v14 = vpop.f32.mrf.mxu0  ;;  %2659 = vmatmul.mubr.bf16.gmra.mxu0 %v5010_v62  ;;  %v3044_v17 = vpop.f32.mrf.mxu1  ;;  %3235 = vmatmul.mubr.bf16.gmra.mxu1 %v5019_v29  ;;  %v5022_v62 = vld [vmem:[%s5242_s26 + $0x2d0] ss:$8 sps:$4 sm:$0xff]  }
 0x18d   : > { %v3810_v18 = vmax.f32 %v5563_v59, %v3504_v6  ;;  %v2469_v50 = vadd.f32 %v5706_v46, %v2468_v14  ;;  %4522 = vmatprep.mubr.msk.bf16.mxu0 %vm1845_vm0, %v5014_v63  ;;  %v3045_v53 = vadd.f32 %v5706_v46, %v3044_v17  ;;  %4594 = vmatprep.mubr.msk.bf16.mxu1 %vm1845_vm0, %v5023_v1  ;;  %v5035_v63 = vld [vmem:[%s5242_s26 + $0x764] ss:$8 sps:$4 sm:$0xff]  }
 0x18e   : > { %v2470_v4 = vpop.f32.mrf.mxu0  ;;  %v3046_v22 = vpop.f32.mrf.mxu1 }
 0x18f   : > { %v3505_v19 = vmax.f32 %v2469_v50, 0.0  ;;  %v5712_v59 = vmax.f32 %v3810_v18, %v3648_v42  ;;  %v3649_v20 = vmax.f32 %v3045_v53, 0.0 }
 0x190   : > { %v2471_v27 = vpop.f32.mrf.mxu0  ;;  %v3047_v31 = vpop.f32.mrf.mxu1 }
 0x191   : > { %v3811_v2 = vmax.f32 %v5572_v13, %v3505_v19  ;;  %v2472_v16 = vadd.f32 %v5706_v46, %v2471_v27  ;;  %v3048_v33 = vadd.f32 %v5706_v46, %v3047_v31  ;;  %v5037_v31 = vld [vmem:[%s5242_s26 + $0x760] ss:$8 sps:$4 sm:$0xff]  }
 0x192   : > { %v2473_v35 = vpop.f32.mrf.mxu0  ;;  %v3049_v36 = vpop.f32.mrf.mxu1 }
 0x193   : > { %v3506_v37 = vmax.f32 %v2472_v16, 0.0  ;;  %v5721_v38 = vmax.f32 %v3811_v2, %v3649_v20  ;;  %v3650_v7 = vmax.f32 %v3048_v33, 0.0  ;;  %v5032_v33 = vld [vmem:[%s5242_s26 + $0x2f4] ss:$8 sps:$4 sm:$0xff]  }
 0x194   : > { %v2476_v47 = vpop.f32.mrf.mxu0  ;;  %2667 = vmatmul.mubr.bf16.gmra.mxu0 %v5016_v30  ;;  %v3052_v48 = vpop.f32.mrf.mxu1  ;;  %3243 = vmatmul.mubr.bf16.gmra.mxu1 %v5025_v57  ;;  %v5028_v30 = vld [vmem:[%s5242_s26 + $0x2e0] ss:$8 sps:$4 sm:$0xff]  }
 0x195   : > { %v3812_v49 = vmax.f32 %v5579_v26, %v3506_v37  ;;  %v2477_v13 = vadd.f32 %v5706_v46, %v2476_v47  ;;  %4523 = vmatprep.mubr.msk.bf16.mxu0 %vm1845_vm0, %v5020_v32  ;;  %v3053_v15 = vadd.f32 %v5706_v46, %v3052_v48  ;;  %4595 = vmatprep.mubr.msk.bf16.mxu1 %vm1845_vm0, %v5029_v34  ;;  %v5041_v32 = vld [vmem:[%s5242_s26 + $0x774] ss:$8 sps:$4 sm:$0xff]  }
 0x196   : > { %v2478_v28 = vpop.f32.mrf.mxu0  ;;  %v3054_v44 = vpop.f32.mrf.mxu1 }
 0x197   : > { %v3507_v0 = vmax.f32 %v2477_v13, 0.0  ;;  %v5728_v51 = vmax.f32 %v3812_v49, %v3650_v7  ;;  %v3651_v60 = vmax.f32 %v3053_v15, 0.0 }
 0x198   : > { %v2479_v61 = vpop.f32.mrf.mxu0  ;;  %v3055_v26 = vpop.f32.mrf.mxu1 }
 0x199   : > { %v3813_v29 = vmax.f32 %v5588_v45, %v3507_v0  ;;  %v2480_v40 = vadd.f32 %v5706_v46, %v2479_v61  ;;  %v3056_v56 = vadd.f32 %v5706_v46, %v3055_v26  ;;  %v5043_v26 = vld [vmem:[%s5242_s26 + $0x770] ss:$8 sps:$4 sm:$0xff]  }
 0x19a   : > { %v2481_v1 = vpop.f32.mrf.mxu0  ;;  %v3057_v3 = vpop.f32.mrf.mxu1 }
 0x19b   : > { %v3508_v5 = vmax.f32 %v2480_v40, 0.0  ;;  %v5737_v6 = vmax.f32 %v3813_v29, %v3651_v60  ;;  %v3652_v50 = vmax.f32 %v3056_v56, 0.0  ;;  %v5038_v56 = vld [vmem:[%s5242_s26 + $0x304] ss:$8 sps:$4 sm:$0xff]  }
 0x19c   : > { %v2484_v14 = vpop.f32.mrf.mxu0  ;;  %2675 = vmatmul.mubr.bf16.gmra.mxu0 %v5022_v62  ;;  %v3060_v17 = vpop.f32.mrf.mxu1  ;;  %3251 = vmatmul.mubr.bf16.gmra.mxu1 %v5031_v21  ;;  %v5034_v62 = vld [vmem:[%s5242_s26 + $0x2f0] ss:$8 sps:$4 sm:$0xff]  }
 0x19d   : > { %v3814_v18 = vmax.f32 %v5595_v58, %v3508_v5  ;;  %v2485_v45 = vadd.f32 %v5706_v46, %v2484_v14  ;;  %4524 = vmatprep.mubr.msk.bf16.mxu0 %vm1845_vm0, %v5026_v11  ;;  %v3061_v42 = vadd.f32 %v5706_v46, %v3060_v17  ;;  %4596 = vmatprep.mubr.msk.bf16.mxu1 %vm1845_vm0, %v5035_v63  ;;  %v5047_v11 = vld [vmem:[%s5242_s26 + $0x784] ss:$8 sps:$4 sm:$0xff]  }
 0x19e   : > { %v2486_v53 = vpop.f32.mrf.mxu0  ;;  %v3062_v4 = vpop.f32.mrf.mxu1 }
 0x19f   : > { %v3509_v22 = vmax.f32 %v2485_v45, 0.0  ;;  %v5744_v19 = vmax.f32 %v3814_v18, %v3652_v50  ;;  %v3653_v20 = vmax.f32 %v3061_v42, 0.0 }
 0x1a0   : > { %v2487_v27 = vpop.f32.mrf.mxu0  ;;  %v3063_v58 = vpop.f32.mrf.mxu1 }
 0x1a1   : > { %v3815_v57 = vmax.f32 %v5604_v12, %v3509_v22  ;;  %v2488_v2 = vadd.f32 %v5706_v46, %v2487_v27  ;;  %v3064_v16 = vadd.f32 %v5706_v46, %v3063_v58  ;;  %v5049_v58 = vld [vmem:[%s5242_s26 + $0x780] ss:$8 sps:$4 sm:$0xff]  }
 0x1a2   : > { %v2489_v34 = vpop.f32.mrf.mxu0  ;;  %v3065_v35 = vpop.f32.mrf.mxu1 }
 0x1a3   : > { %v3510_v36 = vmax.f32 %v2488_v2, 0.0  ;;  %v5753_v37 = vmax.f32 %v3815_v57, %v3653_v20  ;;  %v3654_v13 = vmax.f32 %v3064_v16, 0.0  ;;  %v5044_v16 = vld [vmem:[%s5242_s26 + $0x314] ss:$8 sps:$4 sm:$0xff]  }
 0x1a4   : > { %v2492_v47 = vpop.f32.mrf.mxu0  ;;  %2683 = vmatmul.mubr.bf16.gmra.mxu0 %v5028_v30  ;;  %v3068_v48 = vpop.f32.mrf.mxu1  ;;  %3259 = vmatmul.mubr.bf16.gmra.mxu1 %v5037_v31  ;;  %v5040_v30 = vld [vmem:[%s5242_s26 + $0x300] ss:$8 sps:$4 sm:$0xff]  }
 0x1a5   : > { %v3816_v49 = vmax.f32 %v5611_v25, %v3510_v36  ;;  %v2493_v12 = vadd.f32 %v5706_v46, %v2492_v47  ;;  %4525 = vmatprep.mubr.msk.bf16.mxu0 %vm1845_vm0, %v5032_v33  ;;  %v3069_v7 = vadd.f32 %v5706_v46, %v3068_v48  ;;  %4597 = vmatprep.mubr.msk.bf16.mxu1 %vm1845_vm0, %v5041_v32  ;;  %v5053_v33 = vld [vmem:[%s5242_s26 + $0x794] ss:$8 sps:$4 sm:$0xff]  }
 0x1a6   : > { %v2494_v15 = vpop.f32.mrf.mxu0  ;;  %v3070_v28 = vpop.f32.mrf.mxu1 }
 0x1a7   : > { %v3511_v44 = vmax.f32 %v2493_v12, 0.0  ;;  %v5760_v0 = vmax.f32 %v3816_v49, %v3654_v13  ;;  %v3655_v60 = vmax.f32 %v3069_v7, 0.0 }
 0x1a8   : > { %v2495_v61 = vpop.f32.mrf.mxu0  ;;  %v3071_v25 = vpop.f32.mrf.mxu1 }
 0x1a9   : > { %v3817_v21 = vmax.f32 %v5620_v43, %v3511_v44  ;;  %v2496_v29 = vadd.f32 %v5706_v46, %v2495_v61  ;;  %v3072_v40 = vadd.f32 %v5706_v46, %v3071_v25  ;;  %v5055_v25 = vld [vmem:[%s5242_s26 + $0x790] ss:$8 sps:$4 sm:$0xff]  }
 0x1aa   : > { %v2497_v63 = vpop.f32.mrf.mxu0  ;;  %v3073_v1 = vpop.f32.mrf.mxu1 }
 0x1ab   : > { %v3512_v3 = vmax.f32 %v2496_v29, 0.0  ;;  %v5769_v5 = vmax.f32 %v3817_v21, %v3655_v60  ;;  %v3656_v45 = vmax.f32 %v3072_v40, 0.0  ;;  %v5050_v40 = vld [vmem:[%s5242_s26 + $0x324] ss:$8 sps:$4 sm:$0xff]  }
 0x1ac   : > { %v2500_v14 = vpop.f32.mrf.mxu0  ;;  %2691 = vmatmul.mubr.bf16.gmra.mxu0 %v5034_v62  ;;  %v3076_v17 = vpop.f32.mrf.mxu1  ;;  %3267 = vmatmul.mubr.bf16.gmra.mxu1 %v5043_v26  ;;  %v5046_v62 = vld [vmem:[%s5242_s26 + $0x310] ss:$8 sps:$4 sm:$0xff]  }
 0x1ad   : > { %v3818_v18 = vmax.f32 %v5627_v55, %v3512_v3  ;;  %v2501_v43 = vadd.f32 %v5706_v46, %v2500_v14  ;;  %4526 = vmatprep.mubr.msk.bf16.mxu0 %vm1845_vm0, %v5038_v56  ;;  %v3077_v50 = vadd.f32 %v5706_v46, %v3076_v17  ;;  %4598 = vmatprep.mubr.msk.bf16.mxu1 %vm1845_vm0, %v5047_v11  ;;  %v5059_v56 = vld [vmem:[%s5242_s26 + $0x7a4] ss:$8 sps:$4 sm:$0xff]  }
 0x1ae   : > { %v2502_v42 = vpop.f32.mrf.mxu0  ;;  %v3078_v53 = vpop.f32.mrf.mxu1 }
 0x1af   : > { %v3513_v4 = vmax.f32 %v2501_v43, 0.0  ;;  %v5776_v22 = vmax.f32 %v3818_v18, %v3656_v45  ;;  %v3657_v20 = vmax.f32 %v3077_v50, 0.0 }
 0x1b0   : > { %v2503_v27 = vpop.f32.mrf.mxu0  ;;  %v3079_v55 = vpop.f32.mrf.mxu1 }
 0x1b1   : > { %v3819_v31 = vmax.f32 %v5636_v10, %v3513_v4  ;;  %v2504_v57 = vadd.f32 %v5706_v46, %v2503_v27  ;;  %v3080_v2 = vadd.f32 %v5706_v46, %v3079_v55  ;;  %v5061_v55 = vld [vmem:[%s5242_s26 + $0x7a0] ss:$8 sps:$4 sm:$0xff]  }
 0x1b2   : > { %v2505_v32 = vpop.f32.mrf.mxu0  ;;  %v3081_v34 = vpop.f32.mrf.mxu1 }
 0x1b3   : > { %v3514_v35 = vmax.f32 %v2504_v57, 0.0  ;;  %v5785_v36 = vmax.f32 %v3819_v31, %v3657_v20  ;;  %v3658_v12 = vmax.f32 %v3080_v2, 0.0  ;;  %v5056_v2 = vld [vmem:[%s5242_s26 + $0x334] ss:$8 sps:$4 sm:$0xff]  }
 0x1b4   : > { %v2508_v47 = vpop.f32.mrf.mxu0  ;;  %2699 = vmatmul.mubr.bf16.gmra.mxu0 %v5040_v30  ;;  %v3084_v48 = vpop.f32.mrf.mxu1  ;;  %3275 = vmatmul.mubr.bf16.gmra.mxu1 %v5049_v58  ;;  %v5052_v30 = vld [vmem:[%s5242_s26 + $0x320] ss:$8 sps:$4 sm:$0xff]  }
 0x1b5   : > { %v3820_v49 = vmax.f32 %v5643_v24, %v3514_v35  ;;  %v2509_v10 = vadd.f32 %v5706_v46, %v2508_v47  ;;  %4527 = vmatprep.mubr.msk.bf16.mxu0 %vm1845_vm0, %v5044_v16  ;;  %v3085_v13 = vadd.f32 %v5706_v46, %v3084_v48  ;;  %4599 = vmatprep.mubr.msk.bf16.mxu1 %vm1845_vm0, %v5053_v33  ;;  %v5065_v16 = vld [vmem:[%s5242_s26 + $0x7b4] ss:$8 sps:$4 sm:$0xff]  }
 0x1b6   : > { %v2510_v7 = vpop.f32.mrf.mxu0  ;;  %v3086_v15 = vpop.f32.mrf.mxu1 }
 0x1b7   : > { %v3515_v28 = vmax.f32 %v2509_v10, 0.0  ;;  %v5792_v44 = vmax.f32 %v3820_v49, %v3658_v12  ;;  %v3659_v60 = vmax.f32 %v3085_v13, 0.0 }
 0x1b8   : > { %v2511_v61 = vpop.f32.mrf.mxu0  ;;  %v3087_v24 = vpop.f32.mrf.mxu1 }
 0x1b9   : > { %v3821_v26 = vmax.f32 %v5652_v41, %v3515_v28  ;;  %v2512_v21 = vadd.f32 %v5706_v46, %v2511_v61  ;;  %v3088_v29 = vadd.f32 %v5706_v46, %v3087_v24  ;;  %v5067_v24 = vld [vmem:[%s5242_s26 + $0x7b0] ss:$8 sps:$4 sm:$0xff]  }
 0x1ba   : > { %v2513_v11 = vpop.f32.mrf.mxu0  ;;  %v3089_v63 = vpop.f32.mrf.mxu1 }
 0x1bb   : > { %v3516_v1 = vmax.f32 %v2512_v21, 0.0  ;;  %v5801_v3 = vmax.f32 %v3821_v26, %v3659_v60  ;;  %v3660_v43 = vmax.f32 %v3088_v29, 0.0  ;;  %v5062_v29 = vld [vmem:[%s5242_s26 + $0x344] ss:$8 sps:$4 sm:$0xff]  }
 0x1bc   : > { %v2516_v14 = vpop.f32.mrf.mxu0  ;;  %2707 = vmatmul.mubr.bf16.gmra.mxu0 %v5046_v62  ;;  %v3092_v17 = vpop.f32.mrf.mxu1  ;;  %3283 = vmatmul.mubr.bf16.gmra.mxu1 %v5055_v25  ;;  %v5058_v62 = vld [vmem:[%s5242_s26 + $0x330] ss:$8 sps:$4 sm:$0xff]  }
 0x1bd   : > { %v3822_v18 = vmax.f32 %v5659_v54, %v3516_v1  ;;  %v2517_v41 = vadd.f32 %v5706_v46, %v2516_v14  ;;  %4528 = vmatprep.mubr.msk.bf16.mxu0 %vm1845_vm0, %v5050_v40  ;;  %v3093_v45 = vadd.f32 %v5706_v46, %v3092_v17  ;;  %4600 = vmatprep.mubr.msk.bf16.mxu1 %vm1845_vm0, %v5059_v56  ;;  %v5071_v40 = vld [vmem:[%s5242_s26 + $0x7c4] ss:$8 sps:$4 sm:$0xff]  }
 0x1be   : > { %v2518_v50 = vpop.f32.mrf.mxu0  ;;  %v3094_v42 = vpop.f32.mrf.mxu1 }
 0x1bf   : > { %v3517_v53 = vmax.f32 %v2517_v41, 0.0  ;;  %v5808_v4 = vmax.f32 %v3822_v18, %v3660_v43  ;;  %v3661_v20 = vmax.f32 %v3093_v45, 0.0 }
 0x1c0   : > { %v2519_v27 = vpop.f32.mrf.mxu0  ;;  %v3095_v54 = vpop.f32.mrf.mxu1 }
 0x1c1   : > { %v3823_v58 = vmax.f32 %v5668_v9, %v3517_v53  ;;  %v2520_v31 = vadd.f32 %v5706_v46, %v2519_v27  ;;  %v3096_v57 = vadd.f32 %v5706_v46, %v3095_v54  ;;  %v5073_v54 = vld [vmem:[%s5242_s26 + $0x7c0] ss:$8 sps:$4 sm:$0xff]  }
 0x1c2   : > { %v2521_v33 = vpop.f32.mrf.mxu0  ;;  %v3097_v32 = vpop.f32.mrf.mxu1 }
 0x1c3   : > { %v3518_v34 = vmax.f32 %v2520_v31, 0.0  ;;  %v5817_v35 = vmax.f32 %v3823_v58, %v3661_v20  ;;  %v3662_v10 = vmax.f32 %v3096_v57, 0.0  ;;  %v5068_v57 = vld [vmem:[%s5242_s26 + $0x354] ss:$8 sps:$4 sm:$0xff]  }
 0x1c4   : > { %v2524_v47 = vpop.f32.mrf.mxu0  ;;  %2715 = vmatmul.mubr.bf16.gmra.mxu0 %v5052_v30  ;;  %v3100_v48 = vpop.f32.mrf.mxu1  ;;  %3291 = vmatmul.mubr.bf16.gmra.mxu1 %v5061_v55  ;;  %v5064_v30 = vld [vmem:[%s5242_s26 + $0x340] ss:$8 sps:$4 sm:$0xff]  }
 0x1c5   : > { %v3824_v49 = vmax.f32 %v5675_v23, %v3518_v34  ;;  %v2525_v9 = vadd.f32 %v5706_v46, %v2524_v47  ;;  %4529 = vmatprep.mubr.msk.bf16.mxu0 %vm1845_vm0, %v5056_v2  ;;  %v3101_v12 = vadd.f32 %v5706_v46, %v3100_v48  ;;  %4601 = vmatprep.mubr.msk.bf16.mxu1 %vm1845_vm0, %v5065_v16  ;;  %v5077_v2 = vld [vmem:[%s5242_s26 + $0x7d4] ss:$8 sps:$4 sm:$0xff]  }
 0x1c6   : > { %v2526_v13 = vpop.f32.mrf.mxu0  ;;  %v3102_v7 = vpop.f32.mrf.mxu1 }
 0x1c7   : > { %v3519_v15 = vmax.f32 %v2525_v9, 0.0  ;;  %v5824_v28 = vmax.f32 %v3824_v49, %v3662_v10  ;;  %v3663_v60 = vmax.f32 %v3101_v12, 0.0 }
 0x1c8   : > { %v2527_v61 = vpop.f32.mrf.mxu0  ;;  %v3103_v23 = vpop.f32.mrf.mxu1 }
 0x1c9   : > { %v3825_v25 = vmax.f32 %v5684_v39, %v3519_v15  ;;  %v2528_v26 = vadd.f32 %v5706_v46, %v2527_v61  ;;  %v3104_v21 = vadd.f32 %v5706_v46, %v3103_v23  ;;  %v5079_v23 = vld [vmem:[%s5242_s26 + $0x7d0] ss:$8 sps:$4 sm:$0xff]  }
 0x1ca   : > { %v2529_v56 = vpop.f32.mrf.mxu0  ;;  %v3105_v11 = vpop.f32.mrf.mxu1 }
 0x1cb   : > { %v3520_v63 = vmax.f32 %v2528_v26, 0.0  ;;  %v5833_v1 = vmax.f32 %v3825_v25, %v3663_v60  ;;  %v3664_v41 = vmax.f32 %v3104_v21, 0.0  ;;  %v5074_v21 = vld [vmem:[%s5242_s26 + $0x364] ss:$8 sps:$4 sm:$0xff]  }
 0x1cc   : > { %v2532_v14 = vpop.f32.mrf.mxu0  ;;  %2723 = vmatmul.mubr.bf16.gmra.mxu0 %v5058_v62  ;;  %v3108_v17 = vpop.f32.mrf.mxu1  ;;  %3299 = vmatmul.mubr.bf16.gmra.mxu1 %v5067_v24  ;;  %v5070_v62 = vld [vmem:[%s5242_s26 + $0x350] ss:$8 sps:$4 sm:$0xff]  }
 0x1cd   : > { %v3826_v18 = vmax.f32 %v5691_v52, %v3520_v63  ;;  %v2533_v39 = vadd.f32 %v5706_v46, %v2532_v14  ;;  %4530 = vmatprep.mubr.msk.bf16.mxu0 %vm1845_vm0, %v5062_v29  ;;  %v3109_v43 = vadd.f32 %v5706_v46, %v3108_v17  ;;  %4602 = vmatprep.mubr.msk.bf16.mxu1 %vm1845_vm0, %v5071_v40  ;;  %v5083_v29 = vld [vmem:[%s5242_s26 + $0x7e4] ss:$8 sps:$4 sm:$0xff]  }
 0x1ce   : > { %v2534_v45 = vpop.f32.mrf.mxu0  ;;  %v3110_v50 = vpop.f32.mrf.mxu1 }
 0x1cf   : > { %v3521_v42 = vmax.f32 %v2533_v39, 0.0  ;;  %v5840_v53 = vmax.f32 %v3826_v18, %v3664_v41  ;;  %v3665_v20 = vmax.f32 %v3109_v43, 0.0 }
 0x1d0   : > { %v2535_v27 = vpop.f32.mrf.mxu0  ;;  %v3111_v52 = vpop.f32.mrf.mxu1 }
 0x1d1   : > { %v3845_v55 = vmax.f32 %v5700_v8, %v3521_v42  ;;  %v2536_v58 = vadd.f32 %v5706_v46, %v2535_v27  ;;  %v3112_v31 = vadd.f32 %v5706_v46, %v3111_v52  ;;  %v5085_v52 = vld [vmem:[%s5242_s26 + $0x7e0] ss:$8 sps:$4 sm:$0xff]  }
 0x1d2   : > { %v2537_v16 = vpop.f32.mrf.mxu0  ;;  %v3113_v33 = vpop.f32.mrf.mxu1 }
 0x1d3   : > { %v3522_v32 = vmax.f32 %v2536_v58, 0.0  ;;  %v5849_v34 = vmax.f32 %v3845_v55, %v3665_v20  ;;  %v3666_v9 = vmax.f32 %v3112_v31, 0.0  ;;  %v5080_v31 = vld [vmem:[%s5242_s26 + $0x374] ss:$8 sps:$4 sm:$0xff]  }
 0x1d4   : > { %v2540_v47 = vpop.f32.mrf.mxu0  ;;  %2731 = vmatmul.mubr.bf16.gmra.mxu0 %v5064_v30  ;;  %v3116_v48 = vpop.f32.mrf.mxu1  ;;  %3307 = vmatmul.mubr.bf16.gmra.mxu1 %v5073_v54  ;;  %v5076_v30 = vld [vmem:[%s5242_s26 + $0x360] ss:$8 sps:$4 sm:$0xff]  }
 0x1d5   : > { %v3846_v49 = vmax.f32 %v5712_v59, %v3522_v32  ;;  %v2541_v8 = vadd.f32 %v5706_v46, %v2540_v47  ;;  %4531 = vmatprep.mubr.msk.bf16.mxu0 %vm1845_vm0, %v5068_v57  ;;  %v3117_v10 = vadd.f32 %v5706_v46, %v3116_v48  ;;  %4603 = vmatprep.mubr.msk.bf16.mxu1 %vm1845_vm0, %v5077_v2  ;;  %v5089_v57 = vld [vmem:[%s5242_s26 + $0x7f4] ss:$8 sps:$4 sm:$0xff]  }
 0x1d6   : > { %v2542_v12 = vpop.f32.mrf.mxu0  ;;  %v3118_v13 = vpop.f32.mrf.mxu1 }
 0x1d7   : > { %v3523_v7 = vmax.f32 %v2541_v8, 0.0  ;;  %v5856_v15 = vmax.f32 %v3846_v49, %v3666_v9  ;;  %v3667_v60 = vmax.f32 %v3117_v10, 0.0 }
 0x1d8   : > { %v2543_v61 = vpop.f32.mrf.mxu0  ;;  %v3119_v59 = vpop.f32.mrf.mxu1 }
 0x1d9   : > { %v3847_v24 = vmax.f32 %v5721_v38, %v3523_v7  ;;  %v2544_v25 = vadd.f32 %v5706_v46, %v2543_v61  ;;  %v3120_v26 = vadd.f32 %v5706_v46, %v3119_v59  ;;  %v5091_v59 = vld [vmem:[%s5242_s26 + $0x7f0] ss:$8 sps:$4 sm:$0xff]  }
 0x1da   : > { %v2545_v40 = vpop.f32.mrf.mxu0  ;;  %v3121_v56 = vpop.f32.mrf.mxu1 }
 0x1db   : > { %v3524_v11 = vmax.f32 %v2544_v25, 0.0  ;;  %v5865_v63 = vmax.f32 %v3847_v24, %v3667_v60  ;;  %v3668_v39 = vmax.f32 %v3120_v26, 0.0  ;;  %v5086_v26 = vld [vmem:[%s5242_s26 + $0x384] ss:$8 sps:$4 sm:$0xff]  }
 0x1dc   : > { %v2548_v14 = vpop.f32.mrf.mxu0  ;;  %2739 = vmatmul.mubr.bf16.gmra.mxu0 %v5070_v62  ;;  %v3124_v17 = vpop.f32.mrf.mxu1  ;;  %3315 = vmatmul.mubr.bf16.gmra.mxu1 %v5079_v23  ;;  %v5082_v62 = vld [vmem:[%s5242_s26 + $0x370] ss:$8 sps:$4 sm:$0xff]  }
 0x1dd   : > { %v3848_v18 = vmax.f32 %v5728_v51, %v3524_v11  ;;  %v2549_v38 = vadd.f32 %v5706_v46, %v2548_v14  ;;  %4532 = vmatprep.mubr.msk.bf16.mxu0 %vm1845_vm0, %v5074_v21  ;;  %v3125_v41 = vadd.f32 %v5706_v46, %v3124_v17  ;;  %4604 = vmatprep.mubr.msk.bf16.mxu1 %vm1845_vm0, %v5083_v29  ;;  %v5095_v21 = vld [vmem:[%s5242_s26 + $0x804] ss:$8 sps:$4 sm:$0xff]  }
 0x1de   : > { %v2550_v43 = vpop.f32.mrf.mxu0  ;;  %v3126_v45 = vpop.f32.mrf.mxu1 }
 0x1df   : > { %v3525_v50 = vmax.f32 %v2549_v38, 0.0  ;;  %v5872_v42 = vmax.f32 %v3848_v18, %v3668_v39  ;;  %v3669_v20 = vmax.f32 %v3125_v41, 0.0 }
 0x1e0   : > { %v2551_v27 = vpop.f32.mrf.mxu0  ;;  %v3127_v51 = vpop.f32.mrf.mxu1 }
 0x1e1   : > { %v3849_v54 = vmax.f32 %v5737_v6, %v3525_v50  ;;  %v2552_v55 = vadd.f32 %v5706_v46, %v2551_v27  ;;  %v3128_v58 = vadd.f32 %v5706_v46, %v3127_v51  ;;  %v5097_v51 = vld [vmem:[%s5242_s26 + $0x800] ss:$8 sps:$4 sm:$0xff]  }
 0x1e2   : > { %v2553_v2 = vpop.f32.mrf.mxu0  ;;  %v3129_v16 = vpop.f32.mrf.mxu1 }
 0x1e3   : > { %v3526_v33 = vmax.f32 %v2552_v55, 0.0  ;;  %v5881_v32 = vmax.f32 %v3849_v54, %v3669_v20  ;;  %v3670_v8 = vmax.f32 %v3128_v58, 0.0  ;;  %v5092_v58 = vld [vmem:[%s5242_s26 + $0x394] ss:$8 sps:$4 sm:$0xff]  }
 0x1e4   : > { %v2556_v47 = vpop.f32.mrf.mxu0  ;;  %2747 = vmatmul.mubr.bf16.gmra.mxu0 %v5076_v30  ;;  %v3132_v48 = vpop.f32.mrf.mxu1  ;;  %3323 = vmatmul.mubr.bf16.gmra.mxu1 %v5085_v52  ;;  %v5088_v30 = vld [vmem:[%s5242_s26 + $0x380] ss:$8 sps:$4 sm:$0xff]  }
 0x1e5   : > { %v3850_v49 = vmax.f32 %v5744_v19, %v3526_v33  ;;  %v2557_v6 = vadd.f32 %v5706_v46, %v2556_v47  ;;  %4533 = vmatprep.mubr.msk.bf16.mxu0 %vm1845_vm0, %v5080_v31  ;;  %v3133_v9 = vadd.f32 %v5706_v46, %v3132_v48  ;;  %4605 = vmatprep.mubr.msk.bf16.mxu1 %vm1845_vm0, %v5089_v57  ;;  %v5101_v31 = vld [vmem:[%s5242_s26 + $0x814] ss:$8 sps:$4 sm:$0xff]  }
 0x1e6   : > { %v2558_v10 = vpop.f32.mrf.mxu0  ;;  %v3134_v12 = vpop.f32.mrf.mxu1 }
 0x1e7   : > { %v3527_v13 = vmax.f32 %v2557_v6, 0.0  ;;  %v5888_v7 = vmax.f32 %v3850_v49, %v3670_v8  ;;  %v3671_v60 = vmax.f32 %v3133_v9, 0.0 }
 0x1e8   : > { %v2559_v61 = vpop.f32.mrf.mxu0  ;;  %v3135_v19 = vpop.f32.mrf.mxu1 }
 0x1e9   : > { %v3851_v23 = vmax.f32 %v5753_v37, %v3527_v13  ;;  %v2560_v24 = vadd.f32 %v5706_v46, %v2559_v61  ;;  %v3136_v25 = vadd.f32 %v5706_v46, %v3135_v19  ;;  %v5103_v19 = vld [vmem:[%s5242_s26 + $0x810] ss:$8 sps:$4 sm:$0xff]  }
 0x1ea   : > { %v2561_v29 = vpop.f32.mrf.mxu0  ;;  %v3137_v40 = vpop.f32.mrf.mxu1 }
 0x1eb   : > { %v3528_v56 = vmax.f32 %v2560_v24, 0.0  ;;  %v5897_v11 = vmax.f32 %v3851_v23, %v3671_v60  ;;  %v3672_v38 = vmax.f32 %v3136_v25, 0.0  ;;  %v5098_v25 = vld [vmem:[%s5242_s26 + $0x3a4] ss:$8 sps:$4 sm:$0xff]  }
 0x1ec   : > { %v2564_v14 = vpop.f32.mrf.mxu0  ;;  %2755 = vmatmul.mubr.bf16.gmra.mxu0 %v5082_v62  ;;  %v3140_v17 = vpop.f32.mrf.mxu1  ;;  %3331 = vmatmul.mubr.bf16.gmra.mxu1 %v5091_v59  ;;  %v5094_v62 = vld [vmem:[%s5242_s26 + $0x390] ss:$8 sps:$4 sm:$0xff]  }
 0x1ed   : > { %v3852_v18 = vmax.f32 %v5760_v0, %v3528_v56  ;;  %v2565_v37 = vadd.f32 %v5706_v46, %v2564_v14  ;;  %4534 = vmatprep.mubr.msk.bf16.mxu0 %vm1845_vm0, %v5086_v26  ;;  %v3141_v39 = vadd.f32 %v5706_v46, %v3140_v17  ;;  %4606 = vmatprep.mubr.msk.bf16.mxu1 %vm1845_vm0, %v5095_v21  ;;  %v5107_v26 = vld [vmem:[%s5242_s26 + $0x824] ss:$8 sps:$4 sm:$0xff]  }
 0x1ee   : > { %v2566_v41 = vpop.f32.mrf.mxu0  ;;  %v3142_v43 = vpop.f32.mrf.mxu1 }
 0x1ef   : > { %v3529_v45 = vmax.f32 %v2565_v37, 0.0  ;;  %v5904_v50 = vmax.f32 %v3852_v18, %v3672_v38  ;;  %v3673_v20 = vmax.f32 %v3141_v39, 0.0 }
 0x1f0   : > { %v2567_v27 = vpop.f32.mrf.mxu0  ;;  %v3143_v0 = vpop.f32.mrf.mxu1 }
 0x1f1   : > { %v3853_v52 = vmax.f32 %v5769_v5, %v3529_v45  ;;  %v2568_v54 = vadd.f32 %v5706_v46, %v2567_v27  ;;  %v3144_v55 = vadd.f32 %v5706_v46, %v3143_v0  ;;  %v5109_v0 = vld [vmem:[%s5242_s26 + $0x820] ss:$8 sps:$4 sm:$0xff]  }
 0x1f2   : > { %v2569_v57 = vpop.f32.mrf.mxu0  ;;  %v3145_v2 = vpop.f32.mrf.mxu1 }
 0x1f3   : > { %v3530_v16 = vmax.f32 %v2568_v54, 0.0  ;;  %v5913_v33 = vmax.f32 %v3853_v52, %v3673_v20  ;;  %v3674_v6 = vmax.f32 %v3144_v55, 0.0  ;;  %v5104_v55 = vld [vmem:[%s5242_s26 + $0x3b4] ss:$8 sps:$4 sm:$0xff]  }
 0x1f4   : > { %v2572_v47 = vpop.f32.mrf.mxu0  ;;  %2763 = vmatmul.mubr.bf16.gmra.mxu0 %v5088_v30  ;;  %v3148_v48 = vpop.f32.mrf.mxu1  ;;  %3339 = vmatmul.mubr.bf16.gmra.mxu1 %v5097_v51  ;;  %v5100_v30 = vld [vmem:[%s5242_s26 + $0x3a0] ss:$8 sps:$4 sm:$0xff]  }
 0x1f5   : > { %v3854_v49 = vmax.f32 %v5776_v22, %v3530_v16  ;;  %v2573_v5 = vadd.f32 %v5706_v46, %v2572_v47  ;;  %4535 = vmatprep.mubr.msk.bf16.mxu0 %vm1845_vm0, %v5092_v58  ;;  %v3149_v8 = vadd.f32 %v5706_v46, %v3148_v48  ;;  %4607 = vmatprep.mubr.msk.bf16.mxu1 %vm1845_vm0, %v5101_v31  ;;  %v5113_v58 = vld [vmem:[%s5242_s26 + $0x834] ss:$8 sps:$4 sm:$0xff]  }
 0x1f6   : > { %v2574_v9 = vpop.f32.mrf.mxu0  ;;  %v3150_v10 = vpop.f32.mrf.mxu1 }
 0x1f7   : > { %v3531_v12 = vmax.f32 %v2573_v5, 0.0  ;;  %v5920_v13 = vmax.f32 %v3854_v49, %v3674_v6  ;;  %v3675_v60 = vmax.f32 %v3149_v8, 0.0 }
 0x1f8   : > { %v2575_v61 = vpop.f32.mrf.mxu0  ;;  %v3151_v22 = vpop.f32.mrf.mxu1 }
 0x1f9   : > { %v3855_v59 = vmax.f32 %v5785_v36, %v3531_v12  ;;  %v2576_v23 = vadd.f32 %v5706_v46, %v2575_v61  ;;  %v3152_v24 = vadd.f32 %v5706_v46, %v3151_v22  ;;  %v5115_v22 = vld [vmem:[%s5242_s26 + $0x830] ss:$8 sps:$4 sm:$0xff]  }
 0x1fa   : > { %v2577_v21 = vpop.f32.mrf.mxu0  ;;  %v3153_v29 = vpop.f32.mrf.mxu1 }
 0x1fb   : > { %v3532_v40 = vmax.f32 %v2576_v23, 0.0  ;;  %v5929_v56 = vmax.f32 %v3855_v59, %v3675_v60  ;;  %v3676_v37 = vmax.f32 %v3152_v24, 0.0  ;;  %v5110_v24 = vld [vmem:[%s5242_s26 + $0x3c4] ss:$8 sps:$4 sm:$0xff]  }
 0x1fc   : > { %v2580_v14 = vpop.f32.mrf.mxu0  ;;  %2771 = vmatmul.mubr.bf16.gmra.mxu0 %v5094_v62  ;;  %v3156_v17 = vpop.f32.mrf.mxu1  ;;  %3347 = vmatmul.mubr.bf16.gmra.mxu1 %v5103_v19  ;;  %v5106_v62 = vld [vmem:[%s5242_s26 + $0x3b0] ss:$8 sps:$4 sm:$0xff]  }
 0x1fd   : > { %v3856_v18 = vmax.f32 %v5792_v44, %v3532_v40  ;;  %v2581_v36 = vadd.f32 %v5706_v46, %v2580_v14  ;;  %4536 = vmatprep.mubr.msk.bf16.mxu0 %vm1845_vm0, %v5098_v25  ;;  %v3157_v38 = vadd.f32 %v5706_v46, %v3156_v17  ;;  %4608 = vmatprep.mubr.msk.bf16.mxu1 %vm1845_vm0, %v5107_v26  ;;  %v5119_v25 = vld [vmem:[%s5242_s26 + $0x844] ss:$8 sps:$4 sm:$0xff]  }
 0x1fe   : > { %v2582_v39 = vpop.f32.mrf.mxu0  ;;  %v3158_v41 = vpop.f32.mrf.mxu1 }
 0x1ff   : > { %v3533_v43 = vmax.f32 %v2581_v36, 0.0  ;;  %v5936_v45 = vmax.f32 %v3856_v18, %v3676_v37  ;;  %v3677_v20 = vmax.f32 %v3157_v38, 0.0 }
 0x200   : > { %v2583_v27 = vpop.f32.mrf.mxu0  ;;  %v3159_v44 = vpop.f32.mrf.mxu1 }
 0x201   : > { %v3857_v51 = vmax.f32 %v5801_v3, %v3533_v43  ;;  %v2584_v52 = vadd.f32 %v5706_v46, %v2583_v27  ;;  %v3160_v54 = vadd.f32 %v5706_v46, %v3159_v44  ;;  %v5121_v44 = vld [vmem:[%s5242_s26 + $0x840] ss:$8 sps:$4 sm:$0xff]  }
 0x202   : > { %v2585_v31 = vpop.f32.mrf.mxu0  ;;  %v3161_v57 = vpop.f32.mrf.mxu1 }
 0x203   : > { %v3534_v2 = vmax.f32 %v2584_v52, 0.0  ;;  %v5945_v16 = vmax.f32 %v3857_v51, %v3677_v20  ;;  %v3678_v5 = vmax.f32 %v3160_v54, 0.0  ;;  %v5116_v54 = vld [vmem:[%s5242_s26 + $0x3d4] ss:$8 sps:$4 sm:$0xff]  }
 0x204   : > { %v2588_v47 = vpop.f32.mrf.mxu0  ;;  %2779 = vmatmul.mubr.bf16.gmra.mxu0 %v5100_v30  ;;  %v3164_v48 = vpop.f32.mrf.mxu1  ;;  %3355 = vmatmul.mubr.bf16.gmra.mxu1 %v5109_v0  ;;  %v5112_v30 = vld [vmem:[%s5242_s26 + $0x3c0] ss:$8 sps:$4 sm:$0xff]  }
 0x205   : > { %v3858_v49 = vmax.f32 %v5808_v4, %v3534_v2  ;;  %v2589_v3 = vadd.f32 %v5706_v46, %v2588_v47  ;;  %4537 = vmatprep.mubr.msk.bf16.mxu0 %vm1845_vm0, %v5104_v55  ;;  %v3165_v6 = vadd.f32 %v5706_v46, %v3164_v48  ;;  %4609 = vmatprep.mubr.msk.bf16.mxu1 %vm1845_vm0, %v5113_v58  ;;  %v5125_v55 = vld [vmem:[%s5242_s26 + $0x854] ss:$8 sps:$4 sm:$0xff]  }
 0x206   : > { %v2590_v8 = vpop.f32.mrf.mxu0  ;;  %v3166_v9 = vpop.f32.mrf.mxu1 }
 0x207   : > { %v3535_v10 = vmax.f32 %v2589_v3, 0.0  ;;  %v5952_v12 = vmax.f32 %v3858_v49, %v3678_v5  ;;  %v3679_v60 = vmax.f32 %v3165_v6, 0.0 }
 0x208   : > { %v2591_v61 = vpop.f32.mrf.mxu0  ;;  %v3167_v4 = vpop.f32.mrf.mxu1 }
 0x209   : > { %v3859_v19 = vmax.f32 %v5817_v35, %v3535_v10  ;;  %v2592_v59 = vadd.f32 %v5706_v46, %v2591_v61  ;;  %v3168_v23 = vadd.f32 %v5706_v46, %v3167_v4  ;;  %v5127_v4 = vld [vmem:[%s5242_s26 + $0x850] ss:$8 sps:$4 sm:$0xff]  }
 0x20a   : > { %v2593_v26 = vpop.f32.mrf.mxu0  ;;  %v3169_v21 = vpop.f32.mrf.mxu1 }
 0x20b   : > { %v3536_v29 = vmax.f32 %v2592_v59, 0.0  ;;  %v5961_v40 = vmax.f32 %v3859_v19, %v3679_v60  ;;  %v3680_v36 = vmax.f32 %v3168_v23, 0.0  ;;  %v5122_v23 = vld [vmem:[%s5242_s26 + $0x3e4] ss:$8 sps:$4 sm:$0xff]  }
 0x20c   : > { %v2596_v14 = vpop.f32.mrf.mxu0  ;;  %2787 = vmatmul.mubr.bf16.gmra.mxu0 %v5106_v62  ;;  %v3172_v17 = vpop.f32.mrf.mxu1  ;;  %3363 = vmatmul.mubr.bf16.gmra.mxu1 %v5115_v22  ;;  %v5118_v62 = vld [vmem:[%s5242_s26 + $0x3d0] ss:$8 sps:$4 sm:$0xff]  }
 0x20d   : > { %v3860_v18 = vmax.f32 %v5824_v28, %v3536_v29  ;;  %v2597_v35 = vadd.f32 %v5706_v46, %v2596_v14  ;;  %4538 = vmatprep.mubr.msk.bf16.mxu0 %vm1845_vm0, %v5110_v24  ;;  %v3173_v37 = vadd.f32 %v5706_v46, %v3172_v17  ;;  %4610 = vmatprep.mubr.msk.bf16.mxu1 %vm1845_vm0, %v5119_v25  ;;  %v5131_v24 = vld [vmem:[%s5242_s26 + $0x864] ss:$8 sps:$4 sm:$0xff]  }
 0x20e   : > { %v2598_v38 = vpop.f32.mrf.mxu0  ;;  %v3174_v39 = vpop.f32.mrf.mxu1 }
 0x20f   : > { %v3537_v41 = vmax.f32 %v2597_v35, 0.0  ;;  %v5968_v43 = vmax.f32 %v3860_v18, %v3680_v36  ;;  %v3681_v20 = vmax.f32 %v3173_v37, 0.0 }
 0x210   : > { %v2599_v27 = vpop.f32.mrf.mxu0  ;;  %v3175_v28 = vpop.f32.mrf.mxu1 }
 0x211   : > { %v3861_v0 = vmax.f32 %v5833_v1, %v3537_v41  ;;  %v2600_v51 = vadd.f32 %v5706_v46, %v2599_v27  ;;  %v3176_v52 = vadd.f32 %v5706_v46, %v3175_v28  ;;  %v5133_v28 = vld [vmem:[%s5242_s26 + $0x860] ss:$8 sps:$4 sm:$0xff]  }
 0x212   : > { %v2601_v58 = vpop.f32.mrf.mxu0  ;;  %v3177_v31 = vpop.f32.mrf.mxu1 }
 0x213   : > { %v3538_v57 = vmax.f32 %v2600_v51, 0.0  ;;  %v5977_v2 = vmax.f32 %v3861_v0, %v3681_v20  ;;  %v3682_v3 = vmax.f32 %v3176_v52, 0.0  ;;  %v6008_v0 = vld [vmem:[%s6401_s2] ss:$0 sm:$0xff]  ;;  %v5128_v52 = vld [vmem:[%s5242_s26 + $0x3f4] ss:$8 sps:$4 sm:$0xff]  }
 0x214   : > { %v2604_v47 = vpop.f32.mrf.mxu0  ;;  %2795 = vmatmul.mubr.bf16.gmra.mxu0 %v5112_v30  ;;  %v3180_v48 = vpop.f32.mrf.mxu1  ;;  %3371 = vmatmul.mubr.bf16.gmra.mxu1 %v5121_v44  ;;  %v5124_v30 = vld [vmem:[%s5242_s26 + $0x3e0] ss:$8 sps:$4 sm:$0xff]  }
 0x215   : > { %v3862_v49 = vmax.f32 %v5840_v53, %v3538_v57  ;;  %v2605_v1 = vadd.f32 %v5706_v46, %v2604_v47  ;;  %4539 = vmatprep.mubr.msk.bf16.mxu0 %vm1845_vm0, %v5116_v54  ;;  %v3181_v5 = vadd.f32 %v5706_v46, %v3180_v48  ;;  %4611 = vmatprep.mubr.msk.bf16.mxu1 %vm1845_vm0, %v5125_v55  ;;  %v5137_v54 = vld [vmem:[%s5242_s26 + $0x874] ss:$8 sps:$4 sm:$0xff]  }
 0x216   : > { %v2606_v6 = vpop.f32.mrf.mxu0  ;;  %v3182_v8 = vpop.f32.mrf.mxu1 }
 0x217   : > { %v3539_v9 = vmax.f32 %v2605_v1, 0.0  ;;  %v5984_v10 = vmax.f32 %v3862_v49, %v3682_v3  ;;  %v3683_v60 = vmax.f32 %v3181_v5, 0.0 }
 0x218   : > { %v2607_v61 = vpop.f32.mrf.mxu0  ;;  %v3183_v53 = vpop.f32.mrf.mxu1 }
 0x219   : > { %v3881_v22 = vmax.f32 %v5849_v34, %v3539_v9  ;;  %v2608_v19 = vadd.f32 %v5706_v46, %v2607_v61  ;;  %v3184_v59 = vadd.f32 %v5706_v46, %v3183_v53  ;;  %v5139_v53 = vld [vmem:[%s5242_s26 + $0x870] ss:$8 sps:$4 sm:$0xff]  }
 0x21a   : > { %v2609_v25 = vpop.f32.mrf.mxu0  ;;  %v3185_v26 = vpop.f32.mrf.mxu1 }
 0x21b   : > { %v3540_v21 = vmax.f32 %v2608_v19, 0.0  ;;  %v5993_v29 = vmax.f32 %v3881_v22, %v3683_v60  ;;  %v3684_v35 = vmax.f32 %v3184_v59, 0.0  ;;  %v5134_v59 = vld [vmem:[%s5242_s26 + $0x404] ss:$8 sps:$4 sm:$0xff]  }
 0x21c   : > { %v2612_v14 = vpop.f32.mrf.mxu0  ;;  %2803 = vmatmul.mubr.bf16.gmra.mxu0 %v5118_v62  ;;  %v3188_v17 = vpop.f32.mrf.mxu1  ;;  %3379 = vmatmul.mubr.bf16.gmra.mxu1 %v5127_v4  ;;  %v5130_v62 = vld [vmem:[%s5242_s26 + $0x3f0] ss:$8 sps:$4 sm:$0xff]  }
 0x21d   : > { %v3882_v18 = vmax.f32 %v5856_v15, %v3540_v21  ;;  %v2613_v34 = vadd.f32 %v5706_v46, %v2612_v14  ;;  %4540 = vmatprep.mubr.msk.bf16.mxu0 %vm1845_vm0, %v5122_v23  ;;  %v3189_v36 = vadd.f32 %v5706_v46, %v3188_v17  ;;  %4612 = vmatprep.mubr.msk.bf16.mxu1 %vm1845_vm0, %v5131_v24  ;;  %v5143_v23 = vld [vmem:[%s5242_s26 + $0x884] ss:$8 sps:$4 sm:$0xff]  }
 0x21e   : > { %v2614_v37 = vpop.f32.mrf.mxu0  ;;  %v3190_v38 = vpop.f32.mrf.mxu1 }
 0x21f   : > { %v3541_v39 = vmax.f32 %v2613_v34, 0.0  ;;  %v6000_v41 = vmax.f32 %v3882_v18, %v3684_v35  ;;  %v3685_v20 = vmax.f32 %v3189_v36, 0.0 }
 0x220   : > { %v2615_v27 = vpop.f32.mrf.mxu0  ;;  %v3191_v15 = vpop.f32.mrf.mxu1 }
 0x221   : > { %v3883_v44 = vmax.f32 %v5865_v63, %v3541_v39  ;;  %v2616_v46 = vadd.f32 %v6008_v0, %v2615_v27  ;;  %v3192_v51 = vadd.f32 %v6008_v0, %v3191_v15  ;;  %v5145_v15 = vld [vmem:[%s5242_s26 + $0x880] ss:$8 sps:$4 sm:$0xff]  }
 0x222   : > { %v2617_v55 = vpop.f32.mrf.mxu0  ;;  %v3193_v58 = vpop.f32.mrf.mxu1 }
 0x223   : > { %v3542_v31 = vmax.f32 %v2616_v46, 0.0  ;;  %v6014_v57 = vmax.f32 %v3883_v44, %v3685_v20  ;;  %v3686_v1 = vmax.f32 %v3192_v51, 0.0  ;;  %v5140_v51 = vld [vmem:[%s5242_s26 + $0x414] ss:$8 sps:$4 sm:$0xff]  }
 0x224   : > { %v2620_v47 = vpop.f32.mrf.mxu0  ;;  %2811 = vmatmul.mubr.bf16.gmra.mxu0 %v5124_v30  ;;  %v3196_v63 = vpop.f32.mrf.mxu1  ;;  %3387 = vmatmul.mubr.bf16.gmra.mxu1 %v5133_v28  ;;  %v5136_v30 = vld [vmem:[%s5242_s26 + $0x400] ss:$8 sps:$4 sm:$0xff]  }
 0x225   : > { %v3884_v48 = vmax.f32 %v5872_v42, %v3542_v31  ;;  %v2621_v49 = vadd.f32 %v6008_v0, %v2620_v47  ;;  %4541 = vmatprep.mubr.msk.bf16.mxu0 %vm1845_vm0, %v5128_v52  ;;  %v3197_v3 = vadd.f32 %v6008_v0, %v3196_v63  ;;  %4613 = vmatprep.mubr.msk.bf16.mxu1 %vm1845_vm0, %v5137_v54  ;;  %v5149_v52 = vld [vmem:[%s5242_s26 + $0x894] ss:$8 sps:$4 sm:$0xff]  }
 0x226   : > { %v2622_v5 = vpop.f32.mrf.mxu0  ;;  %v3198_v6 = vpop.f32.mrf.mxu1 }
 0x227   : > { %v3543_v8 = vmax.f32 %v2621_v49, 0.0  ;;  %v6021_v9 = vmax.f32 %v3884_v48, %v3686_v1  ;;  %v3687_v60 = vmax.f32 %v3197_v3, 0.0 }
 0x228   : > { %v2623_v61 = vpop.f32.mrf.mxu0  ;;  %v3199_v42 = vpop.f32.mrf.mxu1 }
 0x229   : > { %v3885_v4 = vmax.f32 %v5881_v32, %v3543_v8  ;;  %v2624_v22 = vadd.f32 %v6008_v0, %v2623_v61  ;;  %v3200_v19 = vadd.f32 %v6008_v0, %v3199_v42  ;;  %v5151_v42 = vld [vmem:[%s5242_s26 + $0x890] ss:$8 sps:$4 sm:$0xff]  }
 0x22a   : > { %v2625_v24 = vpop.f32.mrf.mxu0  ;;  %v3201_v25 = vpop.f32.mrf.mxu1 }
 0x22b   : > { %v3544_v26 = vmax.f32 %v2624_v22, 0.0  ;;  %v6030_v21 = vmax.f32 %v3885_v4, %v3687_v60  ;;  %v3688_v34 = vmax.f32 %v3200_v19, 0.0  ;;  %v5146_v19 = vld [vmem:[%s5242_s26 + $0x424] ss:$8 sps:$4 sm:$0xff]  }
 0x22c   : > { %v2628_v14 = vpop.f32.mrf.mxu0  ;;  %2819 = vmatmul.mubr.bf16.gmra.mxu0 %v5130_v62  ;;  %v3204_v17 = vpop.f32.mrf.mxu1  ;;  %3395 = vmatmul.mubr.bf16.gmra.mxu1 %v5139_v53  ;;  %v5142_v62 = vld [vmem:[%s5242_s26 + $0x410] ss:$8 sps:$4 sm:$0xff]  }
 0x22d   : > { %v3886_v18 = vmax.f32 %v5888_v7, %v3544_v26  ;;  %v2629_v32 = vadd.f32 %v6008_v0, %v2628_v14  ;;  %4542 = vmatprep.mubr.msk.bf16.mxu0 %vm1845_vm0, %v5134_v59  ;;  %v3205_v35 = vadd.f32 %v6008_v0, %v3204_v17  ;;  %4614 = vmatprep.mubr.msk.bf16.mxu1 %vm1845_vm0, %v5143_v23  ;;  %v5155_v59 = vld [vmem:[%s5242_s26 + $0x8a4] ss:$8 sps:$4 sm:$0xff]  }
 0x22e   : > { %v2630_v36 = vpop.f32.mrf.mxu0  ;;  %v3206_v37 = vpop.f32.mrf.mxu1 }
 0x22f   : > { %v3545_v38 = vmax.f32 %v2629_v32, 0.0  ;;  %v6037_v39 = vmax.f32 %v3886_v18, %v3688_v34  ;;  %v3689_v20 = vmax.f32 %v3205_v35, 0.0 }
 0x230   : > { %v2631_v27 = vpop.f32.mrf.mxu0  ;;  %v3207_v7 = vpop.f32.mrf.mxu1 }
 0x231   : > { %v3887_v28 = vmax.f32 %v5897_v11, %v3545_v38  ;;  %v2632_v44 = vadd.f32 %v6008_v0, %v2631_v27  ;;  %v3208_v46 = vadd.f32 %v6008_v0, %v3207_v7  ;;  %v5157_v7 = vld [vmem:[%s5242_s26 + $0x8a0] ss:$8 sps:$4 sm:$0xff]  }
 0x232   : > { %v2633_v54 = vpop.f32.mrf.mxu0  ;;  %v3209_v55 = vpop.f32.mrf.mxu1 }
 0x233   : > { %v3546_v58 = vmax.f32 %v2632_v44, 0.0  ;;  %v6046_v31 = vmax.f32 %v3887_v28, %v3689_v20  ;;  %v3690_v49 = vmax.f32 %v3208_v46, 0.0  ;;  %v5152_v46 = vld [vmem:[%s5242_s26 + $0x434] ss:$8 sps:$4 sm:$0xff]  }
 0x234   : > { %v2636_v47 = vpop.f32.mrf.mxu0  ;;  %2827 = vmatmul.mubr.bf16.gmra.mxu0 %v5136_v30  ;;  %v3212_v63 = vpop.f32.mrf.mxu1  ;;  %3403 = vmatmul.mubr.bf16.gmra.mxu1 %v5145_v15  ;;  %v5148_v30 = vld [vmem:[%s5242_s26 + $0x420] ss:$8 sps:$4 sm:$0xff]  }
 0x235   : > { %v3888_v48 = vmax.f32 %v5904_v50, %v3546_v58  ;;  %v2637_v11 = vadd.f32 %v6008_v0, %v2636_v47  ;;  %4543 = vmatprep.mubr.msk.bf16.mxu0 %vm1845_vm0, %v5140_v51  ;;  %v3213_v1 = vadd.f32 %v6008_v0, %v3212_v63  ;;  %4615 = vmatprep.mubr.msk.bf16.mxu1 %vm1845_vm0, %v5149_v52  ;;  %v5161_v51 = vld [vmem:[%s5242_s26 + $0x8b4] ss:$8 sps:$4 sm:$0xff]  }
 0x236   : > { %v2638_v3 = vpop.f32.mrf.mxu0  ;;  %v3214_v5 = vpop.f32.mrf.mxu1 }
 0x237   : > { %v3547_v6 = vmax.f32 %v2637_v11, 0.0  ;;  %v6053_v8 = vmax.f32 %v3888_v48, %v3690_v49  ;;  %v3691_v60 = vmax.f32 %v3213_v1, 0.0 }
 0x238   : > { %v2639_v61 = vpop.f32.mrf.mxu0  ;;  %v3215_v50 = vpop.f32.mrf.mxu1 }
 0x239   : > { %v3889_v53 = vmax.f32 %v5913_v33, %v3547_v6  ;;  %v2640_v4 = vadd.f32 %v6008_v0, %v2639_v61  ;;  %v3216_v22 = vadd.f32 %v6008_v0, %v3215_v50  ;;  %v5163_v50 = vld [vmem:[%s5242_s26 + $0x8b0] ss:$8 sps:$4 sm:$0xff]  }
 0x23a   : > { %v2641_v23 = vpop.f32.mrf.mxu0  ;;  %v3217_v24 = vpop.f32.mrf.mxu1 }
 0x23b   : > { %v3548_v25 = vmax.f32 %v2640_v4, 0.0  ;;  %v6062_v26 = vmax.f32 %v3889_v53, %v3691_v60  ;;  %v3692_v32 = vmax.f32 %v3216_v22, 0.0  ;;  %v5158_v22 = vld [vmem:[%s5242_s26 + $0x444] ss:$8 sps:$4 sm:$0xff]  }
 0x23c   : > { %v2644_v14 = vpop.f32.mrf.mxu0  ;;  %2835 = vmatmul.mubr.bf16.gmra.mxu0 %v5142_v62  ;;  %v3220_v17 = vpop.f32.mrf.mxu1  ;;  %3411 = vmatmul.mubr.bf16.gmra.mxu1 %v5151_v42  ;;  %v5154_v62 = vld [vmem:[%s5242_s26 + $0x430] ss:$8 sps:$4 sm:$0xff]  }
 0x23d   : > { %v3890_v18 = vmax.f32 %v5920_v13, %v3548_v25  ;;  %v2645_v33 = vadd.f32 %v6008_v0, %v2644_v14  ;;  %4544 = vmatprep.mubr.msk.bf16.mxu0 %vm1845_vm0, %v5146_v19  ;;  %v3221_v34 = vadd.f32 %v6008_v0, %v3220_v17  ;;  %4616 = vmatprep.mubr.msk.bf16.mxu1 %vm1845_vm0, %v5155_v59  ;;  %v5167_v19 = vld [vmem:[%s5242_s26 + $0x8c4] ss:$8 sps:$4 sm:$0xff]  }
 0x23e   : > { %v2646_v35 = vpop.f32.mrf.mxu0  ;;  %v3222_v36 = vpop.f32.mrf.mxu1 }
 0x23f   : > { %v3549_v37 = vmax.f32 %v2645_v33, 0.0  ;;  %v6069_v38 = vmax.f32 %v3890_v18, %v3692_v32  ;;  %v3693_v20 = vmax.f32 %v3221_v34, 0.0 }
 0x240   : > { %v2647_v27 = vpop.f32.mrf.mxu0  ;;  %v3223_v13 = vpop.f32.mrf.mxu1 }
 0x241   : > { %v3891_v15 = vmax.f32 %v5929_v56, %v3549_v37  ;;  %v2648_v28 = vadd.f32 %v6008_v0, %v2647_v27  ;;  %v3224_v44 = vadd.f32 %v6008_v0, %v3223_v13  ;;  %v5169_v13 = vld [vmem:[%s5242_s26 + $0x8c0] ss:$8 sps:$4 sm:$0xff]  }
 0x242   : > { %v2649_v52 = vpop.f32.mrf.mxu0  ;;  %v3225_v54 = vpop.f32.mrf.mxu1 }
 0x243   : > { %v3550_v55 = vmax.f32 %v2648_v28, 0.0  ;;  %v6078_v58 = vmax.f32 %v3891_v15, %v3693_v20  ;;  %v3694_v11 = vmax.f32 %v3224_v44, 0.0  ;;  %v5164_v44 = vld [vmem:[%s5242_s26 + $0x454] ss:$8 sps:$4 sm:$0xff]  }
 0x244   : > { %v2652_v47 = vpop.f32.mrf.mxu0  ;;  %2843 = vmatmul.mubr.bf16.gmra.mxu0 %v5148_v30  ;;  %v3228_v63 = vpop.f32.mrf.mxu1  ;;  %3419 = vmatmul.mubr.bf16.gmra.mxu1 %v5157_v7  ;;  %v5160_v30 = vld [vmem:[%s5242_s26 + $0x440] ss:$8 sps:$4 sm:$0xff]  }
 0x245   : > { %v3892_v48 = vmax.f32 %v5936_v45, %v3550_v55  ;;  %v2653_v56 = vadd.f32 %v6008_v0, %v2652_v47  ;;  %4545 = vmatprep.mubr.msk.bf16.mxu0 %vm1845_vm0, %v5152_v46  ;;  %v3229_v49 = vadd.f32 %v6008_v0, %v3228_v63  ;;  %4617 = vmatprep.mubr.msk.bf16.mxu1 %vm1845_vm0, %v5161_v51  ;;  %v5173_v46 = vld [vmem:[%s5242_s26 + $0x8d4] ss:$8 sps:$4 sm:$0xff]  }
 0x246   : > { %v2654_v1 = vpop.f32.mrf.mxu0  ;;  %v3230_v3 = vpop.f32.mrf.mxu1 }
 0x247   : > { %v3551_v5 = vmax.f32 %v2653_v56, 0.0  ;;  %v6085_v6 = vmax.f32 %v3892_v48, %v3694_v11  ;;  %v3695_v60 = vmax.f32 %v3229_v49, 0.0 }
 0x248   : > { %v2655_v61 = vpop.f32.mrf.mxu0  ;;  %v3231_v45 = vpop.f32.mrf.mxu1 }
 0x249   : > { %v3893_v42 = vmax.f32 %v5945_v16, %v3551_v5  ;;  %v2656_v53 = vadd.f32 %v6008_v0, %v2655_v61  ;;  %v3232_v4 = vadd.f32 %v6008_v0, %v3231_v45  ;;  %v5175_v45 = vld [vmem:[%s5242_s26 + $0x8d0] ss:$8 sps:$4 sm:$0xff]  }
 0x24a   : > { %v2657_v59 = vpop.f32.mrf.mxu0  ;;  %v3233_v23 = vpop.f32.mrf.mxu1 }
 0x24b   : > { %v3552_v24 = vmax.f32 %v2656_v53, 0.0  ;;  %v6094_v25 = vmax.f32 %v3893_v42, %v3695_v60  ;;  %v3696_v33 = vmax.f32 %v3232_v4, 0.0  ;;  %v5170_v4 = vld [vmem:[%s5242_s26 + $0x464] ss:$8 sps:$4 sm:$0xff]  }
 0x24c   : > { %v2660_v14 = vpop.f32.mrf.mxu0  ;;  %2851 = vmatmul.mubr.bf16.gmra.mxu0 %v5154_v62  ;;  %v3236_v17 = vpop.f32.mrf.mxu1  ;;  %3427 = vmatmul.mubr.bf16.gmra.mxu1 %v5163_v50  ;;  %v5166_v62 = vld [vmem:[%s5242_s26 + $0x450] ss:$8 sps:$4 sm:$0xff]  }
 0x24d   : > { %v3894_v18 = vmax.f32 %v5952_v12, %v3552_v24  ;;  %v2661_v16 = vadd.f32 %v6008_v0, %v2660_v14  ;;  %4546 = vmatprep.mubr.msk.bf16.mxu0 %vm1845_vm0, %v5158_v22  ;;  %v3237_v32 = vadd.f32 %v6008_v0, %v3236_v17  ;;  %4618 = vmatprep.mubr.msk.bf16.mxu1 %vm1845_vm0, %v5167_v19  ;;  %v5179_v22 = vld [vmem:[%s5242_s26 + $0x8e4] ss:$8 sps:$4 sm:$0xff]  }
 0x24e   : > { %v2662_v34 = vpop.f32.mrf.mxu0  ;;  %v3238_v35 = vpop.f32.mrf.mxu1 }
 0x24f   : > { %v3553_v36 = vmax.f32 %v2661_v16, 0.0  ;;  %v6101_v37 = vmax.f32 %v3894_v18, %v3696_v33  ;;  %v3697_v20 = vmax.f32 %v3237_v32, 0.0 }
 0x250   : > { %v2663_v27 = vpop.f32.mrf.mxu0  ;;  %v3239_v12 = vpop.f32.mrf.mxu1 }
 0x251   : > { %v3895_v7 = vmax.f32 %v5961_v40, %v3553_v36  ;;  %v2664_v15 = vadd.f32 %v6008_v0, %v2663_v27  ;;  %v3240_v28 = vadd.f32 %v6008_v0, %v3239_v12  ;;  %v5181_v12 = vld [vmem:[%s5242_s26 + $0x8e0] ss:$8 sps:$4 sm:$0xff]  }
 0x252   : > { %v2665_v51 = vpop.f32.mrf.mxu0  ;;  %v3241_v52 = vpop.f32.mrf.mxu1 }
 0x253   : > { %v3554_v54 = vmax.f32 %v2664_v15, 0.0  ;;  %v6110_v55 = vmax.f32 %v3895_v7, %v3697_v20  ;;  %v3698_v56 = vmax.f32 %v3240_v28, 0.0  ;;  %v5176_v28 = vld [vmem:[%s5242_s26 + $0x474] ss:$8 sps:$4 sm:$0xff]  }
 0x254   : > { %v2668_v47 = vpop.f32.mrf.mxu0  ;;  %2859 = vmatmul.mubr.bf16.gmra.mxu0 %v5160_v30  ;;  %v3244_v63 = vpop.f32.mrf.mxu1  ;;  %3435 = vmatmul.mubr.bf16.gmra.mxu1 %v5169_v13  ;;  %v5172_v30 = vld [vmem:[%s5242_s26 + $0x460] ss:$8 sps:$4 sm:$0xff]  }
 0x255   : > { %v3896_v48 = vmax.f32 %v5968_v43, %v3554_v54  ;;  %v2669_v40 = vadd.f32 %v6008_v0, %v2668_v47  ;;  %4547 = vmatprep.mubr.msk.bf16.mxu0 %vm1845_vm0, %v5164_v44  ;;  %v3245_v11 = vadd.f32 %v6008_v0, %v3244_v63  ;;  %4619 = vmatprep.mubr.msk.bf16.mxu1 %vm1845_vm0, %v5173_v46  ;;  %v5182_v44 = vld [vmem:[%s5242_s26 + $0x8f4] ss:$8 sps:$4 sm:$0xff]  }
 0x256   : > { %v2670_v49 = vpop.f32.mrf.mxu0  ;;  %v3246_v1 = vpop.f32.mrf.mxu1 }
 0x257   : > { %v3555_v3 = vmax.f32 %v2669_v40, 0.0  ;;  %v6117_v5 = vmax.f32 %v3896_v48, %v3698_v56  ;;  %v3699_v60 = vmax.f32 %v3245_v11, 0.0 }
 0x258   : > { %v2671_v61 = vpop.f32.mrf.mxu0  ;;  %v3247_v43 = vpop.f32.mrf.mxu1 }
 0x259   : > { %v3897_v50 = vmax.f32 %v5977_v2, %v3555_v3  ;;  %v2672_v42 = vadd.f32 %v6008_v0, %v2671_v61  ;;  %v3248_v53 = vadd.f32 %v6008_v0, %v3247_v43 }
 0x25a   : > { %v2673_v19 = vpop.f32.mrf.mxu0  ;;  %v3249_v59 = vpop.f32.mrf.mxu1 }
 0x25b   : > { %v3556_v23 = vmax.f32 %v2672_v42, 0.0  ;;  %v6126_v24 = vmax.f32 %v3897_v50, %v3699_v60  ;;  %v3700_v16 = vmax.f32 %v3248_v53, 0.0 }
 0x25c   : > { %v2676_v14 = vpop.f32.mrf.mxu0  ;;  %2867 = vmatmul.mubr.bf16.gmra.mxu0 %v5166_v62  ;;  %v3252_v17 = vpop.f32.mrf.mxu1  ;;  %3443 = vmatmul.mubr.bf16.gmra.mxu1 %v5175_v45  ;;  %v5178_v62 = vld [vmem:[%s5242_s26 + $0x470] ss:$8 sps:$4 sm:$0xff]  }
 0x25d   : > { %v3898_v18 = vmax.f32 %v5984_v10, %v3556_v23  ;;  %v2677_v2 = vadd.f32 %v6008_v0, %v2676_v14  ;;  %4548 = vmatprep.mubr.msk.bf16.mxu0 %vm1845_vm0, %v5170_v4  ;;  %v3253_v33 = vadd.f32 %v6008_v0, %v3252_v17  ;;  %4620 = vmatprep.mubr.msk.bf16.mxu1 %vm1845_vm0, %v5179_v22  ;;  %v5184_v45 = vld [vmem:[%s5242_s26 + $0x8f0] ss:$8 sps:$4 sm:$0xff]  }
 0x25e   : > { %v2678_v32 = vpop.f32.mrf.mxu0  ;;  %v3254_v34 = vpop.f32.mrf.mxu1 }
 0x25f   : > { %v3557_v35 = vmax.f32 %v2677_v2, 0.0  ;;  %v6133_v36 = vmax.f32 %v3898_v18, %v3700_v16  ;;  %v3701_v20 = vmax.f32 %v3253_v33, 0.0 }
 0x260   : > { %v2679_v27 = vpop.f32.mrf.mxu0  ;;  %v3255_v10 = vpop.f32.mrf.mxu1 }
 0x261   : > { %v3917_v13 = vmax.f32 %v5993_v29, %v3557_v35  ;;  %v2680_v7 = vadd.f32 %v6008_v0, %v2679_v27  ;;  %v3256_v15 = vadd.f32 %v6008_v0, %v3255_v10 }
 0x262   : > { %v2681_v46 = vpop.f32.mrf.mxu0  ;;  %v3257_v51 = vpop.f32.mrf.mxu1 }
 0x263   : > { %v3558_v52 = vmax.f32 %v2680_v7, 0.0  ;;  %v6142_v54 = vmax.f32 %v3917_v13, %v3701_v20  ;;  %v3702_v40 = vmax.f32 %v3256_v15, 0.0 }
 0x264   : > { %v2684_v47 = vpop.f32.mrf.mxu0  ;;  %2875 = vmatmul.mubr.bf16.gmra.mxu0 %v5172_v30  ;;  %v3260_v63 = vpop.f32.mrf.mxu1  ;;  %3451 = vmatmul.mubr.bf16.gmra.mxu1 %v5181_v12 }
 0x265   : > { %v3918_v48 = vmax.f32 %v6000_v41, %v3558_v52  ;;  %v2685_v29 = vadd.f32 %v6008_v0, %v2684_v47  ;;  %4549 = vmatprep.mubr.msk.bf16.mxu0 %vm1845_vm0, %v5176_v28  ;;  %v3261_v56 = vadd.f32 %v6008_v0, %v3260_v63  ;;  %4621 = vmatprep.mubr.msk.bf16.mxu1 %vm1845_vm0, %v5182_v44 }
 0x266   : > { %v2686_v11 = vpop.f32.mrf.mxu0  ;;  %v3262_v49 = vpop.f32.mrf.mxu1 }
 0x267   : > { %v3559_v1 = vmax.f32 %v2685_v29, 0.0  ;;  %v6149_v3 = vmax.f32 %v3918_v48, %v3702_v40  ;;  %v3703_v60 = vmax.f32 %v3261_v56, 0.0 }
 0x268   : > { %v2687_v61 = vpop.f32.mrf.mxu0  ;;  %v3263_v43 = vpop.f32.mrf.mxu1 }
 0x269   : > { %v3919_v41 = vmax.f32 %v6014_v57, %v3559_v1  ;;  %v2688_v50 = vadd.f32 %v6008_v0, %v2687_v61  ;;  %v3264_v42 = vadd.f32 %v6008_v0, %v3263_v43 }
 0x26a   : > { %v2689_v53 = vpop.f32.mrf.mxu0  ;;  %v3265_v4 = vpop.f32.mrf.mxu1 }
 0x26b   : > { %v3560_v22 = vmax.f32 %v2688_v50, 0.0  ;;  %v6156_v19 = vmax.f32 %v3919_v41, %v3703_v60  ;;  %v3704_v18 = vmax.f32 %v3264_v42, 0.0 }
 0x26c   : > { %v2692_v59 = vpop.f32.mrf.mxu0  ;;  %2883 = vmatmul.mubr.bf16.gmra.mxu0 %v5178_v62  ;;  %v3268_v23 = vpop.f32.mrf.mxu1  ;;  %3459 = vmatmul.mubr.bf16.gmra.mxu1 %v5184_v45 }
 0x26d   : > { %v3920_v14 = vmax.f32 %v6021_v9, %v3560_v22  ;;  %v2693_v17 = vadd.f32 %v6008_v0, %v2692_v59  ;;  %v3269_v57 = vadd.f32 %v6008_v0, %v3268_v23 }
 0x26e   : > { %v2694_v2 = vpop.f32.mrf.mxu0  ;;  %v3270_v16 = vpop.f32.mrf.mxu1 }
 0x26f   : > { %v3561_v33 = vmax.f32 %v2693_v17, 0.0  ;;  %v6161_v32 = vmax.f32 %v3920_v14, %v3704_v18  ;;  %v3705_v34 = vmax.f32 %v3269_v57, 0.0 }
 0x270   : > { %v2695_v35 = vpop.f32.mrf.mxu0  ;;  %v3271_v20 = vpop.f32.mrf.mxu1 }
 0x271   : > { %v3921_v27 = vmax.f32 %v6030_v21, %v3561_v33  ;;  %v2696_v30 = vadd.f32 %v6008_v0, %v2695_v35  ;;  %v3272_v10 = vadd.f32 %v6008_v0, %v3271_v20 }
 0x272   : > { %v2697_v9 = vpop.f32.mrf.mxu0  ;;  %v3273_v12 = vpop.f32.mrf.mxu1 }
 0x273   : > { %v3562_v13 = vmax.f32 %v2696_v30, 0.0  ;;  %v6166_v7 = vmax.f32 %v3921_v27, %v3705_v34  ;;  %v3706_v51 = vmax.f32 %v3272_v10, 0.0 }
 0x274   : > { %v2700_v15 = vpop.f32.mrf.mxu0  ;;  %v3276_v28 = vpop.f32.mrf.mxu1 }
 0x275   : > { %v3922_v44 = vmax.f32 %v6037_v39, %v3562_v13  ;;  %v2701_v46 = vadd.f32 %v6008_v0, %v2700_v15  ;;  %v3277_v52 = vadd.f32 %v6008_v0, %v3276_v28 }
 0x276   : > { %v2702_v47 = vpop.f32.mrf.mxu0  ;;  %v3278_v21 = vpop.f32.mrf.mxu1 }
 0x277   : > { %v3563_v63 = vmax.f32 %v2701_v46, 0.0  ;;  %v6171_v48 = vmax.f32 %v3922_v44, %v3706_v51  ;;  %v3707_v29 = vmax.f32 %v3277_v52, 0.0 }
 0x278   : > { %v2703_v40 = vpop.f32.mrf.mxu0  ;;  %v3279_v56 = vpop.f32.mrf.mxu1 }
 0x279   : > { %v3923_v11 = vmax.f32 %v6046_v31, %v3563_v63  ;;  %v2704_v49 = vadd.f32 %v6008_v0, %v2703_v40  ;;  %v3280_v1 = vadd.f32 %v6008_v0, %v3279_v56 }
 0x27a   : > { %v2705_v39 = vpop.f32.mrf.mxu0  ;;  %v3281_v60 = vpop.f32.mrf.mxu1 }
 0x27b   : > { %v3564_v61 = vmax.f32 %v2704_v49, 0.0  ;;  %v6176_v62 = vmax.f32 %v3923_v11, %v3707_v29  ;;  %v3708_v42 = vmax.f32 %v3280_v1, 0.0 }
 0x27c   : > { %v2708_v43 = vpop.f32.mrf.mxu0  ;;  %v3284_v45 = vpop.f32.mrf.mxu1 }
 0x27d   : > { %v3924_v41 = vmax.f32 %v6053_v8, %v3564_v61  ;;  %v2709_v50 = vadd.f32 %v6008_v0, %v2708_v43  ;;  %v3285_v53 = vadd.f32 %v6008_v0, %v3284_v45 }
 0x27e   : > { %v2710_v4 = vpop.f32.mrf.mxu0  ;;  %v3286_v31 = vpop.f32.mrf.mxu1 }
 0x27f   : > { %v3565_v22 = vmax.f32 %v2709_v50, 0.0  ;;  %v6181_v59 = vmax.f32 %v3924_v41, %v3708_v42  ;;  %v3709_v23 = vmax.f32 %v3285_v53, 0.0 }
 0x280   : > { %v2711_v14 = vpop.f32.mrf.mxu0  ;;  %v3287_v17 = vpop.f32.mrf.mxu1 }
 0x281   : > { %v3925_v18 = vmax.f32 %v6062_v26, %v3565_v22  ;;  %v2712_v57 = vadd.f32 %v6008_v0, %v2711_v14  ;;  %v3288_v2 = vadd.f32 %v6008_v0, %v3287_v17 }
 0x282   : > { %v2713_v8 = vpop.f32.mrf.mxu0  ;;  %v3289_v16 = vpop.f32.mrf.mxu1 }
 0x283   : > { %v3566_v33 = vmax.f32 %v2712_v57, 0.0  ;;  %v6186_v34 = vmax.f32 %v3925_v18, %v3709_v23  ;;  %v3710_v10 = vmax.f32 %v3288_v2, 0.0 }
 0x284   : > { %v2716_v35 = vpop.f32.mrf.mxu0  ;;  %v3292_v20 = vpop.f32.mrf.mxu1 }
 0x285   : > { %v3926_v27 = vmax.f32 %v6069_v38, %v3566_v33  ;;  %v2717_v30 = vadd.f32 %v6008_v0, %v2716_v35  ;;  %v3293_v9 = vadd.f32 %v6008_v0, %v3292_v20 }
 0x286   : > { %v2718_v12 = vpop.f32.mrf.mxu0  ;;  %v3294_v26 = vpop.f32.mrf.mxu1 }
 0x287   : > { %v3567_v13 = vmax.f32 %v2717_v30, 0.0  ;;  %v6191_v15 = vmax.f32 %v3926_v27, %v3710_v10  ;;  %v3711_v28 = vmax.f32 %v3293_v9, 0.0 }
 0x288   : > { %v2719_v44 = vpop.f32.mrf.mxu0  ;;  %v3295_v46 = vpop.f32.mrf.mxu1 }
 0x289   : > { %v3927_v51 = vmax.f32 %v6078_v58, %v3567_v13  ;;  %v2720_v52 = vadd.f32 %v6008_v0, %v2719_v44  ;;  %v3296_v47 = vadd.f32 %v6008_v0, %v3295_v46 }
 0x28a   : > { %v2721_v38 = vpop.f32.mrf.mxu0  ;;  %v3297_v21 = vpop.f32.mrf.mxu1 }
 0x28b   : > { %v3568_v63 = vmax.f32 %v2720_v52, 0.0  ;;  %v6196_v29 = vmax.f32 %v3927_v51, %v3711_v28  ;;  %v3712_v1 = vmax.f32 %v3296_v47, 0.0 }
 0x28c   : > { %v2724_v40 = vpop.f32.mrf.mxu0  ;;  %v3300_v56 = vpop.f32.mrf.mxu1 }
 0x28d   : > { %v3928_v11 = vmax.f32 %v6085_v6, %v3568_v63  ;;  %v2725_v49 = vadd.f32 %v6008_v0, %v2724_v40  ;;  %v3301_v39 = vadd.f32 %v6008_v0, %v3300_v56 }
 0x28e   : > { %v2726_v60 = vpop.f32.mrf.mxu0  ;;  %v3302_v58 = vpop.f32.mrf.mxu1 }
 0x28f   : > { %v3569_v61 = vmax.f32 %v2725_v49, 0.0  ;;  %v6201_v43 = vmax.f32 %v3928_v11, %v3712_v1  ;;  %v3713_v45 = vmax.f32 %v3301_v39, 0.0 }
 0x290   : > { %v2727_v41 = vpop.f32.mrf.mxu0  ;;  %v3303_v50 = vpop.f32.mrf.mxu1 }
 0x291   : > { %v3929_v42 = vmax.f32 %v6094_v25, %v3569_v61  ;;  %v2728_v53 = vadd.f32 %v6008_v0, %v2727_v41  ;;  %v3304_v4 = vadd.f32 %v6008_v0, %v3303_v50 }
 0x292   : > { %v2729_v6 = vpop.f32.mrf.mxu0  ;;  %v3305_v31 = vpop.f32.mrf.mxu1 }
 0x293   : > { %v3570_v22 = vmax.f32 %v2728_v53, 0.0  ;;  %v6206_v23 = vmax.f32 %v3929_v42, %v3713_v45  ;;  %v3714_v2 = vmax.f32 %v3304_v4, 0.0 }
 0x294   : > { %v2732_v14 = vpop.f32.mrf.mxu0  ;;  %v3308_v17 = vpop.f32.mrf.mxu1 }
 0x295   : > { %v3930_v18 = vmax.f32 %v6101_v37, %v3570_v22  ;;  %v2733_v57 = vadd.f32 %v6008_v0, %v2732_v14  ;;  %v3309_v8 = vadd.f32 %v6008_v0, %v3308_v17 }
 0x296   : > { %v2734_v16 = vpop.f32.mrf.mxu0  ;;  %v3310_v25 = vpop.f32.mrf.mxu1 }
 0x297   : > { %v3571_v33 = vmax.f32 %v2733_v57, 0.0  ;;  %v6211_v35 = vmax.f32 %v3930_v18, %v3714_v2  ;;  %v3715_v20 = vmax.f32 %v3309_v8, 0.0 }
 0x298   : > { %v2735_v27 = vpop.f32.mrf.mxu0  ;;  %v3311_v30 = vpop.f32.mrf.mxu1 }
 0x299   : > { %v3931_v10 = vmax.f32 %v6110_v55, %v3571_v33  ;;  %v2736_v9 = vadd.f32 %v6008_v0, %v2735_v27  ;;  %v3312_v12 = vadd.f32 %v6008_v0, %v3311_v30 }
 0x29a   : > { %v2737_v37 = vpop.f32.mrf.mxu0  ;;  %v3313_v26 = vpop.f32.mrf.mxu1 }
 0x29b   : > { %v3572_v13 = vmax.f32 %v2736_v9, 0.0  ;;  %v6216_v28 = vmax.f32 %v3931_v10, %v3715_v20  ;;  %v3716_v47 = vmax.f32 %v3312_v12, 0.0 }
 0x29c   : > { %v2740_v44 = vpop.f32.mrf.mxu0  ;;  %v3316_v46 = vpop.f32.mrf.mxu1 }
 0x29d   : > { %v3932_v51 = vmax.f32 %v6117_v5, %v3572_v13  ;;  %v2741_v52 = vadd.f32 %v6008_v0, %v2740_v44  ;;  %v3317_v38 = vadd.f32 %v6008_v0, %v3316_v46 }
 0x29e   : > { %v2742_v21 = vpop.f32.mrf.mxu0  ;;  %v3318_v55 = vpop.f32.mrf.mxu1 }
 0x29f   : > { %v3573_v63 = vmax.f32 %v2741_v52, 0.0  ;;  %v6221_v40 = vmax.f32 %v3932_v51, %v3716_v47  ;;  %v3717_v56 = vmax.f32 %v3317_v38, 0.0 }
 0x2a0   : > { %v2743_v11 = vpop.f32.mrf.mxu0  ;;  %v3319_v49 = vpop.f32.mrf.mxu1 }
 0x2a1   : > { %v3933_v1 = vmax.f32 %v6126_v24, %v3573_v63  ;;  %v2744_v39 = vadd.f32 %v6008_v0, %v2743_v11  ;;  %v3320_v60 = vadd.f32 %v6008_v0, %v3319_v49 }
 0x2a2   : > { %v2745_v5 = vpop.f32.mrf.mxu0  ;;  %v3321_v58 = vpop.f32.mrf.mxu1 }
 0x2a3   : > { %v3574_v61 = vmax.f32 %v2744_v39, 0.0  ;;  %v6226_v45 = vmax.f32 %v3933_v1, %v3717_v56  ;;  %v3718_v4 = vmax.f32 %v3320_v60, 0.0 }
 0x2a4   : > { %v2748_v41 = vpop.f32.mrf.mxu0  ;;  %v3324_v50 = vpop.f32.mrf.mxu1 }
 0x2a5   : > { %v3934_v42 = vmax.f32 %v6133_v36, %v3574_v61  ;;  %v2749_v53 = vadd.f32 %v6008_v0, %v2748_v41  ;;  %v3325_v6 = vadd.f32 %v6008_v0, %v3324_v50 }
 0x2a6   : > { %v2750_v31 = vpop.f32.mrf.mxu0  ;;  %v3326_v24 = vpop.f32.mrf.mxu1 }
 0x2a7   : > { %v3575_v22 = vmax.f32 %v2749_v53, 0.0  ;;  %v6231_v14 = vmax.f32 %v3934_v42, %v3718_v4  ;;  %v3719_v17 = vmax.f32 %v3325_v6, 0.0 }
 0x2a8   : > { %v2751_v18 = vpop.f32.mrf.mxu0  ;;  %v3327_v57 = vpop.f32.mrf.mxu1 }
 0x2a9   : > { %v3953_v2 = vmax.f32 %v6142_v54, %v3575_v22  ;;  %v2752_v8 = vadd.f32 %v6008_v0, %v2751_v18  ;;  %v3328_v16 = vadd.f32 %v6008_v0, %v3327_v57 }
 0x2aa   : > { %v2753_v36 = vpop.f32.mrf.mxu0  ;;  %v3329_v25 = vpop.f32.mrf.mxu1 }
 0x2ab   : > { %v3576_v33 = vmax.f32 %v2752_v8, 0.0  ;;  %v6236_v20 = vmax.f32 %v3953_v2, %v3719_v17  ;;  %v3720_v12 = vmax.f32 %v3328_v16, 0.0 }
 0x2ac   : > { %v2756_v27 = vpop.f32.mrf.mxu0  ;;  %v3332_v30 = vpop.f32.mrf.mxu1 }
 0x2ad   : > { %v3954_v10 = vmax.f32 %v6149_v3, %v3576_v33  ;;  %v2757_v9 = vadd.f32 %v6008_v0, %v2756_v27  ;;  %v3333_v37 = vadd.f32 %v6008_v0, %v3332_v30 }
 0x2ae   : > { %v2758_v26 = vpop.f32.mrf.mxu0  ;;  %v3334_v54 = vpop.f32.mrf.mxu1 }
 0x2af   : > { %v3577_v13 = vmax.f32 %v2757_v9, 0.0  ;;  %v6241_v44 = vmax.f32 %v3954_v10, %v3720_v12  ;;  %v3721_v46 = vmax.f32 %v3333_v37, 0.0 }
 0x2b0   : > { %v2759_v51 = vpop.f32.mrf.mxu0  ;;  %v3335_v52 = vpop.f32.mrf.mxu1 }
 0x2b1   : > { %v3955_v47 = vmax.f32 %v6156_v19, %v3577_v13  ;;  %v2760_v38 = vadd.f32 %v6008_v0, %v2759_v51  ;;  %v3336_v21 = vadd.f32 %v6008_v0, %v3335_v52 }
 0x2b2   : > { %v2761_v3 = vpop.f32.mrf.mxu0  ;;  %v3337_v55 = vpop.f32.mrf.mxu1 }
 0x2b3   : > { %v3578_v63 = vmax.f32 %v2760_v38, 0.0  ;;  %v6246_v56 = vmax.f32 %v3955_v47, %v3721_v46  ;;  %v3722_v60 = vmax.f32 %v3336_v21, 0.0 }
 0x2b4   : > { %v2764_v11 = vpop.f32.mrf.mxu0  ;;  %v3340_v49 = vpop.f32.mrf.mxu1 }
 0x2b5   : > { %v3956_v1 = vmax.f32 %v6161_v32, %v3578_v63  ;;  %v2765_v39 = vadd.f32 %v6008_v0, %v2764_v11  ;;  %v3341_v5 = vadd.f32 %v6008_v0, %v3340_v49 }
 0x2b6   : > { %v2766_v58 = vpop.f32.mrf.mxu0  ;;  %v3342_v19 = vpop.f32.mrf.mxu1 }
 0x2b7   : > { %v3579_v61 = vmax.f32 %v2765_v39, 0.0  ;;  %v6251_v41 = vmax.f32 %v3956_v1, %v3722_v60  ;;  %v3723_v50 = vmax.f32 %v3341_v5, 0.0 }
 0x2b8   : > { %v2767_v42 = vpop.f32.mrf.mxu0  ;;  %v3343_v53 = vpop.f32.mrf.mxu1 }
 0x2b9   : > { %v3957_v4 = vmax.f32 %v6166_v7, %v3579_v61  ;;  %v2768_v6 = vadd.f32 %v6008_v0, %v2767_v42  ;;  %v3344_v31 = vadd.f32 %v6008_v0, %v3343_v53 }
 0x2ba   : > { %v2769_v32 = vpop.f32.mrf.mxu0  ;;  %v3345_v24 = vpop.f32.mrf.mxu1 }
 0x2bb   : > { %v3580_v22 = vmax.f32 %v2768_v6, 0.0  ;;  %v6256_v17 = vmax.f32 %v3957_v4, %v3723_v50  ;;  %v3724_v16 = vmax.f32 %v3344_v31, 0.0 }
 0x2bc   : > { %v2772_v18 = vpop.f32.mrf.mxu0  ;;  %v3348_v57 = vpop.f32.mrf.mxu1 }
 0x2bd   : > { %v3958_v2 = vmax.f32 %v6171_v48, %v3580_v22  ;;  %v2773_v8 = vadd.f32 %v6008_v0, %v2772_v18  ;;  %v3349_v36 = vadd.f32 %v6008_v0, %v3348_v57 }
 0x2be   : > { %v2774_v25 = vpop.f32.mrf.mxu0  ;;  %v3350_v7 = vpop.f32.mrf.mxu1 }
 0x2bf   : > { %v3581_v33 = vmax.f32 %v2773_v8, 0.0  ;;  %v6261_v27 = vmax.f32 %v3958_v2, %v3724_v16  ;;  %v3725_v30 = vmax.f32 %v3349_v36, 0.0  ;;  %v6287_v36 = vld [vmem:[%s6401_s2] ss:$0 sm:$0xff] }
 0x2c0   : > { %v2775_v10 = vpop.f32.mrf.mxu0  ;;  %v3351_v9 = vpop.f32.mrf.mxu1 }
 0x2c1   : > { %v3959_v12 = vmax.f32 %v6176_v62, %v3581_v33  ;;  %v2776_v37 = vadd.f32 %v6008_v0, %v2775_v10  ;;  %v3352_v26 = vadd.f32 %v6008_v0, %v3351_v9 }
 0x2c2   : > { %v2777_v48 = vpop.f32.mrf.mxu0  ;;  %v3353_v54 = vpop.f32.mrf.mxu1 }
 0x2c3   : > { %v3582_v13 = vmax.f32 %v2776_v37, 0.0  ;;  %v6266_v46 = vmax.f32 %v3959_v12, %v3725_v30  ;;  %v3726_v21 = vmax.f32 %v3352_v26, 0.0 }
 0x2c4   : > { %v2780_v51 = vpop.f32.mrf.mxu0  ;;  %v3356_v52 = vpop.f32.mrf.mxu1 }
 0x2c5   : > { %v3960_v47 = vmax.f32 %v6181_v59, %v3582_v13  ;;  %v2781_v38 = vadd.f32 %v6008_v0, %v2780_v51  ;;  %v3357_v3 = vadd.f32 %v6008_v0, %v3356_v52 }
 0x2c6   : > { %v2782_v55 = vpop.f32.mrf.mxu0  ;;  %v3358_v62 = vpop.f32.mrf.mxu1 }
 0x2c7   : > { %v3583_v63 = vmax.f32 %v2781_v38, 0.0  ;;  %v6271_v11 = vmax.f32 %v3960_v47, %v3726_v21  ;;  %v3727_v49 = vmax.f32 %v3357_v3, 0.0 }
 0x2c8   : > { %v2783_v1 = vpop.f32.mrf.mxu0  ;;  %v3359_v39 = vpop.f32.mrf.mxu1 }
 0x2c9   : > { %v3961_v60 = vmax.f32 %v6186_v34, %v3583_v63  ;;  %v2784_v5 = vadd.f32 %v6008_v0, %v2783_v1  ;;  %v3360_v58 = vadd.f32 %v6008_v0, %v3359_v39 }
 0x2ca   : > { %v2785_v59 = vpop.f32.mrf.mxu0  ;;  %v3361_v19 = vpop.f32.mrf.mxu1 }
 0x2cb   : > { %v3584_v61 = vmax.f32 %v2784_v5, 0.0  ;;  %v6276_v50 = vmax.f32 %v3961_v60, %v3727_v49  ;;  %v3728_v31 = vmax.f32 %v3360_v58, 0.0 }
 0x2cc   : > { %v2788_v42 = vpop.f32.mrf.mxu0  ;;  %v3364_v53 = vpop.f32.mrf.mxu1 }
 0x2cd   : > { %v3962_v4 = vmax.f32 %v6191_v15, %v3584_v61  ;;  %v2789_v6 = vadd.f32 %v6008_v0, %v2788_v42  ;;  %v3365_v32 = vadd.f32 %v6008_v0, %v3364_v53 }
 0x2ce   : > { %v2790_v24 = vpop.f32.mrf.mxu0  ;;  %v3366_v34 = vpop.f32.mrf.mxu1 }
 0x2cf   : > { %v3585_v22 = vmax.f32 %v2789_v6, 0.0  ;;  %v6281_v18 = vmax.f32 %v3962_v4, %v3728_v31  ;;  %v3729_v57 = vmax.f32 %v3365_v32, 0.0 }
 0x2d0   : > { %v2791_v2 = vpop.f32.mrf.mxu0  ;;  %v3367_v8 = vpop.f32.mrf.mxu1 }
 0x2d1   : > { %v3963_v16 = vmax.f32 %v6196_v29, %v3585_v22  ;;  %v2792_v15 = vadd.f32 %v6287_v36, %v2791_v2  ;;  %v3368_v25 = vadd.f32 %v6287_v36, %v3367_v8 }
 0x2d2   : > { %v2793_v0 = vpop.f32.mrf.mxu0  ;;  %v3369_v7 = vpop.f32.mrf.mxu1 }
 0x2d3   : > { %v3586_v33 = vmax.f32 %v2792_v15, 0.0  ;;  %v6291_v30 = vmax.f32 %v3963_v16, %v3729_v57  ;;  %v3730_v37 = vmax.f32 %v3368_v25, 0.0 }
 0x2d4   : > { %v2796_v10 = vpop.f32.mrf.mxu0  ;;  %v3372_v9 = vpop.f32.mrf.mxu1 }
 0x2d5   : > { %v3964_v12 = vmax.f32 %v6201_v43, %v3586_v33  ;;  %v2797_v29 = vadd.f32 %v6287_v36, %v2796_v10  ;;  %v3373_v26 = vadd.f32 %v6287_v36, %v3372_v9 }
 0x2d6   : > { %v2798_v48 = vpop.f32.mrf.mxu0  ;;  %v3374_v54 = vpop.f32.mrf.mxu1 }
 0x2d7   : > { %v3587_v13 = vmax.f32 %v2797_v29, 0.0  ;;  %v6296_v51 = vmax.f32 %v3964_v12, %v3730_v37  ;;  %v3731_v52 = vmax.f32 %v3373_v26, 0.0 }
 0x2d8   : > { %v2799_v47 = vpop.f32.mrf.mxu0  ;;  %v3375_v38 = vpop.f32.mrf.mxu1 }
 0x2d9   : > { %v3965_v21 = vmax.f32 %v6206_v23, %v3587_v13  ;;  %v2800_v3 = vadd.f32 %v6287_v36, %v2799_v47  ;;  %v3376_v55 = vadd.f32 %v6287_v36, %v3375_v38 }
 0x2da   : > { %v2801_v43 = vpop.f32.mrf.mxu0  ;;  %v3377_v62 = vpop.f32.mrf.mxu1 }
 0x2db   : > { %v3588_v63 = vmax.f32 %v2800_v3, 0.0  ;;  %v6301_v49 = vmax.f32 %v3965_v21, %v3731_v52  ;;  %v3732_v58 = vmax.f32 %v3376_v55, 0.0 }
 0x2dc   : > { %v2804_v1 = vpop.f32.mrf.mxu0  ;;  %v3380_v39 = vpop.f32.mrf.mxu1 }
 0x2dd   : > { %v3966_v60 = vmax.f32 %v6211_v35, %v3588_v63  ;;  %v2805_v5 = vadd.f32 %v6287_v36, %v2804_v1  ;;  %v3381_v59 = vadd.f32 %v6287_v36, %v3380_v39 }
 0x2de   : > { %v2806_v19 = vpop.f32.mrf.mxu0  ;;  %v3382_v23 = vpop.f32.mrf.mxu1 }
 0x2df   : > { %v3589_v61 = vmax.f32 %v2805_v5, 0.0  ;;  %v6306_v42 = vmax.f32 %v3966_v60, %v3732_v58  ;;  %v3733_v53 = vmax.f32 %v3381_v59, 0.0 }
 0x2e0   : > { %v2807_v4 = vpop.f32.mrf.mxu0  ;;  %v3383_v6 = vpop.f32.mrf.mxu1 }
 0x2e1   : > { %v3967_v31 = vmax.f32 %v6216_v28, %v3589_v61  ;;  %v2808_v32 = vadd.f32 %v6287_v36, %v2807_v4  ;;  %v3384_v24 = vadd.f32 %v6287_v36, %v3383_v6 }
 0x2e2   : > { %v2809_v35 = vpop.f32.mrf.mxu0  ;;  %v3385_v34 = vpop.f32.mrf.mxu1 }
 0x2e3   : > { %v3590_v22 = vmax.f32 %v2808_v32, 0.0  ;;  %v6311_v57 = vmax.f32 %v3967_v31, %v3733_v53  ;;  %v3734_v25 = vmax.f32 %v3384_v24, 0.0 }
 0x2e4   : > { %v2812_v2 = vpop.f32.mrf.mxu0  ;;  %v3388_v8 = vpop.f32.mrf.mxu1 }
 0x2e5   : > { %v3968_v16 = vmax.f32 %v6221_v40, %v3590_v22  ;;  %v2813_v15 = vadd.f32 %v6287_v36, %v2812_v2  ;;  %v3389_v0 = vadd.f32 %v6287_v36, %v3388_v8 }
 0x2e6   : > { %v2814_v28 = vpop.f32.mrf.mxu0  ;;  %v3390_v7 = vpop.f32.mrf.mxu1 }
 0x2e7   : > { %v3591_v33 = vmax.f32 %v2813_v15, 0.0  ;;  %v6316_v10 = vmax.f32 %v3968_v16, %v3734_v25  ;;  %v3735_v9 = vmax.f32 %v3389_v0, 0.0 }
 0x2e8   : > { %v2815_v12 = vpop.f32.mrf.mxu0  ;;  %v3391_v29 = vpop.f32.mrf.mxu1 }
 0x2e9   : > { %v3969_v37 = vmax.f32 %v6226_v45, %v3591_v33  ;;  %v2816_v26 = vadd.f32 %v6287_v36, %v2815_v12  ;;  %v3392_v48 = vadd.f32 %v6287_v36, %v3391_v29 }
 0x2ea   : > { %v2817_v40 = vpop.f32.mrf.mxu0  ;;  %v3393_v54 = vpop.f32.mrf.mxu1 }
 0x2eb   : > { %v3592_v13 = vmax.f32 %v2816_v26, 0.0  ;;  %v6323_v52 = vmax.f32 %v3969_v37, %v3735_v9  ;;  %v3736_v55 = vmax.f32 %v3392_v48, 0.0 }
 0x2ec   : > { %v2820_v47 = vpop.f32.mrf.mxu0  ;;  %v3396_v38 = vpop.f32.mrf.mxu1 }
 0x2ed   : > { %v3970_v21 = vmax.f32 %v6231_v14, %v3592_v13  ;;  %v2821_v3 = vadd.f32 %v6287_v36, %v2820_v47  ;;  %v3397_v1 = vadd.f32 %v6287_v36, %v3396_v38 }
 0x2ee   : > { %v2822_v45 = vpop.f32.mrf.mxu0  ;;  %v3398_v43 = vpop.f32.mrf.mxu1 }
 0x2ef   : > { %v3593_v62 = vmax.f32 %v2821_v3, 0.0  ;;  %v6327_v63 = vmax.f32 %v3970_v21, %v3736_v55  ;;  %v3737_v61 = vmax.f32 %v3397_v1, 0.0 }
 0x2f0   : > { %v2823_v39 = vpop.f32.mrf.mxu0  ;;  %v3399_v60 = vpop.f32.mrf.mxu1 }
 0x2f1   : > { %v2824_v5 = vadd.f32 %v6287_v36, %v2823_v39  ;;  %v3400_v58 = vadd.f32 %v6287_v36, %v3399_v60  ;;  %v3989_v19 = vmax.f32 %v6236_v20, %v3593_v62 }
 0x2f2   : > { %v2825_v59 = vpop.f32.mrf.mxu0  ;;  %v3401_v14 = vpop.f32.mrf.mxu1 }
 0x2f3   : > { %v3594_v23 = vmax.f32 %v2824_v5, 0.0  ;;  %v3738_v32 = vmax.f32 %v3400_v58, 0.0  ;;  %v4007_v22 = vmax.f32 %v3989_v19, %v3737_v61 }
 0x2f4   : > { %v2828_v53 = vpop.f32.mrf.mxu0  ;;  %v3404_v4 = vpop.f32.mrf.mxu1 }
 0x2f5   : > { %v3990_v6 = vmax.f32 %v6241_v44, %v3594_v23  ;;  %v2829_v31 = vadd.f32 %v6287_v36, %v2828_v53  ;;  %v3405_v8 = vadd.f32 %v6287_v36, %v3404_v4 }
 0x2f6   : > { %v2830_v24 = vpop.f32.mrf.mxu0  ;;  %v3406_v35 = vpop.f32.mrf.mxu1 }
 0x2f7   : > { %v3595_v34 = vmax.f32 %v2829_v31, 0.0  ;;  %v4008_v2 = vmax.f32 %v3990_v6, %v3738_v32  ;;  %v3739_v9 = vmax.f32 %v3405_v8, 0.0 }
 0x2f8   : > { %v2831_v16 = vpop.f32.mrf.mxu0  ;;  %v3407_v20 = vpop.f32.mrf.mxu1 }
 0x2f9   : > { %v2832_v44 = vadd.f32 %v6287_v36, %v2831_v16  ;;  %v4664_v15 = vpack.c.bf16 %v4008_v2, %v4007_v22  ;;  %v3408_v25 = vadd.f32 %v6287_v36, %v3407_v20  ;;  %v3991_v7 = vmax.f32 %v6246_v56, %v3595_v34 }
 0x2fa   : > { %v2833_v0 = vpop.f32.mrf.mxu0  ;;  %v3409_v28 = vpop.f32.mrf.mxu1 }
 0x2fb   : > { %v3596_v33 = vmax.f32 %v2832_v44, 0.0  ;;  %4665 = vst [vmem:[%s6339_s25] sm:$0xff] %v4664_v15   ;;  %v3740_v48 = vmax.f32 %v3408_v25, 0.0  ;;  %v4009_v47 = vmax.f32 %v3991_v7, %v3739_v9 }
 0x2fc   : > { %v2836_v12 = vpop.f32.mrf.mxu0  ;;  %v3412_v29 = vpop.f32.mrf.mxu1 }
 0x2fd   : > { %v3992_v37 = vmax.f32 %v6251_v41, %v3596_v33  ;;  %v2837_v26 = vadd.f32 %v6287_v36, %v2836_v12  ;;  %v3413_v21 = vadd.f32 %v6287_v36, %v3412_v29 }
 0x2fe   : > { %v2838_v40 = vpop.f32.mrf.mxu0  ;;  %v3414_v54 = vpop.f32.mrf.mxu1 }
 0x2ff   : > { %v3597_v13 = vmax.f32 %v2837_v26, 0.0  ;;  %v4010_v38 = vmax.f32 %v3992_v37, %v3740_v48  ;;  %v3741_v60 = vmax.f32 %v3413_v21, 0.0 }
 0x300   : > { %v2839_v3 = vpop.f32.mrf.mxu0  ;;  %v3415_v56 = vpop.f32.mrf.mxu1 }
 0x301   : > { %v2840_v55 = vadd.f32 %v6287_v36, %v2839_v3  ;;  %v4669_v45 = vpack.c.bf16 %v4010_v38, %v4009_v47  ;;  %v3416_v43 = vadd.f32 %v6287_v36, %v3415_v56  ;;  %v3993_v1 = vmax.f32 %v6256_v17, %v3597_v13 }
 0x302   : > { %v2841_v62 = vpop.f32.mrf.mxu0  ;;  %v3417_v41 = vpop.f32.mrf.mxu1 }
 0x303   : > { %v3598_v39 = vmax.f32 %v2840_v55, 0.0  ;;  %4706 = vst [vmem:[%s6339_s25 + $0x8] sm:$0xff] %v4669_v45   ;;  %v3742_v19 = vmax.f32 %v3416_v43, 0.0  ;;  %v4011_v4 = vmax.f32 %v3993_v1, %v3741_v60 }
 0x304   : > { %v2844_v5 = vpop.f32.mrf.mxu0  ;;  %v3420_v58 = vpop.f32.mrf.mxu1 }
 0x305   : > { %v3994_v59 = vmax.f32 %v6261_v27, %v3598_v39  ;;  %v2845_v14 = vadd.f32 %v6287_v36, %v2844_v5  ;;  %v3421_v31 = vadd.f32 %v6287_v36, %v3420_v58 }
 0x306   : > { %v2846_v23 = vpop.f32.mrf.mxu0  ;;  %v3422_v61 = vpop.f32.mrf.mxu1 }
 0x307   : > { %v3599_v53 = vmax.f32 %v2845_v14, 0.0  ;;  %v4012_v6 = vmax.f32 %v3994_v59, %v3742_v19  ;;  %v3743_v16 = vmax.f32 %v3421_v31, 0.0 }
 0x308   : > { %v2847_v32 = vpop.f32.mrf.mxu0  ;;  %v3423_v17 = vpop.f32.mrf.mxu1 }
 0x309   : > { %v2848_v24 = vadd.f32 %v6287_v36, %v2847_v32  ;;  %v4674_v35 = vpack.c.bf16 %v4012_v6, %v4011_v4  ;;  %v3424_v34 = vadd.f32 %v6287_v36, %v3423_v17  ;;  %v3995_v2 = vmax.f32 %v6266_v46, %v3599_v53 }
 0x30a   : > { %v2849_v22 = vpop.f32.mrf.mxu0  ;;  %v3425_v27 = vpop.f32.mrf.mxu1 }
 0x30b   : > { %v3600_v8 = vmax.f32 %v2848_v24, 0.0  ;;  %4707 = vst [vmem:[%s6339_s25 + $0x10] sm:$0xff] %v4674_v35   ;;  %v3744_v0 = vmax.f32 %v3424_v34, 0.0  ;;  %v4013_v9 = vmax.f32 %v3995_v2, %v3743_v16 }
 0x30c   : > { %v2852_v20 = vpop.f32.mrf.mxu0  ;;  %v3428_v44 = vpop.f32.mrf.mxu1 }
 0x30d   : > { %v3996_v15 = vmax.f32 %v6271_v11, %v3600_v8  ;;  %v2853_v25 = vadd.f32 %v6287_v36, %v2852_v20  ;;  %v3429_v29 = vadd.f32 %v6287_v36, %v3428_v44 }
 0x30e   : > { %v2854_v28 = vpop.f32.mrf.mxu0  ;;  %v3430_v7 = vpop.f32.mrf.mxu1 }
 0x30f   : > { %v3601_v33 = vmax.f32 %v2853_v25, 0.0  ;;  %v4014_v12 = vmax.f32 %v3996_v15, %v3744_v0  ;;  %v3745_v38 = vmax.f32 %v3429_v29, 0.0 }
 0x310   : > { %v2855_v37 = vpop.f32.mrf.mxu0  ;;  %v3431_v46 = vpop.f32.mrf.mxu1 }
 0x311   : > { %v2856_v26 = vadd.f32 %v6287_v36, %v2855_v37  ;;  %v4679_v48 = vpack.c.bf16 %v4014_v12, %v4013_v9  ;;  %v3432_v40 = vadd.f32 %v6287_v36, %v3431_v46  ;;  %v3997_v13 = vmax.f32 %v6276_v50, %v3601_v33 }
 0x312   : > { %v2857_v54 = vpop.f32.mrf.mxu0  ;;  %v3433_v11 = vpop.f32.mrf.mxu1 }
 0x313   : > { %v3602_v47 = vmax.f32 %v2856_v26, 0.0  ;;  %4708 = vst [vmem:[%s6339_s25 + $0x18] sm:$0xff] %v4679_v48   ;;  %v3746_v45 = vmax.f32 %v3432_v40, 0.0  ;;  %v4015_v1 = vmax.f32 %v3997_v13, %v3745_v38 }
 0x314   : > { %v2860_v21 = vpop.f32.mrf.mxu0  ;;  %v3436_v3 = vpop.f32.mrf.mxu1 }
 0x315   : > { %v3998_v56 = vmax.f32 %v6281_v18, %v3602_v47  ;;  %v2861_v55 = vadd.f32 %v6287_v36, %v2860_v21  ;;  %v3437_v60 = vadd.f32 %v6287_v36, %v3436_v3 }
 0x316   : > { %v2862_v43 = vpop.f32.mrf.mxu0  ;;  %v3438_v62 = vpop.f32.mrf.mxu1 }
 0x317   : > { %v3603_v41 = vmax.f32 %v2861_v55, 0.0  ;;  %v4016_v39 = vmax.f32 %v3998_v56, %v3746_v45  ;;  %v3747_v53 = vmax.f32 %v3437_v60, 0.0 }
 0x318   : > { %v2863_v5 = vpop.f32.mrf.mxu0  ;;  %v3439_v50 = vpop.f32.mrf.mxu1 }
 0x319   : > { %v2864_v58 = vadd.f32 %v6287_v36, %v2863_v5  ;;  %v4684_v59 = vpack.c.bf16 %v4016_v39, %v4015_v1  ;;  %v3440_v14 = vadd.f32 %v6287_v36, %v3439_v50  ;;  %v3999_v23 = vmax.f32 %v6291_v30, %v3603_v41 }
 0x31a   : > { %v2865_v19 = vpop.f32.mrf.mxu0  ;;  %v3441_v18 = vpop.f32.mrf.mxu1 }
 0x31b   : > { %v3604_v61 = vmax.f32 %v2864_v58, 0.0  ;;  %4709 = vst [vmem:[%s6339_s25 + $0x20] sm:$0xff] %v4684_v59   ;;  %v3748_v17 = vmax.f32 %v3440_v14, 0.0  ;;  %v4017_v22 = vmax.f32 %v3999_v23, %v3747_v53 }
 0x31c   : > { %v2868_v4 = vpop.f32.mrf.mxu0  ;;  %v3444_v6 = vpop.f32.mrf.mxu1 }
 0x31d   : > { %v4000_v31 = vmax.f32 %v6296_v51, %v3604_v61  ;;  %v2869_v32 = vadd.f32 %v6287_v36, %v2868_v4  ;;  %v3445_v2 = vadd.f32 %v6287_v36, %v3444_v6 }
 0x31e   : > { %v2870_v24 = vpop.f32.mrf.mxu0  ;;  %v3446_v35 = vpop.f32.mrf.mxu1 }
 0x31f   : > { %v3605_v34 = vmax.f32 %v2869_v32, 0.0  ;;  %v4018_v27 = vmax.f32 %v4000_v31, %v3748_v17  ;;  %v3749_v28 = vmax.f32 %v3445_v2, 0.0 }
 0x320   : > { %v2871_v8 = vpop.f32.mrf.mxu0  ;;  %v3447_v30 = vpop.f32.mrf.mxu1 }
 0x321   : > { %v2872_v16 = vadd.f32 %v6287_v36, %v2871_v8  ;;  %v4689_v20 = vpack.c.bf16 %v4018_v27, %v4017_v22  ;;  %v3448_v44 = vadd.f32 %v6287_v36, %v3447_v30  ;;  %v4001_v25 = vmax.f32 %v6301_v49, %v3605_v34 }
 0x322   : > { %v2873_v15 = vpop.f32.mrf.mxu0  ;;  %v3449_v51 = vpop.f32.mrf.mxu1 }
 0x323   : > { %v3606_v0 = vmax.f32 %v2872_v16, 0.0  ;;  %4710 = vst [vmem:[%s6339_s25 + $0x28] sm:$0xff] %v4689_v20   ;;  %v3750_v29 = vmax.f32 %v3448_v44, 0.0  ;;  %v4019_v48 = vmax.f32 %v4001_v25, %v3749_v28 }
 0x324   : > { %v2876_v7 = vpop.f32.mrf.mxu0  ;;  %v3452_v33 = vpop.f32.mrf.mxu1 }
 0x325   : > { %v4002_v9 = vmax.f32 %v6306_v42, %v3606_v0  ;;  %v2877_v12 = vadd.f32 %v6287_v36, %v2876_v7  ;;  %v3453_v54 = vadd.f32 %v6287_v36, %v3452_v33 }
 0x326   : > { %v2878_v37 = vpop.f32.mrf.mxu0  ;;  %v3454_v46 = vpop.f32.mrf.mxu1 }
 0x327   : > { %v3607_v26 = vmax.f32 %v2877_v12, 0.0  ;;  %v4020_v40 = vmax.f32 %v4002_v9, %v3750_v29  ;;  %v3751_v55 = vmax.f32 %v3453_v54, 0.0 }
 0x328   : > { %v2879_v11 = vpop.f32.mrf.mxu0  ;;  %v3455_v49 = vpop.f32.mrf.mxu1 }
 0x329   : > { %v2880_v13 = vadd.f32 %v6287_v36, %v2879_v11  ;;  %v4694_v47 = vpack.c.bf16 %v4020_v40, %v4019_v48  ;;  %v3456_v38 = vadd.f32 %v6287_v36, %v3455_v49  ;;  %v4003_v3 = vmax.f32 %v6311_v57, %v3607_v26 }
 0x32a   : > { %v2881_v21 = vpop.f32.mrf.mxu0  ;;  %v3457_v42 = vpop.f32.mrf.mxu1 }
 0x32b   : > { %v3608_v56 = vmax.f32 %v2880_v13, 0.0  ;;  %4711 = vst [vmem:[%s6339_s25 + $0x30] sm:$0xff] %v4694_v47   ;;  %v3752_v1 = vmax.f32 %v3456_v38, 0.0  ;;  %v4021_v50 = vmax.f32 %v4003_v3, %v3751_v55 }
 0x32c   : > { %v2884_v45 = vpop.f32.mrf.mxu0  ;;  %v3460_v43 = vpop.f32.mrf.mxu1 }
 0x32d   : > { %v4004_v62 = vmax.f32 %v6316_v10, %v3608_v56  ;;  %v2885_v41 = vadd.f32 %v6287_v36, %v2884_v45  ;;  %v3461_v59 = vadd.f32 %v6287_v36, %v3460_v43 }
 0x32e   : > { %v2886_v39 = vpop.f32.mrf.mxu0  ;;  %v3462_v60 = vpop.f32.mrf.mxu1 }
 0x32f   : > { %v3609_v5 = vmax.f32 %v2885_v41, 0.0  ;;  %v4022_v58 = vmax.f32 %v4004_v62, %v3752_v1  ;;  %v3753_v6 = vmax.f32 %v3461_v59, 0.0 }
 0x330   : > { %v2887_v14 = vpop.f32.mrf.mxu0  ;;  %v3463_v57 = vpop.f32.mrf.mxu1 }
 0x331   : > { %v2888_v19 = vadd.f32 %v6287_v36, %v2887_v14  ;;  %v4699_v18 = vpack.c.bf16 %v4022_v58, %v4021_v50  ;;  %v3464_v23 = vadd.f32 %v6287_v36, %v3463_v57  ;;  %v4005_v53 = vmax.f32 %v6323_v52, %v3609_v5 }
 0x332   : > { %v2889_v10 = vpop.f32.mrf.mxu0  ;;  %v3465_v61 = vpop.f32.mrf.mxu1 }
 0x333   : > { %v3610_v4 = vmax.f32 %v2888_v19, 0.0  ;;  %4712 = vst [vmem:[%s6339_s25 + $0x38] sm:$0xff] %v4699_v18   ;;  %v3754_v32 = vmax.f32 %v3464_v23, 0.0  ;;  %v4023_v17 = vmax.f32 %v4005_v53, %v3753_v6 }
 0x335   : > { %v4006_v31 = vmax.f32 %v6327_v63, %v3610_v4 }
 0x337   : > { %v4024_v24 = vmax.f32 %v4006_v31, %v3754_v32 }
 0x339   : > { %v4704_v35 = vpack.c.bf16 %v4024_v24, %v4023_v17 }
 0x33b   : > { %4713 = vst [vmem:[%s6339_s25 + $0x40] sm:$0xff] %v4704_v35  }
 0x33c PF: > { %s13_s12 = sadd.s32 1, %s5194_s12  }
 0x33d   : > { %p10_p5 = scmp.ge.s32.totalorder %s13_s12, 4  }
 0x33f   :  { %12 = sbr.rel (!%p10_p5) target bundleno = 1 (0x1), region = 62 }

// kernel: agent_net_forward.6
= control target key start
LH: loop header
LB: loop body
LE: loop exit
PB: predicated region body
PF: predicated region fallthrough
CT: control target
= control target key end

     0   :  { %s2007_s12 = smov 0   ;;  %s2238_s0 = inlined_call_operand.vmem [shape: bf16[2,288,400], index: 0, kind: input, shape index: {}]   ;;  %s2239_s1 = inlined_call_operand.vmem [shape: bf16[2,400,128], index: 1, kind: input, shape index: {}]   ;;  %s2240_s2 = inlined_call_operand.vmem [shape: f32[2,1,128], index: 2, kind: input, shape index: {}]   ;;  %s2241_s3 = inlined_call_operand.vmem [shape: bf16[2,288,128], index: 3, kind: output, shape index: {}]  }
   0x1 LB: > { %s1528_s13 = sadd.s32 4294967295, %s1984_s12   ;;  %p1532_p0 = scmp.ge.s32.totalorder %s1984_s12, 1  ;;  %s1984_s12 = sphi %s2007_s12, %s13_s12  }
   0x2   : > { %p155_p1 = scmp.lt.s32.totalorder %s1984_s12, 3 }
   0x4   : > { %p156_p2 = pnand %p1532_p0, %p155_p1 }
   0x5   : > { %p187_p3 = scmp.lt.s32.totalorder (!%p156_p2), %s1528_s13, 1 }
   0x6   : > { %159 = sbr.rel (%p156_p2) target bundleno = 421 (0x1a5), region = 32 }
   0xb   : > { %v1986_v0 = vmov 0   ;;  %s2243_s13 = smov (!%p187_p3, %s1528_s13), 1  ;;  %vm827_vm0 = vcmask 130048  }
   0xc   : > { %882 = vmatprep.subr.bf16.mxu0 %v1986_v0  ;;  %1059 = vmatprep.subr.bf16.mxu1 %v1986_v0  ;;  %s1834_s14 = smul.u32 200, %s2243_s13  ;;  %s199_s24 = scalar_lea.vmem %s2240_s2, %s2243_s13 }
   0xd   : > { %s1833_s18 = smul.u32 576, %s2243_s13 }
   0xe   : > { %s2023_s17 = scalar_lea.vmem %s2239_s1, %s1834_s14  ;;  %s1835_s25 = smul.u32 144, %s2243_s13 }
   0xf   : > { %v1845_v1 = vld [vmem:[%s2023_s17 + $0x38] sm:$0xff]   ;;  %v1846_v2 = vld [vmem:[%s2023_s17 + $0x30] sm:$0xff]   ;;  %v1847_v3 = vld [vmem:[%s2023_s17 + $0x28] sm:$0xff]   ;;  %s2050_s21 = scalar_lea.vmem %s2238_s0, %s1833_s18 }
  0x10   : > { %883 = vmatpush1.bf16.msra.mxu0 %v1845_v1  ;;  %v1852_v4 = vld [vmem:[%s2023_s17 + $0xb8] sm:$0xff]   ;;  %v1854_v5 = vld [vmem:[%s2023_s17 + $0xb0] sm:$0xff]   ;;  %v1848_v6 = vld [vmem:[%s2023_s17 + $0x20] sm:$0xff]   ;;  %s2182_s28 = scalar_lea.vmem %s2241_s3, %s1835_s25 }
  0x11   : > { %884 = vmatprep.subr.bf16.mxu0 %v1986_v0  ;;  %1060 = vmatpush1.bf16.msra.mxu1 %v1852_v4  ;;  %v1856_v7 = vld [vmem:[%s2023_s17 + $0xa8] sm:$0xff]   ;;  %v1849_v8 = vld [vmem:[%s2023_s17 + $0x18] sm:$0xff]   ;;  %v1858_v9 = vld [vmem:[%s2023_s17 + $0xa0] sm:$0xff]  }
  0x12   : > { %1061 = vmatprep.subr.bf16.mxu1 %v1986_v0  ;;  %v1850_v10 = vld [vmem:[%s2023_s17 + $0x10] sm:$0xff]   ;;  %v1860_v11 = vld [vmem:[%s2023_s17 + $0x98] sm:$0xff]   ;;  %v1851_v12 = vld [vmem:[%s2023_s17 + $0x8] sm:$0xff]  }
  0x13   : > { %v1862_v13 = vld [vmem:[%s2023_s17 + $0x90] sm:$0xff]   ;;  %v1871_v14 = vld [vmem:[%s2050_s21 + $0xc] ss:$16 sps:$4 sm:$0xff]   ;;  %v1853_v15 = vld [vmem:[%s2023_s17] sm:$0xff]  }
  0x14   : > { %885 = vmatpush1.bf16.msra.mxu0 %v1846_v2  ;;  %1634 = vmatprep.mubr.msk.bf16.mxu1 %vm827_vm0, %v1871_v14  ;;  %v1875_v16 = vld [vmem:[%s2050_s21 + $0x4] ss:$16 sps:$4 sm:$0xff]   ;;  %v1864_v17 = vld [vmem:[%s2023_s17 + $0x88] sm:$0xff]   ;;  %v1855_v18 = vld [vmem:[%s2023_s17 + $0x78] sm:$0xff]  }
  0x15   : > { %886 = vmatprep.subr.bf16.mxu0 %v1986_v0  ;;  %1062 = vmatpush1.bf16.msra.mxu1 %v1854_v5  ;;  %v1866_v19 = vld [vmem:[%s2023_s17 + $0x80] sm:$0xff]   ;;  %v1857_v20 = vld [vmem:[%s2023_s17 + $0x70] sm:$0xff]   ;;  %v1859_v22 = vld [vmem:[%s2023_s17 + $0x68] sm:$0xff]  }
  0x16   : > { %1063 = vmatprep.subr.bf16.mxu1 %v1986_v0  ;;  %914 = vmatprep.mubr.bf16.mxu0 %v1875_v16  ;;  %v1868_v21 = vld [vmem:[%s2023_s17 + $0xc0] sm:$0xff]   ;;  %v1869_v23 = vld [vmem:[%s2050_s21 + $0x8] ss:$16 sps:$4 sm:$0xff]   ;;  %v1876_v24 = vld [vmem:[%s2050_s21 + $0x2c] ss:$16 sps:$4 sm:$0xff]  }
  0x17   : > { %v1861_v25 = vld [vmem:[%s2023_s17 + $0x60] sm:$0xff]   ;;  %v1863_v26 = vld [vmem:[%s2023_s17 + $0x58] sm:$0xff]   ;;  %v1865_v29 = vld [vmem:[%s2023_s17 + $0x50] sm:$0xff]  }
  0x18   : > { %887 = vmatpush1.bf16.msra.mxu0 %v1847_v3  ;;  %v1878_v27 = vld [vmem:[%s2050_s21 + $0x28] ss:$16 sps:$4 sm:$0xff]   ;;  %v1882_v28 = vld [vmem:[%s2050_s21 + $0x4c] ss:$16 sps:$4 sm:$0xff]   ;;  %v1872_v33 = vld [vmem:[%s2023_s17 + $0x40] sm:$0xff]  }
  0x19   : > { %888 = vmatprep.subr.bf16.mxu0 %v1986_v0  ;;  %1064 = vmatpush1.bf16.msra.mxu1 %v1856_v7  ;;  %v1867_v30 = vld [vmem:[%s2023_s17 + $0x48] sm:$0xff]   ;;  %v1873_v34 = vld [vmem:[%s2050_s21] ss:$16 sps:$4 sm:$0xff]   ;;  %v1879_v35 = vld [vmem:[%s2050_s21 + $0x24] ss:$16 sps:$4 sm:$0xff]  }
  0x1a   : > { %1065 = vmatprep.subr.bf16.mxu1 %v1986_v0  ;;  %v1884_v31 = vld [vmem:[%s2050_s21 + $0x48] ss:$16 sps:$4 sm:$0xff]   ;;  %v1888_v32 = vld [vmem:[%s2050_s21 + $0x6c] ss:$16 sps:$4 sm:$0xff]   ;;  %v1881_v38 = vld [vmem:[%s2050_s21 + $0x20] ss:$16 sps:$4 sm:$0xff]  }
  0x1b   : > { %v1890_v36 = vld [vmem:[%s2050_s21 + $0x68] ss:$16 sps:$4 sm:$0xff]   ;;  %v1894_v37 = vld [vmem:[%s2050_s21 + $0x8c] ss:$16 sps:$4 sm:$0xff]   ;;  %v1885_v39 = vld [vmem:[%s2050_s21 + $0x44] ss:$16 sps:$4 sm:$0xff]  }
  0x1c   : > { %889 = vmatpush1.bf16.msra.mxu0 %v1848_v6  ;;  %v1896_v40 = vld [vmem:[%s2050_s21 + $0x88] ss:$16 sps:$4 sm:$0xff]   ;;  %v1900_v41 = vld [vmem:[%s2050_s21 + $0xac] ss:$16 sps:$4 sm:$0xff]   ;;  %v1887_v42 = vld [vmem:[%s2050_s21 + $0x40] ss:$16 sps:$4 sm:$0xff]  }
  0x1d   : > { %890 = vmatprep.subr.bf16.mxu0 %v1986_v0  ;;  %1066 = vmatpush1.bf16.msra.mxu1 %v1858_v9  ;;  %v1891_v43 = vld [vmem:[%s2050_s21 + $0x64] ss:$16 sps:$4 sm:$0xff]   ;;  %v1902_v44 = vld [vmem:[%s2050_s21 + $0xa8] ss:$16 sps:$4 sm:$0xff]   ;;  %v1906_v45 = vld [vmem:[%s2050_s21 + $0xcc] ss:$16 sps:$4 sm:$0xff]  }
  0x1e   : > { %1067 = vmatprep.subr.bf16.mxu1 %v1986_v0  ;;  %v1893_v46 = vld [vmem:[%s2050_s21 + $0x60] ss:$16 sps:$4 sm:$0xff]   ;;  %v1897_v47 = vld [vmem:[%s2050_s21 + $0x84] ss:$16 sps:$4 sm:$0xff]   ;;  %v1908_v48 = vld [vmem:[%s2050_s21 + $0xc8] ss:$16 sps:$4 sm:$0xff]  }
  0x1f   : > { %v1912_v49 = vld [vmem:[%s2050_s21 + $0xec] ss:$16 sps:$4 sm:$0xff]   ;;  %v1899_v50 = vld [vmem:[%s2050_s21 + $0x80] ss:$16 sps:$4 sm:$0xff]   ;;  %v1903_v51 = vld [vmem:[%s2050_s21 + $0xa4] ss:$16 sps:$4 sm:$0xff]  }
  0x20   : > { %891 = vmatpush1.bf16.msra.mxu0 %v1849_v8  ;;  %v1914_v52 = vld [vmem:[%s2050_s21 + $0xe8] ss:$16 sps:$4 sm:$0xff]   ;;  %v1918_v53 = vld [vmem:[%s2050_s21 + $0x10c] ss:$16 sps:$4 sm:$0xff]   ;;  %v1905_v54 = vld [vmem:[%s2050_s21 + $0xa0] ss:$16 sps:$4 sm:$0xff]  }
  0x21   : > { %892 = vmatprep.subr.bf16.mxu0 %v1986_v0  ;;  %1068 = vmatpush1.bf16.msra.mxu1 %v1860_v11  ;;  %v1909_v55 = vld [vmem:[%s2050_s21 + $0xc4] ss:$16 sps:$4 sm:$0xff]   ;;  %v1920_v56 = vld [vmem:[%s2050_s21 + $0x108] ss:$16 sps:$4 sm:$0xff]   ;;  %v1924_v57 = vld [vmem:[%s2050_s21 + $0x12c] ss:$16 sps:$4 sm:$0xff]  }
  0x22   : > { %1069 = vmatprep.subr.bf16.mxu1 %v1986_v0  ;;  %v1911_v58 = vld [vmem:[%s2050_s21 + $0xc0] ss:$16 sps:$4 sm:$0xff]   ;;  %v1915_v59 = vld [vmem:[%s2050_s21 + $0xe4] ss:$16 sps:$4 sm:$0xff]   ;;  %v1926_v60 = vld [vmem:[%s2050_s21 + $0x128] ss:$16 sps:$4 sm:$0xff]  }
  0x23   : > { %v1930_v61 = vld [vmem:[%s2050_s21 + $0x14c] ss:$16 sps:$4 sm:$0xff]   ;;  %v1917_v62 = vld [vmem:[%s2050_s21 + $0xe0] ss:$16 sps:$4 sm:$0xff]   ;;  %v1921_v63 = vld [vmem:[%s2050_s21 + $0x104] ss:$16 sps:$4 sm:$0xff]  }
  0x24   : > { %893 = vmatpush1.bf16.msra.mxu0 %v1850_v10  ;;  %v1936_v1 = vld [vmem:[%s2050_s21 + $0x16c] ss:$16 sps:$4 sm:$0xff]   ;;  %v1923_v2 = vld [vmem:[%s2050_s21 + $0x100] ss:$16 sps:$4 sm:$0xff]   ;;  %v1927_v3 = vld [vmem:[%s2050_s21 + $0x124] ss:$16 sps:$4 sm:$0xff]  }
  0x25   : > { %894 = vmatprep.subr.bf16.mxu0 %v1986_v0  ;;  %1070 = vmatpush1.bf16.msra.mxu1 %v1862_v13  ;;  %v1938_v4 = vld [vmem:[%s2050_s21 + $0x168] ss:$16 sps:$4 sm:$0xff]   ;;  %v1942_v5 = vld [vmem:[%s2050_s21 + $0x18c] ss:$16 sps:$4 sm:$0xff]   ;;  %v1929_v6 = vld [vmem:[%s2050_s21 + $0x120] ss:$16 sps:$4 sm:$0xff]  }
  0x26   : > { %1071 = vmatprep.subr.bf16.mxu1 %v1986_v0  ;;  %v1933_v7 = vld [vmem:[%s2050_s21 + $0x144] ss:$16 sps:$4 sm:$0xff]   ;;  %v1944_v8 = vld [vmem:[%s2050_s21 + $0x188] ss:$16 sps:$4 sm:$0xff]   ;;  %v1948_v9 = vld [vmem:[%s2050_s21 + $0x1ac] ss:$16 sps:$4 sm:$0xff]  }
  0x27   : > { %v1935_v10 = vld [vmem:[%s2050_s21 + $0x140] ss:$16 sps:$4 sm:$0xff]   ;;  %v1939_v11 = vld [vmem:[%s2050_s21 + $0x164] ss:$16 sps:$4 sm:$0xff]   ;;  %v1954_v13 = vld [vmem:[%s2050_s21 + $0x1cc] ss:$16 sps:$4 sm:$0xff]  }
  0x28   : > { %895 = vmatpush1.bf16.msra.mxu0 %v1851_v12  ;;  %v1950_v12 = vld [vmem:[%s2050_s21 + $0x1a8] ss:$16 sps:$4 sm:$0xff]   ;;  %v1941_v14 = vld [vmem:[%s2050_s21 + $0x160] ss:$16 sps:$4 sm:$0xff]  }
  0x29   : > { %896 = vmatprep.subr.bf16.mxu0 %v1986_v0  ;;  %1072 = vmatpush1.bf16.msra.mxu1 %v1864_v17  ;;  %v1956_v16 = vld [vmem:[%s2050_s21 + $0x1c8] ss:$16 sps:$4 sm:$0xff]   ;;  %v1960_v17 = vld [vmem:[%s2050_s21 + $0x1ec] ss:$16 sps:$4 sm:$0xff]  }
  0x2a   : > { %1073 = vmatprep.subr.bf16.mxu1 %v1986_v0 }
  0x2c   : > { %897 = vmatpush1.bf16.msra.mxu0 %v1853_v15  ;;  %v1945_v15 = vld [vmem:[%s2050_s21 + $0x184] ss:$16 sps:$4 sm:$0xff]  }
  0x2d   : > { %898 = vmatprep.subr.bf16.mxu0 %v1986_v0  ;;  %1074 = vmatpush1.bf16.msra.mxu1 %v1866_v19  ;;  %v1951_v19 = vld [vmem:[%s2050_s21 + $0x1a4] ss:$16 sps:$4 sm:$0xff]  }
  0x2e   : > { %1089 = vmatprep.subr.bf16.mxu1 %v1986_v0 }
  0x30   : > { %899 = vmatpush2.bf16.msra.mxu0 %v1855_v18  ;;  %v1947_v18 = vld [vmem:[%s2050_s21 + $0x180] ss:$16 sps:$4 sm:$0xff]  }
  0x31   : > { %900 = vmatprep.subr.bf16.mxu0 %v1986_v0  ;;  %1090 = vmatpush2.bf16.msra.mxu1 %v1868_v21  ;;  %v1966_v21 = vld [vmem:[%s2050_s21 + $0x20c] ss:$16 sps:$4 sm:$0xff]  }
  0x34   : > { %901 = vmatpush2.bf16.msra.mxu0 %v1857_v20  ;;  %1092 = vmatmul.mubr.bf16.vlgmr.msra.gmra.mxu1 %v1869_v23  ;;  %v1962_v20 = vld [vmem:[%s2050_s21 + $0x1e8] ss:$16 sps:$4 sm:$0xff]   ;;  %v1957_v23 = vld [vmem:[%s2050_s21 + $0x1c4] ss:$16 sps:$4 sm:$0xff]  }
  0x35   : > { %902 = vmatprep.subr.bf16.mxu0 %v1986_v0  ;;  %1635 = vmatprep.mubr.msk.bf16.mxu1 %vm827_vm0, %v1876_v24  ;;  %v1968_v24 = vld [vmem:[%s2050_s21 + $0x208] ss:$16 sps:$4 sm:$0xff]  }
  0x38   : > { %903 = vmatpush2.bf16.msra.mxu0 %v1859_v22  ;;  %v1953_v22 = vld [vmem:[%s2050_s21 + $0x1a0] ss:$16 sps:$4 sm:$0xff]  }
  0x39   : > { %904 = vmatprep.subr.bf16.mxu0 %v1986_v0 }
  0x3c   : > { %905 = vmatpush2.bf16.msra.mxu0 %v1861_v25  ;;  %1100 = vmatmul.mubr.bf16.gmra.mxu1 %v1878_v27  ;;  %v1972_v25 = vld [vmem:[%s2050_s21 + $0x22c] ss:$16 sps:$4 sm:$0xff]   ;;  %v1963_v27 = vld [vmem:[%s2050_s21 + $0x1e4] ss:$16 sps:$4 sm:$0xff]  }
  0x3d   : > { %906 = vmatprep.subr.bf16.mxu0 %v1986_v0  ;;  %1636 = vmatprep.mubr.msk.bf16.mxu1 %vm827_vm0, %v1882_v28  ;;  %v1974_v28 = vld [vmem:[%s2050_s21 + $0x228] ss:$16 sps:$4 sm:$0xff]  }
  0x40   : > { %907 = vmatpush2.bf16.msra.mxu0 %v1863_v26  ;;  %v1959_v26 = vld [vmem:[%s2050_s21 + $0x1c0] ss:$16 sps:$4 sm:$0xff]  }
  0x41   : > { %908 = vmatprep.subr.bf16.mxu0 %v1986_v0 }
  0x44   : > { %909 = vmatpush2.bf16.msra.mxu0 %v1865_v29  ;;  %1108 = vmatmul.mubr.bf16.gmra.mxu1 %v1884_v31  ;;  %v1965_v29 = vld [vmem:[%s2050_s21 + $0x1e0] ss:$16 sps:$4 sm:$0xff]  }
  0x45   : > { %910 = vmatprep.subr.bf16.mxu0 %v1986_v0  ;;  %1637 = vmatprep.mubr.msk.bf16.mxu1 %vm827_vm0, %v1888_v32  ;;  %v1971_v31 = vld [vmem:[%s2050_s21 + $0x200] ss:$16 sps:$4 sm:$0xff]   ;;  %v1975_v32 = vld [vmem:[%s2050_s21 + $0x224] ss:$16 sps:$4 sm:$0xff]  }
  0x48   : > { %911 = vmatpush2.bf16.msra.mxu0 %v1867_v30  ;;  %v1969_v30 = vld [vmem:[%s2050_s21 + $0x204] ss:$16 sps:$4 sm:$0xff]  }
  0x49   : > { %912 = vmatprep.subr.bf16.mxu0 %v1986_v0  ;;  %v1932_v0 = vld [vmem:[%s2050_s21 + $0x148] ss:$16 sps:$4 sm:$0xff]  }
  0x4c   : > { %913 = vmatpush2.bf16.msra.mxu0 %v1872_v33  ;;  %1116 = vmatmul.mubr.bf16.gmra.mxu1 %v1890_v36  ;;  %v1977_v33 = vld [vmem:[%s2050_s21 + $0x220] ss:$16 sps:$4 sm:$0xff]  }
  0x4d   : > { %1638 = vmatprep.mubr.msk.bf16.mxu1 %vm827_vm0, %v1894_v37 }
  0x4f   : > { %915 = vmatmul.mubr.bf16.vlgmr.msra.gmra.mxu0 %v1873_v34 }
  0x50   : > { %922 = vmatprep.mubr.bf16.mxu0 %v1879_v35 }
  0x54   : > { %1124 = vmatmul.mubr.bf16.gmra.mxu1 %v1896_v40 }
  0x55   : > { %1639 = vmatprep.mubr.msk.bf16.mxu1 %vm827_vm0, %v1900_v41 }
  0x57   : > { %923 = vmatmul.mubr.bf16.gmra.mxu0 %v1881_v38 }
  0x58   : > { %930 = vmatprep.mubr.bf16.mxu0 %v1885_v39 }
  0x5c   : > { %1132 = vmatmul.mubr.bf16.gmra.mxu1 %v1902_v44  ;;  %v2173_v44 = vld [vmem:[%s199_s24] ss:$0 sm:$0xff] }
  0x5d   : > { %1640 = vmatprep.mubr.msk.bf16.mxu1 %vm827_vm0, %v1906_v45 }
  0x5f   : > { %931 = vmatmul.mubr.bf16.gmra.mxu0 %v1887_v42 }
  0x60   : > { %938 = vmatprep.mubr.bf16.mxu0 %v1891_v43 }
  0x64   : > { %1140 = vmatmul.mubr.bf16.gmra.mxu1 %v1908_v48 }
  0x65   : > { %1641 = vmatprep.mubr.msk.bf16.mxu1 %vm827_vm0, %v1912_v49 }
  0x67   : > { %939 = vmatmul.mubr.bf16.gmra.mxu0 %v1893_v46 }
  0x68   : > { %946 = vmatprep.mubr.bf16.mxu0 %v1897_v47 }
  0x6c   : > { %1148 = vmatmul.mubr.bf16.gmra.mxu1 %v1914_v52 }
  0x6d   : > { %1642 = vmatprep.mubr.msk.bf16.mxu1 %vm827_vm0, %v1918_v53 }
  0x6f   : > { %947 = vmatmul.mubr.bf16.gmra.mxu0 %v1899_v50 }
  0x70   : > { %954 = vmatprep.mubr.bf16.mxu0 %v1903_v51 }
  0x74   : > { %1156 = vmatmul.mubr.bf16.gmra.mxu1 %v1920_v56 }
  0x75   : > { %1643 = vmatprep.mubr.msk.bf16.mxu1 %vm827_vm0, %v1924_v57 }
  0x77   : > { %955 = vmatmul.mubr.bf16.gmra.mxu0 %v1905_v54 }
  0x78   : > { %962 = vmatprep.mubr.bf16.mxu0 %v1909_v55 }
  0x7c   : > { %1164 = vmatmul.mubr.bf16.gmra.mxu1 %v1926_v60 }
  0x7d   : > { %1644 = vmatprep.mubr.msk.bf16.mxu1 %vm827_vm0, %v1930_v61 }
  0x7f   : > { %963 = vmatmul.mubr.bf16.gmra.mxu0 %v1911_v58 }
  0x80   : > { %970 = vmatprep.mubr.bf16.mxu0 %v1915_v59 }
  0x84   : > { %1172 = vmatmul.mubr.bf16.gmra.mxu1 %v1932_v0 }
  0x85   : > { %1645 = vmatprep.mubr.msk.bf16.mxu1 %vm827_vm0, %v1936_v1 }
  0x87   : > { %971 = vmatmul.mubr.bf16.gmra.mxu0 %v1917_v62 }
  0x88   : > { %978 = vmatprep.mubr.bf16.mxu0 %v1921_v63 }
  0x8c   : > { %1180 = vmatmul.mubr.bf16.gmra.mxu1 %v1938_v4 }
  0x8d   : > { %1646 = vmatprep.mubr.msk.bf16.mxu1 %vm827_vm0, %v1942_v5 }
  0x8f   : > { %979 = vmatmul.mubr.bf16.gmra.mxu0 %v1923_v2 }
  0x90   : > { %986 = vmatprep.mubr.bf16.mxu0 %v1927_v3 }
  0x94   : > { %1188 = vmatmul.mubr.bf16.gmra.mxu1 %v1944_v8 }
  0x95   : > { %1647 = vmatprep.mubr.msk.bf16.mxu1 %vm827_vm0, %v1948_v9 }
  0x97   : > { %987 = vmatmul.mubr.bf16.gmra.mxu0 %v1929_v6 }
  0x98   : > { %994 = vmatprep.mubr.bf16.mxu0 %v1933_v7 }
  0x9c   : > { %1196 = vmatmul.mubr.bf16.gmra.mxu1 %v1950_v12 }
  0x9d   : > { %1648 = vmatprep.mubr.msk.bf16.mxu1 %vm827_vm0, %v1954_v13 }
  0x9f   : > { %995 = vmatmul.mubr.bf16.gmra.mxu0 %v1935_v10 }
  0xa0   : > { %1002 = vmatprep.mubr.bf16.mxu0 %v1939_v11 }
  0xa4   : > { %1204 = vmatmul.mubr.bf16.gmra.mxu1 %v1956_v16 }
  0xa5   : > { %1649 = vmatprep.mubr.msk.bf16.mxu1 %vm827_vm0, %v1960_v17 }
  0xa7   : > { %1003 = vmatmul.mubr.bf16.gmra.mxu0 %v1941_v14 }
  0xa8   : > { %1010 = vmatprep.mubr.bf16.mxu0 %v1945_v15 }
  0xac   : > { %1212 = vmatmul.mubr.bf16.gmra.mxu1 %v1962_v20 }
  0xad   : > { %1650 = vmatprep.mubr.msk.bf16.mxu1 %vm827_vm0, %v1966_v21 }
  0xaf   : > { %1011 = vmatmul.mubr.bf16.gmra.mxu0 %v1947_v18 }
  0xb0   : > { %1018 = vmatprep.mubr.bf16.mxu0 %v1951_v19 }
  0xb4   : > { %1220 = vmatmul.mubr.bf16.gmra.mxu1 %v1968_v24 }
  0xb5   : > { %1651 = vmatprep.mubr.msk.bf16.mxu1 %vm827_vm0, %v1972_v25 }
  0xb7   : > { %1019 = vmatmul.mubr.bf16.gmra.mxu0 %v1953_v22 }
  0xb8   : > { %1026 = vmatprep.mubr.bf16.mxu0 %v1957_v23 }
  0xbc   : > { %1228 = vmatmul.mubr.bf16.gmra.mxu1 %v1974_v28 }
  0xbf   : > { %1027 = vmatmul.mubr.bf16.gmra.mxu0 %v1959_v26 }
  0xc0   : > { %1034 = vmatprep.mubr.bf16.mxu0 %v1963_v27 }
  0xc7   : > { %1035 = vmatmul.mubr.bf16.gmra.mxu0 %v1965_v29 }
  0xc8   : > { %1042 = vmatprep.mubr.bf16.mxu0 %v1969_v30 }
  0xcf   : > { %1043 = vmatmul.mubr.bf16.gmra.mxu0 %v1971_v31 }
  0xd0   : > { %1050 = vmatprep.mubr.bf16.mxu0 %v1975_v32 }
  0xd7   : > { %1051 = vmatmul.mubr.bf16.gmra.mxu0 %v1977_v33 }
  0xf4   : > { %v1093_v34 = vpop.f32.mrf.mxu1 }
  0xf6   : > { %v1095_v35 = vpop.f32.mrf.mxu1 }
  0xf8   : > { %v1096_v36 = vpop.f32.mrf.mxu1 }
  0xfa   : > { %v1098_v37 = vpop.f32.mrf.mxu1 }
  0xfc   : > { %v1101_v38 = vpop.f32.mrf.mxu1 }
  0xfe   : > { %v1103_v39 = vpop.f32.mrf.mxu1 }
 0x100   : > { %v1104_v40 = vpop.f32.mrf.mxu1 }
 0x102   : > { %v1106_v41 = vpop.f32.mrf.mxu1 }
 0x104   : > { %v1109_v42 = vpop.f32.mrf.mxu1 }
 0x106   : > { %v1111_v43 = vpop.f32.mrf.mxu1 }
 0x108   : > { %v1112_v45 = vpop.f32.mrf.mxu1 }
 0x10a   : > { %v1114_v48 = vpop.f32.mrf.mxu1 }
 0x10c   : > { %v1117_v50 = vpop.f32.mrf.mxu1 }
 0x10e   : > { %v1119_v54 = vpop.f32.mrf.mxu1 }
 0x10f   : > { %v916_v46 = vpop.f32.mrf.mxu0 }
 0x110   : > { %v917_v47 = vadd.f32 %v2173_v44, %v916_v46  ;;  %v1120_v57 = vpop.f32.mrf.mxu1 }
 0x111   : > { %v918_v49 = vpop.f32.mrf.mxu0 }
 0x112   : > { %v1094_v52 = vadd.f32 %v1093_v34, %v917_v47  ;;  %v1122_v62 = vpop.f32.mrf.mxu1 }
 0x113   : > { %v919_v51 = vpop.f32.mrf.mxu0 }
 0x114   : > { %v920_v53 = vadd.f32 %v2173_v44, %v919_v51  ;;  %v1236_v59 = vmax.f32 %v1094_v52, 0.0  ;;  %v1125_v1 = vpop.f32.mrf.mxu1 }
 0x115   : > { %v921_v55 = vpop.f32.mrf.mxu0 }
 0x116   : > { %v1097_v56 = vadd.f32 %v1096_v36, %v920_v53  ;;  %v1127_v5 = vpop.f32.mrf.mxu1 }
 0x117   : > { %v924_v58 = vpop.f32.mrf.mxu0 }
 0x118   : > { %v1237_v60 = vmax.f32 %v1097_v56, 0.0  ;;  %v925_v61 = vadd.f32 %v2173_v44, %v924_v58  ;;  %v1128_v8 = vpop.f32.mrf.mxu1 }
 0x119   : > { %v926_v63 = vpop.f32.mrf.mxu0 }
 0x11a   : > { %v1729_v0 = vpack.c.bf16 %v1237_v60, %v1236_v59  ;;  %v1102_v3 = vadd.f32 %v1101_v38, %v925_v61  ;;  %v1130_v13 = vpop.f32.mrf.mxu1 }
 0x11b   : > { %v927_v2 = vpop.f32.mrf.mxu0 }
 0x11c   : > { %1730 = vst [vmem:[%s2182_s28] sm:$0xff] %v1729_v0   ;;  %v928_v4 = vadd.f32 %v2173_v44, %v927_v2  ;;  %v1238_v10 = vmax.f32 %v1102_v3, 0.0  ;;  %v1133_v16 = vpop.f32.mrf.mxu1 }
 0x11d   : > { %v929_v6 = vpop.f32.mrf.mxu0 }
 0x11e   : > { %v1105_v7 = vadd.f32 %v1104_v40, %v928_v4  ;;  %v1135_v20 = vpop.f32.mrf.mxu1 }
 0x11f   : > { %v932_v9 = vpop.f32.mrf.mxu0 }
 0x120   : > { %v1239_v11 = vmax.f32 %v1105_v7, 0.0  ;;  %v933_v12 = vadd.f32 %v2173_v44, %v932_v9  ;;  %v1136_v23 = vpop.f32.mrf.mxu1 }
 0x121   : > { %v934_v14 = vpop.f32.mrf.mxu0 }
 0x122   : > { %v1734_v15 = vpack.c.bf16 %v1239_v11, %v1238_v10  ;;  %v1110_v18 = vadd.f32 %v1109_v42, %v933_v12  ;;  %v1138_v28 = vpop.f32.mrf.mxu1 }
 0x123   : > { %v935_v17 = vpop.f32.mrf.mxu0 }
 0x124   : > { %1816 = vst [vmem:[%s2182_s28 + $0x8] sm:$0xff] %v1734_v15   ;;  %v936_v19 = vadd.f32 %v2173_v44, %v935_v17  ;;  %v1240_v25 = vmax.f32 %v1110_v18, 0.0  ;;  %v1141_v31 = vpop.f32.mrf.mxu1 }
 0x125   : > { %v937_v21 = vpop.f32.mrf.mxu0 }
 0x126   : > { %v1113_v22 = vadd.f32 %v1112_v45, %v936_v19  ;;  %v1143_v35 = vpop.f32.mrf.mxu1 }
 0x127   : > { %v940_v24 = vpop.f32.mrf.mxu0 }
 0x128   : > { %v1241_v26 = vmax.f32 %v1113_v22, 0.0  ;;  %v941_v27 = vadd.f32 %v2173_v44, %v940_v24  ;;  %v1144_v38 = vpop.f32.mrf.mxu1 }
 0x129   : > { %v942_v29 = vpop.f32.mrf.mxu0 }
 0x12a   : > { %v1739_v30 = vpack.c.bf16 %v1241_v26, %v1240_v25  ;;  %v1118_v33 = vadd.f32 %v1117_v50, %v941_v27  ;;  %v1146_v43 = vpop.f32.mrf.mxu1 }
 0x12b   : > { %v943_v32 = vpop.f32.mrf.mxu0 }
 0x12c   : > { %1817 = vst [vmem:[%s2182_s28 + $0x10] sm:$0xff] %v1739_v30   ;;  %v944_v34 = vadd.f32 %v2173_v44, %v943_v32  ;;  %v1242_v40 = vmax.f32 %v1118_v33, 0.0  ;;  %v1149_v47 = vpop.f32.mrf.mxu1 }
 0x12d   : > { %v945_v36 = vpop.f32.mrf.mxu0 }
 0x12e   : > { %v1121_v37 = vadd.f32 %v1120_v57, %v944_v34  ;;  %v1151_v51 = vpop.f32.mrf.mxu1 }
 0x12f   : > { %v948_v39 = vpop.f32.mrf.mxu0 }
 0x130   : > { %v1243_v41 = vmax.f32 %v1121_v37, 0.0  ;;  %v949_v42 = vadd.f32 %v2173_v44, %v948_v39  ;;  %v1152_v54 = vpop.f32.mrf.mxu1 }
 0x131   : > { %v950_v45 = vpop.f32.mrf.mxu0 }
 0x132   : > { %v1744_v46 = vpack.c.bf16 %v1243_v41, %v1242_v40  ;;  %v1126_v49 = vadd.f32 %v1125_v1, %v949_v42  ;;  %v1154_v59 = vpop.f32.mrf.mxu1 }
 0x133   : > { %v951_v48 = vpop.f32.mrf.mxu0 }
 0x134   : > { %1818 = vst [vmem:[%s2182_s28 + $0x18] sm:$0xff] %v1744_v46   ;;  %v952_v50 = vadd.f32 %v2173_v44, %v951_v48  ;;  %v1244_v56 = vmax.f32 %v1126_v49, 0.0  ;;  %v1157_v62 = vpop.f32.mrf.mxu1 }
 0x135   : > { %v953_v52 = vpop.f32.mrf.mxu0 }
 0x136   : > { %v1129_v53 = vadd.f32 %v1128_v8, %v952_v50  ;;  %v1159_v2 = vpop.f32.mrf.mxu1 }
 0x137   : > { %v956_v55 = vpop.f32.mrf.mxu0 }
 0x138   : > { %v1245_v57 = vmax.f32 %v1129_v53, 0.0  ;;  %v957_v58 = vadd.f32 %v2173_v44, %v956_v55  ;;  %v1160_v5 = vpop.f32.mrf.mxu1 }
 0x139   : > { %v958_v60 = vpop.f32.mrf.mxu0 }
 0x13a   : > { %v1749_v61 = vpack.c.bf16 %v1245_v57, %v1244_v56  ;;  %v1134_v0 = vadd.f32 %v1133_v16, %v957_v58  ;;  %v1162_v10 = vpop.f32.mrf.mxu1 }
 0x13b   : > { %v959_v63 = vpop.f32.mrf.mxu0 }
 0x13c   : > { %1819 = vst [vmem:[%s2182_s28 + $0x20] sm:$0xff] %v1749_v61   ;;  %v960_v1 = vadd.f32 %v2173_v44, %v959_v63  ;;  %v1246_v7 = vmax.f32 %v1134_v0, 0.0  ;;  %v1165_v13 = vpop.f32.mrf.mxu1 }
 0x13d   : > { %v961_v3 = vpop.f32.mrf.mxu0 }
 0x13e   : > { %v1137_v4 = vadd.f32 %v1136_v23, %v960_v1  ;;  %v1167_v17 = vpop.f32.mrf.mxu1 }
 0x13f   : > { %v964_v6 = vpop.f32.mrf.mxu0 }
 0x140   : > { %v1247_v8 = vmax.f32 %v1137_v4, 0.0  ;;  %v965_v9 = vadd.f32 %v2173_v44, %v964_v6  ;;  %v1168_v20 = vpop.f32.mrf.mxu1 }
 0x141   : > { %v966_v11 = vpop.f32.mrf.mxu0 }
 0x142   : > { %v1754_v12 = vpack.c.bf16 %v1247_v8, %v1246_v7  ;;  %v1142_v15 = vadd.f32 %v1141_v31, %v965_v9  ;;  %v1170_v25 = vpop.f32.mrf.mxu1 }
 0x143   : > { %v967_v14 = vpop.f32.mrf.mxu0 }
 0x144   : > { %1820 = vst [vmem:[%s2182_s28 + $0x28] sm:$0xff] %v1754_v12   ;;  %v968_v16 = vadd.f32 %v2173_v44, %v967_v14  ;;  %v1248_v22 = vmax.f32 %v1142_v15, 0.0  ;;  %v1173_v28 = vpop.f32.mrf.mxu1 }
 0x145   : > { %v969_v18 = vpop.f32.mrf.mxu0 }
 0x146   : > { %v1145_v19 = vadd.f32 %v1144_v38, %v968_v16  ;;  %v1175_v32 = vpop.f32.mrf.mxu1 }
 0x147   : > { %v972_v21 = vpop.f32.mrf.mxu0 }
 0x148   : > { %v1249_v23 = vmax.f32 %v1145_v19, 0.0  ;;  %v973_v24 = vadd.f32 %v2173_v44, %v972_v21  ;;  %v1176_v35 = vpop.f32.mrf.mxu1 }
 0x149   : > { %v974_v26 = vpop.f32.mrf.mxu0 }
 0x14a   : > { %v1759_v27 = vpack.c.bf16 %v1249_v23, %v1248_v22  ;;  %v1150_v30 = vadd.f32 %v1149_v47, %v973_v24  ;;  %v1178_v40 = vpop.f32.mrf.mxu1 }
 0x14b   : > { %v975_v29 = vpop.f32.mrf.mxu0 }
 0x14c   : > { %1821 = vst [vmem:[%s2182_s28 + $0x30] sm:$0xff] %v1759_v27   ;;  %v976_v31 = vadd.f32 %v2173_v44, %v975_v29  ;;  %v1250_v37 = vmax.f32 %v1150_v30, 0.0  ;;  %v1181_v43 = vpop.f32.mrf.mxu1 }
 0x14d   : > { %v977_v33 = vpop.f32.mrf.mxu0 }
 0x14e   : > { %v1153_v34 = vadd.f32 %v1152_v54, %v976_v31  ;;  %v1183_v48 = vpop.f32.mrf.mxu1 }
 0x14f   : > { %v980_v36 = vpop.f32.mrf.mxu0 }
 0x150   : > { %v1251_v38 = vmax.f32 %v1153_v34, 0.0  ;;  %v981_v39 = vadd.f32 %v2173_v44, %v980_v36  ;;  %v1184_v51 = vpop.f32.mrf.mxu1 }
 0x151   : > { %v982_v41 = vpop.f32.mrf.mxu0 }
 0x152   : > { %v1764_v42 = vpack.c.bf16 %v1251_v38, %v1250_v37  ;;  %v1158_v46 = vadd.f32 %v1157_v62, %v981_v39  ;;  %v1186_v56 = vpop.f32.mrf.mxu1 }
 0x153   : > { %v983_v45 = vpop.f32.mrf.mxu0 }
 0x154   : > { %1822 = vst [vmem:[%s2182_s28 + $0x38] sm:$0xff] %v1764_v42   ;;  %v984_v47 = vadd.f32 %v2173_v44, %v983_v45  ;;  %v1252_v53 = vmax.f32 %v1158_v46, 0.0  ;;  %v1189_v59 = vpop.f32.mrf.mxu1 }
 0x155   : > { %v985_v49 = vpop.f32.mrf.mxu0 }
 0x156   : > { %v1161_v50 = vadd.f32 %v1160_v5, %v984_v47  ;;  %v1191_v63 = vpop.f32.mrf.mxu1 }
 0x157   : > { %v988_v52 = vpop.f32.mrf.mxu0 }
 0x158   : > { %v1253_v54 = vmax.f32 %v1161_v50, 0.0  ;;  %v989_v55 = vadd.f32 %v2173_v44, %v988_v52  ;;  %v1192_v2 = vpop.f32.mrf.mxu1 }
 0x159   : > { %v990_v57 = vpop.f32.mrf.mxu0 }
 0x15a   : > { %v1769_v58 = vpack.c.bf16 %v1253_v54, %v1252_v53  ;;  %v1166_v61 = vadd.f32 %v1165_v13, %v989_v55  ;;  %v1194_v7 = vpop.f32.mrf.mxu1 }
 0x15b   : > { %v991_v60 = vpop.f32.mrf.mxu0 }
 0x15c   : > { %1823 = vst [vmem:[%s2182_s28 + $0x40] sm:$0xff] %v1769_v58   ;;  %v992_v62 = vadd.f32 %v2173_v44, %v991_v60  ;;  %v1254_v4 = vmax.f32 %v1166_v61, 0.0  ;;  %v1197_v10 = vpop.f32.mrf.mxu1 }
 0x15d   : > { %v993_v0 = vpop.f32.mrf.mxu0 }
 0x15e   : > { %v1169_v1 = vadd.f32 %v1168_v20, %v992_v62  ;;  %v1199_v14 = vpop.f32.mrf.mxu1 }
 0x15f   : > { %v996_v3 = vpop.f32.mrf.mxu0 }
 0x160   : > { %v1255_v5 = vmax.f32 %v1169_v1, 0.0  ;;  %v997_v6 = vadd.f32 %v2173_v44, %v996_v3  ;;  %v1200_v17 = vpop.f32.mrf.mxu1 }
 0x161   : > { %v998_v8 = vpop.f32.mrf.mxu0 }
 0x162   : > { %v1774_v9 = vpack.c.bf16 %v1255_v5, %v1254_v4  ;;  %v1174_v12 = vadd.f32 %v1173_v28, %v997_v6  ;;  %v1202_v22 = vpop.f32.mrf.mxu1 }
 0x163   : > { %v999_v11 = vpop.f32.mrf.mxu0 }
 0x164   : > { %1824 = vst [vmem:[%s2182_s28 + $0x48] sm:$0xff] %v1774_v9   ;;  %v1000_v13 = vadd.f32 %v2173_v44, %v999_v11  ;;  %v1256_v19 = vmax.f32 %v1174_v12, 0.0  ;;  %v1205_v25 = vpop.f32.mrf.mxu1 }
 0x165   : > { %v1001_v15 = vpop.f32.mrf.mxu0 }
 0x166   : > { %v1177_v16 = vadd.f32 %v1176_v35, %v1000_v13  ;;  %v1207_v29 = vpop.f32.mrf.mxu1 }
 0x167   : > { %v1004_v18 = vpop.f32.mrf.mxu0 }
 0x168   : > { %v1257_v20 = vmax.f32 %v1177_v16, 0.0  ;;  %v1005_v21 = vadd.f32 %v2173_v44, %v1004_v18  ;;  %v1208_v32 = vpop.f32.mrf.mxu1 }
 0x169   : > { %v1006_v23 = vpop.f32.mrf.mxu0 }
 0x16a   : > { %v1779_v24 = vpack.c.bf16 %v1257_v20, %v1256_v19  ;;  %v1182_v27 = vadd.f32 %v1181_v43, %v1005_v21  ;;  %v1210_v37 = vpop.f32.mrf.mxu1 }
 0x16b   : > { %v1007_v26 = vpop.f32.mrf.mxu0 }
 0x16c   : > { %1825 = vst [vmem:[%s2182_s28 + $0x50] sm:$0xff] %v1779_v24   ;;  %v1008_v28 = vadd.f32 %v2173_v44, %v1007_v26  ;;  %v1258_v34 = vmax.f32 %v1182_v27, 0.0  ;;  %v1213_v40 = vpop.f32.mrf.mxu1 }
 0x16d   : > { %v1009_v30 = vpop.f32.mrf.mxu0 }
 0x16e   : > { %v1185_v31 = vadd.f32 %v1184_v51, %v1008_v28  ;;  %v1215_v45 = vpop.f32.mrf.mxu1 }
 0x16f   : > { %v1012_v33 = vpop.f32.mrf.mxu0 }
 0x170   : > { %v1259_v35 = vmax.f32 %v1185_v31, 0.0  ;;  %v1013_v36 = vadd.f32 %v2173_v44, %v1012_v33  ;;  %v1216_v48 = vpop.f32.mrf.mxu1 }
 0x171   : > { %v1014_v38 = vpop.f32.mrf.mxu0 }
 0x172   : > { %v1784_v39 = vpack.c.bf16 %v1259_v35, %v1258_v34  ;;  %v1190_v42 = vadd.f32 %v1189_v59, %v1013_v36  ;;  %v1218_v53 = vpop.f32.mrf.mxu1 }
 0x173   : > { %v1015_v41 = vpop.f32.mrf.mxu0 }
 0x174   : > { %1826 = vst [vmem:[%s2182_s28 + $0x58] sm:$0xff] %v1784_v39   ;;  %v1016_v43 = vadd.f32 %v2173_v44, %v1015_v41  ;;  %v1260_v50 = vmax.f32 %v1190_v42, 0.0  ;;  %v1221_v56 = vpop.f32.mrf.mxu1 }
 0x175   : > { %v1017_v46 = vpop.f32.mrf.mxu0 }
 0x176   : > { %v1193_v47 = vadd.f32 %v1192_v2, %v1016_v43  ;;  %v1223_v60 = vpop.f32.mrf.mxu1 }
 0x177   : > { %v1020_v49 = vpop.f32.mrf.mxu0 }
 0x178   : > { %v1261_v51 = vmax.f32 %v1193_v47, 0.0  ;;  %v1021_v52 = vadd.f32 %v2173_v44, %v1020_v49  ;;  %v1224_v63 = vpop.f32.mrf.mxu1 }
 0x179   : > { %v1022_v54 = vpop.f32.mrf.mxu0 }
 0x17a   : > { %v1789_v55 = vpack.c.bf16 %v1261_v51, %v1260_v50  ;;  %v1198_v58 = vadd.f32 %v1197_v10, %v1021_v52  ;;  %v1226_v4 = vpop.f32.mrf.mxu1 }
 0x17b   : > { %v1023_v57 = vpop.f32.mrf.mxu0 }
 0x17c   : > { %1827 = vst [vmem:[%s2182_s28 + $0x60] sm:$0xff] %v1789_v55   ;;  %v1024_v59 = vadd.f32 %v2173_v44, %v1023_v57  ;;  %v1262_v1 = vmax.f32 %v1198_v58, 0.0  ;;  %v1229_v7 = vpop.f32.mrf.mxu1 }
 0x17d   : > { %v1025_v61 = vpop.f32.mrf.mxu0 }
 0x17e   : > { %v1201_v62 = vadd.f32 %v1200_v17, %v1024_v59  ;;  %v1231_v11 = vpop.f32.mrf.mxu1 }
 0x17f   : > { %v1028_v0 = vpop.f32.mrf.mxu0 }
 0x180   : > { %v1263_v2 = vmax.f32 %v1201_v62, 0.0  ;;  %v1029_v3 = vadd.f32 %v2173_v44, %v1028_v0  ;;  %v1232_v14 = vpop.f32.mrf.mxu1 }
 0x181   : > { %v1030_v5 = vpop.f32.mrf.mxu0 }
 0x182   : > { %v1794_v6 = vpack.c.bf16 %v1263_v2, %v1262_v1  ;;  %v1206_v9 = vadd.f32 %v1205_v25, %v1029_v3  ;;  %v1234_v19 = vpop.f32.mrf.mxu1 }
 0x183   : > { %v1031_v8 = vpop.f32.mrf.mxu0 }
 0x184   : > { %1828 = vst [vmem:[%s2182_s28 + $0x68] sm:$0xff] %v1794_v6   ;;  %v1032_v10 = vadd.f32 %v2173_v44, %v1031_v8  ;;  %v1264_v16 = vmax.f32 %v1206_v9, 0.0 }
 0x185   : > { %v1033_v12 = vpop.f32.mrf.mxu0 }
 0x186   : > { %v1209_v13 = vadd.f32 %v1208_v32, %v1032_v10 }
 0x187   : > { %v1036_v15 = vpop.f32.mrf.mxu0 }
 0x188   : > { %v1265_v17 = vmax.f32 %v1209_v13, 0.0  ;;  %v1037_v18 = vadd.f32 %v2173_v44, %v1036_v15 }
 0x189   : > { %v1038_v20 = vpop.f32.mrf.mxu0 }
 0x18a   : > { %v1799_v21 = vpack.c.bf16 %v1265_v17, %v1264_v16  ;;  %v1214_v23 = vadd.f32 %v1213_v40, %v1037_v18 }
 0x18b   : > { %v1039_v22 = vpop.f32.mrf.mxu0 }
 0x18c   : > { %1829 = vst [vmem:[%s2182_s28 + $0x70] sm:$0xff] %v1799_v21   ;;  %v1040_v24 = vadd.f32 %v2173_v44, %v1039_v22  ;;  %v1266_v28 = vmax.f32 %v1214_v23, 0.0 }
 0x18d   : > { %v1041_v25 = vpop.f32.mrf.mxu0 }
 0x18e   : > { %v1217_v26 = vadd.f32 %v1216_v48, %v1040_v24 }
 0x18f   : > { %v1044_v27 = vpop.f32.mrf.mxu0 }
 0x190   : > { %v1267_v29 = vmax.f32 %v1217_v26, 0.0  ;;  %v1045_v30 = vadd.f32 %v2173_v44, %v1044_v27 }
 0x191   : > { %v1046_v31 = vpop.f32.mrf.mxu0 }
 0x192   : > { %v1804_v32 = vpack.c.bf16 %v1267_v29, %v1266_v28  ;;  %v1222_v34 = vadd.f32 %v1221_v56, %v1045_v30 }
 0x193   : > { %v1047_v33 = vpop.f32.mrf.mxu0 }
 0x194   : > { %1830 = vst [vmem:[%s2182_s28 + $0x78] sm:$0xff] %v1804_v32   ;;  %v1048_v35 = vadd.f32 %v2173_v44, %v1047_v33  ;;  %v1268_v39 = vmax.f32 %v1222_v34, 0.0 }
 0x195   : > { %v1049_v36 = vpop.f32.mrf.mxu0 }
 0x196   : > { %v1225_v37 = vadd.f32 %v1224_v63, %v1048_v35 }
 0x197   : > { %v1052_v38 = vpop.f32.mrf.mxu0 }
 0x198   : > { %v1269_v40 = vmax.f32 %v1225_v37, 0.0  ;;  %v1053_v41 = vadd.f32 %v2173_v44, %v1052_v38 }
 0x199   : > { %v1054_v42 = vpop.f32.mrf.mxu0 }
 0x19a   : > { %v1809_v43 = vpack.c.bf16 %v1269_v40, %v1268_v39  ;;  %v1230_v46 = vadd.f32 %v1229_v7, %v1053_v41 }
 0x19b   : > { %v1055_v45 = vpop.f32.mrf.mxu0 }
 0x19c   : > { %1831 = vst [vmem:[%s2182_s28 + $0x80] sm:$0xff] %v1809_v43   ;;  %v1056_v47 = vadd.f32 %v2173_v44, %v1055_v45  ;;  %v1270_v50 = vmax.f32 %v1230_v46, 0.0 }
 0x19d   : > { %v1057_v48 = vpop.f32.mrf.mxu0 }
 0x19e   : > { %v1233_v49 = vadd.f32 %v1232_v14, %v1056_v47 }
 0x1a0   : > { %v1271_v51 = vmax.f32 %v1233_v49, 0.0 }
 0x1a2   : > { %v1814_v52 = vpack.c.bf16 %v1271_v51, %v1270_v50 }
 0x1a4   : > { %1832 = vst [vmem:[%s2182_s28 + $0x88] sm:$0xff] %v1814_v52  }
 0x1a5 PF: > { %s13_s12 = sadd.s32 1, %s1984_s12  }
 0x1a6   : > { %p10_p4 = scmp.ge.s32.totalorder %s13_s12, 4  }
 0x1a8   :  { %12 = sbr.rel (!%p10_p4) target bundleno = 1 (0x1), region = 68 }

// kernel: agent_net_forward.7
= control target key start
LH: loop header
LB: loop body
LE: loop exit
PB: predicated region body
PF: predicated region fallthrough
CT: control target
= control target key end

     0   :  { %s6367_s24 = smov 0   ;;  %s6369_s25 = smov 0   ;;  %s7732_s0 = inlined_call_operand.vmem [shape: bf16[8,768], index: 0, kind: input, shape index: {}]   ;;  %s7733_s1 = inlined_call_operand.vmem [shape: bf16[768,1536], index: 1, kind: input, shape index: {}]   ;;  %s7734_s2 = inlined_call_operand.vmem [shape: f32[1,1536], index: 2, kind: input, shape index: {}]   ;;  %s7735_s3 = inlined_call_operand.vmem [shape: bf16[1536,512], index: 3, kind: input, shape index: {}]   ;;  %s7736_s4 = inlined_call_operand.vmem [shape: f32[1,512], index: 4, kind: input, shape index: {}]   ;;  %s7737_s5 = inlined_call_operand.vmem [shape: bf16[512,128], index: 5, kind: input, shape index: {}]   ;;  %s7738_s6 = inlined_call_operand.vmem [shape: f32[1,128], index: 6, kind: input, shape index: {}]   ;;  %s7739_s7 = inlined_call_operand.vmem [shape: f32[8,128], index: 7, kind: output, shape index: {}]  }
   0x1   :  { %s6371_s26 = smov 0  }
   0x2 LB: > { %s6383_s27 = sadd.s32 4294967295, %s6324_s26   ;;  %s6386_s28 = sadd.s32 1, %s6324_s26   ;;  %s6324_s26 = sphi %s6371_s26, %s7742_s26   ;;  %s6320_s25 = sphi %s6369_s25, %s7741_s25   ;;  %s6316_s24 = sphi %s6367_s24, %s7740_s24  }
   0x3   : > { %s42_s29 = ssub.s32 %s6324_s26, %s6386_s28  ;;  %s45_s30 = sadd.s32 1, %s6320_s25 }
   0x4   : > { %p43_p0 = scmp.eq.s32.totalorder %s42_s29, 0  ;;  %p52_p1 = scmp.ne.s32.totalorder %s6320_s25, %s6316_s24 }
   0x5   : > { %p53_p2 = scmp.eq.s32.totalorder %s6324_s26, 0  ;;  %p4939_p4 = scmp.ge.s32.totalorder %s6324_s26, 2 }
   0x6   : > { %s6395_s8 = scalar_select %p43_p0, %s6320_s25, %s45_s30  }
   0x7   : > { %p54_p3 = por %p53_p2, %p52_p1  ;;  %226 = sbr.rel (%p4939_p4) target bundleno = 161 (0xa1), region = 32 }
   0xc   : > { %229 = sbr.rel (!%p54_p3) target bundleno = 161 (0xa1), region = 36  ;;  %s231_s9 = sand.u32 (%p54_p3), 1, %s6320_s25  }
   0xd   : > { %s5467_s10 = smul.u32 (%p54_p3), 24, %s6324_s26 }
   0xe   : > { %s5513_s11 = smul.u32 (%p54_p3), 2304, %s231_s9 }
   0xf   : > { %s6403_s14 = scalar_lea.vmem (%p54_p3), %s7733_s1, %s5467_s10 }
  0x10   : > { %v249_v0 = vld [vmem:[%s6403_s14] sm:$0xff] (%p54_p3)  ;;  %v251_v1 = vld [vmem:[%s6403_s14 + $0x8] sm:$0xff] (%p54_p3)  ;;  %v253_v2 = vld [vmem:[%s6403_s14 + $0x10] sm:$0xff] (%p54_p3)  ;;  %s6408_s15 = scalar_lea.vmem (%p54_p3), [#allocation3], %s5513_s11 }
  0x11   : > { %250 = vst [vmem:[%s6408_s15] sm:$0xff] %v249_v0  ;;  %252 = vst [vmem:[%s6408_s15 + $0x8] sm:$0xff] %v251_v1  ;;  %v255_v3 = vld [vmem:[%s6403_s14 + $0x30] sm:$0xff]  ;;  %v257_v4 = vld [vmem:[%s6403_s14 + $0x38] sm:$0xff] }
  0x12   : > { %254 = vst [vmem:[%s6408_s15 + $0x10] sm:$0xff] %v253_v2  ;;  %v259_v5 = vld [vmem:[%s6403_s14 + $0x40] sm:$0xff]  ;;  %256 = vst [vmem:[%s6408_s15 + $0x18] sm:$0xff] %v255_v3  ;;  %v263_v7 = vld [vmem:[%s6403_s14 + $0x68] sm:$0xff] }
  0x13   : > { %258 = vst [vmem:[%s6408_s15 + $0x20] sm:$0xff] %v257_v4  ;;  %260 = vst [vmem:[%s6408_s15 + $0x28] sm:$0xff] %v259_v5  ;;  %v261_v6 = vld [vmem:[%s6403_s14 + $0x60] sm:$0xff]  ;;  %v265_v8 = vld [vmem:[%s6403_s14 + $0x70] sm:$0xff] }
  0x14   : > { %262 = vst [vmem:[%s6408_s15 + $0x30] sm:$0xff] %v261_v6  ;;  %264 = vst [vmem:[%s6408_s15 + $0x38] sm:$0xff] %v263_v7  ;;  %v267_v9 = vld [vmem:[%s6403_s14 + $0x90] sm:$0xff]  ;;  %v269_v10 = vld [vmem:[%s6403_s14 + $0x98] sm:$0xff] }
  0x15   : > { %266 = vst [vmem:[%s6408_s15 + $0x40] sm:$0xff] %v265_v8  ;;  %v271_v11 = vld [vmem:[%s6403_s14 + $0xa0] sm:$0xff]  ;;  %268 = vst [vmem:[%s6408_s15 + $0x48] sm:$0xff] %v267_v9  ;;  %v275_v13 = vld [vmem:[%s6403_s14 + $0xc8] sm:$0xff] }
  0x16   : > { %270 = vst [vmem:[%s6408_s15 + $0x50] sm:$0xff] %v269_v10  ;;  %272 = vst [vmem:[%s6408_s15 + $0x58] sm:$0xff] %v271_v11  ;;  %v273_v12 = vld [vmem:[%s6403_s14 + $0xc0] sm:$0xff]  ;;  %v277_v14 = vld [vmem:[%s6403_s14 + $0xd0] sm:$0xff] }
  0x17   : > { %274 = vst [vmem:[%s6408_s15 + $0x60] sm:$0xff] %v273_v12  ;;  %276 = vst [vmem:[%s6408_s15 + $0x68] sm:$0xff] %v275_v13  ;;  %v279_v15 = vld [vmem:[%s6403_s14 + $0xf0] sm:$0xff]  ;;  %v281_v16 = vld [vmem:[%s6403_s14 + $0xf8] sm:$0xff] }
  0x18   : > { %278 = vst [vmem:[%s6408_s15 + $0x70] sm:$0xff] %v277_v14  ;;  %v283_v17 = vld [vmem:[%s6403_s14 + $0x100] sm:$0xff]  ;;  %280 = vst [vmem:[%s6408_s15 + $0x78] sm:$0xff] %v279_v15  ;;  %v287_v19 = vld [vmem:[%s6403_s14 + $0x128] sm:$0xff] }
  0x19   : > { %282 = vst [vmem:[%s6408_s15 + $0x80] sm:$0xff] %v281_v16  ;;  %284 = vst [vmem:[%s6408_s15 + $0x88] sm:$0xff] %v283_v17  ;;  %v285_v18 = vld [vmem:[%s6403_s14 + $0x120] sm:$0xff]  ;;  %v289_v20 = vld [vmem:[%s6403_s14 + $0x130] sm:$0xff] }
  0x1a   : > { %286 = vst [vmem:[%s6408_s15 + $0x90] sm:$0xff] %v285_v18  ;;  %288 = vst [vmem:[%s6408_s15 + $0x98] sm:$0xff] %v287_v19  ;;  %v291_v21 = vld [vmem:[%s6403_s14 + $0x150] sm:$0xff]  ;;  %v293_v22 = vld [vmem:[%s6403_s14 + $0x158] sm:$0xff] }
  0x1b   : > { %290 = vst [vmem:[%s6408_s15 + $0xa0] sm:$0xff] %v289_v20  ;;  %v295_v23 = vld [vmem:[%s6403_s14 + $0x160] sm:$0xff]  ;;  %292 = vst [vmem:[%s6408_s15 + $0xa8] sm:$0xff] %v291_v21  ;;  %v299_v25 = vld [vmem:[%s6403_s14 + $0x188] sm:$0xff] }
  0x1c   : > { %294 = vst [vmem:[%s6408_s15 + $0xb0] sm:$0xff] %v293_v22  ;;  %296 = vst [vmem:[%s6408_s15 + $0xb8] sm:$0xff] %v295_v23  ;;  %v297_v24 = vld [vmem:[%s6403_s14 + $0x180] sm:$0xff]  ;;  %v301_v26 = vld [vmem:[%s6403_s14 + $0x190] sm:$0xff] }
  0x1d   : > { %298 = vst [vmem:[%s6408_s15 + $0xc0] sm:$0xff] %v297_v24  ;;  %300 = vst [vmem:[%s6408_s15 + $0xc8] sm:$0xff] %v299_v25  ;;  %v303_v27 = vld [vmem:[%s6403_s14 + $0x1b0] sm:$0xff]  ;;  %v305_v28 = vld [vmem:[%s6403_s14 + $0x1b8] sm:$0xff] }
  0x1e   : > { %302 = vst [vmem:[%s6408_s15 + $0xd0] sm:$0xff] %v301_v26  ;;  %v307_v29 = vld [vmem:[%s6403_s14 + $0x1c0] sm:$0xff]  ;;  %304 = vst [vmem:[%s6408_s15 + $0xd8] sm:$0xff] %v303_v27  ;;  %v311_v31 = vld [vmem:[%s6403_s14 + $0x1e8] sm:$0xff] }
  0x1f   : > { %306 = vst [vmem:[%s6408_s15 + $0xe0] sm:$0xff] %v305_v28  ;;  %308 = vst [vmem:[%s6408_s15 + $0xe8] sm:$0xff] %v307_v29  ;;  %v309_v30 = vld [vmem:[%s6403_s14 + $0x1e0] sm:$0xff]  ;;  %v313_v32 = vld [vmem:[%s6403_s14 + $0x1f0] sm:$0xff] }
  0x20   : > { %310 = vst [vmem:[%s6408_s15 + $0xf0] sm:$0xff] %v309_v30  ;;  %312 = vst [vmem:[%s6408_s15 + $0xf8] sm:$0xff] %v311_v31  ;;  %v315_v33 = vld [vmem:[%s6403_s14 + $0x210] sm:$0xff]  ;;  %v317_v34 = vld [vmem:[%s6403_s14 + $0x218] sm:$0xff] }
  0x21   : > { %314 = vst [vmem:[%s6408_s15 + $0x100] sm:$0xff] %v313_v32  ;;  %v319_v35 = vld [vmem:[%s6403_s14 + $0x220] sm:$0xff]  ;;  %316 = vst [vmem:[%s6408_s15 + $0x108] sm:$0xff] %v315_v33  ;;  %v323_v37 = vld [vmem:[%s6403_s14 + $0x248] sm:$0xff] }
  0x22   : > { %318 = vst [vmem:[%s6408_s15 + $0x110] sm:$0xff] %v317_v34  ;;  %320 = vst [vmem:[%s6408_s15 + $0x118] sm:$0xff] %v319_v35  ;;  %v321_v36 = vld [vmem:[%s6403_s14 + $0x240] sm:$0xff]  ;;  %v325_v38 = vld [vmem:[%s6403_s14 + $0x250] sm:$0xff] }
  0x23   : > { %322 = vst [vmem:[%s6408_s15 + $0x120] sm:$0xff] %v321_v36  ;;  %324 = vst [vmem:[%s6408_s15 + $0x128] sm:$0xff] %v323_v37  ;;  %v327_v39 = vld [vmem:[%s6403_s14 + $0x270] sm:$0xff]  ;;  %v329_v40 = vld [vmem:[%s6403_s14 + $0x278] sm:$0xff] }
  0x24   : > { %326 = vst [vmem:[%s6408_s15 + $0x130] sm:$0xff] %v325_v38  ;;  %v331_v41 = vld [vmem:[%s6403_s14 + $0x280] sm:$0xff]  ;;  %328 = vst [vmem:[%s6408_s15 + $0x138] sm:$0xff] %v327_v39  ;;  %v335_v43 = vld [vmem:[%s6403_s14 + $0x2a8] sm:$0xff] }
  0x25   : > { %330 = vst [vmem:[%s6408_s15 + $0x140] sm:$0xff] %v329_v40  ;;  %332 = vst [vmem:[%s6408_s15 + $0x148] sm:$0xff] %v331_v41  ;;  %v333_v42 = vld [vmem:[%s6403_s14 + $0x2a0] sm:$0xff]  ;;  %v337_v44 = vld [vmem:[%s6403_s14 + $0x2b0] sm:$0xff] }
  0x26   : > { %334 = vst [vmem:[%s6408_s15 + $0x150] sm:$0xff] %v333_v42  ;;  %336 = vst [vmem:[%s6408_s15 + $0x158] sm:$0xff] %v335_v43  ;;  %v339_v45 = vld [vmem:[%s6403_s14 + $0x2d0] sm:$0xff]  ;;  %v341_v46 = vld [vmem:[%s6403_s14 + $0x2d8] sm:$0xff] }
  0x27   : > { %338 = vst [vmem:[%s6408_s15 + $0x160] sm:$0xff] %v337_v44  ;;  %v343_v47 = vld [vmem:[%s6403_s14 + $0x2e0] sm:$0xff]  ;;  %340 = vst [vmem:[%s6408_s15 + $0x168] sm:$0xff] %v339_v45  ;;  %v347_v49 = vld [vmem:[%s6403_s14 + $0x308] sm:$0xff] }
  0x28   : > { %342 = vst [vmem:[%s6408_s15 + $0x170] sm:$0xff] %v341_v46  ;;  %344 = vst [vmem:[%s6408_s15 + $0x178] sm:$0xff] %v343_v47  ;;  %v345_v48 = vld [vmem:[%s6403_s14 + $0x300] sm:$0xff]  ;;  %v349_v50 = vld [vmem:[%s6403_s14 + $0x310] sm:$0xff] }
  0x29   : > { %346 = vst [vmem:[%s6408_s15 + $0x180] sm:$0xff] %v345_v48  ;;  %348 = vst [vmem:[%s6408_s15 + $0x188] sm:$0xff] %v347_v49  ;;  %v351_v51 = vld [vmem:[%s6403_s14 + $0x330] sm:$0xff]  ;;  %v353_v52 = vld [vmem:[%s6403_s14 + $0x338] sm:$0xff] }
  0x2a   : > { %350 = vst [vmem:[%s6408_s15 + $0x190] sm:$0xff] %v349_v50  ;;  %v355_v53 = vld [vmem:[%s6403_s14 + $0x340] sm:$0xff]  ;;  %352 = vst [vmem:[%s6408_s15 + $0x198] sm:$0xff] %v351_v51  ;;  %v359_v55 = vld [vmem:[%s6403_s14 + $0x368] sm:$0xff] }
  0x2b   : > { %354 = vst [vmem:[%s6408_s15 + $0x1a0] sm:$0xff] %v353_v52  ;;  %356 = vst [vmem:[%s6408_s15 + $0x1a8] sm:$0xff] %v355_v53  ;;  %v357_v54 = vld [vmem:[%s6403_s14 + $0x360] sm:$0xff]  ;;  %v361_v56 = vld [vmem:[%s6403_s14 + $0x370] sm:$0xff] }
  0x2c   : > { %358 = vst [vmem:[%s6408_s15 + $0x1b0] sm:$0xff] %v357_v54  ;;  %360 = vst [vmem:[%s6408_s15 + $0x1b8] sm:$0xff] %v359_v55  ;;  %v363_v57 = vld [vmem:[%s6403_s14 + $0x390] sm:$0xff]  ;;  %v365_v58 = vld [vmem:[%s6403_s14 + $0x398] sm:$0xff] }
  0x2d   : > { %362 = vst [vmem:[%s6408_s15 + $0x1c0] sm:$0xff] %v361_v56  ;;  %v367_v59 = vld [vmem:[%s6403_s14 + $0x3a0] sm:$0xff]  ;;  %364 = vst [vmem:[%s6408_s15 + $0x1c8] sm:$0xff] %v363_v57  ;;  %v371_v61 = vld [vmem:[%s6403_s14 + $0x3c8] sm:$0xff] }
  0x2e   : > { %366 = vst [vmem:[%s6408_s15 + $0x1d0] sm:$0xff] %v365_v58  ;;  %368 = vst [vmem:[%s6408_s15 + $0x1d8] sm:$0xff] %v367_v59  ;;  %v369_v60 = vld [vmem:[%s6403_s14 + $0x3c0] sm:$0xff]  ;;  %v373_v62 = vld [vmem:[%s6403_s14 + $0x3d0] sm:$0xff] }
  0x2f   : > { %370 = vst [vmem:[%s6408_s15 + $0x1e0] sm:$0xff] %v369_v60  ;;  %372 = vst [vmem:[%s6408_s15 + $0x1e8] sm:$0xff] %v371_v61  ;;  %v375_v63 = vld [vmem:[%s6403_s14 + $0x3f0] sm:$0xff]  ;;  %v377_v0 = vld [vmem:[%s6403_s14 + $0x3f8] sm:$0xff] }
  0x30   : > { %374 = vst [vmem:[%s6408_s15 + $0x1f0] sm:$0xff] %v373_v62  ;;  %v379_v1 = vld [vmem:[%s6403_s14 + $0x400] sm:$0xff]  ;;  %376 = vst [vmem:[%s6408_s15 + $0x1f8] sm:$0xff] %v375_v63  ;;  %v383_v3 = vld [vmem:[%s6403_s14 + $0x428] sm:$0xff] }
  0x31   : > { %378 = vst [vmem:[%s6408_s15 + $0x200] sm:$0xff] %v377_v0  ;;  %380 = vst [vmem:[%s6408_s15 + $0x208] sm:$0xff] %v379_v1  ;;  %v381_v2 = vld [vmem:[%s6403_s14 + $0x420] sm:$0xff]  ;;  %v385_v4 = vld [vmem:[%s6403_s14 + $0x430] sm:$0xff] }
  0x32   : > { %382 = vst [vmem:[%s6408_s15 + $0x210] sm:$0xff] %v381_v2  ;;  %384 = vst [vmem:[%s6408_s15 + $0x218] sm:$0xff] %v383_v3  ;;  %v387_v5 = vld [vmem:[%s6403_s14 + $0x450] sm:$0xff]  ;;  %v389_v6 = vld [vmem:[%s6403_s14 + $0x458] sm:$0xff] }
  0x33   : > { %386 = vst [vmem:[%s6408_s15 + $0x220] sm:$0xff] %v385_v4  ;;  %v391_v7 = vld [vmem:[%s6403_s14 + $0x460] sm:$0xff]  ;;  %388 = vst [vmem:[%s6408_s15 + $0x228] sm:$0xff] %v387_v5  ;;  %v395_v9 = vld [vmem:[%s6403_s14 + $0x488] sm:$0xff] }
  0x34   : > { %390 = vst [vmem:[%s6408_s15 + $0x230] sm:$0xff] %v389_v6  ;;  %392 = vst [vmem:[%s6408_s15 + $0x238] sm:$0xff] %v391_v7  ;;  %v393_v8 = vld [vmem:[%s6403_s14 + $0x480] sm:$0xff]  ;;  %v397_v10 = vld [vmem:[%s6403_s14 + $0x490] sm:$0xff] }
  0x35   : > { %394 = vst [vmem:[%s6408_s15 + $0x240] sm:$0xff] %v393_v8  ;;  %396 = vst [vmem:[%s6408_s15 + $0x248] sm:$0xff] %v395_v9  ;;  %v399_v11 = vld [vmem:[%s6403_s14 + $0x4b0] sm:$0xff]  ;;  %v401_v12 = vld [vmem:[%s6403_s14 + $0x4b8] sm:$0xff] }
  0x36   : > { %398 = vst [vmem:[%s6408_s15 + $0x250] sm:$0xff] %v397_v10  ;;  %v403_v13 = vld [vmem:[%s6403_s14 + $0x4c0] sm:$0xff]  ;;  %400 = vst [vmem:[%s6408_s15 + $0x258] sm:$0xff] %v399_v11  ;;  %v407_v15 = vld [vmem:[%s6403_s14 + $0x4e8] sm:$0xff] }
  0x37   : > { %402 = vst [vmem:[%s6408_s15 + $0x260] sm:$0xff] %v401_v12  ;;  %404 = vst [vmem:[%s6408_s15 + $0x268] sm:$0xff] %v403_v13  ;;  %v405_v14 = vld [vmem:[%s6403_s14 + $0x4e0] sm:$0xff]  ;;  %v409_v16 = vld [vmem:[%s6403_s14 + $0x4f0] sm:$0xff] }
  0x38   : > { %406 = vst [vmem:[%s6408_s15 + $0x270] sm:$0xff] %v405_v14  ;;  %408 = vst [vmem:[%s6408_s15 + $0x278] sm:$0xff] %v407_v15  ;;  %v411_v17 = vld [vmem:[%s6403_s14 + $0x510] sm:$0xff]  ;;  %v413_v18 = vld [vmem:[%s6403_s14 + $0x518] sm:$0xff] }
  0x39   : > { %410 = vst [vmem:[%s6408_s15 + $0x280] sm:$0xff] %v409_v16  ;;  %v415_v19 = vld [vmem:[%s6403_s14 + $0x520] sm:$0xff]  ;;  %412 = vst [vmem:[%s6408_s15 + $0x288] sm:$0xff] %v411_v17  ;;  %v419_v21 = vld [vmem:[%s6403_s14 + $0x548] sm:$0xff] }
  0x3a   : > { %414 = vst [vmem:[%s6408_s15 + $0x290] sm:$0xff] %v413_v18  ;;  %416 = vst [vmem:[%s6408_s15 + $0x298] sm:$0xff] %v415_v19  ;;  %v417_v20 = vld [vmem:[%s6403_s14 + $0x540] sm:$0xff]  ;;  %v421_v22 = vld [vmem:[%s6403_s14 + $0x550] sm:$0xff] }
  0x3b   : > { %418 = vst [vmem:[%s6408_s15 + $0x2a0] sm:$0xff] %v417_v20  ;;  %420 = vst [vmem:[%s6408_s15 + $0x2a8] sm:$0xff] %v419_v21  ;;  %v423_v23 = vld [vmem:[%s6403_s14 + $0x570] sm:$0xff]  ;;  %v425_v24 = vld [vmem:[%s6403_s14 + $0x578] sm:$0xff] }
  0x3c   : > { %422 = vst [vmem:[%s6408_s15 + $0x2b0] sm:$0xff] %v421_v22  ;;  %v427_v25 = vld [vmem:[%s6403_s14 + $0x580] sm:$0xff]  ;;  %424 = vst [vmem:[%s6408_s15 + $0x2b8] sm:$0xff] %v423_v23  ;;  %v431_v27 = vld [vmem:[%s6403_s14 + $0x5a8] sm:$0xff] }
  0x3d   : > { %426 = vst [vmem:[%s6408_s15 + $0x2c0] sm:$0xff] %v425_v24  ;;  %428 = vst [vmem:[%s6408_s15 + $0x2c8] sm:$0xff] %v427_v25  ;;  %v429_v26 = vld [vmem:[%s6403_s14 + $0x5a0] sm:$0xff]  ;;  %v433_v28 = vld [vmem:[%s6403_s14 + $0x5b0] sm:$0xff] }
  0x3e   : > { %430 = vst [vmem:[%s6408_s15 + $0x2d0] sm:$0xff] %v429_v26  ;;  %432 = vst [vmem:[%s6408_s15 + $0x2d8] sm:$0xff] %v431_v27  ;;  %v435_v29 = vld [vmem:[%s6403_s14 + $0x5d0] sm:$0xff]  ;;  %v437_v30 = vld [vmem:[%s6403_s14 + $0x5d8] sm:$0xff] }
  0x3f   : > { %434 = vst [vmem:[%s6408_s15 + $0x2e0] sm:$0xff] %v433_v28  ;;  %v439_v31 = vld [vmem:[%s6403_s14 + $0x5e0] sm:$0xff]  ;;  %436 = vst [vmem:[%s6408_s15 + $0x2e8] sm:$0xff] %v435_v29  ;;  %v443_v33 = vld [vmem:[%s6403_s14 + $0x608] sm:$0xff] }
  0x40   : > { %438 = vst [vmem:[%s6408_s15 + $0x2f0] sm:$0xff] %v437_v30  ;;  %440 = vst [vmem:[%s6408_s15 + $0x2f8] sm:$0xff] %v439_v31  ;;  %v441_v32 = vld [vmem:[%s6403_s14 + $0x600] sm:$0xff]  ;;  %v445_v34 = vld [vmem:[%s6403_s14 + $0x610] sm:$0xff] }
  0x41   : > { %442 = vst [vmem:[%s6408_s15 + $0x300] sm:$0xff] %v441_v32  ;;  %444 = vst [vmem:[%s6408_s15 + $0x308] sm:$0xff] %v443_v33  ;;  %v447_v35 = vld [vmem:[%s6403_s14 + $0x630] sm:$0xff]  ;;  %v449_v36 = vld [vmem:[%s6403_s14 + $0x638] sm:$0xff] }
  0x42   : > { %446 = vst [vmem:[%s6408_s15 + $0x310] sm:$0xff] %v445_v34  ;;  %v451_v37 = vld [vmem:[%s6403_s14 + $0x640] sm:$0xff]  ;;  %448 = vst [vmem:[%s6408_s15 + $0x318] sm:$0xff] %v447_v35  ;;  %v455_v39 = vld [vmem:[%s6403_s14 + $0x668] sm:$0xff] }
  0x43   : > { %450 = vst [vmem:[%s6408_s15 + $0x320] sm:$0xff] %v449_v36  ;;  %452 = vst [vmem:[%s6408_s15 + $0x328] sm:$0xff] %v451_v37  ;;  %v453_v38 = vld [vmem:[%s6403_s14 + $0x660] sm:$0xff]  ;;  %v457_v40 = vld [vmem:[%s6403_s14 + $0x670] sm:$0xff] }
  0x44   : > { %454 = vst [vmem:[%s6408_s15 + $0x330] sm:$0xff] %v453_v38  ;;  %456 = vst [vmem:[%s6408_s15 + $0x338] sm:$0xff] %v455_v39  ;;  %v459_v41 = vld [vmem:[%s6403_s14 + $0x690] sm:$0xff]  ;;  %v461_v42 = vld [vmem:[%s6403_s14 + $0x698] sm:$0xff] }
  0x45   : > { %458 = vst [vmem:[%s6408_s15 + $0x340] sm:$0xff] %v457_v40  ;;  %v463_v43 = vld [vmem:[%s6403_s14 + $0x6a0] sm:$0xff]  ;;  %460 = vst [vmem:[%s6408_s15 + $0x348] sm:$0xff] %v459_v41  ;;  %v467_v45 = vld [vmem:[%s6403_s14 + $0x6c8] sm:$0xff] }
  0x46   : > { %462 = vst [vmem:[%s6408_s15 + $0x350] sm:$0xff] %v461_v42  ;;  %464 = vst [vmem:[%s6408_s15 + $0x358] sm:$0xff] %v463_v43  ;;  %v465_v44 = vld [vmem:[%s6403_s14 + $0x6c0] sm:$0xff]  ;;  %v469_v46 = vld [vmem:[%s6403_s14 + $0x6d0] sm:$0xff] }
  0x47   : > { %466 = vst [vmem:[%s6408_s15 + $0x360] sm:$0xff] %v465_v44  ;;  %468 = vst [vmem:[%s6408_s15 + $0x368] sm:$0xff] %v467_v45  ;;  %v471_v47 = vld [vmem:[%s6403_s14 + $0x6f0] sm:$0xff]  ;;  %v473_v48 = vld [vmem:[%s6403_s14 + $0x6f8] sm:$0xff] }
  0x48   : > { %470 = vst [vmem:[%s6408_s15 + $0x370] sm:$0xff] %v469_v46  ;;  %v475_v49 = vld [vmem:[%s6403_s14 + $0x700] sm:$0xff]  ;;  %472 = vst [vmem:[%s6408_s15 + $0x378] sm:$0xff] %v471_v47  ;;  %v479_v51 = vld [vmem:[%s6403_s14 + $0x728] sm:$0xff] }
  0x49   : > { %474 = vst [vmem:[%s6408_s15 + $0x380] sm:$0xff] %v473_v48  ;;  %476 = vst [vmem:[%s6408_s15 + $0x388] sm:$0xff] %v475_v49  ;;  %v477_v50 = vld [vmem:[%s6403_s14 + $0x720] sm:$0xff]  ;;  %v481_v52 = vld [vmem:[%s6403_s14 + $0x730] sm:$0xff] }
  0x4a   : > { %478 = vst [vmem:[%s6408_s15 + $0x390] sm:$0xff] %v477_v50  ;;  %480 = vst [vmem:[%s6408_s15 + $0x398] sm:$0xff] %v479_v51  ;;  %v483_v53 = vld [vmem:[%s6403_s14 + $0x750] sm:$0xff]  ;;  %v485_v54 = vld [vmem:[%s6403_s14 + $0x758] sm:$0xff] }
  0x4b   : > { %482 = vst [vmem:[%s6408_s15 + $0x3a0] sm:$0xff] %v481_v52  ;;  %v487_v55 = vld [vmem:[%s6403_s14 + $0x760] sm:$0xff]  ;;  %484 = vst [vmem:[%s6408_s15 + $0x3a8] sm:$0xff] %v483_v53  ;;  %v491_v57 = vld [vmem:[%s6403_s14 + $0x788] sm:$0xff] }
  0x4c   : > { %486 = vst [vmem:[%s6408_s15 + $0x3b0] sm:$0xff] %v485_v54  ;;  %488 = vst [vmem:[%s6408_s15 + $0x3b8] sm:$0xff] %v487_v55  ;;  %v489_v56 = vld [vmem:[%s6403_s14 + $0x780] sm:$0xff]  ;;  %v493_v58 = vld [vmem:[%s6403_s14 + $0x790] sm:$0xff] }
  0x4d   : > { %490 = vst [vmem:[%s6408_s15 + $0x3c0] sm:$0xff] %v489_v56  ;;  %492 = vst [vmem:[%s6408_s15 + $0x3c8] sm:$0xff] %v491_v57  ;;  %v495_v59 = vld [vmem:[%s6403_s14 + $0x7b0] sm:$0xff]  ;;  %v497_v60 = vld [vmem:[%s6403_s14 + $0x7b8] sm:$0xff] }
  0x4e   : > { %494 = vst [vmem:[%s6408_s15 + $0x3d0] sm:$0xff] %v493_v58  ;;  %v499_v61 = vld [vmem:[%s6403_s14 + $0x7c0] sm:$0xff]  ;;  %496 = vst [vmem:[%s6408_s15 + $0x3d8] sm:$0xff] %v495_v59  ;;  %v503_v63 = vld [vmem:[%s6403_s14 + $0x7e8] sm:$0xff] }
  0x4f   : > { %498 = vst [vmem:[%s6408_s15 + $0x3e0] sm:$0xff] %v497_v60  ;;  %500 = vst [vmem:[%s6408_s15 + $0x3e8] sm:$0xff] %v499_v61  ;;  %v501_v62 = vld [vmem:[%s6403_s14 + $0x7e0] sm:$0xff]  ;;  %v505_v0 = vld [vmem:[%s6403_s14 + $0x7f0] sm:$0xff] }
  0x50   : > { %502 = vst [vmem:[%s6408_s15 + $0x3f0] sm:$0xff] %v501_v62  ;;  %504 = vst [vmem:[%s6408_s15 + $0x3f8] sm:$0xff] %v503_v63  ;;  %v507_v1 = vld [vmem:[%s6403_s14 + $0x810] sm:$0xff]  ;;  %v509_v2 = vld [vmem:[%s6403_s14 + $0x818] sm:$0xff] }
  0x51   : > { %506 = vst [vmem:[%s6408_s15 + $0x400] sm:$0xff] %v505_v0  ;;  %v511_v3 = vld [vmem:[%s6403_s14 + $0x820] sm:$0xff]  ;;  %508 = vst [vmem:[%s6408_s15 + $0x408] sm:$0xff] %v507_v1  ;;  %v515_v5 = vld [vmem:[%s6403_s14 + $0x848] sm:$0xff] }
  0x52   : > { %510 = vst [vmem:[%s6408_s15 + $0x410] sm:$0xff] %v509_v2  ;;  %512 = vst [vmem:[%s6408_s15 + $0x418] sm:$0xff] %v511_v3  ;;  %v513_v4 = vld [vmem:[%s6403_s14 + $0x840] sm:$0xff]  ;;  %v517_v6 = vld [vmem:[%s6403_s14 + $0x850] sm:$0xff] }
  0x53   : > { %514 = vst [vmem:[%s6408_s15 + $0x420] sm:$0xff] %v513_v4  ;;  %516 = vst [vmem:[%s6408_s15 + $0x428] sm:$0xff] %v515_v5  ;;  %v519_v7 = vld [vmem:[%s6403_s14 + $0x870] sm:$0xff]  ;;  %v521_v8 = vld [vmem:[%s6403_s14 + $0x878] sm:$0xff] }
  0x54   : > { %518 = vst [vmem:[%s6408_s15 + $0x430] sm:$0xff] %v517_v6  ;;  %v523_v9 = vld [vmem:[%s6403_s14 + $0x880] sm:$0xff]  ;;  %520 = vst [vmem:[%s6408_s15 + $0x438] sm:$0xff] %v519_v7  ;;  %v527_v11 = vld [vmem:[%s6403_s14 + $0x8a8] sm:$0xff] }
  0x55   : > { %522 = vst [vmem:[%s6408_s15 + $0x440] sm:$0xff] %v521_v8  ;;  %524 = vst [vmem:[%s6408_s15 + $0x448] sm:$0xff] %v523_v9  ;;  %v525_v10 = vld [vmem:[%s6403_s14 + $0x8a0] sm:$0xff]  ;;  %v529_v12 = vld [vmem:[%s6403_s14 + $0x8b0] sm:$0xff] }
  0x56   : > { %526 = vst [vmem:[%s6408_s15 + $0x450] sm:$0xff] %v525_v10  ;;  %528 = vst [vmem:[%s6408_s15 + $0x458] sm:$0xff] %v527_v11  ;;  %v531_v13 = vld [vmem:[%s6403_s14 + $0x8d0] sm:$0xff]  ;;  %v533_v14 = vld [vmem:[%s6403_s14 + $0x8d8] sm:$0xff] }
  0x57   : > { %530 = vst [vmem:[%s6408_s15 + $0x460] sm:$0xff] %v529_v12  ;;  %v535_v15 = vld [vmem:[%s6403_s14 + $0x8e0] sm:$0xff]  ;;  %532 = vst [vmem:[%s6408_s15 + $0x468] sm:$0xff] %v531_v13  ;;  %v539_v17 = vld [vmem:[%s6403_s14 + $0x908] sm:$0xff] }
  0x58   : > { %534 = vst [vmem:[%s6408_s15 + $0x470] sm:$0xff] %v533_v14  ;;  %536 = vst [vmem:[%s6408_s15 + $0x478] sm:$0xff] %v535_v15  ;;  %v537_v16 = vld [vmem:[%s6403_s14 + $0x900] sm:$0xff]  ;;  %v541_v18 = vld [vmem:[%s6403_s14 + $0x910] sm:$0xff] }
  0x59   : > { %538 = vst [vmem:[%s6408_s15 + $0x480] sm:$0xff] %v537_v16  ;;  %540 = vst [vmem:[%s6408_s15 + $0x488] sm:$0xff] %v539_v17  ;;  %v543_v19 = vld [vmem:[%s6403_s14 + $0x930] sm:$0xff]  ;;  %v545_v20 = vld [vmem:[%s6403_s14 + $0x938] sm:$0xff] }
  0x5a   : > { %542 = vst [vmem:[%s6408_s15 + $0x490] sm:$0xff] %v541_v18  ;;  %v547_v21 = vld [vmem:[%s6403_s14 + $0x940] sm:$0xff]  ;;  %544 = vst [vmem:[%s6408_s15 + $0x498] sm:$0xff] %v543_v19  ;;  %v551_v23 = vld [vmem:[%s6403_s14 + $0x968] sm:$0xff] }
  0x5b   : > { %546 = vst [vmem:[%s6408_s15 + $0x4a0] sm:$0xff] %v545_v20  ;;  %548 = vst [vmem:[%s6408_s15 + $0x4a8] sm:$0xff] %v547_v21  ;;  %v549_v22 = vld [vmem:[%s6403_s14 + $0x960] sm:$0xff]  ;;  %v553_v24 = vld [vmem:[%s6403_s14 + $0x970] sm:$0xff] }
  0x5c   : > { %550 = vst [vmem:[%s6408_s15 + $0x4b0] sm:$0xff] %v549_v22  ;;  %552 = vst [vmem:[%s6408_s15 + $0x4b8] sm:$0xff] %v551_v23  ;;  %v555_v25 = vld [vmem:[%s6403_s14 + $0x990] sm:$0xff]  ;;  %v557_v26 = vld [vmem:[%s6403_s14 + $0x998] sm:$0xff] }
  0x5d   : > { %554 = vst [vmem:[%s6408_s15 + $0x4c0] sm:$0xff] %v553_v24  ;;  %v559_v27 = vld [vmem:[%s6403_s14 + $0x9a0] sm:$0xff]  ;;  %556 = vst [vmem:[%s6408_s15 + $0x4c8] sm:$0xff] %v555_v25  ;;  %v563_v29 = vld [vmem:[%s6403_s14 + $0x9c8] sm:$0xff] }
  0x5e   : > { %558 = vst [vmem:[%s6408_s15 + $0x4d0] sm:$0xff] %v557_v26  ;;  %560 = vst [vmem:[%s6408_s15 + $0x4d8] sm:$0xff] %v559_v27  ;;  %v561_v28 = vld [vmem:[%s6403_s14 + $0x9c0] sm:$0xff]  ;;  %v565_v30 = vld [vmem:[%s6403_s14 + $0x9d0] sm:$0xff] }
  0x5f   : > { %562 = vst [vmem:[%s6408_s15 + $0x4e0] sm:$0xff] %v561_v28  ;;  %564 = vst [vmem:[%s6408_s15 + $0x4e8] sm:$0xff] %v563_v29  ;;  %v567_v31 = vld [vmem:[%s6403_s14 + $0x9f0] sm:$0xff]  ;;  %v569_v32 = vld [vmem:[%s6403_s14 + $0x9f8] sm:$0xff] }
  0x60   : > { %566 = vst [vmem:[%s6408_s15 + $0x4f0] sm:$0xff] %v565_v30  ;;  %v571_v33 = vld [vmem:[%s6403_s14 + $0xa00] sm:$0xff]  ;;  %568 = vst [vmem:[%s6408_s15 + $0x4f8] sm:$0xff] %v567_v31  ;;  %v575_v35 = vld [vmem:[%s6403_s14 + $0xa28] sm:$0xff] }
  0x61   : > { %570 = vst [vmem:[%s6408_s15 + $0x500] sm:$0xff] %v569_v32  ;;  %572 = vst [vmem:[%s6408_s15 + $0x508] sm:$0xff] %v571_v33  ;;  %v573_v34 = vld [vmem:[%s6403_s14 + $0xa20] sm:$0xff]  ;;  %v577_v36 = vld [vmem:[%s6403_s14 + $0xa30] sm:$0xff] }
  0x62   : > { %574 = vst [vmem:[%s6408_s15 + $0x510] sm:$0xff] %v573_v34  ;;  %576 = vst [vmem:[%s6408_s15 + $0x518] sm:$0xff] %v575_v35  ;;  %v579_v37 = vld [vmem:[%s6403_s14 + $0xa50] sm:$0xff]  ;;  %v581_v38 = vld [vmem:[%s6403_s14 + $0xa58] sm:$0xff] }
  0x63   : > { %578 = vst [vmem:[%s6408_s15 + $0x520] sm:$0xff] %v577_v36  ;;  %v583_v39 = vld [vmem:[%s6403_s14 + $0xa60] sm:$0xff]  ;;  %580 = vst [vmem:[%s6408_s15 + $0x528] sm:$0xff] %v579_v37  ;;  %v587_v41 = vld [vmem:[%s6403_s14 + $0xa88] sm:$0xff] }
  0x64   : > { %582 = vst [vmem:[%s6408_s15 + $0x530] sm:$0xff] %v581_v38  ;;  %584 = vst [vmem:[%s6408_s15 + $0x538] sm:$0xff] %v583_v39  ;;  %v585_v40 = vld [vmem:[%s6403_s14 + $0xa80] sm:$0xff]  ;;  %v589_v42 = vld [vmem:[%s6403_s14 + $0xa90] sm:$0xff] }
  0x65   : > { %586 = vst [vmem:[%s6408_s15 + $0x540] sm:$0xff] %v585_v40  ;;  %588 = vst [vmem:[%s6408_s15 + $0x548] sm:$0xff] %v587_v41  ;;  %v591_v43 = vld [vmem:[%s6403_s14 + $0xab0] sm:$0xff]  ;;  %v593_v44 = vld [vmem:[%s6403_s14 + $0xab8] sm:$0xff] }
  0x66   : > { %590 = vst [vmem:[%s6408_s15 + $0x550] sm:$0xff] %v589_v42  ;;  %v595_v45 = vld [vmem:[%s6403_s14 + $0xac0] sm:$0xff]  ;;  %592 = vst [vmem:[%s6408_s15 + $0x558] sm:$0xff] %v591_v43  ;;  %v599_v47 = vld [vmem:[%s6403_s14 + $0xae8] sm:$0xff] }
  0x67   : > { %594 = vst [vmem:[%s6408_s15 + $0x560] sm:$0xff] %v593_v44  ;;  %596 = vst [vmem:[%s6408_s15 + $0x568] sm:$0xff] %v595_v45  ;;  %v597_v46 = vld [vmem:[%s6403_s14 + $0xae0] sm:$0xff]  ;;  %v601_v48 = vld [vmem:[%s6403_s14 + $0xaf0] sm:$0xff] }
  0x68   : > { %598 = vst [vmem:[%s6408_s15 + $0x570] sm:$0xff] %v597_v46  ;;  %600 = vst [vmem:[%s6408_s15 + $0x578] sm:$0xff] %v599_v47  ;;  %v603_v49 = vld [vmem:[%s6403_s14 + $0xb10] sm:$0xff]  ;;  %v605_v50 = vld [vmem:[%s6403_s14 + $0xb18] sm:$0xff] }
  0x69   : > { %602 = vst [vmem:[%s6408_s15 + $0x580] sm:$0xff] %v601_v48  ;;  %v607_v51 = vld [vmem:[%s6403_s14 + $0xb20] sm:$0xff]  ;;  %604 = vst [vmem:[%s6408_s15 + $0x588] sm:$0xff] %v603_v49  ;;  %v611_v53 = vld [vmem:[%s6403_s14 + $0xb48] sm:$0xff] }
  0x6a   : > { %606 = vst [vmem:[%s6408_s15 + $0x590] sm:$0xff] %v605_v50  ;;  %608 = vst [vmem:[%s6408_s15 + $0x598] sm:$0xff] %v607_v51  ;;  %v609_v52 = vld [vmem:[%s6403_s14 + $0xb40] sm:$0xff]  ;;  %v613_v54 = vld [vmem:[%s6403_s14 + $0xb50] sm:$0xff] }
  0x6b   : > { %610 = vst [vmem:[%s6408_s15 + $0x5a0] sm:$0xff] %v609_v52  ;;  %612 = vst [vmem:[%s6408_s15 + $0x5a8] sm:$0xff] %v611_v53  ;;  %v615_v55 = vld [vmem:[%s6403_s14 + $0xb70] sm:$0xff]  ;;  %v617_v56 = vld [vmem:[%s6403_s14 + $0xb78] sm:$0xff] }
  0x6c   : > { %614 = vst [vmem:[%s6408_s15 + $0x5b0] sm:$0xff] %v613_v54  ;;  %v619_v57 = vld [vmem:[%s6403_s14 + $0xb80] sm:$0xff]  ;;  %616 = vst [vmem:[%s6408_s15 + $0x5b8] sm:$0xff] %v615_v55  ;;  %v623_v59 = vld [vmem:[%s6403_s14 + $0xba8] sm:$0xff] }
  0x6d   : > { %618 = vst [vmem:[%s6408_s15 + $0x5c0] sm:$0xff] %v617_v56  ;;  %620 = vst [vmem:[%s6408_s15 + $0x5c8] sm:$0xff] %v619_v57  ;;  %v621_v58 = vld [vmem:[%s6403_s14 + $0xba0] sm:$0xff]  ;;  %v625_v60 = vld [vmem:[%s6403_s14 + $0xbb0] sm:$0xff] }
  0x6e   : > { %622 = vst [vmem:[%s6408_s15 + $0x5d0] sm:$0xff] %v621_v58  ;;  %624 = vst [vmem:[%s6408_s15 + $0x5d8] sm:$0xff] %v623_v59  ;;  %v627_v61 = vld [vmem:[%s6403_s14 + $0xbd0] sm:$0xff]  ;;  %v629_v62 = vld [vmem:[%s6403_s14 + $0xbd8] sm:$0xff] }
  0x6f   : > { %626 = vst [vmem:[%s6408_s15 + $0x5e0] sm:$0xff] %v625_v60  ;;  %v631_v63 = vld [vmem:[%s6403_s14 + $0xbe0] sm:$0xff]  ;;  %628 = vst [vmem:[%s6408_s15 + $0x5e8] sm:$0xff] %v627_v61  ;;  %v635_v1 = vld [vmem:[%s6403_s14 + $0xc08] sm:$0xff] }
  0x70   : > { %630 = vst [vmem:[%s6408_s15 + $0x5f0] sm:$0xff] %v629_v62  ;;  %632 = vst [vmem:[%s6408_s15 + $0x5f8] sm:$0xff] %v631_v63  ;;  %v633_v0 = vld [vmem:[%s6403_s14 + $0xc00] sm:$0xff]  ;;  %v637_v2 = vld [vmem:[%s6403_s14 + $0xc10] sm:$0xff] }
  0x71   : > { %634 = vst [vmem:[%s6408_s15 + $0x600] sm:$0xff] %v633_v0  ;;  %636 = vst [vmem:[%s6408_s15 + $0x608] sm:$0xff] %v635_v1  ;;  %v639_v3 = vld [vmem:[%s6403_s14 + $0xc30] sm:$0xff]  ;;  %v641_v4 = vld [vmem:[%s6403_s14 + $0xc38] sm:$0xff] }
  0x72   : > { %638 = vst [vmem:[%s6408_s15 + $0x610] sm:$0xff] %v637_v2  ;;  %v643_v5 = vld [vmem:[%s6403_s14 + $0xc40] sm:$0xff]  ;;  %640 = vst [vmem:[%s6408_s15 + $0x618] sm:$0xff] %v639_v3  ;;  %v647_v7 = vld [vmem:[%s6403_s14 + $0xc68] sm:$0xff] }
  0x73   : > { %642 = vst [vmem:[%s6408_s15 + $0x620] sm:$0xff] %v641_v4  ;;  %644 = vst [vmem:[%s6408_s15 + $0x628] sm:$0xff] %v643_v5  ;;  %v645_v6 = vld [vmem:[%s6403_s14 + $0xc60] sm:$0xff]  ;;  %v649_v8 = vld [vmem:[%s6403_s14 + $0xc70] sm:$0xff] }
  0x74   : > { %646 = vst [vmem:[%s6408_s15 + $0x630] sm:$0xff] %v645_v6  ;;  %648 = vst [vmem:[%s6408_s15 + $0x638] sm:$0xff] %v647_v7  ;;  %v651_v9 = vld [vmem:[%s6403_s14 + $0xc90] sm:$0xff]  ;;  %v653_v10 = vld [vmem:[%s6403_s14 + $0xc98] sm:$0xff] }
  0x75   : > { %650 = vst [vmem:[%s6408_s15 + $0x640] sm:$0xff] %v649_v8  ;;  %v655_v11 = vld [vmem:[%s6403_s14 + $0xca0] sm:$0xff]  ;;  %652 = vst [vmem:[%s6408_s15 + $0x648] sm:$0xff] %v651_v9  ;;  %v659_v13 = vld [vmem:[%s6403_s14 + $0xcc8] sm:$0xff] }
  0x76   : > { %654 = vst [vmem:[%s6408_s15 + $0x650] sm:$0xff] %v653_v10  ;;  %656 = vst [vmem:[%s6408_s15 + $0x658] sm:$0xff] %v655_v11  ;;  %v657_v12 = vld [vmem:[%s6403_s14 + $0xcc0] sm:$0xff]  ;;  %v661_v14 = vld [vmem:[%s6403_s14 + $0xcd0] sm:$0xff] }
  0x77   : > { %658 = vst [vmem:[%s6408_s15 + $0x660] sm:$0xff] %v657_v12  ;;  %660 = vst [vmem:[%s6408_s15 + $0x668] sm:$0xff] %v659_v13  ;;  %v663_v15 = vld [vmem:[%s6403_s14 + $0xcf0] sm:$0xff]  ;;  %v665_v16 = vld [vmem:[%s6403_s14 + $0xcf8] sm:$0xff] }
  0x78   : > { %662 = vst [vmem:[%s6408_s15 + $0x670] sm:$0xff] %v661_v14  ;;  %v667_v17 = vld [vmem:[%s6403_s14 + $0xd00] sm:$0xff]  ;;  %664 = vst [vmem:[%s6408_s15 + $0x678] sm:$0xff] %v663_v15  ;;  %v671_v19 = vld [vmem:[%s6403_s14 + $0xd28] sm:$0xff] }
  0x79   : > { %666 = vst [vmem:[%s6408_s15 + $0x680] sm:$0xff] %v665_v16  ;;  %668 = vst [vmem:[%s6408_s15 + $0x688] sm:$0xff] %v667_v17  ;;  %v669_v18 = vld [vmem:[%s6403_s14 + $0xd20] sm:$0xff]  ;;  %v673_v20 = vld [vmem:[%s6403_s14 + $0xd30] sm:$0xff] }
  0x7a   : > { %670 = vst [vmem:[%s6408_s15 + $0x690] sm:$0xff] %v669_v18  ;;  %672 = vst [vmem:[%s6408_s15 + $0x698] sm:$0xff] %v671_v19  ;;  %v675_v21 = vld [vmem:[%s6403_s14 + $0xd50] sm:$0xff]  ;;  %v677_v22 = vld [vmem:[%s6403_s14 + $0xd58] sm:$0xff] }
  0x7b   : > { %674 = vst [vmem:[%s6408_s15 + $0x6a0] sm:$0xff] %v673_v20  ;;  %v679_v23 = vld [vmem:[%s6403_s14 + $0xd60] sm:$0xff]  ;;  %676 = vst [vmem:[%s6408_s15 + $0x6a8] sm:$0xff] %v675_v21  ;;  %v683_v25 = vld [vmem:[%s6403_s14 + $0xd88] sm:$0xff] }
  0x7c   : > { %678 = vst [vmem:[%s6408_s15 + $0x6b0] sm:$0xff] %v677_v22  ;;  %680 = vst [vmem:[%s6408_s15 + $0x6b8] sm:$0xff] %v679_v23  ;;  %v681_v24 = vld [vmem:[%s6403_s14 + $0xd80] sm:$0xff]  ;;  %v685_v26 = vld [vmem:[%s6403_s14 + $0xd90] sm:$0xff] }
  0x7d   : > { %682 = vst [vmem:[%s6408_s15 + $0x6c0] sm:$0xff] %v681_v24  ;;  %684 = vst [vmem:[%s6408_s15 + $0x6c8] sm:$0xff] %v683_v25  ;;  %v687_v27 = vld [vmem:[%s6403_s14 + $0xdb0] sm:$0xff]  ;;  %v689_v28 = vld [vmem:[%s6403_s14 + $0xdb8] sm:$0xff] }
  0x7e   : > { %686 = vst [vmem:[%s6408_s15 + $0x6d0] sm:$0xff] %v685_v26  ;;  %v691_v29 = vld [vmem:[%s6403_s14 + $0xdc0] sm:$0xff]  ;;  %688 = vst [vmem:[%s6408_s15 + $0x6d8] sm:$0xff] %v687_v27  ;;  %v695_v31 = vld [vmem:[%s6403_s14 + $0xde8] sm:$0xff] }
  0x7f   : > { %690 = vst [vmem:[%s6408_s15 + $0x6e0] sm:$0xff] %v689_v28  ;;  %692 = vst [vmem:[%s6408_s15 + $0x6e8] sm:$0xff] %v691_v29  ;;  %v693_v30 = vld [vmem:[%s6403_s14 + $0xde0] sm:$0xff]  ;;  %v697_v32 = vld [vmem:[%s6403_s14 + $0xdf0] sm:$0xff] }
  0x80   : > { %694 = vst [vmem:[%s6408_s15 + $0x6f0] sm:$0xff] %v693_v30  ;;  %696 = vst [vmem:[%s6408_s15 + $0x6f8] sm:$0xff] %v695_v31  ;;  %v699_v33 = vld [vmem:[%s6403_s14 + $0xe10] sm:$0xff]  ;;  %v701_v34 = vld [vmem:[%s6403_s14 + $0xe18] sm:$0xff] }
  0x81   : > { %698 = vst [vmem:[%s6408_s15 + $0x700] sm:$0xff] %v697_v32  ;;  %v703_v35 = vld [vmem:[%s6403_s14 + $0xe20] sm:$0xff]  ;;  %700 = vst [vmem:[%s6408_s15 + $0x708] sm:$0xff] %v699_v33  ;;  %v707_v37 = vld [vmem:[%s6403_s14 + $0xe48] sm:$0xff] }
  0x82   : > { %702 = vst [vmem:[%s6408_s15 + $0x710] sm:$0xff] %v701_v34  ;;  %704 = vst [vmem:[%s6408_s15 + $0x718] sm:$0xff] %v703_v35  ;;  %v705_v36 = vld [vmem:[%s6403_s14 + $0xe40] sm:$0xff]  ;;  %v709_v38 = vld [vmem:[%s6403_s14 + $0xe50] sm:$0xff] }
  0x83   : > { %706 = vst [vmem:[%s6408_s15 + $0x720] sm:$0xff] %v705_v36  ;;  %708 = vst [vmem:[%s6408_s15 + $0x728] sm:$0xff] %v707_v37  ;;  %v711_v39 = vld [vmem:[%s6403_s14 + $0xe70] sm:$0xff]  ;;  %v713_v40 = vld [vmem:[%s6403_s14 + $0xe78] sm:$0xff] }
  0x84   : > { %710 = vst [vmem:[%s6408_s15 + $0x730] sm:$0xff] %v709_v38  ;;  %v715_v41 = vld [vmem:[%s6403_s14 + $0xe80] sm:$0xff]  ;;  %712 = vst [vmem:[%s6408_s15 + $0x738] sm:$0xff] %v711_v39  ;;  %v719_v43 = vld [vmem:[%s6403_s14 + $0xea8] sm:$0xff] }
  0x85   : > { %714 = vst [vmem:[%s6408_s15 + $0x740] sm:$0xff] %v713_v40  ;;  %716 = vst [vmem:[%s6408_s15 + $0x748] sm:$0xff] %v715_v41  ;;  %v717_v42 = vld [vmem:[%s6403_s14 + $0xea0] sm:$0xff]  ;;  %v721_v44 = vld [vmem:[%s6403_s14 + $0xeb0] sm:$0xff] }
  0x86   : > { %718 = vst [vmem:[%s6408_s15 + $0x750] sm:$0xff] %v717_v42  ;;  %720 = vst [vmem:[%s6408_s15 + $0x758] sm:$0xff] %v719_v43  ;;  %v723_v45 = vld [vmem:[%s6403_s14 + $0xed0] sm:$0xff]  ;;  %v725_v46 = vld [vmem:[%s6403_s14 + $0xed8] sm:$0xff] }
  0x87   : > { %722 = vst [vmem:[%s6408_s15 + $0x760] sm:$0xff] %v721_v44  ;;  %v727_v47 = vld [vmem:[%s6403_s14 + $0xee0] sm:$0xff]  ;;  %724 = vst [vmem:[%s6408_s15 + $0x768] sm:$0xff] %v723_v45  ;;  %v731_v49 = vld [vmem:[%s6403_s14 + $0xf08] sm:$0xff] }
  0x88   : > { %726 = vst [vmem:[%s6408_s15 + $0x770] sm:$0xff] %v725_v46  ;;  %728 = vst [vmem:[%s6408_s15 + $0x778] sm:$0xff] %v727_v47  ;;  %v729_v48 = vld [vmem:[%s6403_s14 + $0xf00] sm:$0xff]  ;;  %v733_v50 = vld [vmem:[%s6403_s14 + $0xf10] sm:$0xff] }
  0x89   : > { %730 = vst [vmem:[%s6408_s15 + $0x780] sm:$0xff] %v729_v48  ;;  %732 = vst [vmem:[%s6408_s15 + $0x788] sm:$0xff] %v731_v49  ;;  %v735_v51 = vld [vmem:[%s6403_s14 + $0xf30] sm:$0xff]  ;;  %v737_v52 = vld [vmem:[%s6403_s14 + $0xf38] sm:$0xff] }
  0x8a   : > { %734 = vst [vmem:[%s6408_s15 + $0x790] sm:$0xff] %v733_v50  ;;  %v739_v53 = vld [vmem:[%s6403_s14 + $0xf40] sm:$0xff]  ;;  %736 = vst [vmem:[%s6408_s15 + $0x798] sm:$0xff] %v735_v51  ;;  %v743_v55 = vld [vmem:[%s6403_s14 + $0xf68] sm:$0xff] }
  0x8b   : > { %738 = vst [vmem:[%s6408_s15 + $0x7a0] sm:$0xff] %v737_v52  ;;  %740 = vst [vmem:[%s6408_s15 + $0x7a8] sm:$0xff] %v739_v53  ;;  %v741_v54 = vld [vmem:[%s6403_s14 + $0xf60] sm:$0xff]  ;;  %v745_v56 = vld [vmem:[%s6403_s14 + $0xf70] sm:$0xff] }
  0x8c   : > { %742 = vst [vmem:[%s6408_s15 + $0x7b0] sm:$0xff] %v741_v54  ;;  %744 = vst [vmem:[%s6408_s15 + $0x7b8] sm:$0xff] %v743_v55  ;;  %v747_v57 = vld [vmem:[%s6403_s14 + $0xf90] sm:$0xff]  ;;  %v749_v58 = vld [vmem:[%s6403_s14 + $0xf98] sm:$0xff] }
  0x8d   : > { %746 = vst [vmem:[%s6408_s15 + $0x7c0] sm:$0xff] %v745_v56  ;;  %v751_v59 = vld [vmem:[%s6403_s14 + $0xfa0] sm:$0xff]  ;;  %748 = vst [vmem:[%s6408_s15 + $0x7c8] sm:$0xff] %v747_v57  ;;  %v755_v61 = vld [vmem:[%s6403_s14 + $0xfc8] sm:$0xff] }
  0x8e   : > { %750 = vst [vmem:[%s6408_s15 + $0x7d0] sm:$0xff] %v749_v58  ;;  %752 = vst [vmem:[%s6408_s15 + $0x7d8] sm:$0xff] %v751_v59  ;;  %v753_v60 = vld [vmem:[%s6403_s14 + $0xfc0] sm:$0xff]  ;;  %v757_v62 = vld [vmem:[%s6403_s14 + $0xfd0] sm:$0xff] }
  0x8f   : > { %754 = vst [vmem:[%s6408_s15 + $0x7e0] sm:$0xff] %v753_v60  ;;  %756 = vst [vmem:[%s6408_s15 + $0x7e8] sm:$0xff] %v755_v61  ;;  %v759_v63 = vld [vmem:[%s6403_s14 + $0xff0] sm:$0xff]  ;;  %v761_v0 = vld [vmem:[%s6403_s14 + $0xff8] sm:$0xff] }
  0x90   : > { %758 = vst [vmem:[%s6408_s15 + $0x7f0] sm:$0xff] %v757_v62  ;;  %v763_v1 = vld [vmem:[%s6403_s14 + $0x1000] sm:$0xff]  ;;  %760 = vst [vmem:[%s6408_s15 + $0x7f8] sm:$0xff] %v759_v63  ;;  %v767_v3 = vld [vmem:[%s6403_s14 + $0x1028] sm:$0xff] }
  0x91   : > { %762 = vst [vmem:[%s6408_s15 + $0x800] sm:$0xff] %v761_v0  ;;  %764 = vst [vmem:[%s6408_s15 + $0x808] sm:$0xff] %v763_v1  ;;  %v765_v2 = vld [vmem:[%s6403_s14 + $0x1020] sm:$0xff]  ;;  %v769_v4 = vld [vmem:[%s6403_s14 + $0x1030] sm:$0xff] }
  0x92   : > { %766 = vst [vmem:[%s6408_s15 + $0x810] sm:$0xff] %v765_v2  ;;  %768 = vst [vmem:[%s6408_s15 + $0x818] sm:$0xff] %v767_v3  ;;  %v771_v5 = vld [vmem:[%s6403_s14 + $0x1050] sm:$0xff]  ;;  %v773_v6 = vld [vmem:[%s6403_s14 + $0x1058] sm:$0xff] }
  0x93   : > { %770 = vst [vmem:[%s6408_s15 + $0x820] sm:$0xff] %v769_v4  ;;  %v775_v7 = vld [vmem:[%s6403_s14 + $0x1060] sm:$0xff]  ;;  %772 = vst [vmem:[%s6408_s15 + $0x828] sm:$0xff] %v771_v5  ;;  %v779_v9 = vld [vmem:[%s6403_s14 + $0x1088] sm:$0xff] }
  0x94   : > { %774 = vst [vmem:[%s6408_s15 + $0x830] sm:$0xff] %v773_v6  ;;  %776 = vst [vmem:[%s6408_s15 + $0x838] sm:$0xff] %v775_v7  ;;  %v777_v8 = vld [vmem:[%s6403_s14 + $0x1080] sm:$0xff]  ;;  %v781_v10 = vld [vmem:[%s6403_s14 + $0x1090] sm:$0xff] }
  0x95   : > { %778 = vst [vmem:[%s6408_s15 + $0x840] sm:$0xff] %v777_v8  ;;  %780 = vst [vmem:[%s6408_s15 + $0x848] sm:$0xff] %v779_v9  ;;  %v783_v11 = vld [vmem:[%s6403_s14 + $0x10b0] sm:$0xff]  ;;  %v785_v12 = vld [vmem:[%s6403_s14 + $0x10b8] sm:$0xff] }
  0x96   : > { %782 = vst [vmem:[%s6408_s15 + $0x850] sm:$0xff] %v781_v10  ;;  %v787_v13 = vld [vmem:[%s6403_s14 + $0x10c0] sm:$0xff]  ;;  %784 = vst [vmem:[%s6408_s15 + $0x858] sm:$0xff] %v783_v11  ;;  %v791_v15 = vld [vmem:[%s6403_s14 + $0x10e8] sm:$0xff] }
  0x97   : > { %786 = vst [vmem:[%s6408_s15 + $0x860] sm:$0xff] %v785_v12  ;;  %788 = vst [vmem:[%s6408_s15 + $0x868] sm:$0xff] %v787_v13  ;;  %v789_v14 = vld [vmem:[%s6403_s14 + $0x10e0] sm:$0xff]  ;;  %v793_v16 = vld [vmem:[%s6403_s14 + $0x10f0] sm:$0xff] }
  0x98   : > { %790 = vst [vmem:[%s6408_s15 + $0x870] sm:$0xff] %v789_v14  ;;  %792 = vst [vmem:[%s6408_s15 + $0x878] sm:$0xff] %v791_v15  ;;  %v795_v17 = vld [vmem:[%s6403_s14 + $0x1110] sm:$0xff]  ;;  %v797_v18 = vld [vmem:[%s6403_s14 + $0x1118] sm:$0xff] }
  0x99   : > { %794 = vst [vmem:[%s6408_s15 + $0x880] sm:$0xff] %v793_v16  ;;  %v799_v19 = vld [vmem:[%s6403_s14 + $0x1120] sm:$0xff]  ;;  %796 = vst [vmem:[%s6408_s15 + $0x888] sm:$0xff] %v795_v17  ;;  %v803_v21 = vld [vmem:[%s6403_s14 + $0x1148] sm:$0xff] }
  0x9a   : > { %798 = vst [vmem:[%s6408_s15 + $0x890] sm:$0xff] %v797_v18  ;;  %800 = vst [vmem:[%s6408_s15 + $0x898] sm:$0xff] %v799_v19  ;;  %v801_v20 = vld [vmem:[%s6403_s14 + $0x1140] sm:$0xff]  ;;  %v805_v22 = vld [vmem:[%s6403_s14 + $0x1150] sm:$0xff] }
  0x9b   : > { %802 = vst [vmem:[%s6408_s15 + $0x8a0] sm:$0xff] %v801_v20  ;;  %804 = vst [vmem:[%s6408_s15 + $0x8a8] sm:$0xff] %v803_v21  ;;  %v807_v23 = vld [vmem:[%s6403_s14 + $0x1170] sm:$0xff]  ;;  %v809_v24 = vld [vmem:[%s6403_s14 + $0x1178] sm:$0xff] }
  0x9c   : > { %806 = vst [vmem:[%s6408_s15 + $0x8b0] sm:$0xff] %v805_v22  ;;  %v811_v25 = vld [vmem:[%s6403_s14 + $0x1180] sm:$0xff]  ;;  %808 = vst [vmem:[%s6408_s15 + $0x8b8] sm:$0xff] %v807_v23  ;;  %v815_v27 = vld [vmem:[%s6403_s14 + $0x11a8] sm:$0xff] }
  0x9d   : > { %810 = vst [vmem:[%s6408_s15 + $0x8c0] sm:$0xff] %v809_v24  ;;  %812 = vst [vmem:[%s6408_s15 + $0x8c8] sm:$0xff] %v811_v25  ;;  %v813_v26 = vld [vmem:[%s6403_s14 + $0x11a0] sm:$0xff]  ;;  %v817_v28 = vld [vmem:[%s6403_s14 + $0x11b0] sm:$0xff] }
  0x9e   : > { %814 = vst [vmem:[%s6408_s15 + $0x8d0] sm:$0xff] %v813_v26  ;;  %816 = vst [vmem:[%s6408_s15 + $0x8d8] sm:$0xff] %v815_v27  ;;  %v819_v29 = vld [vmem:[%s6403_s14 + $0x11d0] sm:$0xff]  ;;  %v821_v30 = vld [vmem:[%s6403_s14 + $0x11d8] sm:$0xff] }
  0x9f   : > { %818 = vst [vmem:[%s6408_s15 + $0x8e0] sm:$0xff] %v817_v28  ;;  %v823_v31 = vld [vmem:[%s6403_s14 + $0x11e0] sm:$0xff]  ;;  %820 = vst [vmem:[%s6408_s15 + $0x8e8] sm:$0xff] %v819_v29 }
  0xa0   : > { %822 = vst [vmem:[%s6408_s15 + $0x8f0] sm:$0xff] %v821_v30  ;;  %824 = vst [vmem:[%s6408_s15 + $0x8f8] sm:$0xff] %v823_v31 }
  0xa1 PF: > { %p4941_p5 = scmp.ge.s32.totalorder %s6324_s26, 1  ;;  %p847_p6 = scmp.lt.s32.totalorder %s6324_s26, 3 }
  0xa3   : > { %p848_p7 = pnand %p4941_p5, %p847_p6 }
  0xa4   : > { %s854_s16 = sand.u32 (!%p848_p7), 1, %s6316_s24   ;;  %s891_s17 = smul.u32 (!%p848_p7), 6, %s6383_s27 }
  0xa5   : > { %851 = sbr.rel (%p848_p7) target bundleno = 1513 (0x5e9), region = 67  ;;  %p4944_p10 = scmp.ne.s32.totalorder (!%p848_p7), %s6383_s27, 0 }
  0xa6   : > { %s5514_s18 = smul.u32 (!%p848_p7), 2304, %s854_s16  ;;  %p892_p8 = scmp.lt.s32.totalorder (!%p848_p7), %s891_s17, 11 }
  0xa7   : > { %s896_s19 = smul.u32 (!%p848_p7), 96, %s6383_s27 }
  0xa8   : > { %s6999_s24 = scalar_lea.vmem (!%p848_p7), [#allocation3], %s5514_s18 }
  0xa9   : > { %p897_p9 = scmp.lt.s32.totalorder (!%p848_p7), %s896_s19, 191 }
  0xaa   : > { %s7744_s17 = smov (!%p892_p8, %s891_s17), 11  ;;  %907 = sbr.rel (%p4944_p10) target bundleno = 178 (0xb2), region = 75 }
  0xab   : > { %s894_s22 = scalar_lea.vmem %s7734_s2, %s7744_s17  ;;  %s7746_s19 = smov (!%p897_p9, %s896_s19), 191 }
  0xac   : > { %s5468_s23 = sshll.u32 %s7746_s19, 4 }
  0xad   : > { %s6997_s30 = scalar_lea.vmem %s7735_s3, %s5468_s23 }
  0xaf   : > { %v6326_v32 = vmov 0.0  }
  0xb0   : > { %908 = vst [vmem:[#allocation2 + $0x10] sm:$0xff] %v6326_v32  ;;  %909 = vst [vmem:[#allocation2] sm:$0xff] %v6326_v32 }
  0xb1   : > { %910 = vst [vmem:[#allocation2 + $0x18] sm:$0xff] %v6326_v32  ;;  %911 = vst [vmem:[#allocation2 + $0x8] sm:$0xff] %v6326_v32 }
  0xb2 PF: > { %v5540_v33 = vld [vmem:[%s6999_s24 + $0x154] ss:$24 sps:$4 sm:$0xff]   ;;  %v5542_v34 = vld [vmem:[%s6999_s24 + $0x150] ss:$24 sps:$4 sm:$0xff]   ;;  %v5546_v37 = vld [vmem:[%s6999_s24 + $0x124] ss:$24 sps:$4 sm:$0xff]  }
  0xb3   : > { %2696 = vmatprep.subr.bf16.mxu0 %v5540_v33  ;;  %v5543_v35 = vld [vmem:[%s6999_s24 + $0x454] ss:$24 sps:$4 sm:$0xff]   ;;  %v5545_v36 = vld [vmem:[%s6999_s24 + $0x450] ss:$24 sps:$4 sm:$0xff]   ;;  %v5548_v38 = vld [vmem:[%s6999_s24 + $0x120] ss:$24 sps:$4 sm:$0xff]  }
  0xb4   : > { %2697 = vmatpush1.bf16.msra.mxu0 %v5542_v34  ;;  %2737 = vmatprep.subr.bf16.mxu1 %v5543_v35  ;;  %v5549_v39 = vld [vmem:[%s6999_s24 + $0x424] ss:$24 sps:$4 sm:$0xff]   ;;  %v5551_v40 = vld [vmem:[%s6999_s24 + $0x420] ss:$24 sps:$4 sm:$0xff]   ;;  %v5552_v41 = vld [vmem:[%s6999_s24 + $0xf4] ss:$24 sps:$4 sm:$0xff]  }
  0xb5   : > { %2738 = vmatpush1.bf16.msra.mxu1 %v5545_v36  ;;  %2698 = vmatprep.subr.bf16.mxu0 %v5546_v37  ;;  %v5554_v42 = vld [vmem:[%s6999_s24 + $0xf0] ss:$24 sps:$4 sm:$0xff]   ;;  %v5555_v43 = vld [vmem:[%s6999_s24 + $0x3f4] ss:$24 sps:$4 sm:$0xff]   ;;  %v5558_v44 = vld [vmem:[%s6999_s24 + $0xc4] ss:$24 sps:$4 sm:$0xff]  }
  0xb6   : > { %2739 = vmatprep.subr.bf16.mxu1 %v5549_v39  ;;  %v5557_v45 = vld [vmem:[%s6999_s24 + $0x3f0] ss:$24 sps:$4 sm:$0xff]   ;;  %v5561_v46 = vld [vmem:[%s6999_s24 + $0x3c4] ss:$24 sps:$4 sm:$0xff]   ;;  %v5560_v47 = vld [vmem:[%s6999_s24 + $0xc0] ss:$24 sps:$4 sm:$0xff]  }
  0xb7   : > { %v5564_v48 = vld [vmem:[%s6999_s24 + $0x94] ss:$24 sps:$4 sm:$0xff]   ;;  %v5563_v49 = vld [vmem:[%s6999_s24 + $0x3c0] ss:$24 sps:$4 sm:$0xff]   ;;  %v5566_v51 = vld [vmem:[%s6999_s24 + $0x90] ss:$24 sps:$4 sm:$0xff]  }
  0xb8   : > { %2699 = vmatpush1.bf16.msra.mxu0 %v5548_v38  ;;  %v5567_v50 = vld [vmem:[%s6999_s24 + $0x394] ss:$24 sps:$4 sm:$0xff]   ;;  %v5570_v52 = vld [vmem:[%s6999_s24 + $0x64] ss:$24 sps:$4 sm:$0xff]   ;;  %v5569_v53 = vld [vmem:[%s6999_s24 + $0x390] ss:$24 sps:$4 sm:$0xff]  }
  0xb9   : > { %2700 = vmatprep.subr.bf16.mxu0 %v5552_v41  ;;  %2740 = vmatpush1.bf16.msra.mxu1 %v5551_v40  ;;  %v5573_v54 = vld [vmem:[%s6999_s24 + $0x364] ss:$24 sps:$4 sm:$0xff]   ;;  %v5572_v55 = vld [vmem:[%s6999_s24 + $0x60] ss:$24 sps:$4 sm:$0xff]   ;;  %v5576_v56 = vld [vmem:[%s6999_s24 + $0x34] ss:$24 sps:$4 sm:$0xff]  }
  0xba   : > { %2741 = vmatprep.subr.bf16.mxu1 %v5555_v43  ;;  %v5575_v57 = vld [vmem:[%s6999_s24 + $0x360] ss:$24 sps:$4 sm:$0xff]   ;;  %v5579_v58 = vld [vmem:[%s6999_s24 + $0x334] ss:$24 sps:$4 sm:$0xff]   ;;  %v5578_v59 = vld [vmem:[%s6999_s24 + $0x30] ss:$24 sps:$4 sm:$0xff]  }
  0xbb   : > { %v5582_v60 = vld [vmem:[%s6999_s24 + $0x4] ss:$24 sps:$4 sm:$0xff]   ;;  %v5581_v61 = vld [vmem:[%s6999_s24 + $0x330] ss:$24 sps:$4 sm:$0xff]   ;;  %v5584_v63 = vld [vmem:[%s6999_s24] ss:$24 sps:$4 sm:$0xff]  }
  0xbc   : > { %2701 = vmatpush1.bf16.msra.mxu0 %v5554_v42  ;;  %v5585_v62 = vld [vmem:[%s6999_s24 + $0x304] ss:$24 sps:$4 sm:$0xff]   ;;  %v5588_v0 = vld [vmem:[%s6999_s24 + $0x2d4] ss:$24 sps:$4 sm:$0xff]   ;;  %v5587_v1 = vld [vmem:[%s6999_s24 + $0x300] ss:$24 sps:$4 sm:$0xff]  }
  0xbd   : > { %2702 = vmatprep.subr.bf16.mxu0 %v5558_v44  ;;  %2742 = vmatpush1.bf16.msra.mxu1 %v5557_v45  ;;  %v5591_v2 = vld [vmem:[%s6999_s24 + $0x5d4] ss:$24 sps:$4 sm:$0xff]   ;;  %v5590_v3 = vld [vmem:[%s6999_s24 + $0x2d0] ss:$24 sps:$4 sm:$0xff]   ;;  %v5594_v4 = vld [vmem:[%s6999_s24 + $0x2a4] ss:$24 sps:$4 sm:$0xff]  }
  0xbe   : > { %2743 = vmatprep.subr.bf16.mxu1 %v5561_v46  ;;  %v5593_v5 = vld [vmem:[%s6999_s24 + $0x5d0] ss:$24 sps:$4 sm:$0xff]   ;;  %v5597_v6 = vld [vmem:[%s6999_s24 + $0x5a4] ss:$24 sps:$4 sm:$0xff]   ;;  %v5596_v7 = vld [vmem:[%s6999_s24 + $0x2a0] ss:$24 sps:$4 sm:$0xff]  }
  0xbf   : > { %v5600_v8 = vld [vmem:[%s6999_s24 + $0x274] ss:$24 sps:$4 sm:$0xff]   ;;  %v5599_v9 = vld [vmem:[%s6999_s24 + $0x5a0] ss:$24 sps:$4 sm:$0xff]   ;;  %v5602_v11 = vld [vmem:[%s6999_s24 + $0x270] ss:$24 sps:$4 sm:$0xff]  }
  0xc0   : > { %2703 = vmatpush1.bf16.msra.mxu0 %v5560_v47  ;;  %v5603_v10 = vld [vmem:[%s6999_s24 + $0x574] ss:$24 sps:$4 sm:$0xff]   ;;  %v5606_v12 = vld [vmem:[%s6999_s24 + $0x244] ss:$24 sps:$4 sm:$0xff]   ;;  %v5605_v13 = vld [vmem:[%s6999_s24 + $0x570] ss:$24 sps:$4 sm:$0xff]  }
  0xc1   : > { %2704 = vmatprep.subr.bf16.mxu0 %v5564_v48  ;;  %2744 = vmatpush1.bf16.msra.mxu1 %v5563_v49  ;;  %v5609_v14 = vld [vmem:[%s6999_s24 + $0x544] ss:$24 sps:$4 sm:$0xff]   ;;  %v5608_v16 = vld [vmem:[%s6999_s24 + $0x240] ss:$24 sps:$4 sm:$0xff]   ;;  %v5612_v18 = vld [vmem:[%s6999_s24 + $0x214] ss:$24 sps:$4 sm:$0xff]  }
  0xc2   : > { %2745 = vmatprep.subr.bf16.mxu1 %v5567_v50  ;;  %v912_v15 = vld [vmem:[%s7732_s0] sm:$0xff]  ;;  %v913_v19 = vld [vmem:[%s7732_s0 + $0x8] sm:$0xff]  ;;  %v5645_v39 = vld [vmem:[%s6999_s24 + $0x15c] ss:$24 sps:$4 sm:$0xff]   ;;  %p5431_p11 = scmp.ne.s32.totalorder %s6383_s27, 1 }
  0xc3   : > { %v7052_v17 = vcombine.high %v912_v15, %v912_v15  ;;  %v5611_v20 = vld [vmem:[%s6999_s24 + $0x540] ss:$24 sps:$4 sm:$0xff]   ;;  %v7060_v21 = vcombine.high %v913_v19, %v913_v19  ;;  %v5615_v22 = vld [vmem:[%s6999_s24 + $0x514] ss:$24 sps:$4 sm:$0xff]   ;;  %v5614_v23 = vld [vmem:[%s6999_s24 + $0x210] ss:$24 sps:$4 sm:$0xff]   ;;  %v7079_v38 = vcombine.low %v912_v15, %v912_v15  ;;  %v7083_v41 = vcombine.low %v913_v19, %v913_v19 }
  0xc4   : > { %2705 = vmatpush1.bf16.msra.mxu0 %v5566_v51  ;;  %v5618_v24 = vld [vmem:[%s6999_s24 + $0x1e4] ss:$24 sps:$4 sm:$0xff]   ;;  %v5617_v25 = vld [vmem:[%s6999_s24 + $0x510] ss:$24 sps:$4 sm:$0xff]   ;;  %v5620_v27 = vld [vmem:[%s6999_s24 + $0x1e0] ss:$24 sps:$4 sm:$0xff]  }
  0xc5   : > { %2706 = vmatprep.subr.bf16.mxu0 %v5570_v52  ;;  %2746 = vmatpush1.bf16.msra.mxu1 %v5569_v53  ;;  %v5621_v26 = vld [vmem:[%s6999_s24 + $0x4e4] ss:$24 sps:$4 sm:$0xff]   ;;  %v5624_v28 = vld [vmem:[%s6999_s24 + $0x1b4] ss:$24 sps:$4 sm:$0xff]   ;;  %v5623_v29 = vld [vmem:[%s6999_s24 + $0x4e0] ss:$24 sps:$4 sm:$0xff]  }
  0xc6   : > { %2747 = vmatprep.subr.bf16.mxu1 %v5573_v54  ;;  %2728 = vmatprep.mubr.bf16.mxu0 %v7052_v17  ;;  %v5627_v30 = vld [vmem:[%s6999_s24 + $0x4b4] ss:$24 sps:$4 sm:$0xff]   ;;  %v5626_v31 = vld [vmem:[%s6999_s24 + $0x1b0] ss:$24 sps:$4 sm:$0xff]   ;;  %v5630_v32 = vld [vmem:[%s6999_s24 + $0x184] ss:$24 sps:$4 sm:$0xff]  }
  0xc7   : > { %2769 = vmatprep.mubr.bf16.mxu1 %v7060_v21  ;;  %v5629_v33 = vld [vmem:[%s6999_s24 + $0x4b0] ss:$24 sps:$4 sm:$0xff]   ;;  %v5633_v34 = vld [vmem:[%s6999_s24 + $0x484] ss:$24 sps:$4 sm:$0xff]   ;;  %v5632_v35 = vld [vmem:[%s6999_s24 + $0x180] ss:$24 sps:$4 sm:$0xff]  }
  0xc8   : > { %2707 = vmatpush1.bf16.msra.mxu0 %v5572_v55  ;;  %v5640_v36 = vld [vmem:[%s6999_s24 + $0x754] ss:$24 sps:$4 sm:$0xff]   ;;  %v5636_v37 = vld [vmem:[%s6999_s24 + $0x480] ss:$24 sps:$4 sm:$0xff]   ;;  %v5638_v40 = vld [vmem:[%s6999_s24 + $0x750] ss:$24 sps:$4 sm:$0xff]  }
  0xc9   : > { %2708 = vmatprep.subr.bf16.mxu0 %v5576_v56  ;;  %2748 = vmatpush1.bf16.msra.mxu1 %v5575_v57  ;;  %v5648_v42 = vld [vmem:[%s6999_s24 + $0x724] ss:$24 sps:$4 sm:$0xff]   ;;  %v5643_v43 = vld [vmem:[%s6999_s24 + $0x158] ss:$24 sps:$4 sm:$0xff]   ;;  %v5654_v46 = vld [vmem:[%s6999_s24 + $0x6f4] ss:$24 sps:$4 sm:$0xff]  }
  0xca   : > { %2749 = vmatprep.subr.bf16.mxu1 %v5579_v58  ;;  %v5651_v44 = vld [vmem:[%s6999_s24 + $0x12c] ss:$24 sps:$4 sm:$0xff]   ;;  %v5646_v45 = vld [vmem:[%s6999_s24 + $0x720] ss:$24 sps:$4 sm:$0xff]   ;;  %v5657_v48 = vld [vmem:[%s6999_s24 + $0xfc] ss:$24 sps:$4 sm:$0xff]  }
  0xcb   : > { %v5649_v47 = vld [vmem:[%s6999_s24 + $0x128] ss:$24 sps:$4 sm:$0xff]   ;;  %v5660_v50 = vld [vmem:[%s6999_s24 + $0x6c4] ss:$24 sps:$4 sm:$0xff]   ;;  %v5655_v51 = vld [vmem:[%s6999_s24 + $0xf8] ss:$24 sps:$4 sm:$0xff]  }
  0xcc   : > { %2709 = vmatpush1.bf16.msra.mxu0 %v5578_v59  ;;  %v5652_v49 = vld [vmem:[%s6999_s24 + $0x6f0] ss:$24 sps:$4 sm:$0xff]   ;;  %v5663_v52 = vld [vmem:[%s6999_s24 + $0xcc] ss:$24 sps:$4 sm:$0xff]   ;;  %v5658_v53 = vld [vmem:[%s6999_s24 + $0x6c0] ss:$24 sps:$4 sm:$0xff]  }
  0xcd   : > { %2710 = vmatprep.subr.bf16.mxu0 %v5582_v60  ;;  %2750 = vmatpush1.bf16.msra.mxu1 %v5581_v61  ;;  %v5666_v54 = vld [vmem:[%s6999_s24 + $0x694] ss:$24 sps:$4 sm:$0xff]   ;;  %v5661_v55 = vld [vmem:[%s6999_s24 + $0xc8] ss:$24 sps:$4 sm:$0xff]   ;;  %v5672_v58 = vld [vmem:[%s6999_s24 + $0x664] ss:$24 sps:$4 sm:$0xff]  }
  0xce   : > { %2751 = vmatprep.subr.bf16.mxu1 %v5585_v62  ;;  %v5669_v56 = vld [vmem:[%s6999_s24 + $0x9c] ss:$24 sps:$4 sm:$0xff]   ;;  %v5664_v57 = vld [vmem:[%s6999_s24 + $0x690] ss:$24 sps:$4 sm:$0xff]   ;;  %v5675_v60 = vld [vmem:[%s6999_s24 + $0x6c] ss:$24 sps:$4 sm:$0xff]  }
  0xcf   : > { %v5667_v59 = vld [vmem:[%s6999_s24 + $0x98] ss:$24 sps:$4 sm:$0xff]   ;;  %v5678_v62 = vld [vmem:[%s6999_s24 + $0x634] ss:$24 sps:$4 sm:$0xff]  }
  0xd0   : > { %2711 = vmatpush1.bf16.msra.mxu0 %v5584_v63  ;;  %v5670_v61 = vld [vmem:[%s6999_s24 + $0x660] ss:$24 sps:$4 sm:$0xff]   ;;  %v5705_v19 = vld [vmem:[%s6999_s24 + $0x27c] ss:$24 sps:$4 sm:$0xff]  }
  0xd1   : > { %2712 = vmatprep.subr.bf16.mxu0 %v5588_v0  ;;  %2752 = vmatpush1.bf16.msra.mxu1 %v5587_v1  ;;  %v5673_v63 = vld [vmem:[%s6999_s24 + $0x68] ss:$24 sps:$4 sm:$0xff]   ;;  %v5681_v0 = vld [vmem:[%s6999_s24 + $0x3c] ss:$24 sps:$4 sm:$0xff]  }
  0xd2   : > { %2753 = vmatprep.subr.bf16.mxu1 %v5591_v2  ;;  %v7114_v1 = vld [vmem:[%s7732_s0 + $0x10] sm:$0xff]  ;;  %v5694_v15 = vld [vmem:[%s6999_s24 + $0x8a0] ss:$24 sps:$4 sm:$0xff]  }
  0xd3   : > { %v5676_v2 = vld [vmem:[%s6999_s24 + $0x630] ss:$24 sps:$4 sm:$0xff]  }
  0xd4   : > { %2713 = vmatpush2.bf16.msra.mxu0 %v5590_v3  ;;  %v7119_v3 = vcombine.high %v7114_v1, %v7114_v1 }
  0xd5   : > { %2714 = vmatprep.subr.bf16.mxu0 %v5594_v4  ;;  %2754 = vmatpush2.bf16.msra.mxu1 %v5593_v5  ;;  %v5684_v4 = vld [vmem:[%s6999_s24 + $0x604] ss:$24 sps:$4 sm:$0xff]   ;;  %v5679_v5 = vld [vmem:[%s6999_s24 + $0x38] ss:$24 sps:$4 sm:$0xff]  }
  0xd6   : > { %2755 = vmatprep.subr.bf16.mxu1 %v5597_v6  ;;  %v5687_v6 = vld [vmem:[%s6999_s24 + $0xc] ss:$24 sps:$4 sm:$0xff]  }
  0xd8   : > { %2715 = vmatpush2.bf16.msra.mxu0 %v5596_v7  ;;  %v5682_v7 = vld [vmem:[%s6999_s24 + $0x600] ss:$24 sps:$4 sm:$0xff]  }
  0xd9   : > { %2716 = vmatprep.subr.bf16.mxu0 %v5600_v8  ;;  %2756 = vmatpush2.bf16.msra.mxu1 %v5599_v9  ;;  %v5690_v8 = vld [vmem:[%s6999_s24 + $0x8d4] ss:$24 sps:$4 sm:$0xff]   ;;  %v5685_v9 = vld [vmem:[%s6999_s24 + $0x8] ss:$24 sps:$4 sm:$0xff]  }
  0xda   : > { %2757 = vmatprep.subr.bf16.mxu1 %v5603_v10  ;;  %v5693_v10 = vld [vmem:[%s6999_s24 + $0x2dc] ss:$24 sps:$4 sm:$0xff]  }
  0xdc   : > { %2717 = vmatpush2.bf16.msra.mxu0 %v5602_v11  ;;  %v5688_v11 = vld [vmem:[%s6999_s24 + $0x8d0] ss:$24 sps:$4 sm:$0xff]  }
  0xdd   : > { %2718 = vmatprep.subr.bf16.mxu0 %v5606_v12  ;;  %2758 = vmatpush2.bf16.msra.mxu1 %v5605_v13  ;;  %v5696_v12 = vld [vmem:[%s6999_s24 + $0x8a4] ss:$24 sps:$4 sm:$0xff]   ;;  %v5691_v13 = vld [vmem:[%s6999_s24 + $0x2d8] ss:$24 sps:$4 sm:$0xff]  }
  0xde   : > { %2759 = vmatprep.subr.bf16.mxu1 %v5609_v14  ;;  %v5699_v14 = vld [vmem:[%s6999_s24 + $0x2ac] ss:$24 sps:$4 sm:$0xff]  }
  0xe0   : > { %2719 = vmatpush2.bf16.msra.mxu0 %v5608_v16  ;;  %v5702_v16 = vld [vmem:[%s6999_s24 + $0x874] ss:$24 sps:$4 sm:$0xff]  }
  0xe1   : > { %2720 = vmatprep.subr.bf16.mxu0 %v5612_v18  ;;  %2760 = vmatpush2.bf16.msra.mxu1 %v5611_v20  ;;  %v5697_v18 = vld [vmem:[%s6999_s24 + $0x2a8] ss:$24 sps:$4 sm:$0xff]  }
  0xe2   : > { %2761 = vmatprep.subr.bf16.mxu1 %v5615_v22  ;;  %v5700_v20 = vld [vmem:[%s6999_s24 + $0x870] ss:$24 sps:$4 sm:$0xff]   ;;  %v5708_v22 = vld [vmem:[%s6999_s24 + $0x844] ss:$24 sps:$4 sm:$0xff]  }
  0xe4   : > { %2721 = vmatpush2.bf16.msra.mxu0 %v5614_v23  ;;  %v5703_v23 = vld [vmem:[%s6999_s24 + $0x278] ss:$24 sps:$4 sm:$0xff]  }
  0xe5   : > { %2722 = vmatprep.subr.bf16.mxu0 %v5618_v24  ;;  %2762 = vmatpush2.bf16.msra.mxu1 %v5617_v25  ;;  %v5711_v24 = vld [vmem:[%s6999_s24 + $0x24c] ss:$24 sps:$4 sm:$0xff]   ;;  %v5706_v25 = vld [vmem:[%s6999_s24 + $0x840] ss:$24 sps:$4 sm:$0xff]  }
  0xe6   : > { %2763 = vmatprep.subr.bf16.mxu1 %v5621_v26  ;;  %v5714_v26 = vld [vmem:[%s6999_s24 + $0x814] ss:$24 sps:$4 sm:$0xff]  }
  0xe8   : > { %2723 = vmatpush2.bf16.msra.mxu0 %v5620_v27  ;;  %v5709_v27 = vld [vmem:[%s6999_s24 + $0x248] ss:$24 sps:$4 sm:$0xff]  }
  0xe9   : > { %2724 = vmatprep.subr.bf16.mxu0 %v5624_v28  ;;  %2764 = vmatpush2.bf16.msra.mxu1 %v5623_v29  ;;  %v5717_v28 = vld [vmem:[%s6999_s24 + $0x21c] ss:$24 sps:$4 sm:$0xff]   ;;  %v5712_v29 = vld [vmem:[%s6999_s24 + $0x810] ss:$24 sps:$4 sm:$0xff]  }
  0xea   : > { %2765 = vmatprep.subr.bf16.mxu1 %v5627_v30  ;;  %v5720_v30 = vld [vmem:[%s6999_s24 + $0x7e4] ss:$24 sps:$4 sm:$0xff]  }
  0xec   : > { %2725 = vmatpush2.bf16.msra.mxu0 %v5626_v31  ;;  %v5715_v31 = vld [vmem:[%s6999_s24 + $0x218] ss:$24 sps:$4 sm:$0xff]  }
  0xed   : > { %2726 = vmatprep.subr.bf16.mxu0 %v5630_v32  ;;  %2766 = vmatpush2.bf16.msra.mxu1 %v5629_v33  ;;  %v5723_v32 = vld [vmem:[%s6999_s24 + $0x1ec] ss:$24 sps:$4 sm:$0xff]   ;;  %v5718_v33 = vld [vmem:[%s6999_s24 + $0x7e0] ss:$24 sps:$4 sm:$0xff]  }
  0xee   : > { %2767 = vmatprep.subr.bf16.mxu1 %v5633_v34  ;;  %v5726_v34 = vld [vmem:[%s6999_s24 + $0x7b4] ss:$24 sps:$4 sm:$0xff]  }
  0xf0   : > { %2727 = vmatpush2.bf16.msra.mxu0 %v5632_v35  ;;  %v5721_v35 = vld [vmem:[%s6999_s24 + $0x1e8] ss:$24 sps:$4 sm:$0xff]  }
  0xf1   : > { %2778 = vmatprep.subr.bf16.mxu0 %v5640_v36  ;;  %2768 = vmatpush2.bf16.msra.mxu1 %v5636_v37  ;;  %v5729_v36 = vld [vmem:[%s6999_s24 + $0x1bc] ss:$24 sps:$4 sm:$0xff]   ;;  %v5724_v37 = vld [vmem:[%s6999_s24 + $0x7b0] ss:$24 sps:$4 sm:$0xff]  }
  0xf2   : > { %2819 = vmatprep.subr.bf16.mxu1 %v5645_v39  ;;  %v5732_v39 = vld [vmem:[%s6999_s24 + $0x784] ss:$24 sps:$4 sm:$0xff]  }
  0xf3   : > { %2729 = vmatmul.mubr.bf16.vlgmr.msra.gmra.mxu0 %v7079_v38 }
  0xf4   : > { %2779 = vmatpush1.bf16.msra.mxu0 %v5638_v40  ;;  %2770 = vmatmul.mubr.bf16.vlgmr.msra.gmra.mxu1 %v7083_v41  ;;  %v5727_v40 = vld [vmem:[%s6999_s24 + $0x1b8] ss:$24 sps:$4 sm:$0xff]  }
  0xf5   : > { %2780 = vmatprep.subr.bf16.mxu0 %v5648_v42  ;;  %2820 = vmatpush1.bf16.msra.mxu1 %v5643_v43  ;;  %v5735_v42 = vld [vmem:[%s6999_s24 + $0x18c] ss:$24 sps:$4 sm:$0xff]   ;;  %v5730_v43 = vld [vmem:[%s6999_s24 + $0x780] ss:$24 sps:$4 sm:$0xff]  }
  0xf6   : > { %2851 = vmatprep.mubr.bf16.mxu1 %v7052_v17  ;;  %2821 = vmatprep.subr.bf16.mxu1 %v5651_v44  ;;  %v5740_v44 = vld [vmem:[%s6999_s24 + $0x45c] ss:$24 sps:$4 sm:$0xff]  }
  0xf7   : > { %2810 = vmatprep.mubr.bf16.mxu0 %v7119_v3 }
  0xf8   : > { %2781 = vmatpush1.bf16.msra.mxu0 %v5646_v45  ;;  %v5733_v45 = vld [vmem:[%s6999_s24 + $0x188] ss:$24 sps:$4 sm:$0xff]  }
  0xf9   : > { %2782 = vmatprep.subr.bf16.mxu0 %v5654_v46  ;;  %2822 = vmatpush1.bf16.msra.mxu1 %v5649_v47  ;;  %v7162_v46 = vcombine.low %v7114_v1, %v7114_v1  ;;  %v5743_v47 = vld [vmem:[%s6999_s24 + $0x75c] ss:$24 sps:$4 sm:$0xff]   ;;  %v5770_v1 = vld [vmem:[%s6999_s24 + $0x36c] ss:$24 sps:$4 sm:$0xff]  }
  0xfa   : > { %2823 = vmatprep.subr.bf16.mxu1 %v5657_v48  ;;  %v5738_v48 = vld [vmem:[%s6999_s24 + $0x458] ss:$24 sps:$4 sm:$0xff]  }
  0xfc   : > { %2783 = vmatpush1.bf16.msra.mxu0 %v5652_v49  ;;  %v5746_v49 = vld [vmem:[%s6999_s24 + $0x42c] ss:$24 sps:$4 sm:$0xff]  }
  0xfd   : > { %2784 = vmatprep.subr.bf16.mxu0 %v5660_v50  ;;  %2824 = vmatpush1.bf16.msra.mxu1 %v5655_v51  ;;  %v5741_v50 = vld [vmem:[%s6999_s24 + $0x758] ss:$24 sps:$4 sm:$0xff]   ;;  %v5749_v51 = vld [vmem:[%s6999_s24 + $0x72c] ss:$24 sps:$4 sm:$0xff]  }
  0xfe   : > { %2825 = vmatprep.subr.bf16.mxu1 %v5663_v52  ;;  %v5744_v52 = vld [vmem:[%s6999_s24 + $0x428] ss:$24 sps:$4 sm:$0xff]  }
 0x100   : > { %2785 = vmatpush1.bf16.msra.mxu0 %v5658_v53  ;;  %v5752_v53 = vld [vmem:[%s6999_s24 + $0x3fc] ss:$24 sps:$4 sm:$0xff]  }
 0x101   : > { %2786 = vmatprep.subr.bf16.mxu0 %v5666_v54  ;;  %2826 = vmatpush1.bf16.msra.mxu1 %v5661_v55  ;;  %v5747_v54 = vld [vmem:[%s6999_s24 + $0x728] ss:$24 sps:$4 sm:$0xff]   ;;  %v5755_v55 = vld [vmem:[%s6999_s24 + $0x6fc] ss:$24 sps:$4 sm:$0xff]  }
 0x102   : > { %2827 = vmatprep.subr.bf16.mxu1 %v5669_v56  ;;  %v5750_v56 = vld [vmem:[%s6999_s24 + $0x3f8] ss:$24 sps:$4 sm:$0xff]  }
 0x104   : > { %2787 = vmatpush1.bf16.msra.mxu0 %v5664_v57  ;;  %v5758_v57 = vld [vmem:[%s6999_s24 + $0x3cc] ss:$24 sps:$4 sm:$0xff]  }
 0x105   : > { %2788 = vmatprep.subr.bf16.mxu0 %v5672_v58  ;;  %2828 = vmatpush1.bf16.msra.mxu1 %v5667_v59  ;;  %v5753_v58 = vld [vmem:[%s6999_s24 + $0x6f8] ss:$24 sps:$4 sm:$0xff]   ;;  %v5761_v59 = vld [vmem:[%s6999_s24 + $0x6cc] ss:$24 sps:$4 sm:$0xff]  }
 0x106   : > { %2829 = vmatprep.subr.bf16.mxu1 %v5675_v60  ;;  %v5756_v60 = vld [vmem:[%s6999_s24 + $0x3c8] ss:$24 sps:$4 sm:$0xff]  }
 0x108   : > { %2789 = vmatpush1.bf16.msra.mxu0 %v5670_v61  ;;  %v5764_v61 = vld [vmem:[%s6999_s24 + $0x39c] ss:$24 sps:$4 sm:$0xff]  }
 0x109   : > { %2790 = vmatprep.subr.bf16.mxu0 %v5678_v62  ;;  %2830 = vmatpush1.bf16.msra.mxu1 %v5673_v63  ;;  %v5759_v62 = vld [vmem:[%s6999_s24 + $0x6c8] ss:$24 sps:$4 sm:$0xff]   ;;  %v5767_v63 = vld [vmem:[%s6999_s24 + $0x69c] ss:$24 sps:$4 sm:$0xff]  }
 0x10a   : > { %2831 = vmatprep.subr.bf16.mxu1 %v5681_v0  ;;  %v5762_v0 = vld [vmem:[%s6999_s24 + $0x398] ss:$24 sps:$4 sm:$0xff]  }
 0x10c   : > { %2791 = vmatpush1.bf16.msra.mxu0 %v5676_v2  ;;  %v5765_v2 = vld [vmem:[%s6999_s24 + $0x698] ss:$24 sps:$4 sm:$0xff]  }
 0x10d   : > { %2792 = vmatprep.subr.bf16.mxu0 %v5684_v4  ;;  %2832 = vmatpush1.bf16.msra.mxu1 %v5679_v5  ;;  %v5773_v4 = vld [vmem:[%s6999_s24 + $0x66c] ss:$24 sps:$4 sm:$0xff]   ;;  %v5768_v5 = vld [vmem:[%s6999_s24 + $0x368] ss:$24 sps:$4 sm:$0xff]  }
 0x10e   : > { %2833 = vmatprep.subr.bf16.mxu1 %v5687_v6  ;;  %v5776_v6 = vld [vmem:[%s6999_s24 + $0x33c] ss:$24 sps:$4 sm:$0xff]  }
 0x110   : > { %2793 = vmatpush1.bf16.msra.mxu0 %v5682_v7  ;;  %v5771_v7 = vld [vmem:[%s6999_s24 + $0x668] ss:$24 sps:$4 sm:$0xff]  }
 0x111   : > { %2794 = vmatprep.subr.bf16.mxu0 %v5690_v8  ;;  %2834 = vmatpush1.bf16.msra.mxu1 %v5685_v9  ;;  %v5779_v8 = vld [vmem:[%s6999_s24 + $0x63c] ss:$24 sps:$4 sm:$0xff]   ;;  %v5774_v9 = vld [vmem:[%s6999_s24 + $0x338] ss:$24 sps:$4 sm:$0xff]  }
 0x112   : > { %2835 = vmatprep.subr.bf16.mxu1 %v5693_v10  ;;  %v5782_v10 = vld [vmem:[%s6999_s24 + $0x30c] ss:$24 sps:$4 sm:$0xff]  }
 0x114   : > { %2795 = vmatpush2.bf16.msra.mxu0 %v5688_v11  ;;  %v5777_v11 = vld [vmem:[%s6999_s24 + $0x638] ss:$24 sps:$4 sm:$0xff]  }
 0x115   : > { %2796 = vmatprep.subr.bf16.mxu0 %v5696_v12  ;;  %2836 = vmatpush2.bf16.msra.mxu1 %v5691_v13  ;;  %v5785_v12 = vld [vmem:[%s6999_s24 + $0x60c] ss:$24 sps:$4 sm:$0xff]   ;;  %v5780_v13 = vld [vmem:[%s6999_s24 + $0x308] ss:$24 sps:$4 sm:$0xff]  }
 0x116   : > { %2837 = vmatprep.subr.bf16.mxu1 %v5699_v14  ;;  %v5788_v14 = vld [vmem:[%s6999_s24 + $0x5dc] ss:$24 sps:$4 sm:$0xff]  }
 0x118   : > { %2797 = vmatpush2.bf16.msra.mxu0 %v5694_v15  ;;  %v5783_v15 = vld [vmem:[%s6999_s24 + $0x608] ss:$24 sps:$4 sm:$0xff]  }
 0x119   : > { %2798 = vmatprep.subr.bf16.mxu0 %v5702_v16  ;;  %2838 = vmatpush2.bf16.msra.mxu1 %v5697_v18  ;;  %v5791_v16 = vld [vmem:[%s6999_s24 + $0x8dc] ss:$24 sps:$4 sm:$0xff]   ;;  %v5786_v18 = vld [vmem:[%s6999_s24 + $0x5d8] ss:$24 sps:$4 sm:$0xff]  }
 0x11a   : > { %2839 = vmatprep.subr.bf16.mxu1 %v5705_v19  ;;  %v5794_v19 = vld [vmem:[%s6999_s24 + $0x5ac] ss:$24 sps:$4 sm:$0xff]  }
 0x11c   : > { %2799 = vmatpush2.bf16.msra.mxu0 %v5700_v20  ;;  %v5789_v20 = vld [vmem:[%s6999_s24 + $0x8d8] ss:$24 sps:$4 sm:$0xff]  }
 0x11d   : > { %2800 = vmatprep.subr.bf16.mxu0 %v5708_v22  ;;  %2840 = vmatpush2.bf16.msra.mxu1 %v5703_v23  ;;  %v5797_v22 = vld [vmem:[%s6999_s24 + $0x8ac] ss:$24 sps:$4 sm:$0xff]   ;;  %v5792_v23 = vld [vmem:[%s6999_s24 + $0x5a8] ss:$24 sps:$4 sm:$0xff]  }
 0x11e   : > { %2841 = vmatprep.subr.bf16.mxu1 %v5711_v24  ;;  %v5800_v24 = vld [vmem:[%s6999_s24 + $0x57c] ss:$24 sps:$4 sm:$0xff]  }
 0x120   : > { %2801 = vmatpush2.bf16.msra.mxu0 %v5706_v25  ;;  %v5795_v25 = vld [vmem:[%s6999_s24 + $0x8a8] ss:$24 sps:$4 sm:$0xff]  }
 0x121   : > { %2802 = vmatprep.subr.bf16.mxu0 %v5714_v26  ;;  %2842 = vmatpush2.bf16.msra.mxu1 %v5709_v27  ;;  %v5803_v26 = vld [vmem:[%s6999_s24 + $0x87c] ss:$24 sps:$4 sm:$0xff]   ;;  %v5798_v27 = vld [vmem:[%s6999_s24 + $0x578] ss:$24 sps:$4 sm:$0xff]  }
 0x122   : > { %2843 = vmatprep.subr.bf16.mxu1 %v5717_v28  ;;  %v5806_v28 = vld [vmem:[%s6999_s24 + $0x54c] ss:$24 sps:$4 sm:$0xff]  }
 0x124   : > { %2803 = vmatpush2.bf16.msra.mxu0 %v5712_v29  ;;  %v5801_v29 = vld [vmem:[%s6999_s24 + $0x878] ss:$24 sps:$4 sm:$0xff]  }
 0x125   : > { %2804 = vmatprep.subr.bf16.mxu0 %v5720_v30  ;;  %2844 = vmatpush2.bf16.msra.mxu1 %v5715_v31  ;;  %v5809_v30 = vld [vmem:[%s6999_s24 + $0x84c] ss:$24 sps:$4 sm:$0xff]   ;;  %v5804_v31 = vld [vmem:[%s6999_s24 + $0x548] ss:$24 sps:$4 sm:$0xff]  }
 0x126   : > { %2845 = vmatprep.subr.bf16.mxu1 %v5723_v32  ;;  %v5812_v32 = vld [vmem:[%s6999_s24 + $0x51c] ss:$24 sps:$4 sm:$0xff]  }
 0x128   : > { %2805 = vmatpush2.bf16.msra.mxu0 %v5718_v33  ;;  %v5807_v33 = vld [vmem:[%s6999_s24 + $0x848] ss:$24 sps:$4 sm:$0xff]  }
 0x129   : > { %2806 = vmatprep.subr.bf16.mxu0 %v5726_v34  ;;  %2846 = vmatpush2.bf16.msra.mxu1 %v5721_v35  ;;  %v5815_v34 = vld [vmem:[%s6999_s24 + $0x81c] ss:$24 sps:$4 sm:$0xff]   ;;  %v5810_v35 = vld [vmem:[%s6999_s24 + $0x518] ss:$24 sps:$4 sm:$0xff]  }
 0x12a   : > { %2847 = vmatprep.subr.bf16.mxu1 %v5729_v36  ;;  %v5818_v36 = vld [vmem:[%s6999_s24 + $0x4ec] ss:$24 sps:$4 sm:$0xff]  }
 0x12c   : > { %2807 = vmatpush2.bf16.msra.mxu0 %v5724_v37  ;;  %v5813_v37 = vld [vmem:[%s6999_s24 + $0x818] ss:$24 sps:$4 sm:$0xff]  }
 0x12d   : > { %2808 = vmatprep.subr.bf16.mxu0 %v5732_v39  ;;  %2848 = vmatpush2.bf16.msra.mxu1 %v5727_v40  ;;  %v5821_v39 = vld [vmem:[%s6999_s24 + $0x7ec] ss:$24 sps:$4 sm:$0xff]   ;;  %v5816_v40 = vld [vmem:[%s6999_s24 + $0x4e8] ss:$24 sps:$4 sm:$0xff]  }
 0x12e   : > { %2849 = vmatprep.subr.bf16.mxu1 %v5735_v42  ;;  %v5824_v42 = vld [vmem:[%s6999_s24 + $0x4bc] ss:$24 sps:$4 sm:$0xff]  }
 0x130   : > { %2809 = vmatpush2.bf16.msra.mxu0 %v5730_v43  ;;  %v5819_v43 = vld [vmem:[%s6999_s24 + $0x7e8] ss:$24 sps:$4 sm:$0xff]  }
 0x131   : > { %2860 = vmatprep.subr.bf16.mxu0 %v5740_v44  ;;  %2850 = vmatpush2.bf16.msra.mxu1 %v5733_v45  ;;  %v5827_v44 = vld [vmem:[%s6999_s24 + $0x7bc] ss:$24 sps:$4 sm:$0xff]   ;;  %v5822_v45 = vld [vmem:[%s6999_s24 + $0x4b8] ss:$24 sps:$4 sm:$0xff]  }
 0x132   : > { %2901 = vmatprep.subr.bf16.mxu1 %v5743_v47  ;;  %v5830_v47 = vld [vmem:[%s6999_s24 + $0x48c] ss:$24 sps:$4 sm:$0xff]  }
 0x133   : > { %2811 = vmatmul.mubr.bf16.vlgmr.msra.gmra.mxu0 %v7162_v46 }
 0x134   : > { %2861 = vmatpush1.bf16.msra.mxu0 %v5738_v48  ;;  %2892 = vmatprep.mubr.bf16.mxu0 %v7060_v21  ;;  %v5825_v48 = vld [vmem:[%s6999_s24 + $0x7b8] ss:$24 sps:$4 sm:$0xff]  }
 0x135   : > { %2852 = vmatmul.mubr.bf16.vlgmr.msra.gmra.mxu1 %v7079_v38  ;;  %2862 = vmatprep.subr.bf16.mxu0 %v5746_v49  ;;  %v5833_v49 = vld [vmem:[%s6999_s24 + $0x78c] ss:$24 sps:$4 sm:$0xff]  }
 0x136   : > { %2902 = vmatpush1.bf16.msra.mxu1 %v5741_v50  ;;  %2933 = vmatprep.mubr.bf16.mxu1 %v7119_v3  ;;  %v5828_v50 = vld [vmem:[%s6999_s24 + $0x488] ss:$24 sps:$4 sm:$0xff]  }
 0x137   : > { %2903 = vmatprep.subr.bf16.mxu1 %v5749_v51  ;;  %v5836_v51 = vld [vmem:[%s6999_s24 + $0x164] ss:$24 sps:$4 sm:$0xff]  }
 0x138   : > { %2863 = vmatpush1.bf16.msra.mxu0 %v5744_v52  ;;  %v5831_v52 = vld [vmem:[%s6999_s24 + $0x788] ss:$24 sps:$4 sm:$0xff]  }
 0x139   : > { %2864 = vmatprep.subr.bf16.mxu0 %v5752_v53  ;;  %v5839_v53 = vld [vmem:[%s6999_s24 + $0x464] ss:$24 sps:$4 sm:$0xff]  }
 0x13a   : > { %2904 = vmatpush1.bf16.msra.mxu1 %v5747_v54  ;;  %v5834_v54 = vld [vmem:[%s6999_s24 + $0x160] ss:$24 sps:$4 sm:$0xff]  }
 0x13b   : > { %2905 = vmatprep.subr.bf16.mxu1 %v5755_v55  ;;  %v5842_v55 = vld [vmem:[%s6999_s24 + $0x134] ss:$24 sps:$4 sm:$0xff]  }
 0x13c   : > { %2865 = vmatpush1.bf16.msra.mxu0 %v5750_v56  ;;  %v5837_v56 = vld [vmem:[%s6999_s24 + $0x460] ss:$24 sps:$4 sm:$0xff]  }
 0x13d   : > { %2866 = vmatprep.subr.bf16.mxu0 %v5758_v57  ;;  %v5845_v57 = vld [vmem:[%s6999_s24 + $0x434] ss:$24 sps:$4 sm:$0xff]  }
 0x13e   : > { %2906 = vmatpush1.bf16.msra.mxu1 %v5753_v58  ;;  %v5840_v58 = vld [vmem:[%s6999_s24 + $0x130] ss:$24 sps:$4 sm:$0xff]  }
 0x13f   : > { %2907 = vmatprep.subr.bf16.mxu1 %v5761_v59  ;;  %v5848_v59 = vld [vmem:[%s6999_s24 + $0x104] ss:$24 sps:$4 sm:$0xff]  }
 0x140   : > { %2867 = vmatpush1.bf16.msra.mxu0 %v5756_v60  ;;  %v5843_v60 = vld [vmem:[%s6999_s24 + $0x430] ss:$24 sps:$4 sm:$0xff]  }
 0x141   : > { %2868 = vmatprep.subr.bf16.mxu0 %v5764_v61  ;;  %v5851_v61 = vld [vmem:[%s6999_s24 + $0x404] ss:$24 sps:$4 sm:$0xff]  }
 0x142   : > { %2908 = vmatpush1.bf16.msra.mxu1 %v5759_v62  ;;  %v5846_v62 = vld [vmem:[%s6999_s24 + $0x100] ss:$24 sps:$4 sm:$0xff]  }
 0x143   : > { %2909 = vmatprep.subr.bf16.mxu1 %v5767_v63  ;;  %v5849_v63 = vld [vmem:[%s6999_s24 + $0x400] ss:$24 sps:$4 sm:$0xff]  }
 0x144   : > { %2869 = vmatpush1.bf16.msra.mxu0 %v5762_v0  ;;  %v5857_v0 = vld [vmem:[%s6999_s24 + $0x3d4] ss:$24 sps:$4 sm:$0xff]  }
 0x145   : > { %2870 = vmatprep.subr.bf16.mxu0 %v5770_v1  ;;  %v5852_v1 = vld [vmem:[%s6999_s24 + $0xd0] ss:$24 sps:$4 sm:$0xff]  }
 0x146   : > { %2910 = vmatpush1.bf16.msra.mxu1 %v5765_v2  ;;  %v5855_v2 = vld [vmem:[%s6999_s24 + $0x3d0] ss:$24 sps:$4 sm:$0xff]  }
 0x147   : > { %2911 = vmatprep.subr.bf16.mxu1 %v5773_v4  ;;  %v5863_v4 = vld [vmem:[%s6999_s24 + $0x3a4] ss:$24 sps:$4 sm:$0xff]  }
 0x148   : > { %2871 = vmatpush1.bf16.msra.mxu0 %v5768_v5  ;;  %v5858_v5 = vld [vmem:[%s6999_s24 + $0xa0] ss:$24 sps:$4 sm:$0xff]  }
 0x149   : > { %2872 = vmatprep.subr.bf16.mxu0 %v5776_v6  ;;  %v5866_v6 = vld [vmem:[%s6999_s24 + $0x74] ss:$24 sps:$4 sm:$0xff]  }
 0x14a   : > { %2912 = vmatpush1.bf16.msra.mxu1 %v5771_v7  ;;  %v5861_v7 = vld [vmem:[%s6999_s24 + $0x3a0] ss:$24 sps:$4 sm:$0xff]  }
 0x14b   : > { %2913 = vmatprep.subr.bf16.mxu1 %v5779_v8  ;;  %v5869_v8 = vld [vmem:[%s6999_s24 + $0x374] ss:$24 sps:$4 sm:$0xff]  }
 0x14c   : > { %2873 = vmatpush1.bf16.msra.mxu0 %v5774_v9  ;;  %v5864_v9 = vld [vmem:[%s6999_s24 + $0x70] ss:$24 sps:$4 sm:$0xff]  }
 0x14d   : > { %2874 = vmatprep.subr.bf16.mxu0 %v5782_v10  ;;  %v5872_v10 = vld [vmem:[%s6999_s24 + $0x44] ss:$24 sps:$4 sm:$0xff]  }
 0x14e   : > { %2914 = vmatpush1.bf16.msra.mxu1 %v5777_v11  ;;  %v5867_v11 = vld [vmem:[%s6999_s24 + $0x370] ss:$24 sps:$4 sm:$0xff]  }
 0x14f   : > { %2915 = vmatprep.subr.bf16.mxu1 %v5785_v12  ;;  %v5875_v12 = vld [vmem:[%s6999_s24 + $0x344] ss:$24 sps:$4 sm:$0xff]  }
 0x150   : > { %2875 = vmatpush1.bf16.msra.mxu0 %v5780_v13  ;;  %v5870_v13 = vld [vmem:[%s6999_s24 + $0x40] ss:$24 sps:$4 sm:$0xff]  }
 0x151   : > { %2876 = vmatprep.subr.bf16.mxu0 %v5788_v14  ;;  %v5878_v14 = vld [vmem:[%s6999_s24 + $0x14] ss:$24 sps:$4 sm:$0xff]  }
 0x152   : > { %2916 = vmatpush1.bf16.msra.mxu1 %v5783_v15  ;;  %v5873_v15 = vld [vmem:[%s6999_s24 + $0x340] ss:$24 sps:$4 sm:$0xff]  }
 0x153   : > { %2917 = vmatprep.subr.bf16.mxu1 %v5791_v16  ;;  %v5881_v16 = vld [vmem:[%s6999_s24 + $0x314] ss:$24 sps:$4 sm:$0xff]  }
 0x154   : > { %2877 = vmatpush2.bf16.msra.mxu0 %v5786_v18  ;;  %v5876_v18 = vld [vmem:[%s6999_s24 + $0x10] ss:$24 sps:$4 sm:$0xff]  }
 0x155   : > { %2878 = vmatprep.subr.bf16.mxu0 %v5794_v19  ;;  %v5884_v19 = vld [vmem:[%s6999_s24 + $0x2e4] ss:$24 sps:$4 sm:$0xff]  }
 0x156   : > { %2918 = vmatpush2.bf16.msra.mxu1 %v5789_v20  ;;  %v5879_v20 = vld [vmem:[%s6999_s24 + $0x310] ss:$24 sps:$4 sm:$0xff]  }
 0x157   : > { %2919 = vmatprep.subr.bf16.mxu1 %v5797_v22  ;;  %v5887_v22 = vld [vmem:[%s6999_s24 + $0x5e4] ss:$24 sps:$4 sm:$0xff]  }
 0x158   : > { %2879 = vmatpush2.bf16.msra.mxu0 %v5792_v23  ;;  %v5882_v23 = vld [vmem:[%s6999_s24 + $0x2e0] ss:$24 sps:$4 sm:$0xff]  }
 0x159   : > { %2880 = vmatprep.subr.bf16.mxu0 %v5800_v24  ;;  %v5890_v24 = vld [vmem:[%s6999_s24 + $0x2b4] ss:$24 sps:$4 sm:$0xff]  }
 0x15a   : > { %2920 = vmatpush2.bf16.msra.mxu1 %v5795_v25  ;;  %v5885_v25 = vld [vmem:[%s6999_s24 + $0x5e0] ss:$24 sps:$4 sm:$0xff]  }
 0x15b   : > { %2921 = vmatprep.subr.bf16.mxu1 %v5803_v26  ;;  %v5888_v26 = vld [vmem:[%s6999_s24 + $0x2b0] ss:$24 sps:$4 sm:$0xff]  }
 0x15c   : > { %2881 = vmatpush2.bf16.msra.mxu0 %v5798_v27  ;;  %v5893_v27 = vld [vmem:[%s6999_s24 + $0x5b4] ss:$24 sps:$4 sm:$0xff]  }
 0x15d   : > { %2882 = vmatprep.subr.bf16.mxu0 %v5806_v28  ;;  %v5891_v28 = vld [vmem:[%s6999_s24 + $0x5b0] ss:$24 sps:$4 sm:$0xff]  }
 0x15e   : > { %2922 = vmatpush2.bf16.msra.mxu1 %v5801_v29  ;;  %v5896_v29 = vld [vmem:[%s6999_s24 + $0x284] ss:$24 sps:$4 sm:$0xff]  }
 0x15f   : > { %2923 = vmatprep.subr.bf16.mxu1 %v5809_v30  ;;  %v5899_v30 = vld [vmem:[%s6999_s24 + $0x584] ss:$24 sps:$4 sm:$0xff]  }
 0x160   : > { %2883 = vmatpush2.bf16.msra.mxu0 %v5804_v31  ;;  %v5894_v31 = vld [vmem:[%s6999_s24 + $0x280] ss:$24 sps:$4 sm:$0xff]  }
 0x161   : > { %2884 = vmatprep.subr.bf16.mxu0 %v5812_v32  ;;  %v5897_v32 = vld [vmem:[%s6999_s24 + $0x580] ss:$24 sps:$4 sm:$0xff]  }
 0x162   : > { %2924 = vmatpush2.bf16.msra.mxu1 %v5807_v33  ;;  %v5902_v33 = vld [vmem:[%s6999_s24 + $0x254] ss:$24 sps:$4 sm:$0xff]  }
 0x163   : > { %2925 = vmatprep.subr.bf16.mxu1 %v5815_v34  ;;  %v5905_v34 = vld [vmem:[%s6999_s24 + $0x554] ss:$24 sps:$4 sm:$0xff]  }
 0x164   : > { %2885 = vmatpush2.bf16.msra.mxu0 %v5810_v35  ;;  %v5900_v35 = vld [vmem:[%s6999_s24 + $0x250] ss:$24 sps:$4 sm:$0xff]  }
 0x165   : > { %2886 = vmatprep.subr.bf16.mxu0 %v5818_v36  ;;  %v5903_v36 = vld [vmem:[%s6999_s24 + $0x550] ss:$24 sps:$4 sm:$0xff]  }
 0x166   : > { %2926 = vmatpush2.bf16.msra.mxu1 %v5813_v37  ;;  %v5908_v37 = vld [vmem:[%s6999_s24 + $0x224] ss:$24 sps:$4 sm:$0xff]  }
 0x167   : > { %2927 = vmatprep.subr.bf16.mxu1 %v5821_v39  ;;  %v5911_v39 = vld [vmem:[%s6999_s24 + $0x524] ss:$24 sps:$4 sm:$0xff]  }
 0x168   : > { %2887 = vmatpush2.bf16.msra.mxu0 %v5816_v40  ;;  %v5906_v40 = vld [vmem:[%s6999_s24 + $0x220] ss:$24 sps:$4 sm:$0xff]  }
 0x169   : > { %2888 = vmatprep.subr.bf16.mxu0 %v5824_v42  ;;  %v5909_v42 = vld [vmem:[%s6999_s24 + $0x520] ss:$24 sps:$4 sm:$0xff]  }
 0x16a   : > { %2928 = vmatpush2.bf16.msra.mxu1 %v5819_v43  ;;  %v5914_v43 = vld [vmem:[%s6999_s24 + $0x1f4] ss:$24 sps:$4 sm:$0xff]  }
 0x16b   : > { %2929 = vmatprep.subr.bf16.mxu1 %v5827_v44  ;;  %v5917_v44 = vld [vmem:[%s6999_s24 + $0x4f4] ss:$24 sps:$4 sm:$0xff]  }
 0x16c   : > { %2889 = vmatpush2.bf16.msra.mxu0 %v5822_v45  ;;  %v5912_v45 = vld [vmem:[%s6999_s24 + $0x1f0] ss:$24 sps:$4 sm:$0xff]  }
 0x16d   : > { %2890 = vmatprep.subr.bf16.mxu0 %v5830_v47  ;;  %v5915_v47 = vld [vmem:[%s6999_s24 + $0x4f0] ss:$24 sps:$4 sm:$0xff]  }
 0x16e   : > { %2930 = vmatpush2.bf16.msra.mxu1 %v5825_v48  ;;  %v5920_v48 = vld [vmem:[%s6999_s24 + $0x1c4] ss:$24 sps:$4 sm:$0xff]  }
 0x16f   : > { %2931 = vmatprep.subr.bf16.mxu1 %v5833_v49  ;;  %v5923_v49 = vld [vmem:[%s6999_s24 + $0x4c4] ss:$24 sps:$4 sm:$0xff]  }
 0x170   : > { %2891 = vmatpush2.bf16.msra.mxu0 %v5828_v50  ;;  %v5918_v50 = vld [vmem:[%s6999_s24 + $0x1c0] ss:$24 sps:$4 sm:$0xff]  }
 0x171   : > { %2942 = vmatprep.subr.bf16.mxu0 %v5836_v51  ;;  %v5926_v51 = vld [vmem:[%s6999_s24 + $0x194] ss:$24 sps:$4 sm:$0xff]  }
 0x172   : > { %2932 = vmatpush2.bf16.msra.mxu1 %v5831_v52  ;;  %v5921_v52 = vld [vmem:[%s6999_s24 + $0x4c0] ss:$24 sps:$4 sm:$0xff]  }
 0x173   : > { %2893 = vmatmul.mubr.bf16.vlgmr.msra.gmra.mxu0 %v7083_v41  ;;  %2983 = vmatprep.subr.bf16.mxu1 %v5839_v53  ;;  %v5929_v53 = vld [vmem:[%s6999_s24 + $0x494] ss:$24 sps:$4 sm:$0xff]  }
 0x174   : > { %2943 = vmatpush1.bf16.msra.mxu0 %v5834_v54  ;;  %2974 = vmatprep.mubr.bf16.mxu0 %v7052_v17  ;;  %v5854_v17 = vld [vmem:[%s6999_s24 + $0xd4] ss:$24 sps:$4 sm:$0xff]   ;;  %v5924_v54 = vld [vmem:[%s6999_s24 + $0x190] ss:$24 sps:$4 sm:$0xff]  }
 0x175   : > { %2934 = vmatmul.mubr.bf16.vlgmr.msra.gmra.mxu1 %v7162_v46  ;;  %2944 = vmatprep.subr.bf16.mxu0 %v5842_v55  ;;  %v5932_v55 = vld [vmem:[%s6999_s24 + $0x764] ss:$24 sps:$4 sm:$0xff]  }
 0x176   : > { %2984 = vmatpush1.bf16.msra.mxu1 %v5837_v56  ;;  %3015 = vmatprep.mubr.bf16.mxu1 %v7060_v21  ;;  %v5860_v21 = vld [vmem:[%s6999_s24 + $0xa4] ss:$24 sps:$4 sm:$0xff]   ;;  %v5927_v56 = vld [vmem:[%s6999_s24 + $0x490] ss:$24 sps:$4 sm:$0xff]  }
 0x177   : > { %2985 = vmatprep.subr.bf16.mxu1 %v5845_v57  ;;  %v5941_v57 = vld [vmem:[%s6997_s30 + $0xe4] ss:$16 sps:$4 sm:$0xff]  }
 0x178   : > { %2945 = vmatpush1.bf16.msra.mxu0 %v5840_v58  ;;  %v5930_v58 = vld [vmem:[%s6999_s24 + $0x760] ss:$24 sps:$4 sm:$0xff]  }
 0x179   : > { %2946 = vmatprep.subr.bf16.mxu0 %v5848_v59  ;;  %v5935_v59 = vld [vmem:[%s6999_s24 + $0x734] ss:$24 sps:$4 sm:$0xff]  }
 0x17a   : > { %2986 = vmatpush1.bf16.msra.mxu1 %v5843_v60  ;;  %v5939_v60 = vld [vmem:[%s6997_s30 + $0xe0] ss:$16 sps:$4 sm:$0xff]  }
 0x17b   : > { %2987 = vmatprep.subr.bf16.mxu1 %v5851_v61  ;;  %v5947_v61 = vld [vmem:[%s6997_s30 + $0xc4] ss:$16 sps:$4 sm:$0xff]  }
 0x17c   : > { %2947 = vmatpush1.bf16.msra.mxu0 %v5846_v62  ;;  %v5933_v62 = vld [vmem:[%s6999_s24 + $0x730] ss:$24 sps:$4 sm:$0xff]  }
 0x17d   : > { %2948 = vmatprep.subr.bf16.mxu0 %v5854_v17 }
 0x17e   : > { %2988 = vmatpush1.bf16.msra.mxu1 %v5849_v63  ;;  %v5938_v63 = vld [vmem:[%s6999_s24 + $0x704] ss:$24 sps:$4 sm:$0xff]  }
 0x17f   : > { %2989 = vmatprep.subr.bf16.mxu1 %v5857_v0  ;;  %v5945_v0 = vld [vmem:[%s6997_s30 + $0xc0] ss:$16 sps:$4 sm:$0xff]  }
 0x180   : > { %2949 = vmatpush1.bf16.msra.mxu0 %v5852_v1 }
 0x181   : > { %2950 = vmatprep.subr.bf16.mxu0 %v5860_v21 }
 0x182   : > { %2990 = vmatpush1.bf16.msra.mxu1 %v5855_v2  ;;  %v5953_v2 = vld [vmem:[%s6997_s30 + $0xa4] ss:$16 sps:$4 sm:$0xff]  }
 0x183   : > { %2991 = vmatprep.subr.bf16.mxu1 %v5863_v4  ;;  %v5936_v4 = vld [vmem:[%s6999_s24 + $0x700] ss:$24 sps:$4 sm:$0xff]  }
 0x184   : > { %2951 = vmatpush1.bf16.msra.mxu0 %v5858_v5 }
 0x185   : > { %2952 = vmatprep.subr.bf16.mxu0 %v5866_v6  ;;  %v5944_v6 = vld [vmem:[%s6999_s24 + $0x6d4] ss:$24 sps:$4 sm:$0xff]  }
 0x186   : > { %2992 = vmatpush1.bf16.msra.mxu1 %v5861_v7 }
 0x187   : > { %2993 = vmatprep.subr.bf16.mxu1 %v5869_v8  ;;  %v5959_v8 = vld [vmem:[%s6997_s30 + $0x84] ss:$16 sps:$4 sm:$0xff]  }
 0x188   : > { %2953 = vmatpush1.bf16.msra.mxu0 %v5864_v9  ;;  %v5942_v9 = vld [vmem:[%s6999_s24 + $0x6d0] ss:$24 sps:$4 sm:$0xff]  }
 0x189   : > { %2954 = vmatprep.subr.bf16.mxu0 %v5872_v10  ;;  %v5950_v10 = vld [vmem:[%s6999_s24 + $0x6a4] ss:$24 sps:$4 sm:$0xff]  }
 0x18a   : > { %2994 = vmatpush1.bf16.msra.mxu1 %v5867_v11 }
 0x18b   : > { %2995 = vmatprep.subr.bf16.mxu1 %v5875_v12  ;;  %v5957_v12 = vld [vmem:[%s6997_s30 + $0x80] ss:$16 sps:$4 sm:$0xff]  }
 0x18c   : > { %2955 = vmatpush1.bf16.msra.mxu0 %v5870_v13  ;;  %v5965_v13 = vld [vmem:[%s6997_s30 + $0x64] ss:$16 sps:$4 sm:$0xff]  }
 0x18d   : > { %2956 = vmatprep.subr.bf16.mxu0 %v5878_v14  ;;  %v5948_v14 = vld [vmem:[%s6999_s24 + $0x6a0] ss:$24 sps:$4 sm:$0xff]  }
 0x18e   : > { %2996 = vmatpush1.bf16.msra.mxu1 %v5873_v15  ;;  %v5956_v15 = vld [vmem:[%s6999_s24 + $0x674] ss:$24 sps:$4 sm:$0xff]  }
 0x18f   : > { %2997 = vmatprep.subr.bf16.mxu1 %v5881_v16  ;;  %v5963_v16 = vld [vmem:[%s6997_s30 + $0x60] ss:$16 sps:$4 sm:$0xff]  }
 0x190   : > { %2957 = vmatpush1.bf16.msra.mxu0 %v5876_v18  ;;  %v5971_v18 = vld [vmem:[%s6997_s30 + $0x44] ss:$16 sps:$4 sm:$0xff]  }
 0x191   : > { %2958 = vmatprep.subr.bf16.mxu0 %v5884_v19  ;;  %v5954_v19 = vld [vmem:[%s6999_s24 + $0x670] ss:$24 sps:$4 sm:$0xff]  }
 0x192   : > { %2998 = vmatpush1.bf16.msra.mxu1 %v5879_v20  ;;  %v5962_v20 = vld [vmem:[%s6999_s24 + $0x644] ss:$24 sps:$4 sm:$0xff]  }
 0x193   : > { %2999 = vmatprep.subr.bf16.mxu1 %v5887_v22  ;;  %v5969_v22 = vld [vmem:[%s6997_s30 + $0x40] ss:$16 sps:$4 sm:$0xff]  }
 0x194   : > { %2959 = vmatpush2.bf16.msra.mxu0 %v5882_v23  ;;  %v5977_v23 = vld [vmem:[%s6997_s30 + $0x24] ss:$16 sps:$4 sm:$0xff]  }
 0x195   : > { %2960 = vmatprep.subr.bf16.mxu0 %v5890_v24  ;;  %v5960_v24 = vld [vmem:[%s6999_s24 + $0x640] ss:$24 sps:$4 sm:$0xff]  }
 0x196   : > { %3000 = vmatpush2.bf16.msra.mxu1 %v5885_v25  ;;  %v5968_v25 = vld [vmem:[%s6999_s24 + $0x614] ss:$24 sps:$4 sm:$0xff]  }
 0x197   : > { %3001 = vmatprep.subr.bf16.mxu1 %v5893_v27  ;;  %v5983_v27 = vld [vmem:[%s6997_s30 + $0x4] ss:$16 sps:$4 sm:$0xff]  }
 0x198   : > { %2961 = vmatpush2.bf16.msra.mxu0 %v5888_v26  ;;  %v5975_v26 = vld [vmem:[%s6997_s30 + $0x20] ss:$16 sps:$4 sm:$0xff]  }
 0x199   : > { %2962 = vmatprep.subr.bf16.mxu0 %v5896_v29  ;;  %v5974_v29 = vld [vmem:[%s6999_s24 + $0x8e4] ss:$24 sps:$4 sm:$0xff]  }
 0x19a   : > { %3002 = vmatpush2.bf16.msra.mxu1 %v5891_v28  ;;  %v5966_v28 = vld [vmem:[%s6999_s24 + $0x610] ss:$24 sps:$4 sm:$0xff]  }
 0x19b   : > { %3003 = vmatprep.subr.bf16.mxu1 %v5899_v30  ;;  %v5981_v30 = vld [vmem:[%s6997_s30] ss:$16 sps:$4 sm:$0xff]  }
 0x19c   : > { %2963 = vmatpush2.bf16.msra.mxu0 %v5894_v31  ;;  %v5989_v31 = vld [vmem:[%s6997_s30 + $0x1e4] ss:$16 sps:$4 sm:$0xff]  }
 0x19d   : > { %2964 = vmatprep.subr.bf16.mxu0 %v5902_v33  ;;  %v5980_v33 = vld [vmem:[%s6999_s24 + $0x8b4] ss:$24 sps:$4 sm:$0xff]  }
 0x19e   : > { %3004 = vmatpush2.bf16.msra.mxu1 %v5897_v32  ;;  %v5972_v32 = vld [vmem:[%s6999_s24 + $0x8e0] ss:$24 sps:$4 sm:$0xff]  }
 0x19f   : > { %3005 = vmatprep.subr.bf16.mxu1 %v5905_v34  ;;  %v5987_v34 = vld [vmem:[%s6997_s30 + $0x1e0] ss:$16 sps:$4 sm:$0xff]  }
 0x1a0   : > { %2965 = vmatpush2.bf16.msra.mxu0 %v5900_v35  ;;  %v5995_v35 = vld [vmem:[%s6997_s30 + $0x1c4] ss:$16 sps:$4 sm:$0xff]  }
 0x1a1   : > { %2966 = vmatprep.subr.bf16.mxu0 %v5908_v37  ;;  %v5986_v37 = vld [vmem:[%s6999_s24 + $0x884] ss:$24 sps:$4 sm:$0xff]  }
 0x1a2   : > { %3006 = vmatpush2.bf16.msra.mxu1 %v5903_v36  ;;  %v5978_v36 = vld [vmem:[%s6999_s24 + $0x8b0] ss:$24 sps:$4 sm:$0xff]  }
 0x1a3   : > { %3007 = vmatprep.subr.bf16.mxu1 %v5911_v39  ;;  %v5993_v39 = vld [vmem:[%s6997_s30 + $0x1c0] ss:$16 sps:$4 sm:$0xff]  }
 0x1a4   : > { %2967 = vmatpush2.bf16.msra.mxu0 %v5906_v40  ;;  %v6001_v40 = vld [vmem:[%s6997_s30 + $0x1a4] ss:$16 sps:$4 sm:$0xff]  }
 0x1a5   : > { %2968 = vmatprep.subr.bf16.mxu0 %v5914_v43  ;;  %v5992_v43 = vld [vmem:[%s6999_s24 + $0x854] ss:$24 sps:$4 sm:$0xff]  }
 0x1a6   : > { %3008 = vmatpush2.bf16.msra.mxu1 %v5909_v42  ;;  %v5984_v42 = vld [vmem:[%s6999_s24 + $0x880] ss:$24 sps:$4 sm:$0xff]  }
 0x1a7   : > { %3009 = vmatprep.subr.bf16.mxu1 %v5917_v44  ;;  %v5999_v44 = vld [vmem:[%s6997_s30 + $0x1a0] ss:$16 sps:$4 sm:$0xff]  }
 0x1a8   : > { %2969 = vmatpush2.bf16.msra.mxu0 %v5912_v45  ;;  %v6007_v45 = vld [vmem:[%s6997_s30 + $0x184] ss:$16 sps:$4 sm:$0xff]  }
 0x1a9   : > { %2970 = vmatprep.subr.bf16.mxu0 %v5920_v48  ;;  %v5998_v48 = vld [vmem:[%s6999_s24 + $0x824] ss:$24 sps:$4 sm:$0xff]  }
 0x1aa   : > { %3010 = vmatpush2.bf16.msra.mxu1 %v5915_v47  ;;  %v5990_v47 = vld [vmem:[%s6999_s24 + $0x850] ss:$24 sps:$4 sm:$0xff]  }
 0x1ab   : > { %3011 = vmatprep.subr.bf16.mxu1 %v5923_v49  ;;  %v1205_v49 = vlaneseq }
 0x1ac   : > { %2971 = vmatpush2.bf16.msra.mxu0 %v5918_v50  ;;  %v6005_v50 = vld [vmem:[%s6997_s30 + $0x180] ss:$16 sps:$4 sm:$0xff]  }
 0x1ad   : > { %2972 = vmatprep.subr.bf16.mxu0 %v5926_v51  ;;  %v6013_v51 = vld [vmem:[%s6997_s30 + $0x164] ss:$16 sps:$4 sm:$0xff]  }
 0x1ae   : > { %3012 = vmatpush2.bf16.msra.mxu1 %v5921_v52  ;;  %v5996_v52 = vld [vmem:[%s6999_s24 + $0x820] ss:$24 sps:$4 sm:$0xff]  }
 0x1af   : > { %3013 = vmatprep.subr.bf16.mxu1 %v5929_v53  ;;  %v6004_v53 = vld [vmem:[%s6999_s24 + $0x7f4] ss:$24 sps:$4 sm:$0xff]  }
 0x1b0   : > { %2973 = vmatpush2.bf16.msra.mxu0 %v5924_v54  ;;  %v7362_v54 = vshrl.u32 %v1205_v49, 7  ;;  %v6148_v49 = vld [vmem:[%s6997_s30 + $0x464] ss:$16 sps:$4 sm:$0xff]  }
 0x1b1   : > { %3024 = vmatprep.subr.bf16.mxu0 %v5932_v55  ;;  %v6011_v55 = vld [vmem:[%s6997_s30 + $0x160] ss:$16 sps:$4 sm:$0xff]  }
 0x1b2   : > { %3014 = vmatpush2.bf16.msra.mxu1 %v5927_v56  ;;  %v6019_v56 = vld [vmem:[%s6997_s30 + $0x144] ss:$16 sps:$4 sm:$0xff]  }
 0x1b3   : > { %v7306_v17 = vpop.f32.mrf.mxu0  ;;  %2975 = vmatmul.mubr.bf16.vlgmr.msra.gmra.mxu0 %v7079_v38  ;;  %4233 = vmatprep.subr.bf16.mxu1 %v5941_v57  ;;  %v6002_v57 = vld [vmem:[%s6999_s24 + $0x7f0] ss:$24 sps:$4 sm:$0xff]  }
 0x1b4   : > { %3025 = vmatpush1.bf16.msra.mxu0 %v5930_v58  ;;  %3056 = vmatprep.mubr.bf16.mxu0 %v7119_v3  ;;  %v7314_v21 = vpop.f32.mrf.mxu1  ;;  %v5951_v3 = vld [vmem:[%s6997_s30 + $0xa0] ss:$16 sps:$4 sm:$0xff]   ;;  %v6010_v58 = vld [vmem:[%s6999_s24 + $0x7c4] ss:$24 sps:$4 sm:$0xff]  }
 0x1b5   : > { %v7312_v1 = vpop.f32.mrf.mxu0  ;;  %3016 = vmatmul.mubr.bf16.vlgmr.msra.gmra.mxu1 %v7083_v41  ;;  %3026 = vmatprep.subr.bf16.mxu0 %v5935_v59  ;;  %v1207_v59 = vsub.s32 0, %v7362_v54 }
 0x1b6   : > { %4234 = vmatpush1.bf16.msra.mxu1 %v5939_v60  ;;  %v7319_v5 = vpop.f32.mrf.mxu1  ;;  %v6017_v60 = vld [vmem:[%s6997_s30 + $0x140] ss:$16 sps:$4 sm:$0xff]  }
 0x1b7   : > { %v2734_v38 = vpop.f32.mrf.mxu0  ;;  %4235 = vmatprep.subr.bf16.mxu1 %v5947_v61  ;;  %v7375_v61 = vld [vmem:[%s894_s22] sm:$0x3f] }
 0x1b8   : > { %3027 = vmatpush1.bf16.msra.mxu0 %v5933_v62  ;;  %v2775_v41 = vpop.f32.mrf.mxu1  ;;  %v6022_v62 = vld [vmem:[%s6997_s30 + $0x124] ss:$16 sps:$4 sm:$0xff]   ;;  %v6020_v38 = vld [vmem:[%s6997_s30 + $0x120] ss:$16 sps:$4 sm:$0xff]  }
 0x1b9   : > { %v2735_v7 = vpop.f32.mrf.mxu0  ;;  %3028 = vmatprep.subr.bf16.mxu0 %v5938_v63  ;;  %v1211_v63 = vsub.s32 1, %v7362_v54 }
 0x1ba   : > { %4236 = vmatpush1.bf16.msra.mxu1 %v5945_v0  ;;  %v2776_v11 = vpop.f32.mrf.mxu1  ;;  %v6008_v0 = vld [vmem:[%s6999_s24 + $0x7c0] ss:$24 sps:$4 sm:$0xff]   ;;  %v6014_v7 = vld [vmem:[%s6999_s24 + $0x790] ss:$24 sps:$4 sm:$0xff]  }
 0x1bb   : > { %4237 = vmatprep.subr.bf16.mxu1 %v5953_v2  ;;  %v6016_v2 = vld [vmem:[%s6999_s24 + $0x794] ss:$24 sps:$4 sm:$0xff]   ;;  %v6026_v11 = vld [vmem:[%s6997_s30 + $0x2e0] ss:$16 sps:$4 sm:$0xff]  }
 0x1bc   : > { %3029 = vmatpush1.bf16.msra.mxu0 %v5936_v4  ;;  %v1208_v4 = vrot.slane %v7375_v61, %v1207_v59 }
 0x1bd   : > { %3030 = vmatprep.subr.bf16.mxu0 %v5944_v6  ;;  %v6025_v6 = vld [vmem:[%s6997_s30 + $0x104] ss:$16 sps:$4 sm:$0xff]  }
 0x1be   : > { %4238 = vmatpush1.bf16.msra.mxu1 %v5951_v3  ;;  %v1212_v3 = vrot.slane %v7375_v61, %v1211_v63  ;;  %v2731_v41 = vadd.f32 %v7306_v17, %v1208_v4  ;;  %v6056_v4 = vld [vmem:[%s6997_s30 + $0x3a0] ss:$16 sps:$4 sm:$0xff]  }
 0x1bf   : > { %4239 = vmatprep.subr.bf16.mxu1 %v5959_v8  ;;  %v6028_v8 = vld [vmem:[%s6997_s30 + $0x2e4] ss:$16 sps:$4 sm:$0xff]  }
 0x1c0   : > { %3031 = vmatpush1.bf16.msra.mxu0 %v5942_v9  ;;  %v6023_v9 = vld [vmem:[%s6997_s30 + $0x100] ss:$16 sps:$4 sm:$0xff]  }
 0x1c1   : > { %3032 = vmatprep.subr.bf16.mxu0 %v5950_v10  ;;  %v2733_v10 = vadd.f32 %v7312_v1, %v1212_v3  ;;  %v6034_v1 = vld [vmem:[%s6997_s30 + $0x2a4] ss:$16 sps:$4 sm:$0xff]  }
 0x1c2   : > { %4240 = vmatpush1.bf16.msra.mxu1 %v5957_v12  ;;  %v6031_v12 = vld [vmem:[%s6997_s30 + $0x2c4] ss:$16 sps:$4 sm:$0xff]  }
 0x1c3   : > { %4241 = vmatprep.subr.bf16.mxu1 %v5965_v13  ;;  %v2772_v13 = vadd.f32 %v7314_v21, %v2731_v41  ;;  %v2774_v17 = vadd.f32 %v7319_v5, %v2733_v10  ;;  %v6032_v5 = vld [vmem:[%s6997_s30 + $0x2a0] ss:$16 sps:$4 sm:$0xff]   ;;  %v6172_v3 = vld [vmem:[%s6997_s30 + $0x5e4] ss:$16 sps:$4 sm:$0xff]  }
 0x1c4   : > { %3033 = vmatpush1.bf16.msra.mxu0 %v5948_v14  ;;  %v6064_v41 = vld [vmem:[%s6997_s30 + $0x364] ss:$16 sps:$4 sm:$0xff]   ;;  %v6062_v10 = vld [vmem:[%s6997_s30 + $0x360] ss:$16 sps:$4 sm:$0xff]  }
 0x1c5   : > { %3034 = vmatprep.subr.bf16.mxu0 %v5956_v15 }
 0x1c6   : > { %4242 = vmatpush1.bf16.msra.mxu1 %v5963_v16  ;;  %v6029_v16 = vld [vmem:[%s6997_s30 + $0x2c0] ss:$16 sps:$4 sm:$0xff]  }
 0x1c7   : > { %4243 = vmatprep.subr.bf16.mxu1 %v5971_v18 }
 0x1c8   : > { %3035 = vmatpush1.bf16.msra.mxu0 %v5954_v19 }
 0x1c9   : > { %3036 = vmatprep.subr.bf16.mxu0 %v5962_v20 }
 0x1ca   : > { %4244 = vmatpush1.bf16.msra.mxu1 %v5969_v22 }
 0x1cb   : > { %4245 = vmatprep.subr.bf16.mxu1 %v5977_v23 }
 0x1cc   : > { %3037 = vmatpush1.bf16.msra.mxu0 %v5960_v24 }
 0x1cd   : > { %3038 = vmatprep.subr.bf16.mxu0 %v5968_v25  ;;  %v6037_v25 = vld [vmem:[%s6997_s30 + $0x284] ss:$16 sps:$4 sm:$0xff]  }
 0x1ce   : > { %4246 = vmatpush1.bf16.msra.mxu1 %v5975_v26 }
 0x1cf   : > { %4247 = vmatprep.subr.bf16.mxu1 %v5983_v27 }
 0x1d0   : > { %3039 = vmatpush1.bf16.msra.mxu0 %v5966_v28 }
 0x1d1   : > { %3040 = vmatprep.subr.bf16.mxu0 %v5974_v29 }
 0x1d2   : > { %4248 = vmatpush1.bf16.msra.mxu1 %v5981_v30  ;;  %v6124_v30 = vld [vmem:[%s6997_s30 + $0x4e4] ss:$16 sps:$4 sm:$0xff]  }
 0x1d3   : > { %4249 = vmatprep.subr.bf16.mxu1 %v5989_v31  ;;  %v6035_v31 = vld [vmem:[%s6997_s30 + $0x280] ss:$16 sps:$4 sm:$0xff]  }
 0x1d4   : > { %3041 = vmatpush2.bf16.msra.mxu0 %v5972_v32  ;;  %v6122_v32 = vld [vmem:[%s6997_s30 + $0x4e0] ss:$16 sps:$4 sm:$0xff]  }
 0x1d5   : > { %3042 = vmatprep.subr.bf16.mxu0 %v5980_v33  ;;  %v6040_v33 = vld [vmem:[%s6997_s30 + $0x264] ss:$16 sps:$4 sm:$0xff]  }
 0x1d6   : > { %4250 = vmatpush2.bf16.msra.mxu1 %v5987_v34  ;;  %v6130_v34 = vld [vmem:[%s6997_s30 + $0x4c4] ss:$16 sps:$4 sm:$0xff]  }
 0x1d7   : > { %4251 = vmatprep.subr.bf16.mxu1 %v5995_v35  ;;  %v6038_v35 = vld [vmem:[%s6997_s30 + $0x260] ss:$16 sps:$4 sm:$0xff]  }
 0x1d8   : > { %3043 = vmatpush2.bf16.msra.mxu0 %v5978_v36  ;;  %v6128_v36 = vld [vmem:[%s6997_s30 + $0x4c0] ss:$16 sps:$4 sm:$0xff]  }
 0x1d9   : > { %3044 = vmatprep.subr.bf16.mxu0 %v5986_v37  ;;  %v6043_v37 = vld [vmem:[%s6997_s30 + $0x244] ss:$16 sps:$4 sm:$0xff]  }
 0x1da   : > { %4252 = vmatpush2.bf16.msra.mxu1 %v5993_v39  ;;  %v6136_v39 = vld [vmem:[%s6997_s30 + $0x4a4] ss:$16 sps:$4 sm:$0xff]  }
 0x1db   : > { %4253 = vmatprep.subr.bf16.mxu1 %v6001_v40  ;;  %v6041_v40 = vld [vmem:[%s6997_s30 + $0x240] ss:$16 sps:$4 sm:$0xff]  }
 0x1dc   : > { %3045 = vmatpush2.bf16.msra.mxu0 %v5984_v42  ;;  %v6134_v42 = vld [vmem:[%s6997_s30 + $0x4a0] ss:$16 sps:$4 sm:$0xff]  }
 0x1dd   : > { %3046 = vmatprep.subr.bf16.mxu0 %v5992_v43  ;;  %v6046_v43 = vld [vmem:[%s6997_s30 + $0x224] ss:$16 sps:$4 sm:$0xff]  }
 0x1de   : > { %4254 = vmatpush2.bf16.msra.mxu1 %v5999_v44  ;;  %v6142_v44 = vld [vmem:[%s6997_s30 + $0x484] ss:$16 sps:$4 sm:$0xff]  }
 0x1df   : > { %4255 = vmatprep.subr.bf16.mxu1 %v6007_v45  ;;  %v6044_v45 = vld [vmem:[%s6997_s30 + $0x220] ss:$16 sps:$4 sm:$0xff]  }
 0x1e0   : > { %3047 = vmatpush2.bf16.msra.mxu0 %v5990_v47  ;;  %v6140_v47 = vld [vmem:[%s6997_s30 + $0x480] ss:$16 sps:$4 sm:$0xff]  }
 0x1e1   : > { %3048 = vmatprep.subr.bf16.mxu0 %v5998_v48  ;;  %v6049_v48 = vld [vmem:[%s6997_s30 + $0x204] ss:$16 sps:$4 sm:$0xff]  }
 0x1e2   : > { %4256 = vmatpush2.bf16.msra.mxu1 %v6005_v50  ;;  %v6047_v50 = vld [vmem:[%s6997_s30 + $0x200] ss:$16 sps:$4 sm:$0xff]  }
 0x1e3   : > { %4257 = vmatprep.subr.bf16.mxu1 %v6013_v51  ;;  %v6146_v51 = vld [vmem:[%s6997_s30 + $0x460] ss:$16 sps:$4 sm:$0xff]  }
 0x1e4   : > { %3049 = vmatpush2.bf16.msra.mxu0 %v5996_v52  ;;  %v6052_v52 = vld [vmem:[%s6997_s30 + $0x3e4] ss:$16 sps:$4 sm:$0xff]  }
 0x1e5   : > { %3050 = vmatprep.subr.bf16.mxu0 %v6004_v53  ;;  %v6154_v53 = vld [vmem:[%s6997_s30 + $0x444] ss:$16 sps:$4 sm:$0xff]  }
 0x1e6   : > { %4258 = vmatpush2.bf16.msra.mxu1 %v6011_v55  ;;  %v6050_v55 = vld [vmem:[%s6997_s30 + $0x3e0] ss:$16 sps:$4 sm:$0xff]  }
 0x1e7   : > { %4259 = vmatprep.subr.bf16.mxu1 %v6019_v56  ;;  %v6152_v56 = vld [vmem:[%s6997_s30 + $0x440] ss:$16 sps:$4 sm:$0xff]  }
 0x1e8   : > { %3051 = vmatpush2.bf16.msra.mxu0 %v6002_v57  ;;  %v6055_v57 = vld [vmem:[%s6997_s30 + $0x3c4] ss:$16 sps:$4 sm:$0xff]  }
 0x1e9   : > { %3052 = vmatprep.subr.bf16.mxu0 %v6010_v58  ;;  %v6160_v58 = vld [vmem:[%s6997_s30 + $0x424] ss:$16 sps:$4 sm:$0xff]  }
 0x1ea   : > { %4260 = vmatpush2.bf16.msra.mxu1 %v6017_v60  ;;  %v6053_v60 = vld [vmem:[%s6997_s30 + $0x3c0] ss:$16 sps:$4 sm:$0xff]  }
 0x1eb   : > { %4261 = vmatprep.subr.bf16.mxu1 %v6022_v62  ;;  %v6158_v62 = vld [vmem:[%s6997_s30 + $0x420] ss:$16 sps:$4 sm:$0xff]  }
 0x1ec   : > { %3053 = vmatpush2.bf16.msra.mxu0 %v6008_v0  ;;  %v6058_v0 = vld [vmem:[%s6997_s30 + $0x3a4] ss:$16 sps:$4 sm:$0xff]  }
 0x1ed   : > { %3054 = vmatprep.subr.bf16.mxu0 %v6016_v2  ;;  %v6166_v2 = vld [vmem:[%s6997_s30 + $0x404] ss:$16 sps:$4 sm:$0xff]  }
 0x1ee   : > { %4262 = vmatpush2.bf16.msra.mxu1 %v6020_v38  ;;  %v6164_v38 = vld [vmem:[%s6997_s30 + $0x400] ss:$16 sps:$4 sm:$0xff]  }
 0x1ef   : > { %4263 = vmatprep.subr.bf16.mxu1 %v6025_v6  ;;  %v6061_v6 = vld [vmem:[%s6997_s30 + $0x384] ss:$16 sps:$4 sm:$0xff]  }
 0x1f0   : > { %3055 = vmatpush2.bf16.msra.mxu0 %v6014_v7  ;;  %v6059_v7 = vld [vmem:[%s6997_s30 + $0x380] ss:$16 sps:$4 sm:$0xff]  }
 0x1f1   : > { %4274 = vmatprep.subr.bf16.mxu0 %v6028_v8  ;;  %v6170_v8 = vld [vmem:[%s6997_s30 + $0x5e0] ss:$16 sps:$4 sm:$0xff]  }
 0x1f2   : > { %4264 = vmatpush2.bf16.msra.mxu1 %v6023_v9  ;;  %v6178_v9 = vld [vmem:[%s6997_s30 + $0x5c4] ss:$16 sps:$4 sm:$0xff]  }
 0x1f3   : > { %v2812_v14 = vpop.f32.mrf.mxu0  ;;  %3057 = vmatmul.mubr.bf16.vlgmr.msra.gmra.mxu0 %v7162_v46  ;;  %4315 = vmatprep.subr.bf16.mxu1 %v6124_v30  ;;  %v6202_v30 = vld [vmem:[%s6997_s30 + $0x544] ss:$16 sps:$4 sm:$0xff]  }
 0x1f4   : > { %v2813_v15 = vadd.f32 %v2812_v14, %v2772_v13  ;;  %4275 = vmatpush1.bf16.msra.mxu0 %v6026_v11  ;;  %v6176_v11 = vld [vmem:[%s6997_s30 + $0x5c0] ss:$16 sps:$4 sm:$0xff]   ;;  %v6184_v13 = vld [vmem:[%s6997_s30 + $0x5a4] ss:$16 sps:$4 sm:$0xff]  }
 0x1f5   : > { %v2814_v18 = vpop.f32.mrf.mxu0  ;;  %4276 = vmatprep.subr.bf16.mxu0 %v6031_v12  ;;  %v7401_v19 = vpop.f32.mrf.mxu1  ;;  %v6067_v12 = vld [vmem:[%s6997_s30 + $0x344] ss:$16 sps:$4 sm:$0xff]   ;;  %v6065_v14 = vld [vmem:[%s6997_s30 + $0x340] ss:$16 sps:$4 sm:$0xff]  }
 0x1f6   : > { %v2815_v20 = vadd.f32 %v2814_v18, %v2774_v17  ;;  %v3065_v22 = vmax.f32 %v2813_v15, 0.0  ;;  %v6182_v17 = vld [vmem:[%s6997_s30 + $0x5a0] ss:$16 sps:$4 sm:$0xff]   ;;  %v6070_v15 = vld [vmem:[%s6997_s30 + $0x324] ss:$16 sps:$4 sm:$0xff]   ;;  %v1215_v18 = vsub.s32 2, %v7362_v54 }
 0x1f7   : > { %v2816_v21 = vpop.f32.mrf.mxu0  ;;  %v7403_v23 = vpop.f32.mrf.mxu1 }
 0x1f8   : > { %v3066_v46 = vmax.f32 %v2815_v20, 0.0  ;;  %4277 = vmatpush1.bf16.msra.mxu0 %v6029_v16  ;;  %v7409_v28 = vpack.c.bf16 %v3065_v22, %v3065_v22  ;;  %v6190_v16 = vld [vmem:[%s6997_s30 + $0x584] ss:$16 sps:$4 sm:$0xff]   ;;  %v6188_v20 = vld [vmem:[%s6997_s30 + $0x580] ss:$16 sps:$4 sm:$0xff]   ;;  %v1219_v21 = vsub.s32 3, %v7362_v54 }
 0x1f9   : > { %v2817_v24 = vpop.f32.mrf.mxu0  ;;  %4278 = vmatprep.subr.bf16.mxu0 %v6034_v1  ;;  %v2857_v26 = vpop.f32.mrf.mxu1  ;;  %v6068_v1 = vld [vmem:[%s6997_s30 + $0x320] ss:$16 sps:$4 sm:$0xff]   ;;  %v6073_v22 = vld [vmem:[%s6997_s30 + $0x304] ss:$16 sps:$4 sm:$0xff]  }
 0x1fa   : > { %v7407_v27 = vpack.c.bf16 %v3066_v46, %v3066_v46  ;;  %v6196_v46 = vld [vmem:[%s6997_s30 + $0x564] ss:$16 sps:$4 sm:$0xff]   ;;  %v6071_v24 = vld [vmem:[%s6997_s30 + $0x300] ss:$16 sps:$4 sm:$0xff]   ;;  %v6076_v26 = vld [vmem:[%s6997_s30 + $0xec] ss:$16 sps:$4 sm:$0xff]  }
 0x1fb   : > { %v2858_v29 = vpop.f32.mrf.mxu1 }
 0x1fc   : > { %4265 = vmatprep.mubr.bf16.mxu1 %v7407_v27  ;;  %4279 = vmatpush1.bf16.msra.mxu0 %v6032_v5  ;;  %v1216_v5 = vrot.slane %v7375_v61, %v1215_v18  ;;  %v1220_v29 = vrot.slane %v7375_v61, %v1219_v21 }
 0x1fd   : > { %4266 = vmatmul.mubr.bf16.vlgmr.msra.gmra.mxu1 %v7409_v28  ;;  %4280 = vmatprep.subr.bf16.mxu0 %v6037_v25  ;;  %v6194_v25 = vld [vmem:[%s6997_s30 + $0x560] ss:$16 sps:$4 sm:$0xff]  }
 0x1fe   : > { %4316 = vmatpush1.bf16.msra.mxu1 %v6122_v32  ;;  %v6200_v32 = vld [vmem:[%s6997_s30 + $0x540] ss:$16 sps:$4 sm:$0xff]  }
 0x1ff   : > { %4317 = vmatprep.subr.bf16.mxu1 %v6130_v34 }
 0x200   : > { %4281 = vmatpush1.bf16.msra.mxu0 %v6035_v31  ;;  %v2854_v31 = vadd.f32 %v7401_v19, %v1216_v5  ;;  %v6118_v5 = vld [vmem:[%s6997_s30 + $0x12c] ss:$16 sps:$4 sm:$0xff]  }
 0x201   : > { %4282 = vmatprep.subr.bf16.mxu0 %v6040_v33  ;;  %v2856_v33 = vadd.f32 %v7403_v23, %v1220_v29  ;;  %v6212_v23 = vld [vmem:[%s6997_s30 + $0x500] ss:$16 sps:$4 sm:$0xff]  }
 0x202   : > { %4318 = vmatpush1.bf16.msra.mxu1 %v6128_v36 }
 0x203   : > { %4319 = vmatprep.subr.bf16.mxu1 %v6136_v39 }
 0x204   : > { %4283 = vmatpush1.bf16.msra.mxu0 %v6038_v35  ;;  %v6208_v35 = vld [vmem:[%s6997_s30 + $0x524] ss:$16 sps:$4 sm:$0xff]  }
 0x205   : > { %4284 = vmatprep.subr.bf16.mxu0 %v6043_v37  ;;  %v6206_v37 = vld [vmem:[%s6997_s30 + $0x520] ss:$16 sps:$4 sm:$0xff]  }
 0x206   : > { %4320 = vmatpush1.bf16.msra.mxu1 %v6134_v42 }
 0x207   : > { %4321 = vmatprep.subr.bf16.mxu1 %v6142_v44 }
 0x208   : > { %4285 = vmatpush1.bf16.msra.mxu0 %v6041_v40 }
 0x209   : > { %4286 = vmatprep.subr.bf16.mxu0 %v6046_v43 }
 0x20a   : > { %4322 = vmatpush1.bf16.msra.mxu1 %v6140_v47 }
 0x20b   : > { %4323 = vmatprep.subr.bf16.mxu1 %v6148_v49 }
 0x20c   : > { %4287 = vmatpush1.bf16.msra.mxu0 %v6044_v45  ;;  %v6214_v45 = vld [vmem:[%s6997_s30 + $0x504] ss:$16 sps:$4 sm:$0xff]  }
 0x20d   : > { %4288 = vmatprep.subr.bf16.mxu0 %v6049_v48 }
 0x20e   : > { %4324 = vmatpush1.bf16.msra.mxu1 %v6146_v51 }
 0x20f   : > { %4325 = vmatprep.subr.bf16.mxu1 %v6154_v53  ;;  %v6220_v53 = vld [vmem:[%s6997_s30 + $0x2ec] ss:$16 sps:$4 sm:$0xff]  }
 0x210   : > { %4289 = vmatpush1.bf16.msra.mxu0 %v6047_v50 }
 0x211   : > { %4290 = vmatprep.subr.bf16.mxu0 %v6052_v52 }
 0x212   : > { %4326 = vmatpush1.bf16.msra.mxu1 %v6152_v56  ;;  %v6074_v56 = vld [vmem:[%s6997_s30 + $0xe8] ss:$16 sps:$4 sm:$0xff]  }
 0x213   : > { %4327 = vmatprep.subr.bf16.mxu1 %v6160_v58  ;;  %v6079_v58 = vld [vmem:[%s6997_s30 + $0xcc] ss:$16 sps:$4 sm:$0xff]  }
 0x214   : > { %4291 = vmatpush2.bf16.msra.mxu0 %v6050_v55 }
 0x215   : > { %4292 = vmatprep.subr.bf16.mxu0 %v6055_v57 }
 0x216   : > { %4328 = vmatpush1.bf16.msra.mxu1 %v6158_v62  ;;  %v6082_v62 = vld [vmem:[%s6997_s30 + $0xac] ss:$16 sps:$4 sm:$0xff]  }
 0x217   : > { %4329 = vmatprep.subr.bf16.mxu1 %v6166_v2  ;;  %v6085_v2 = vld [vmem:[%s6997_s30 + $0x8c] ss:$16 sps:$4 sm:$0xff]  }
 0x218   : > { %4293 = vmatpush2.bf16.msra.mxu0 %v6053_v60  ;;  %v6077_v60 = vld [vmem:[%s6997_s30 + $0xc8] ss:$16 sps:$4 sm:$0xff]  }
 0x219   : > { %4294 = vmatprep.subr.bf16.mxu0 %v6058_v0  ;;  %v6080_v0 = vld [vmem:[%s6997_s30 + $0xa8] ss:$16 sps:$4 sm:$0xff]  }
 0x21a   : > { %4330 = vmatpush1.bf16.msra.mxu1 %v6164_v38  ;;  %v6088_v38 = vld [vmem:[%s6997_s30 + $0x6c] ss:$16 sps:$4 sm:$0xff]  }
 0x21b   : > { %4331 = vmatprep.subr.bf16.mxu1 %v6172_v3  ;;  %v6089_v3 = vld [vmem:[%s6997_s30 + $0x48] ss:$16 sps:$4 sm:$0xff]  }
 0x21c   : > { %4295 = vmatpush2.bf16.msra.mxu0 %v6056_v4  ;;  %v6083_v4 = vld [vmem:[%s6997_s30 + $0x88] ss:$16 sps:$4 sm:$0xff]  }
 0x21d   : > { %4296 = vmatprep.subr.bf16.mxu0 %v6061_v6  ;;  %v6086_v6 = vld [vmem:[%s6997_s30 + $0x68] ss:$16 sps:$4 sm:$0xff]  }
 0x21e   : > { %4332 = vmatpush2.bf16.msra.mxu1 %v6170_v8  ;;  %v6092_v8 = vld [vmem:[%s6997_s30 + $0x28] ss:$16 sps:$4 sm:$0xff]  }
 0x21f   : > { %4333 = vmatprep.subr.bf16.mxu1 %v6178_v9  ;;  %v6095_v9 = vld [vmem:[%s6997_s30 + $0x8] ss:$16 sps:$4 sm:$0xff]  }
 0x220   : > { %4297 = vmatpush2.bf16.msra.mxu0 %v6059_v7  ;;  %v6094_v7 = vld [vmem:[%s6997_s30 + $0x2c] ss:$16 sps:$4 sm:$0xff]  }
 0x221   : > { %4298 = vmatprep.subr.bf16.mxu0 %v6064_v41  ;;  %v6097_v41 = vld [vmem:[%s6997_s30 + $0xc] ss:$16 sps:$4 sm:$0xff]  }
 0x222   : > { %4334 = vmatpush2.bf16.msra.mxu1 %v6176_v11  ;;  %v6098_v11 = vld [vmem:[%s6997_s30 + $0x1e8] ss:$16 sps:$4 sm:$0xff]  }
 0x223   : > { %4335 = vmatprep.subr.bf16.mxu1 %v6184_v13  ;;  %v6101_v13 = vld [vmem:[%s6997_s30 + $0x1c8] ss:$16 sps:$4 sm:$0xff]  }
 0x224   : > { %4299 = vmatpush2.bf16.msra.mxu0 %v6062_v10  ;;  %v6100_v10 = vld [vmem:[%s6997_s30 + $0x1ec] ss:$16 sps:$4 sm:$0xff]  }
 0x225   : > { %4300 = vmatprep.subr.bf16.mxu0 %v6067_v12  ;;  %v6103_v12 = vld [vmem:[%s6997_s30 + $0x1cc] ss:$16 sps:$4 sm:$0xff]  }
 0x226   : > { %4336 = vmatpush2.bf16.msra.mxu1 %v6182_v17  ;;  %v6104_v17 = vld [vmem:[%s6997_s30 + $0x1a8] ss:$16 sps:$4 sm:$0xff]  }
 0x227   : > { %4337 = vmatprep.subr.bf16.mxu1 %v6190_v16  ;;  %v6107_v16 = vld [vmem:[%s6997_s30 + $0x188] ss:$16 sps:$4 sm:$0xff]  }
 0x228   : > { %4301 = vmatpush2.bf16.msra.mxu0 %v6065_v14  ;;  %v6106_v14 = vld [vmem:[%s6997_s30 + $0x1ac] ss:$16 sps:$4 sm:$0xff]  }
 0x229   : > { %4302 = vmatprep.subr.bf16.mxu0 %v6070_v15  ;;  %v6109_v15 = vld [vmem:[%s6997_s30 + $0x18c] ss:$16 sps:$4 sm:$0xff]  }
 0x22a   : > { %4338 = vmatpush2.bf16.msra.mxu1 %v6188_v20  ;;  %v6110_v20 = vld [vmem:[%s6997_s30 + $0x168] ss:$16 sps:$4 sm:$0xff]  }
 0x22b   : > { %4339 = vmatprep.subr.bf16.mxu1 %v6196_v46  ;;  %v6113_v46 = vld [vmem:[%s6997_s30 + $0x148] ss:$16 sps:$4 sm:$0xff]  }
 0x22c   : > { %4303 = vmatpush2.bf16.msra.mxu0 %v6068_v1  ;;  %v6112_v1 = vld [vmem:[%s6997_s30 + $0x16c] ss:$16 sps:$4 sm:$0xff]  }
 0x22d   : > { %4304 = vmatprep.subr.bf16.mxu0 %v6073_v22  ;;  %v6115_v22 = vld [vmem:[%s6997_s30 + $0x14c] ss:$16 sps:$4 sm:$0xff]  }
 0x22e   : > { %4340 = vmatpush2.bf16.msra.mxu1 %v6194_v25  ;;  %v6116_v25 = vld [vmem:[%s6997_s30 + $0x128] ss:$16 sps:$4 sm:$0xff]  }
 0x22f   : > { %4341 = vmatprep.subr.bf16.mxu1 %v6202_v30  ;;  %v6121_v30 = vld [vmem:[%s6997_s30 + $0x10c] ss:$16 sps:$4 sm:$0xff]  }
 0x230   : > { %4305 = vmatpush2.bf16.msra.mxu0 %v6071_v24 }
 0x231   : > { %4356 = vmatprep.subr.bf16.mxu0 %v6076_v26 }
 0x232   : > { %4342 = vmatpush2.bf16.msra.mxu1 %v6200_v32 }
 0x233   : > { %v2894_v34 = vpop.f32.mrf.mxu0  ;;  %4343 = vmatprep.subr.bf16.mxu1 %v6208_v35  ;;  %v6127_v35 = vld [vmem:[%s6997_s30 + $0x4ec] ss:$16 sps:$4 sm:$0xff]  }
 0x234   : > { %v2895_v36 = vadd.f32 %v2894_v34, %v2854_v31 }
 0x235   : > { %v2896_v39 = vpop.f32.mrf.mxu0  ;;  %v2935_v40 = vpop.f32.mrf.mxu1 }
 0x236   : > { %v2897_v42 = vadd.f32 %v2896_v39, %v2856_v33  ;;  %v2936_v43 = vadd.f32 %v2935_v40, %v2895_v36  ;;  %4344 = vmatpush2.bf16.msra.mxu1 %v6206_v37  ;;  %v6119_v33 = vld [vmem:[%s6997_s30 + $0x108] ss:$16 sps:$4 sm:$0xff]   ;;  %v6133_v40 = vld [vmem:[%s6997_s30 + $0x4cc] ss:$16 sps:$4 sm:$0xff]  }
 0x237   : > { %v2898_v19 = vpop.f32.mrf.mxu0  ;;  %v2937_v44 = vpop.f32.mrf.mxu1  ;;  %4345 = vmatprep.subr.bf16.mxu1 %v6214_v45  ;;  %v6125_v39 = vld [vmem:[%s6997_s30 + $0x4e8] ss:$16 sps:$4 sm:$0xff]  }
 0x238   : > { %v2938_v47 = vadd.f32 %v2937_v44, %v2897_v42  ;;  %v3067_v48 = vmax.f32 %v2936_v43, 0.0  ;;  %v6131_v42 = vld [vmem:[%s6997_s30 + $0x4c8] ss:$16 sps:$4 sm:$0xff]   ;;  %v6139_v43 = vld [vmem:[%s6997_s30 + $0x4ac] ss:$16 sps:$4 sm:$0xff]  }
 0x239   : > { %v2899_v49 = vpop.f32.mrf.mxu0  ;;  %v2939_v50 = vpop.f32.mrf.mxu1  ;;  %v6137_v19 = vld [vmem:[%s6997_s30 + $0x4a8] ss:$16 sps:$4 sm:$0xff]   ;;  %v6145_v44 = vld [vmem:[%s6997_s30 + $0x48c] ss:$16 sps:$4 sm:$0xff]  }
 0x23a   : > { %v3068_v51 = vmax.f32 %v2938_v47, 0.0  ;;  %4346 = vmatpush2.bf16.msra.mxu1 %v6212_v23  ;;  %v7485_v57 = vpack.c.bf16 %v3067_v48, %v3067_v48  ;;  %v6143_v45 = vld [vmem:[%s6997_s30 + $0x488] ss:$16 sps:$4 sm:$0xff]   ;;  %v6151_v47 = vld [vmem:[%s6997_s30 + $0x46c] ss:$16 sps:$4 sm:$0xff]  }
 0x23b   : > { %v2940_v52 = vpop.f32.mrf.mxu1  ;;  %4397 = vmatprep.subr.bf16.mxu1 %v6220_v53  ;;  %v6157_v23 = vld [vmem:[%s6997_s30 + $0x44c] ss:$16 sps:$4 sm:$0xff]   ;;  %v6155_v48 = vld [vmem:[%s6997_s30 + $0x448] ss:$16 sps:$4 sm:$0xff]  }
 0x23c   : > { %v7482_v55 = vpack.c.bf16 %v3068_v51, %v3068_v51  ;;  %v6163_v49 = vld [vmem:[%s6997_s30 + $0x42c] ss:$16 sps:$4 sm:$0xff]   ;;  %v6161_v50 = vld [vmem:[%s6997_s30 + $0x428] ss:$16 sps:$4 sm:$0xff]  }
 0x23d   : > { %v6169_v51 = vld [vmem:[%s6997_s30 + $0x40c] ss:$16 sps:$4 sm:$0xff]   ;;  %v6167_v52 = vld [vmem:[%s6997_s30 + $0x408] ss:$16 sps:$4 sm:$0xff]  }
 0x23e   : > { %4306 = vmatprep.mubr.bf16.mxu0 %v7482_v55  ;;  %v6175_v53 = vld [vmem:[%s6997_s30 + $0x5ec] ss:$16 sps:$4 sm:$0xff]  }
 0x23f   : > { %4307 = vmatmul.mubr.bf16.vlgmr.msra.gmra.mxu0 %v7485_v57 }
 0x240   : > { %4357 = vmatpush1.bf16.msra.mxu0 %v6074_v56  ;;  %4388 = vmatprep.mubr.bf16.mxu0 %v7407_v27  ;;  %v6091_v27 = vld [vmem:[%s6997_s30 + $0x4c] ss:$16 sps:$4 sm:$0xff]   ;;  %v6173_v56 = vld [vmem:[%s6997_s30 + $0x5e8] ss:$16 sps:$4 sm:$0xff]  }
 0x241   : > { %4358 = vmatprep.subr.bf16.mxu0 %v6079_v58  ;;  %v6181_v58 = vld [vmem:[%s6997_s30 + $0x5cc] ss:$16 sps:$4 sm:$0xff]  }
 0x244   : > { %4359 = vmatpush1.bf16.msra.mxu0 %v6077_v60  ;;  %v6179_v60 = vld [vmem:[%s6997_s30 + $0x5c8] ss:$16 sps:$4 sm:$0xff]  }
 0x245   : > { %4360 = vmatprep.subr.bf16.mxu0 %v6082_v62  ;;  %v6187_v62 = vld [vmem:[%s6997_s30 + $0x5ac] ss:$16 sps:$4 sm:$0xff]  }
 0x248   : > { %4361 = vmatpush1.bf16.msra.mxu0 %v6080_v0  ;;  %v6185_v0 = vld [vmem:[%s6997_s30 + $0x5a8] ss:$16 sps:$4 sm:$0xff]  }
 0x249   : > { %4362 = vmatprep.subr.bf16.mxu0 %v6085_v2  ;;  %v6193_v2 = vld [vmem:[%s6997_s30 + $0x58c] ss:$16 sps:$4 sm:$0xff]  }
 0x24c   : > { %4363 = vmatpush1.bf16.msra.mxu0 %v6083_v4  ;;  %v1223_v4 = vsub.s32 4, %v7362_v54 }
 0x24d   : > { %4364 = vmatprep.subr.bf16.mxu0 %v6088_v38  ;;  %v1227_v38 = vsub.s32 5, %v7362_v54 }
 0x250   : > { %4365 = vmatpush1.bf16.msra.mxu0 %v6086_v6  ;;  %v6191_v6 = vld [vmem:[%s6997_s30 + $0x588] ss:$16 sps:$4 sm:$0xff]  }
 0x251   : > { %4366 = vmatprep.subr.bf16.mxu0 %v6091_v27  ;;  %v6199_v27 = vld [vmem:[%s6997_s30 + $0x56c] ss:$16 sps:$4 sm:$0xff]  }
 0x254   : > { %4367 = vmatpush1.bf16.msra.mxu0 %v6089_v3  ;;  %v1224_v3 = vrot.slane %v7375_v61, %v1223_v4  ;;  %v6262_v4 = vld [vmem:[%s6997_s30 + $0x32c] ss:$16 sps:$4 sm:$0xff]  }
 0x255   : > { %4368 = vmatprep.subr.bf16.mxu0 %v6094_v7  ;;  %v1228_v7 = vrot.slane %v7375_v61, %v1227_v38  ;;  %v6260_v38 = vld [vmem:[%s6997_s30 + $0x328] ss:$16 sps:$4 sm:$0xff]  }
 0x258   : > { %4369 = vmatpush1.bf16.msra.mxu0 %v6092_v8  ;;  %v6197_v8 = vld [vmem:[%s6997_s30 + $0x568] ss:$16 sps:$4 sm:$0xff]  }
 0x259   : > { %4370 = vmatprep.subr.bf16.mxu0 %v6097_v41  ;;  %v6205_v41 = vld [vmem:[%s6997_s30 + $0x54c] ss:$16 sps:$4 sm:$0xff]  }
 0x25c   : > { %4371 = vmatpush1.bf16.msra.mxu0 %v6095_v9 }
 0x25d   : > { %4372 = vmatprep.subr.bf16.mxu0 %v6100_v10 }
 0x260   : > { %4373 = vmatpush2.bf16.msra.mxu0 %v6098_v11  ;;  %v6203_v11 = vld [vmem:[%s6997_s30 + $0x548] ss:$16 sps:$4 sm:$0xff]  }
 0x261   : > { %4374 = vmatprep.subr.bf16.mxu0 %v6103_v12  ;;  %v6211_v12 = vld [vmem:[%s6997_s30 + $0x52c] ss:$16 sps:$4 sm:$0xff]  }
 0x264   : > { %4375 = vmatpush2.bf16.msra.mxu0 %v6101_v13 }
 0x265   : > { %4376 = vmatprep.subr.bf16.mxu0 %v6106_v14 }
 0x268   : > { %4377 = vmatpush2.bf16.msra.mxu0 %v6104_v17 }
 0x269   : > { %4378 = vmatprep.subr.bf16.mxu0 %v6109_v15  ;;  %v6209_v15 = vld [vmem:[%s6997_s30 + $0x528] ss:$16 sps:$4 sm:$0xff]  }
 0x26c   : > { %4379 = vmatpush2.bf16.msra.mxu0 %v6107_v16 }
 0x26d   : > { %4380 = vmatprep.subr.bf16.mxu0 %v6112_v1  ;;  %v6217_v1 = vld [vmem:[%s6997_s30 + $0x50c] ss:$16 sps:$4 sm:$0xff]  }
 0x270   : > { %4381 = vmatpush2.bf16.msra.mxu0 %v6110_v20 }
 0x271   : > { %4382 = vmatprep.subr.bf16.mxu0 %v6115_v22 }
 0x273   : > { %v7517_v24 = vpop.f32.mrf.mxu0 }
 0x274   : > { %4383 = vmatpush2.bf16.msra.mxu0 %v6113_v46  ;;  %v2977_v9 = vadd.f32 %v7517_v24, %v1224_v3  ;;  %v6215_v24 = vld [vmem:[%s6997_s30 + $0x508] ss:$16 sps:$4 sm:$0xff]  }
 0x275   : > { %v7520_v26 = vpop.f32.mrf.mxu0  ;;  %v7522_v29 = vpop.f32.mrf.mxu1  ;;  %4384 = vmatprep.subr.bf16.mxu0 %v6118_v5 }
 0x276   : > { %v2979_v10 = vadd.f32 %v7520_v26, %v1228_v7  ;;  %v3018_v13 = vadd.f32 %v7522_v29, %v2977_v9  ;;  %v6218_v29 = vld [vmem:[%s6997_s30 + $0x2e8] ss:$16 sps:$4 sm:$0xff]  }
 0x277   : > { %v2980_v31 = vpop.f32.mrf.mxu0  ;;  %v7525_v32 = vpop.f32.mrf.mxu1 }
 0x278   : > { %4385 = vmatpush2.bf16.msra.mxu0 %v6116_v25  ;;  %v3020_v61 = vadd.f32 %v7525_v32, %v2979_v10  ;;  %v6223_v31 = vld [vmem:[%s6997_s30 + $0x2cc] ss:$16 sps:$4 sm:$0xff]  }
 0x279   : > { %v2981_v34 = vpop.f32.mrf.mxu0  ;;  %4386 = vmatprep.subr.bf16.mxu0 %v6121_v30  ;;  %v3021_v36 = vpop.f32.mrf.mxu1 }
 0x27b   : > { %v3022_v37 = vpop.f32.mrf.mxu1 }
 0x27c   : > { %4387 = vmatpush2.bf16.msra.mxu0 %v6119_v33  ;;  %v6221_v33 = vld [vmem:[%s6997_s30 + $0x2c8] ss:$16 sps:$4 sm:$0xff]  }
 0x27d   : > { %4438 = vmatprep.subr.bf16.mxu0 %v6127_v35  ;;  %v6226_v35 = vld [vmem:[%s6997_s30 + $0x2ac] ss:$16 sps:$4 sm:$0xff]   ;;  %v6224_v37 = vld [vmem:[%s6997_s30 + $0x2a8] ss:$16 sps:$4 sm:$0xff]  }
 0x27f   : > { %4389 = vmatmul.mubr.bf16.vlgmr.msra.gmra.mxu0 %v7409_v28  ;;  %v6149_v28 = vld [vmem:[%s6997_s30 + $0x468] ss:$16 sps:$4 sm:$0xff]  }
 0x280   : > { %4439 = vmatpush1.bf16.msra.mxu0 %v6125_v39 }
 0x281   : > { %4440 = vmatprep.subr.bf16.mxu0 %v6133_v40  ;;  %v6229_v40 = vld [vmem:[%s6997_s30 + $0x28c] ss:$16 sps:$4 sm:$0xff]  }
 0x284   : > { %4441 = vmatpush1.bf16.msra.mxu0 %v6131_v42  ;;  %v6232_v42 = vld [vmem:[%s6997_s30 + $0x26c] ss:$16 sps:$4 sm:$0xff]  }
 0x285   : > { %4442 = vmatprep.subr.bf16.mxu0 %v6139_v43  ;;  %v6230_v43 = vld [vmem:[%s6997_s30 + $0x268] ss:$16 sps:$4 sm:$0xff]  }
 0x288   : > { %4443 = vmatpush1.bf16.msra.mxu0 %v6137_v19  ;;  %v6235_v19 = vld [vmem:[%s6997_s30 + $0x24c] ss:$16 sps:$4 sm:$0xff]  }
 0x289   : > { %4444 = vmatprep.subr.bf16.mxu0 %v6145_v44  ;;  %v6233_v44 = vld [vmem:[%s6997_s30 + $0x248] ss:$16 sps:$4 sm:$0xff]  }
 0x28c   : > { %4445 = vmatpush1.bf16.msra.mxu0 %v6143_v45  ;;  %v6238_v45 = vld [vmem:[%s6997_s30 + $0x22c] ss:$16 sps:$4 sm:$0xff]  }
 0x28d   : > { %4446 = vmatprep.subr.bf16.mxu0 %v6151_v47  ;;  %v6236_v47 = vld [vmem:[%s6997_s30 + $0x228] ss:$16 sps:$4 sm:$0xff]  }
 0x290   : > { %4447 = vmatpush1.bf16.msra.mxu0 %v6149_v28  ;;  %v6241_v28 = vld [vmem:[%s6997_s30 + $0x20c] ss:$16 sps:$4 sm:$0xff]  }
 0x291   : > { %4448 = vmatprep.subr.bf16.mxu0 %v6157_v23  ;;  %v6239_v23 = vld [vmem:[%s6997_s30 + $0x208] ss:$16 sps:$4 sm:$0xff]  }
 0x294   : > { %4449 = vmatpush1.bf16.msra.mxu0 %v6155_v48  ;;  %v6244_v48 = vld [vmem:[%s6997_s30 + $0x3ec] ss:$16 sps:$4 sm:$0xff]  }
 0x295   : > { %4450 = vmatprep.subr.bf16.mxu0 %v6163_v49  ;;  %v6242_v49 = vld [vmem:[%s6997_s30 + $0x3e8] ss:$16 sps:$4 sm:$0xff]  }
 0x298   : > { %4451 = vmatpush1.bf16.msra.mxu0 %v6161_v50  ;;  %v6247_v50 = vld [vmem:[%s6997_s30 + $0x3cc] ss:$16 sps:$4 sm:$0xff]  }
 0x299   : > { %4452 = vmatprep.subr.bf16.mxu0 %v6169_v51  ;;  %v6245_v51 = vld [vmem:[%s6997_s30 + $0x3c8] ss:$16 sps:$4 sm:$0xff]  }
 0x29c   : > { %4453 = vmatpush1.bf16.msra.mxu0 %v6167_v52  ;;  %v6250_v52 = vld [vmem:[%s6997_s30 + $0x3ac] ss:$16 sps:$4 sm:$0xff]  }
 0x29d   : > { %4454 = vmatprep.subr.bf16.mxu0 %v6175_v53  ;;  %v6248_v53 = vld [vmem:[%s6997_s30 + $0x3a8] ss:$16 sps:$4 sm:$0xff]  }
 0x2a0   : > { %4455 = vmatpush2.bf16.msra.mxu0 %v6173_v56  ;;  %v6253_v56 = vld [vmem:[%s6997_s30 + $0x38c] ss:$16 sps:$4 sm:$0xff]  }
 0x2a1   : > { %4456 = vmatprep.subr.bf16.mxu0 %v6181_v58  ;;  %v6251_v58 = vld [vmem:[%s6997_s30 + $0x388] ss:$16 sps:$4 sm:$0xff]  }
 0x2a4   : > { %4457 = vmatpush2.bf16.msra.mxu0 %v6179_v60  ;;  %v6256_v60 = vld [vmem:[%s6997_s30 + $0x36c] ss:$16 sps:$4 sm:$0xff]  }
 0x2a5   : > { %4458 = vmatprep.subr.bf16.mxu0 %v6187_v62  ;;  %v6254_v62 = vld [vmem:[%s6997_s30 + $0x368] ss:$16 sps:$4 sm:$0xff]  }
 0x2a8   : > { %4459 = vmatpush2.bf16.msra.mxu0 %v6185_v0  ;;  %v6259_v0 = vld [vmem:[%s6997_s30 + $0x34c] ss:$16 sps:$4 sm:$0xff]  }
 0x2a9   : > { %4460 = vmatprep.subr.bf16.mxu0 %v6193_v2  ;;  %v6257_v2 = vld [vmem:[%s6997_s30 + $0x348] ss:$16 sps:$4 sm:$0xff]  }
 0x2ac   : > { %4461 = vmatpush2.bf16.msra.mxu0 %v6191_v6  ;;  %v6265_v6 = vld [vmem:[%s6997_s30 + $0x30c] ss:$16 sps:$4 sm:$0xff]  }
 0x2ad   : > { %4462 = vmatprep.subr.bf16.mxu0 %v6199_v27  ;;  %v6263_v27 = vld [vmem:[%s6997_s30 + $0x308] ss:$16 sps:$4 sm:$0xff]  }
 0x2b0   : > { %4463 = vmatpush2.bf16.msra.mxu0 %v6197_v8 }
 0x2b1   : > { %4464 = vmatprep.subr.bf16.mxu0 %v6205_v41 }
 0x2b3   : > { %v3058_v14 = vpop.f32.mrf.mxu0 }
 0x2b4   : > { %v3059_v17 = vadd.f32 %v3058_v14, %v3018_v13  ;;  %4465 = vmatpush2.bf16.msra.mxu0 %v6203_v11  ;;  %v3071_v14 = vld [vmem:[#allocation2 + $0x10] sm:$0xff] }
 0x2b5   : > { %v3060_v16 = vpop.f32.mrf.mxu0  ;;  %4466 = vmatprep.subr.bf16.mxu0 %v6211_v12 }
 0x2b6   : > { %v3061_v20 = vadd.f32 %v3060_v16, %v3020_v61  ;;  %v3069_v22 = vmax.f32 %v3059_v17, 0.0 }
 0x2b7   : > { %v3062_v46 = vpop.f32.mrf.mxu0 }
 0x2b8   : > { %v3070_v5 = vmax.f32 %v3061_v20, 0.0  ;;  %4467 = vmatpush2.bf16.msra.mxu0 %v6209_v15  ;;  %v3079_v30 = vpack.c.bf16 %v3069_v22, %v3069_v22 }
 0x2b9   : > { %v3063_v25 = vpop.f32.mrf.mxu0  ;;  %4468 = vmatprep.subr.bf16.mxu0 %v6217_v1  ;;  %v3072_v1 = vld [vmem:[#allocation2] sm:$0xff] }
 0x2ba   : > { %v3080_v26 = vpack.c.bf16 %v3070_v5, %v3070_v5 }
 0x2bc   : > { %4469 = vmatpush2.bf16.msra.mxu0 %v6215_v24  ;;  %4347 = vmatprep.mubr.bf16.mxu1 %v3080_v26 }
 0x2bd   : > { %4470 = vmatprep.mubr.bf16.mxu0 %v3080_v26  ;;  %v7571_v32 = vpop.f32.mrf.mxu1  ;;  %4348 = vmatmul.mubr.bf16.vlgmr.msra.gmra.mxu1 %v3079_v30 }
 0x2be   : > { %4398 = vmatpush1.bf16.msra.mxu1 %v6218_v29  ;;  %4429 = vmatprep.mubr.bf16.mxu1 %v7482_v55  ;;  %v6227_v55 = vld [vmem:[%s6997_s30 + $0x288] ss:$16 sps:$4 sm:$0xff]  }
 0x2bf   : > { %4471 = vmatmul.mubr.bf16.vlgmr.msra.gmra.mxu0 %v3079_v30  ;;  %v7575_v34 = vpop.f32.mrf.mxu1  ;;  %4399 = vmatprep.subr.bf16.mxu1 %v6223_v31 }
 0x2c1   : > { %v4271_v36 = vpop.f32.mrf.mxu1 }
 0x2c2   : > { %4400 = vmatpush1.bf16.msra.mxu1 %v6221_v33  ;;  %v3074_v36 = vld [vmem:[#allocation2 + $0x8] sm:$0xff] }
 0x2c3   : > { %v4272_v39 = vpop.f32.mrf.mxu1  ;;  %4401 = vmatprep.subr.bf16.mxu1 %v6226_v35 }
 0x2c6   : > { %4402 = vmatpush1.bf16.msra.mxu1 %v6224_v37 }
 0x2c7   : > { %4403 = vmatprep.subr.bf16.mxu1 %v6229_v40 }
 0x2ca   : > { %4404 = vmatpush1.bf16.msra.mxu1 %v6227_v55 }
 0x2cb   : > { %4405 = vmatprep.subr.bf16.mxu1 %v6232_v42 }
 0x2ce   : > { %4406 = vmatpush1.bf16.msra.mxu1 %v6230_v43 }
 0x2cf   : > { %4407 = vmatprep.subr.bf16.mxu1 %v6235_v19 }
 0x2d2   : > { %4408 = vmatpush1.bf16.msra.mxu1 %v6233_v44 }
 0x2d3   : > { %4409 = vmatprep.subr.bf16.mxu1 %v6238_v45 }
 0x2d6   : > { %4410 = vmatpush1.bf16.msra.mxu1 %v6236_v47 }
 0x2d7   : > { %4411 = vmatprep.subr.bf16.mxu1 %v6241_v28 }
 0x2da   : > { %4412 = vmatpush1.bf16.msra.mxu1 %v6239_v23 }
 0x2db   : > { %4413 = vmatprep.subr.bf16.mxu1 %v6244_v48 }
 0x2de   : > { %4414 = vmatpush2.bf16.msra.mxu1 %v6242_v49 }
 0x2df   : > { %4415 = vmatprep.subr.bf16.mxu1 %v6247_v50 }
 0x2e2   : > { %4416 = vmatpush2.bf16.msra.mxu1 %v6245_v51 }
 0x2e3   : > { %4417 = vmatprep.subr.bf16.mxu1 %v6250_v52 }
 0x2e6   : > { %4418 = vmatpush2.bf16.msra.mxu1 %v6248_v53 }
 0x2e7   : > { %4419 = vmatprep.subr.bf16.mxu1 %v6253_v56 }
 0x2ea   : > { %4420 = vmatpush2.bf16.msra.mxu1 %v6251_v58 }
 0x2eb   : > { %4421 = vmatprep.subr.bf16.mxu1 %v6256_v60 }
 0x2ee   : > { %4422 = vmatpush2.bf16.msra.mxu1 %v6254_v62 }
 0x2ef   : > { %4423 = vmatprep.subr.bf16.mxu1 %v6259_v0 }
 0x2f2   : > { %4424 = vmatpush2.bf16.msra.mxu1 %v6257_v2 }
 0x2f3   : > { %4425 = vmatprep.subr.bf16.mxu1 %v6262_v4 }
 0x2f6   : > { %4426 = vmatpush2.bf16.msra.mxu1 %v6260_v38 }
 0x2f7   : > { %4427 = vmatprep.subr.bf16.mxu1 %v6265_v6 }
 0x2fa   : > { %4428 = vmatpush2.bf16.msra.mxu1 %v6263_v27 }
 0x2fd   : > { %4430 = vmatmul.mubr.bf16.vlgmr.msra.gmra.mxu1 %v7485_v57 }
 0x2ff   : > { %v4308_v3 = vpop.f32.mrf.mxu0 }
 0x300   : > { %v4309_v13 = vadd.f32 %v4308_v3, %v7571_v32  ;;  %v3073_v32 = vld [vmem:[#allocation2 + $0x18] sm:$0xff] }
 0x301   : > { %v4310_v7 = vpop.f32.mrf.mxu0 }
 0x302   : > { %v4311_v17 = vadd.f32 %v4310_v7, %v7575_v34 }
 0x303   : > { %v4312_v8 = vpop.f32.mrf.mxu0 }
 0x305   : > { %v4313_v41 = vpop.f32.mrf.mxu0 }
 0x33f   : > { %v4390_v9 = vpop.f32.mrf.mxu0 }
 0x341   : > { %v4392_v10 = vpop.f32.mrf.mxu0 }
 0x343   : > { %v4394_v11 = vpop.f32.mrf.mxu0 }
 0x345   : > { %v4395_v12 = vpop.f32.mrf.mxu0 }
 0x37d   : > { %v4349_v61 = vpop.f32.mrf.mxu1 }
 0x37e   : > { %v4350_v15 = vadd.f32 %v4349_v61, %v4309_v13 }
 0x37f   : > { %v4472_v16 = vpop.f32.mrf.mxu0  ;;  %v4351_v20 = vpop.f32.mrf.mxu1 }
 0x380   : > { %v4479_v22 = vadd.f32 %v4350_v15, %v3071_v14  ;;  %v4352_v57 = vadd.f32 %v4351_v20, %v4311_v17 }
 0x381   : > { %v4474_v46 = vpop.f32.mrf.mxu0  ;;  %v4353_v5 = vpop.f32.mrf.mxu1 }
 0x382   : > { %4483 = vst [vmem:[#allocation2 + $0x10] sm:$0xff] %v4479_v22  ;;  %v4480_v24 = vadd.f32 %v4352_v57, %v3072_v1 }
 0x383   : > { %v4476_v25 = vpop.f32.mrf.mxu0  ;;  %v4354_v26 = vpop.f32.mrf.mxu1 }
 0x384   : > { %4484 = vst [vmem:[#allocation2] sm:$0xff] %v4480_v24 }
 0x385   : > { %v4477_v29 = vpop.f32.mrf.mxu0 }
 0x3bd   : > { %v4431_v30 = vpop.f32.mrf.mxu1 }
 0x3be   : > { %v4432_v31 = vadd.f32 %v4431_v30, %v4390_v9 }
 0x3bf   : > { %v4433_v33 = vpop.f32.mrf.mxu1 }
 0x3c0   : > { %v4473_v35 = vadd.f32 %v4472_v16, %v4432_v31  ;;  %v4434_v34 = vadd.f32 %v4433_v33, %v4392_v10 }
 0x3c1   : > { %v4435_v37 = vpop.f32.mrf.mxu1 }
 0x3c2   : > { %v4481_v39 = vadd.f32 %v4473_v35, %v3073_v32  ;;  %v4475_v40 = vadd.f32 %v4474_v46, %v4434_v34  ;;  %4490 = sbr.rel (%p5431_p11) target bundleno = 1513 (0x5e9), region = 79 }
 0x3c3   : > { %v4436_v55 = vpop.f32.mrf.mxu1 }
 0x3c4   : > { %4485 = vst [vmem:[#allocation2 + $0x18] sm:$0xff] %v4481_v39  ;;  %v4482_v42 = vadd.f32 %v4475_v40, %v3074_v36 }
 0x3c6   : > { %4486 = vst [vmem:[#allocation2 + $0x8] sm:$0xff] %v4482_v42 }
 0x3c7   : > { %v6266_v43 = vld [vmem:[%s7737_s5 + $0x78] sm:$0xff]   ;;  %v6270_v47 = vld [vmem:[%s7737_s5 + $0x70] sm:$0xff]   ;;  %v6274_v49 = vld [vmem:[%s7737_s5 + $0x68] sm:$0xff]  }
 0x3c8   : > { %v6267_v19 = vld [vmem:[%s7737_s5 + $0xf8] sm:$0xff]   ;;  %5469 = vmatprep.subr.bf16.mxu0 %v6266_v43  ;;  %v6271_v28 = vld [vmem:[%s7737_s5 + $0xf0] sm:$0xff]   ;;  %v6275_v50 = vld [vmem:[%s7737_s5 + $0xe8] sm:$0xff]  }
 0x3c9   : > { %v6268_v44 = vld [vmem:[%s7737_s5 + $0x38] sm:$0xff]   ;;  %5491 = vmatprep.subr.bf16.mxu1 %v6267_v19  ;;  %v6272_v23 = vld [vmem:[%s7737_s5 + $0x30] sm:$0xff]   ;;  %v6276_v51 = vld [vmem:[%s7737_s5 + $0x28] sm:$0xff]  }
 0x3ca   : > { %v6269_v45 = vld [vmem:[%s7737_s5 + $0xb8] sm:$0xff]   ;;  %5470 = vmatpush3.bf16.msra.mxu0 %v6268_v44  ;;  %v6273_v48 = vld [vmem:[%s7737_s5 + $0xb0] sm:$0xff]   ;;  %v6277_v52 = vld [vmem:[%s7737_s5 + $0xa8] sm:$0xff]  }
 0x3cb   : > { %5492 = vmatpush3.bf16.msra.mxu1 %v6269_v45  ;;  %5471 = vmatprep.subr.bf16.mxu0 %v6270_v47  ;;  %v6278_v53 = vld [vmem:[%s7737_s5 + $0x60] sm:$0xff]   ;;  %v6282_v62 = vld [vmem:[%s7737_s5 + $0x58] sm:$0xff]   ;;  %v6286_v38 = vld [vmem:[%s7737_s5 + $0x50] sm:$0xff]  }
 0x3cc   : > { %5493 = vmatprep.subr.bf16.mxu1 %v6271_v28  ;;  %v6279_v56 = vld [vmem:[%s7737_s5 + $0xe0] sm:$0xff]   ;;  %v6283_v0 = vld [vmem:[%s7737_s5 + $0xd8] sm:$0xff]   ;;  %v6287_v6 = vld [vmem:[%s7737_s5 + $0xd0] sm:$0xff]  }
 0x3cd   : > { %v6280_v58 = vld [vmem:[%s7737_s5 + $0x20] sm:$0xff]   ;;  %v6284_v2 = vld [vmem:[%s7737_s5 + $0x18] sm:$0xff]   ;;  %v6288_v27 = vld [vmem:[%s7737_s5 + $0x10] sm:$0xff]  }
 0x3ce   : > { %5472 = vmatpush3.bf16.msra.mxu0 %v6272_v23  ;;  %v6281_v60 = vld [vmem:[%s7737_s5 + $0xa0] sm:$0xff]   ;;  %v6285_v4 = vld [vmem:[%s7737_s5 + $0x98] sm:$0xff]   ;;  %v6289_v3 = vld [vmem:[%s7737_s5 + $0x90] sm:$0xff]  }
 0x3cf   : > { %5494 = vmatpush3.bf16.msra.mxu1 %v6273_v48  ;;  %5473 = vmatprep.subr.bf16.mxu0 %v6274_v49  ;;  %v6290_v7 = vld [vmem:[%s7737_s5 + $0x48] sm:$0xff]   ;;  %v6294_v10 = vld [vmem:[%s7737_s5 + $0x40] sm:$0xff]   ;;  %v4491_v1 = vld [vmem:[#allocation2 + $0x10] sm:$0xff] }
 0x3d0   : > { %5495 = vmatprep.subr.bf16.mxu1 %v6275_v50  ;;  %v6291_v8 = vld [vmem:[%s7737_s5 + $0xc8] sm:$0xff]   ;;  %v6295_v11 = vld [vmem:[%s7737_s5 + $0xc0] sm:$0xff]   ;;  %v4493_v22 = vld [vmem:[#allocation2 + $0x18] sm:$0xff] }
 0x3d1   : > { %v6292_v41 = vld [vmem:[%s7737_s5 + $0x8] sm:$0xff]   ;;  %v6296_v12 = vld [vmem:[%s7737_s5] sm:$0xff]  }
 0x3d2   : > { %5474 = vmatpush3.bf16.msra.mxu0 %v6276_v51  ;;  %v6293_v9 = vld [vmem:[%s7737_s5 + $0x88] sm:$0xff]   ;;  %v6297_v13 = vld [vmem:[%s7737_s5 + $0x80] sm:$0xff]  }
 0x3d3   : > { %5496 = vmatpush3.bf16.msra.mxu1 %v6277_v52  ;;  %5475 = vmatprep.subr.bf16.mxu0 %v6278_v53  ;;  %v4492_v14 = vld [vmem:[#allocation2] sm:$0xff]  ;;  %v4494_v17 = vld [vmem:[#allocation2 + $0x8] sm:$0xff] }
 0x3d4   : > { %5497 = vmatprep.subr.bf16.mxu1 %v6279_v56  ;;  %v4495_v61 = vld [vmem:[%s7736_s4] sm:$0xf] }
 0x3d5   : > { %v4504_v15 = vrot.slane %v4495_v61, %v1211_v63  ;;  %v4512_v16 = vrot.slane %v4495_v61, %v1219_v21  ;;  %v4500_v20 = vrot.slane %v4495_v61, %v1207_v59  ;;  %v4508_v57 = vrot.slane %v4495_v61, %v1215_v18  ;;  %v5432_v54 = vld [vmem:[%s7738_s6] ss:$0 sm:$0xff] }
 0x3d6   : > { %5476 = vmatpush3.bf16.msra.mxu0 %v6280_v58 }
 0x3d7   : > { %5498 = vmatpush3.bf16.msra.mxu1 %v6281_v60  ;;  %5477 = vmatprep.subr.bf16.mxu0 %v6282_v62  ;;  %v4518_v46 = vadd.f32 %v4504_v15, %v4492_v14  ;;  %v4520_v5 = vadd.f32 %v4512_v16, %v4494_v17  ;;  %v4517_v24 = vadd.f32 %v4500_v20, %v4491_v1 }
 0x3d8   : > { %5499 = vmatprep.subr.bf16.mxu1 %v6283_v0  ;;  %v4519_v25 = vadd.f32 %v4508_v57, %v4493_v22 }
 0x3d9   : > { %v4522_v26 = vmax.f32 %v4518_v46, 0.0  ;;  %v4524_v29 = vmax.f32 %v4520_v5, 0.0  ;;  %v4521_v30 = vmax.f32 %v4517_v24, 0.0 }
 0x3da   : > { %5478 = vmatpush3.bf16.msra.mxu0 %v6284_v2  ;;  %v4523_v31 = vmax.f32 %v4519_v25, 0.0 }
 0x3db   : > { %5500 = vmatpush3.bf16.msra.mxu1 %v6285_v4  ;;  %5479 = vmatprep.subr.bf16.mxu0 %v6286_v38  ;;  %v4526_v63 = vpack.c.bf16 %v4522_v26, %v4522_v26  ;;  %v4528_v32 = vpack.c.bf16 %v4524_v29, %v4524_v29  ;;  %v4525_v33 = vpack.c.bf16 %v4521_v30, %v4521_v30 }
 0x3dc   : > { %5501 = vmatprep.subr.bf16.mxu1 %v6287_v6  ;;  %v4527_v21 = vpack.c.bf16 %v4523_v31, %v4523_v31 }
 0x3dd   : > { %4824 = vmatprep.mubr.bf16.mxu0 %v4526_v63  ;;  %4864 = vmatprep.mubr.bf16.mxu1 %v4528_v32 }
 0x3de   : > { %5480 = vmatpush3.bf16.msra.mxu0 %v6288_v27 }
 0x3df   : > { %5502 = vmatpush3.bf16.msra.mxu1 %v6289_v3  ;;  %5481 = vmatprep.subr.bf16.mxu0 %v6290_v7 }
 0x3e0   : > { %5503 = vmatprep.subr.bf16.mxu1 %v6291_v8 }
 0x3e2   : > { %5482 = vmatpush3.bf16.msra.mxu0 %v6292_v41 }
 0x3e3   : > { %5504 = vmatpush3.bf16.msra.mxu1 %v6293_v9  ;;  %5483 = vmatprep.subr.bf16.mxu0 %v6294_v10 }
 0x3e4   : > { %5505 = vmatprep.subr.bf16.mxu1 %v6295_v11 }
 0x3e6   : > { %5484 = vmatpush3.bf16.msra.mxu0 %v6296_v12 }
 0x3e7   : > { %5506 = vmatpush3.bf16.msra.mxu1 %v6297_v13 }
 0x3e9   : > { %4825 = vmatmul.mubr.bf16.vlgmr.msra.gmra.mxu0 %v4525_v33 }
 0x3ea   : > { %4865 = vmatmul.mubr.bf16.vlgmr.msra.gmra.mxu1 %v4527_v21 }
 0x4a9   : > { %v5485_v59 = vpop.f32.mrf.mxu0 }
 0x4aa   : > { %v5507_v35 = vpop.f32.mrf.mxu1 }
 0x4ab   : > { %v5486_v18 = vpop.f32.mrf.mxu0 }
 0x4ac   : > { %v5508_v34 = vpop.f32.mrf.mxu1  ;;  %v5487_v36 = vadd.f32 %v5486_v18, %v5485_v59 }
 0x4ad   : > { %v5488_v37 = vpop.f32.mrf.mxu0  ;;  %v5509_v55 = vadd.f32 %v5508_v34, %v5507_v35 }
 0x4ae   : > { %v5510_v39 = vpop.f32.mrf.mxu1  ;;  %v4827_v40 = vadd.f32 %v5487_v36, %v5432_v54 }
 0x4af   : > { %v5489_v42 = vpop.f32.mrf.mxu0 }
 0x4b0   : > { %v5511_v43 = vpop.f32.mrf.mxu1  ;;  %v4867_v19 = vadd.f32 %v5509_v55, %v4827_v40 }
 0x4b2   : > { %4872 = vmax.xlane.f32.xlu0 %v4867_v19 }
 0x53b   : > { %v4873_v44 = vpop.xlane.xlu0 %4872 }
 0x53c   : > { %v4874_v45 = vsub.f32 %v4867_v19, %v4873_v44 }
 0x53e   : > { %v4875_v47 = vmul.f32 1.442695, %v4874_v45 }
 0x540   : > { %6298 = vpow2.f32 %v4875_v47 }
 0x54d   : > { %v6299_v28 = vpop.eup %6298 }
 0x54e   : > { %4877 = vadd.xlane.f32.xlu0 %v6299_v28 }
 0x5d7   : > { %v4878_v23 = vpop.xlane.xlu0 %4877 }
 0x5d8   : > { %6300 = vrcp.f32 %v4878_v23 }
 0x5e5   : > { %v6301_v48 = vpop.eup %6300 }
 0x5e6   : > { %v4880_v49 = vmul.f32 %v6301_v48, %v6299_v28 }
 0x5e8   : > { %4881 = vst [vmem:[%s7739_s7] sm:$0xff] %v4880_v49 }
 0x5e9 PF: > { %p14_p12 = scmp.ge.s32.totalorder %s6386_s28, 4   ;;  %s7740_s24 = smov %s6320_s25 }
 0x5ea   : > { %s7741_s25 = smov %s6395_s8  ;;  %s7742_s26 = smov %s6386_s28 }
 0x5eb   :  { %16 = sbr.rel (!%p14_p12) target bundleno = 2 (0x2), region = 116 }

</bundles_post_ra>
